<compile_context>
chip_gen: v7x
topology: tpu7x:2x2x1
jax: 0.10.0
libtpu: 0.0.40
codegen_flags: <defaults>
</compile_context>

<pallas_src>
import math
import numpy as np
import jax
import jax.numpy as jnp
from jax import lax
from jax.experimental import pallas as pl
from jax.experimental.pallas import tpu as pltpu

# ----------------- small synthetic SAM configuration -----------------
C = 32                    # transformer_dim / prompt embed_dim
HEADS = 2                 # attention heads (SAM uses 8; scaled with C)
MLP_DIM = 64              # two-way transformer mlp_dim
H = W = 8                 # image-embedding spatial size
HW = H * W
IMG_SIZE = (128, 128)     # prompt-encoder input_image_size (H, W)
NUM_MASK_TOKENS = 4       # num_multimask_outputs(3) + 1
T = 1 + NUM_MASK_TOKENS + 2   # iou token + mask tokens + 2 box corners = 7
C4 = C // 4
C8 = C // 8
EPS_LN = 1e-5             # nn.LayerNorm default
EPS_LN2D = 1e-6           # SAM LayerNorm2d


# ----------------- shared small math -----------------
def mm(a, b):
    return jnp.dot(a, b, preferred_element_type=jnp.float32)


def mm_bt(a, b):
    # a @ b.T without materializing a transpose (reference path only)
    return lax.dot_general(a, b, (((1,), (1,)), ((), ())),
                           preferred_element_type=jnp.float32)


def layer_norm(x, g, b, eps):
    mu = jnp.mean(x, axis=-1, keepdims=True)
    var = jnp.mean(jnp.square(x - mu), axis=-1, keepdims=True)
    return (x - mu) * lax.rsqrt(var + eps) * g + b


def gelu(x):
    # TODO(synk): PyTorch nn.GELU is exact (erf); tanh approximation used here.
    return jax.nn.gelu(x, approximate=True)


# =====================================================================
# Reference math (mirrors the original PyTorch module structure)
# =====================================================================
def attention(q, k, v, p, num_heads):
    qp = mm(q, p["wq"]) + p["bq"]
    kp = mm(k, p["wk"]) + p["bk"]
    vp = mm(v, p["wv"]) + p["bv"]
    ci = p["wq"].shape[1]
    dh = ci // num_heads
    scale = 1.0 / math.sqrt(dh)
    outs = []
    for h in range(num_heads):
        qh = qp[:, h * dh:(h + 1) * dh]
        kh = kp[:, h * dh:(h + 1) * dh]
        vh = vp[:, h * dh:(h + 1) * dh]
        a = mm_bt(qh, kh) * scale
        a = a - jnp.max(a, axis=-1, keepdims=True)
        a = jnp.exp(a)
        a = a / jnp.sum(a, axis=-1, keepdims=True)
        outs.append(mm(a, vh))
    o = jnp.concatenate(outs, axis=-1)
    return mm(o, p["wo"]) + p["bo"]


def two_way_block(queries, keys, query_pe, key_pe, p, skip_first_layer_pe):
    if skip_first_layer_pe:
        queries = attention(queries, queries, queries, p["self_attn"], HEADS)
    else:
        q = queries + query_pe
        queries = queries + attention(q, q, queries, p["self_attn"], HEADS)
    queries = layer_norm(queries, p["norm1"]["g"], p["norm1"]["b"], EPS_LN)

    q = queries + query_pe
    k = keys + key_pe
    queries = queries + attention(q, k, keys, p["cross_t2i"], HEADS)
    queries = layer_norm(queries, p["norm2"]["g"], p["norm2"]["b"], EPS_LN)

    m = p["mlp"]
    mlp_out = mm(jnp.maximum(mm(queries, m["w1"]) + m["b1"], 0.0), m["w2"]) + m["b2"]
    queries = queries + mlp_out
    queries = layer_norm(queries, p["norm3"]["g"], p["norm3"]["b"], EPS_LN)

    q = queries + query_pe
    k = keys + key_pe
    keys = keys + attention(k, q, queries, p["cross_i2t"], HEADS)
    keys = layer_norm(keys, p["norm4"]["g"], p["norm4"]["b"], EPS_LN)
    return queries, keys


def sam_decode_math(tokens, img, image_pe, no_mask, p):
    """Reference mask-decoder math for one batch element (unfused)."""
    src = img + no_mask
    queries, keys = tokens, src
    for i, blk in enumerate(p["blocks"]):
        queries, keys = two_way_block(queries, keys, tokens, image_pe, blk,
                                      skip_first_layer_pe=(i == 0))
    q = queries + tokens
    k = keys + image_pe
    queries = queries + attention(q, k, keys, p["final_attn"], HEADS)
    queries = layer_norm(queries, p["final_norm"]["g"], p["final_norm"]["b"], EPS_LN)

    t0 = queries[1:2, :]
    hm = p["hyper_mlp0"]
    hh = jnp.maximum(mm(t0, hm["w0"]) + hm["b0"], 0.0)
    hh = jnp.maximum(mm(hh, hm["w1"]) + hm["b1"], 0.0)
    hyper0 = mm(hh, hm["w2"]) + hm["b2"]

    up = p["upscale"]
    cols = []
    for d1 in range(4):
        y = mm(keys, up["w1"][d1]) + up["b1"]
        y = layer_norm(y, up["ln_g"], up["ln_b"], EPS_LN2D)
        y = gelu(y)
        for d2 in range(4):
            z = mm(y, up["w2"][d2]) + up["b2"]
            z = gelu(z)
            cols.append(mm_bt(z, hyper0))
    return jnp.concatenate(cols, axis=-1)    # (HW, 16)


# =====================================================================
# Host-side weight fusion & packing into a single (R, 128) slab
# =====================================================================
def _pack_to_slab(entries):
    offsets = {}
    row = 0
    for name, arr in entries:
        r, c = arr.shape
        assert c <= 128, name
        offsets[name] = (row, r, c)
        row += ((r + 7) // 8) * 8           # 8-sublane alignment per entry
    slab = np.zeros((max(8, row), 128), np.float32)
    for name, arr in entries:
        off, r, c = offsets[name]
        slab[off:off + r, :c] = arr
    return jnp.asarray(slab), offsets


def pack_decoder(decoder):
    entries = []

    def add(name, arr):
        arr = np.asarray(arr, np.float32)
        if arr.ndim == 1:
            arr = arr[None, :]
        entries.append((name, arr))

    def add_attn(prefix, a):
        add(prefix + "/wqkv", np.concatenate([np.asarray(a["wq"]),
                                              np.asarray(a["wk"]),
                                              np.asarray(a["wv"])], axis=1))
        add(prefix + "/bqkv", np.concatenate([np.asarray(a["bq"]),
                                              np.asarray(a["bk"]),
                                              np.asarray(a["bv"])], axis=1))
        add(prefix + "/wo", a["wo"])
        add(prefix + "/bo", a["bo"])

    def add_norm(prefix, n):
        add(prefix, np.concatenate([np.asarray(n["g"]), np.asarray(n["b"])], axis=0))

    for bi, blk in enumerate(decoder["blocks"]):
        p = "b%d" % bi
        add_attn(p + "/self", blk["self_attn"]); add_norm(p + "/n1", blk["norm1"])
        add_attn(p + "/t2i", blk["cross_t2i"]);  add_norm(p + "/n2", blk["norm2"])
        add(p + "/mlp_w1", blk["mlp"]["w1"]); add(p + "/mlp_b1", blk["mlp"]["b1"])
        add(p + "/mlp_w2", blk["mlp"]["w2"]); add(p + "/mlp_b2", blk["mlp"]["b2"])
        add_norm(p + "/n3", blk["norm3"])
        add_attn(p + "/i2t", blk["cross_i2t"]); add_norm(p + "/n4", blk["norm4"])

    add_attn("final", decoder["final_attn"])
    add_norm("final/n", decoder["final_norm"])

    hm = decoder["hyper_mlp0"]
    add("hyp/w0", hm["w0"]); add("hyp/b0", hm["b0"])
    add("hyp/w1", hm["w1"]); add("hyp/b1", hm["b1"])
    # last hyper layer tiled 16x along lanes -> produces hyper0 replicated per offset
    add("hyp/w2t", np.tile(np.asarray(hm["w2"]), (1, 16)))
    add("hyp/b2t", np.tile(np.asarray(hm["b2"]), (1, 16)))

    up = decoder["upscale"]
    w1 = np.asarray(up["w1"])                                    # (4, C, C4)
    add("up/w1s", np.concatenate([w1[d] for d in range(4)], axis=1))   # (C, 4*C4)
    add("up/b1s", np.tile(np.asarray(up["b1"]), (1, 4)))
    add("up/lngs", np.tile(np.asarray(up["ln_g"]), (1, 4)))
    add("up/lnbs", np.tile(np.asarray(up["ln_b"]), (1, 4)))
    w2 = np.asarray(up["w2"])                                    # (4, C4, C8)
    w2s = np.concatenate([w2[d] for d in range(4)], axis=1)      # (C4, 4*C8)
    w2bd = np.zeros((4 * C4, 16 * C8), np.float32)               # block-diag (32, 64)
    for d1 in range(4):
        w2bd[d1 * C4:(d1 + 1) * C4, d1 * 4 * C8:(d1 + 1) * 4 * C8] = w2s
    add("up/w2bd", w2bd)
    add("up/b2s", np.tile(np.asarray(up["b2"]), (1, 16)))

    # constants: grouped-mean matrix for LayerNorm2d and group-sum matrix
    Gm = np.zeros((4 * C4, 4 * C4), np.float32)
    for g in range(4):
        Gm[g * C4:(g + 1) * C4, g * C4:(g + 1) * C4] = 1.0 / C4
    add("const/Gm", Gm)
    S = np.zeros((16 * C8, 16), np.float32)
    for k in range(16):
        S[k * C8:(k + 1) * C8, k] = 1.0
    add("const/S", S)

    return _pack_to_slab(entries)


# =====================================================================
# Fused in-kernel math
# =====================================================================
def _ln(x, gb, eps):
    mu = jnp.mean(x, axis=-1, keepdims=True)
    var = jnp.mean(jnp.square(x - mu), axis=-1, keepdims=True)
    return (x - mu) * lax.rsqrt(var + eps) * gb[0:1, :] + gb[1:2, :]


def _attn_fused(get, name, q_in, k_in, v_in, ci, fuse):
    """fuse in {'qkv','qk','none'} depending on which inputs coincide."""
    wn, bn = name + "/wqkv", name + "/bqkv"
    if fuse == "qkv":
        qkv = mm(q_in, get(wn)) + get(bn)
        qp, kp, vp = qkv[:, 0:ci], qkv[:, ci:2 * ci], qkv[:, 2 * ci:3 * ci]
    elif fuse == "qk":
        qk = mm(q_in, get(wn, 0, 2 * ci)) + get(bn, 0, 2 * ci)
        qp, kp = qk[:, 0:ci], qk[:, ci:2 * ci]
        vp = mm(v_in, get(wn, 2 * ci, 3 * ci)) + get(bn, 2 * ci, 3 * ci)
    else:
        qp = mm(q_in, get(wn, 0, ci)) + get(bn, 0, ci)
        kp = mm(k_in, get(wn, ci, 2 * ci)) + get(bn, ci, 2 * ci)
        vp = mm(v_in, get(wn, 2 * ci, 3 * ci)) + get(bn, 2 * ci, 3 * ci)

    dh = ci // HEADS
    qh = jnp.stack([qp[:, h * dh:(h + 1) * dh] for h in range(HEADS)], axis=0)
    kh = jnp.stack([kp[:, h * dh:(h + 1) * dh] for h in range(HEADS)], axis=0)
    vh = jnp.stack([vp[:, h * dh:(h + 1) * dh] for h in range(HEADS)], axis=0)

    a = jnp.einsum("hqd,hkd->hqk", qh, kh,
                   preferred_element_type=jnp.float32) * (1.0 / math.sqrt(dh))
    a = jnp.exp(a - jnp.max(a, axis=-1, keepdims=True))
    a = a * pl.reciprocal(jnp.sum(a, axis=-1, keepdims=True), approx=True)
    o = jnp.einsum("hqk,hkd->hqd", a, vh, preferred_element_type=jnp.float32)
    o = jnp.concatenate([o[h] for h in range(HEADS)], axis=-1)
    return mm(o, get(name + "/wo")) + get(name + "/bo")


def _fused_block(get, p, queries, keys, qpe, kpe, skip_pe):
    if skip_pe:
        queries = _attn_fused(get, p + "/self", queries, queries, queries, C, "qkv")
    else:
        q = queries + qpe
        queries = queries + _attn_fused(get, p + "/self", q, q, queries, C, "qk")
    queries = _ln(queries, get(p + "/n1"), EPS_LN)

    q = queries + qpe
    k = keys + kpe
    queries = queries + _attn_fused(get, p + "/t2i", q, k, keys, C // 2, "none")
    queries = _ln(queries, get(p + "/n2"), EPS_LN)

    hid = jnp.maximum(mm(queries, get(p + "/mlp_w1")) + get(p + "/mlp_b1"), 0.0)
    queries = queries + mm(hid, get(p + "/mlp_w2")) + get(p + "/mlp_b2")
    queries = _ln(queries, get(p + "/n3"), EPS_LN)

    q = queries + qpe
    k = keys + kpe
    keys = keys + _attn_fused(get, p + "/i2t", k, q, queries, C // 2, "none")
    keys = _ln(keys, get(p + "/n4"), EPS_LN)
    return queries, keys


def sam_decode_fused(get, tok, src, img_pe, n_blocks):
    queries, keys = tok, src
    for bi in range(n_blocks):
        queries, keys = _fused_block(get, "b%d" % bi, queries, keys, tok, img_pe,
                                     skip_pe=(bi == 0))
    q = queries + tok
    k = keys + img_pe
    queries = queries + _attn_fused(get, "final", q, k, keys, C // 2, "none")
    queries = _ln(queries, get("final/n"), EPS_LN)

    # hypernetwork MLP for mask token 0; last layer pre-tiled 16x -> (1, 64)
    t0 = queries[1:2, :]
    hh = jnp.maximum(mm(t0, get("hyp/w0")) + get("hyp/b0"), 0.0)
    hh = jnp.maximum(mm(hh, get("hyp/w1")) + get("hyp/b1"), 0.0)
    h_tiled = mm(hh, get("hyp/w2t")) + get("hyp/b2t")            # (1, 64)

    # fused output upscaling: all 4 first-deconv offsets in one matmul,
    # grouped LayerNorm2d via constant group-mean matmuls, block-diagonal
    # second deconv (all 16 offsets), then hyper0-weighted group sums.
    Y = mm(keys, get("up/w1s")) + get("up/b1s")                  # (HW, 32)
    Gm = get("const/Gm")
    mu = mm(Y, Gm)
    var = mm(jnp.square(Y - mu), Gm)
    Y = (Y - mu) * lax.rsqrt(var + EPS_LN2D) * get("up/lngs") + get("up/lnbs")
    Y = gelu(Y)
    Z = gelu(mm(Y, get("up/w2bd")) + get("up/b2s"))              # (HW, 64)
    return mm(Z * h_tiled, get("const/S"))                       # (HW, 16)


# ----------------- Pallas kernel wrapper -----------------
def _build_pallas_decoder(offsets, n_blocks, slab_rows, B):
    def kernel(tokens_ref, src_ref, pe_ref, slab_ref, out_ref):
        def get(name, lo=0, hi=None):
            off, r, c = offsets[name]
            return slab_ref[off:off + r, lo:(c if hi is None else hi)]
        out_ref[0, :, :] = sam_decode_fused(get, tokens_ref[0], src_ref[...],
                                            pe_ref[...], n_blocks)

    return pl.pallas_call(
        kernel,
        out_shape=jax.ShapeDtypeStruct((B, HW, 16), jnp.float32),
        grid=(B,),
        in_specs=[pl.BlockSpec((1, T, C), lambda b: (b, 0, 0)),
                  pl.BlockSpec((HW, C), lambda b: (0, 0)),
                  pl.BlockSpec((HW, C), lambda b: (0, 0)),
                  pl.BlockSpec((slab_rows, 128), lambda b: (0, 0))],
        out_specs=pl.BlockSpec((1, HW, 16), lambda b: (b, 0, 0)),
        compiler_params=pltpu.CompilerParams(
            dimension_semantics=("parallel",)),
    )


# ----------------- prompt-encoder glue (tiny; plain JAX) -----------------
def pe_encoding(coords, gauss):
    coords = 2.0 * coords - 1.0
    coords = coords @ gauss
    coords = 2.0 * np.pi * coords
    return jnp.concatenate([jnp.sin(coords), jnp.cos(coords)], axis=-1)


def embed_boxes(boxes, prompt):
    boxes = boxes + 0.5
    coords = boxes.reshape(-1, 2, 2)
    coords = coords / jnp.array([IMG_SIZE[1], IMG_SIZE[0]], jnp.float32)
    corner = pe_encoding(coords, prompt["gauss"])            # (B, 2, C)
    corner = corner.at[:, 0, :].add(prompt["point_embed_2"])
    corner = corner.at[:, 1, :].add(prompt["point_embed_3"])
    return corner


def dense_positional_encoding(prompt):
    y = (jnp.arange(H, dtype=jnp.float32) + 0.5) / H
    x = (jnp.arange(W, dtype=jnp.float32) + 0.5) / W
    xg = jnp.broadcast_to(x[None, :], (H, W))
    yg = jnp.broadcast_to(y[:, None], (H, W))
    coords = jnp.stack([xg, yg], axis=-1)
    return pe_encoding(coords, prompt["gauss"]).reshape(HW, C)


def prepare_tokens(boxes, prompt):
    B = boxes.shape[0]
    sparse = embed_boxes(boxes, prompt)                      # (B, 2, C)
    output_tokens = jnp.concatenate([prompt["iou_token"], prompt["mask_tokens"]], 0)
    return jnp.concatenate(
        [jnp.broadcast_to(output_tokens[None], (B, 5, C)), sparse], axis=1)


def pixel_shuffle(blocked, B):
    # (B, HW, 16) -> (B, 4H, 4W); rows = 4i + 2*di + di2, cols = 4j + 2*dj + dj2
    m = blocked.reshape(B, H, W, 2, 2, 2, 2)
    m = m.transpose(0, 1, 3, 5, 2, 4, 6)
    return m.reshape(B, 4 * H, 4 * W)


def make_sam_decoder(prompt, decoder):
    """Packs weights once and returns a jit-cached forward(image_embedding, boxes)."""
    slab, offsets = pack_decoder(decoder)
    n_blocks = len(decoder["blocks"])
    slab_rows = slab.shape[0]

    @jax.jit
    def forward(image_embedding, boxes):
        B = boxes.shape[0]
        tokens = prepare_tokens(boxes, prompt).astype(jnp.float32)
        dense_pe = dense_positional_encoding(prompt).astype(jnp.float32)
        img_flat = image_embedding[0].reshape(C, HW).T.astype(jnp.float32)
        src = img_flat + prompt["no_mask"].astype(jnp.float32)   # dense (no-mask) prompt
        run = _build_pallas_decoder(offsets, n_blocks, slab_rows, B)
        blocked = run(tokens, src, dense_pe, slab)               # Pallas kernel
        return pixel_shuffle(blocked, B)                         # == masks[:, 0, :, :]

    return forward


def sam_decoder_reference(image_embedding, boxes, prompt, decoder):
    B = boxes.shape[0]
    tokens = prepare_tokens(boxes, prompt)
    dense_pe = dense_positional_encoding(prompt)
    img_flat = image_embedding[0].reshape(C, HW).T
    blocked = jnp.stack([
        sam_decode_math(tokens[b], img_flat, dense_pe, prompt["no_mask"], decoder)
        for b in range(B)])
    return pixel_shuffle(blocked, B)


# ----------------- deterministic synthetic parameters -----------------
def init_params(seed=0):
    keys = iter(jax.random.split(jax.random.PRNGKey(seed), 512))
    nrm = lambda shape, s=1.0: s * jax.random.normal(next(keys), shape, jnp.float32)

    def linear(din, dout, s=0.1):
        return nrm((din, dout), s), nrm((1, dout), 0.01)

    def attn_params(dim, internal):
        wq, bq = linear(dim, internal)
        wk, bk = linear(dim, internal)
        wv, bv = linear(dim, internal)
        wo, bo = linear(internal, dim)
        return dict(wq=wq, bq=bq, wk=wk, bk=bk, wv=wv, bv=bv, wo=wo, bo=bo)

    def norm_params(dim):
        return dict(g=jnp.ones((1, dim), jnp.float32),
                    b=jnp.zeros((1, dim), jnp.float32))

    def block_params():
        w1, b1 = linear(C, MLP_DIM)
        w2, b2 = linear(MLP_DIM, C)
        return dict(self_attn=attn_params(C, C), norm1=norm_params(C),
                    cross_t2i=attn_params(C, C // 2), norm2=norm_params(C),
                    mlp=dict(w1=w1, b1=b1, w2=w2, b2=b2), norm3=norm_params(C),
                    cross_i2t=attn_params(C, C // 2), norm4=norm_params(C))

    hw0, hb0 = linear(C, C)
    hw1, hb1 = linear(C, C)
    hw2, hb2 = linear(C, C8)

    decoder = dict(
        blocks=[block_params(), block_params()],
        final_attn=attn_params(C, C // 2),
        final_norm=norm_params(C),
        hyper_mlp0=dict(w0=hw0, b0=hb0, w1=hw1, b1=hb1, w2=hw2, b2=hb2),
        upscale=dict(
            # ConvTranspose2d(k=2,s=2) weights stored per spatial offset:
            # (4 offsets, Cin, Cout)
            w1=nrm((4, C, C4), 0.1), b1=nrm((1, C4), 0.01),
            ln_g=jnp.ones((1, C4), jnp.float32), ln_b=jnp.zeros((1, C4), jnp.float32),
            w2=nrm((4, C4, C8), 0.1), b2=nrm((1, C8), 0.01)),
    )
    prompt = dict(
        gauss=nrm((2, C // 2), 1.0),
        point_embed_2=nrm((C,), 1.0),
        point_embed_3=nrm((C,), 1.0),
        no_mask=nrm((1, C), 1.0),
        iou_token=nrm((1, C), 1.0),
        mask_tokens=nrm((NUM_MASK_TOKENS, C), 1.0),
    )
    return prompt, decoder


if __name__ == "__main__":
    prompt, decoder = init_params(0)
    key = jax.random.PRNGKey(0)
    k1, k2 = jax.random.split(key)
    image_embedding = jax.random.normal(k1, (1, C, H, W), jnp.float32)   # NCHW
    boxes = jax.random.uniform(k2, (2, 4), jnp.float32, 0.0, float(IMG_SIZE[0]))

    forward = make_sam_decoder(prompt, decoder)
    out = jax.block_until_ready(forward(image_embedding, boxes))
    ref = jax.block_until_ready(sam_decoder_reference(image_embedding, boxes,
                                                      prompt, decoder))
    assert out.shape == (2, 4 * H, 4 * W) and out.dtype == jnp.float32
    np.testing.assert_allclose(np.asarray(out), np.asarray(ref),
                               rtol=5e-2, atol=5e-2)
    print("KERNEL_OK")
</pallas_src>

<mosaic_0001>
module attributes {stable_mosaic.version = 11 : i64} {
  func.func @kernel(%arg0: i32, %arg1: memref<1x7x32xf32, #tpu.memory_space<vmem>>, %arg2: memref<64x32xf32, #tpu.memory_space<vmem>>, %arg3: memref<64x32xf32, #tpu.memory_space<vmem>>, %arg4: memref<1088x128xf32, #tpu.memory_space<vmem>>, %arg5: memref<1x64x16xf32, #tpu.memory_space<vmem>>) attributes {dimension_semantics = [#tpu.dimension_semantics<parallel>], iteration_bounds = array<i64: 2>, scalar_prefetch = 0 : i64, scratch_operands = 0 : i64, tpu.core_type = #tpu.core_type<tc>, window_params = [{transform_indices = @transform_0, window_bounds = array<i64: 1, 7, 32>}, {pipeline_mode = #tpu.pipeline_mode<synchronous>, transform_indices = @transform_1, window_bounds = array<i64: 64, 32>}, {pipeline_mode = #tpu.pipeline_mode<synchronous>, transform_indices = @transform_2, window_bounds = array<i64: 64, 32>}, {pipeline_mode = #tpu.pipeline_mode<synchronous>, transform_indices = @transform_3, window_bounds = array<i64: 1088, 128>}, {transform_indices = @transform_4, window_bounds = array<i64: 1, 64, 16>}]} {
    %c0 = arith.constant 0 : index
    %c0_0 = arith.constant 0 : index
    %c0_1 = arith.constant 0 : index
    %0 = vector.load %arg1[%c0, %c0_0, %c0_1] : memref<1x7x32xf32, #tpu.memory_space<vmem>>, vector<1x7x32xf32>
    %1 = vector.shape_cast %0 : vector<1x7x32xf32> to vector<7x32xf32>
    %c0_2 = arith.constant 0 : index
    %c0_3 = arith.constant 0 : index
    %2 = vector.load %arg2[%c0_2, %c0_3] : memref<64x32xf32, #tpu.memory_space<vmem>>, vector<64x32xf32>
    %c0_4 = arith.constant 0 : index
    %c0_5 = arith.constant 0 : index
    %3 = vector.load %arg3[%c0_4, %c0_5] : memref<64x32xf32, #tpu.memory_space<vmem>>, vector<64x32xf32>
    %c0_6 = arith.constant 0 : index
    %c0_7 = arith.constant 0 : index
    %4 = vector.load %arg4[%c0_6, %c0_7] : memref<1088x128xf32, #tpu.memory_space<vmem>>, vector<32x96xf32>
    %cst = arith.constant dense<0.000000e+00> : vector<7x96xf32>
    %5 = tpu.matmul %1, %4, %cst {dimension_numbers = #tpu.dot_dimension_numbers<[1], [0], [0], [1], [0, 0, 1, 1], [], []>} : vector<7x32xf32>, vector<32x96xf32>, vector<7x96xf32> -> vector<7x96xf32>
    %c32 = arith.constant 32 : index
    %c0_8 = arith.constant 0 : index
    %6 = vector.load %arg4[%c32, %c0_8] : memref<1088x128xf32, #tpu.memory_space<vmem>>, vector<1x96xf32>
    %7 = vector.broadcast %6 : vector<1x96xf32> to vector<7x96xf32>
    %8 = arith.addf %5, %7 : vector<7x96xf32>
    %9 = vector.extract_strided_slice %8 {offsets = [0, 0], sizes = [7, 32], strides = [1, 1]} : vector<7x96xf32> to vector<7x32xf32>
    %10 = vector.extract_strided_slice %8 {offsets = [0, 32], sizes = [7, 32], strides = [1, 1]} : vector<7x96xf32> to vector<7x32xf32>
    %11 = vector.extract_strided_slice %8 {offsets = [0, 64], sizes = [7, 32], strides = [1, 1]} : vector<7x96xf32> to vector<7x32xf32>
    %12 = vector.extract_strided_slice %9 {offsets = [0, 0], sizes = [7, 16], strides = [1, 1]} : vector<7x32xf32> to vector<7x16xf32>
    %13 = vector.extract_strided_slice %9 {offsets = [0, 16], sizes = [7, 16], strides = [1, 1]} : vector<7x32xf32> to vector<7x16xf32>
    %14 = vector.shape_cast %12 : vector<7x16xf32> to vector<1x7x16xf32>
    %15 = vector.shape_cast %13 : vector<7x16xf32> to vector<1x7x16xf32>
    %16 = tpu.concatenate %14, %15 in 0 : vector<1x7x16xf32>, vector<1x7x16xf32> -> vector<2x7x16xf32>
    %17 = vector.extract_strided_slice %10 {offsets = [0, 0], sizes = [7, 16], strides = [1, 1]} : vector<7x32xf32> to vector<7x16xf32>
    %18 = vector.extract_strided_slice %10 {offsets = [0, 16], sizes = [7, 16], strides = [1, 1]} : vector<7x32xf32> to vector<7x16xf32>
    %19 = vector.shape_cast %17 : vector<7x16xf32> to vector<1x7x16xf32>
    %20 = vector.shape_cast %18 : vector<7x16xf32> to vector<1x7x16xf32>
    %21 = tpu.concatenate %19, %20 in 0 : vector<1x7x16xf32>, vector<1x7x16xf32> -> vector<2x7x16xf32>
    %22 = vector.extract_strided_slice %11 {offsets = [0, 0], sizes = [7, 16], strides = [1, 1]} : vector<7x32xf32> to vector<7x16xf32>
    %23 = vector.extract_strided_slice %11 {offsets = [0, 16], sizes = [7, 16], strides = [1, 1]} : vector<7x32xf32> to vector<7x16xf32>
    %24 = vector.shape_cast %22 : vector<7x16xf32> to vector<1x7x16xf32>
    %25 = vector.shape_cast %23 : vector<7x16xf32> to vector<1x7x16xf32>
    %26 = tpu.concatenate %24, %25 in 0 : vector<1x7x16xf32>, vector<1x7x16xf32> -> vector<2x7x16xf32>
    "tpu.trace_start"() <{level = 10 : i32, message = "hqd,hkd->hqk"}> : () -> ()
    %cst_9 = arith.constant dense<0.000000e+00> : vector<2x7x7xf32>
    %27 = tpu.matmul %16, %21, %cst_9 {dimension_numbers = #tpu.dot_dimension_numbers<[2], [2], [1], [1], [0, 0, 0, 1, 1, 1], [0], [0]>} : vector<2x7x16xf32>, vector<2x7x16xf32>, vector<2x7x7xf32> -> vector<2x7x7xf32>
    "tpu.trace_stop"() : () -> ()
    %cst_10 = arith.constant 2.500000e-01 : f32
    %28 = vector.broadcast %cst_10 : f32 to vector<2x7x7xf32>
    %29 = arith.mulf %27, %28 : vector<2x7x7xf32>
    %cst_11 = arith.constant dense<0xFF800000> : vector<2x7xf32>
    %30 = vector.multi_reduction <maximumf>, %29, %cst_11 [2] : vector<2x7x7xf32> to vector<2x7xf32>
    %31 = vector.shape_cast %30 : vector<2x7xf32> to vector<2x7x1xf32>
    %32 = vector.broadcast %31 : vector<2x7x1xf32> to vector<2x7x7xf32>
    %33 = arith.subf %29, %32 : vector<2x7x7xf32>
    %34 = math.exp %33 : vector<2x7x7xf32>
    %cst_12 = arith.constant dense<0.000000e+00> : vector<2x7xf32>
    %35 = vector.multi_reduction <add>, %34, %cst_12 [2] : vector<2x7x7xf32> to vector<2x7xf32>
    %36 = vector.shape_cast %35 : vector<2x7xf32> to vector<2x7x1xf32>
    %37 = tpu.reciprocal %36 {approx = true} : vector<2x7x1xf32> -> vector<2x7x1xf32>
    %38 = vector.broadcast %37 : vector<2x7x1xf32> to vector<2x7x7xf32>
    %39 = arith.mulf %34, %38 : vector<2x7x7xf32>
    "tpu.trace_start"() <{level = 10 : i32, message = "hqk,hkd->hqd"}> : () -> ()
    %cst_13 = arith.constant dense<0.000000e+00> : vector<2x7x16xf32>
    %40 = tpu.matmul %39, %26, %cst_13 {dimension_numbers = #tpu.dot_dimension_numbers<[2], [1], [1], [2], [0, 0, 0, 1, 1, 2], [0], [0]>} : vector<2x7x7xf32>, vector<2x7x16xf32>, vector<2x7x16xf32> -> vector<2x7x16xf32>
    "tpu.trace_stop"() : () -> ()
    %41 = vector.extract_strided_slice %40 {offsets = [0, 0, 0], sizes = [1, 7, 16], strides = [1, 1, 1]} : vector<2x7x16xf32> to vector<1x7x16xf32>
    %42 = vector.shape_cast %41 : vector<1x7x16xf32> to vector<7x16xf32>
    %43 = vector.extract_strided_slice %40 {offsets = [1, 0, 0], sizes = [1, 7, 16], strides = [1, 1, 1]} : vector<2x7x16xf32> to vector<1x7x16xf32>
    %44 = vector.shape_cast %43 : vector<1x7x16xf32> to vector<7x16xf32>
    %45 = tpu.concatenate %42, %44 in 1 : vector<7x16xf32>, vector<7x16xf32> -> vector<7x32xf32>
    %c40 = arith.constant 40 : index
    %c0_14 = arith.constant 0 : index
    %46 = vector.load %arg4[%c40, %c0_14] : memref<1088x128xf32, #tpu.memory_space<vmem>>, vector<32x32xf32>
    %cst_15 = arith.constant dense<0.000000e+00> : vector<7x32xf32>
    %47 = tpu.matmul %45, %46, %cst_15 {dimension_numbers = #tpu.dot_dimension_numbers<[1], [0], [0], [1], [0, 0, 1, 1], [], []>} : vector<7x32xf32>, vector<32x32xf32>, vector<7x32xf32> -> vector<7x32xf32>
    %c72 = arith.constant 72 : index
    %c0_16 = arith.constant 0 : index
    %48 = vector.load %arg4[%c72, %c0_16] : memref<1088x128xf32, #tpu.memory_space<vmem>>, vector<1x32xf32>
    %49 = vector.broadcast %48 : vector<1x32xf32> to vector<7x32xf32>
    %50 = arith.addf %47, %49 : vector<7x32xf32>
    %c80 = arith.constant 80 : index
    %c0_17 = arith.constant 0 : index
    %51 = vector.load %arg4[%c80, %c0_17] : memref<1088x128xf32, #tpu.memory_space<vmem>>, vector<2x32xf32>
    %cst_18 = arith.constant dense<0.000000e+00> : vector<7xf32>
    %52 = vector.multi_reduction <add>, %50, %cst_18 [1] : vector<7x32xf32> to vector<7xf32>
    %53 = vector.shape_cast %52 : vector<7xf32> to vector<7x1xf32>
    %cst_19 = arith.constant 3.200000e+01 : f32
    %54 = vector.broadcast %cst_19 : f32 to vector<7x1xf32>
    %55 = arith.divf %53, %54 : vector<7x1xf32>
    %56 = vector.broadcast %55 : vector<7x1xf32> to vector<7x32xf32>
    %57 = arith.subf %50, %56 : vector<7x32xf32>
    %58 = arith.mulf %57, %57 : vector<7x32xf32>
    %cst_20 = arith.constant dense<0.000000e+00> : vector<7xf32>
    %59 = vector.multi_reduction <add>, %58, %cst_20 [1] : vector<7x32xf32> to vector<7xf32>
    %60 = vector.shape_cast %59 : vector<7xf32> to vector<7x1xf32>
    %cst_21 = arith.constant 3.200000e+01 : f32
    %61 = vector.broadcast %cst_21 : f32 to vector<7x1xf32>
    %62 = arith.divf %60, %61 : vector<7x1xf32>
    %63 = vector.broadcast %55 : vector<7x1xf32> to vector<7x32xf32>
    %64 = arith.subf %50, %63 : vector<7x32xf32>
    %cst_22 = arith.constant 9.99999974E-6 : f32
    %65 = vector.broadcast %cst_22 : f32 to vector<7x1xf32>
    %66 = arith.addf %62, %65 : vector<7x1xf32>
    %67 = math.rsqrt %66 : vector<7x1xf32>
    %68 = vector.broadcast %67 : vector<7x1xf32> to vector<7x32xf32>
    %69 = arith.mulf %64, %68 : vector<7x32xf32>
    %70 = vector.extract_strided_slice %51 {offsets = [0, 0], sizes = [1, 32], strides = [1, 1]} : vector<2x32xf32> to vector<1x32xf32>
    %71 = vector.broadcast %70 : vector<1x32xf32> to vector<7x32xf32>
    %72 = arith.mulf %69, %71 : vector<7x32xf32>
    %73 = vector.extract_strided_slice %51 {offsets = [1, 0], sizes = [1, 32], strides = [1, 1]} : vector<2x32xf32> to vector<1x32xf32>
    %74 = vector.broadcast %73 : vector<1x32xf32> to vector<7x32xf32>
    %75 = arith.addf %72, %74 : vector<7x32xf32>
    %76 = arith.addf %75, %1 : vector<7x32xf32>
    %77 = arith.addf %2, %3 : vector<64x32xf32>
    %c88 = arith.constant 88 : index
    %c0_23 = arith.constant 0 : index
    %78 = vector.load %arg4[%c88, %c0_23] : memref<1088x128xf32, #tpu.memory_space<vmem>>, vector<32x16xf32>
    %cst_24 = arith.constant dense<0.000000e+00> : vector<7x16xf32>
    %79 = tpu.matmul %76, %78, %cst_24 {dimension_numbers = #tpu.dot_dimension_numbers<[1], [0], [0], [1], [0, 0, 1, 1], [], []>} : vector<7x32xf32>, vector<32x16xf32>, vector<7x16xf32> -> vector<7x16xf32>
    %c120 = arith.constant 120 : index
    %c0_25 = arith.constant 0 : index
    %80 = vector.load %arg4[%c120, %c0_25] : memref<1088x128xf32, #tpu.memory_space<vmem>>, vector<1x16xf32>
    %81 = vector.broadcast %80 : vector<1x16xf32> to vector<7x16xf32>
    %82 = arith.addf %79, %81 : vector<7x16xf32>
    %c88_26 = arith.constant 88 : index
    %c16 = arith.constant 16 : index
    %83 = vector.load %arg4[%c88_26, %c16] : memref<1088x128xf32, #tpu.memory_space<vmem>>, vector<32x16xf32>
    %cst_27 = arith.constant dense<0.000000e+00> : vector<64x16xf32>
    %84 = tpu.matmul %77, %83, %cst_27 {dimension_numbers = #tpu.dot_dimension_numbers<[1], [0], [0], [1], [0, 0, 1, 1], [], []>} : vector<64x32xf32>, vector<32x16xf32>, vector<64x16xf32> -> vector<64x16xf32>
    %c120_28 = arith.constant 120 : index
    %c16_29 = arith.constant 16 : index
    %85 = vector.load %arg4[%c120_28, %c16_29] : memref<1088x128xf32, #tpu.memory_space<vmem>>, vector<1x16xf32>
    %86 = vector.broadcast %85 : vector<1x16xf32> to vector<64x16xf32>
    %87 = arith.addf %84, %86 : vector<64x16xf32>
    %c88_30 = arith.constant 88 : index
    %c32_31 = arith.constant 32 : index
    %88 = vector.load %arg4[%c88_30, %c32_31] : memref<1088x128xf32, #tpu.memory_space<vmem>>, vector<32x16xf32>
    %cst_32 = arith.constant dense<0.000000e+00> : vector<64x16xf32>
    %89 = tpu.matmul %2, %88, %cst_32 {dimension_numbers = #tpu.dot_dimension_numbers<[1], [0], [0], [1], [0, 0, 1, 1], [], []>} : vector<64x32xf32>, vector<32x16xf32>, vector<64x16xf32> -> vector<64x16xf32>
    %c120_33 = arith.constant 120 : index
    %c32_34 = arith.constant 32 : index
    %90 = vector.load %arg4[%c120_33, %c32_34] : memref<1088x128xf32, #tpu.memory_space<vmem>>, vector<1x16xf32>
    %91 = vector.broadcast %90 : vector<1x16xf32> to vector<64x16xf32>
    %92 = arith.addf %89, %91 : vector<64x16xf32>
    %93 = vector.extract_strided_slice %82 {offsets = [0, 0], sizes = [7, 8], strides = [1, 1]} : vector<7x16xf32> to vector<7x8xf32>
    %94 = vector.extract_strided_slice %82 {offsets = [0, 8], sizes = [7, 8], strides = [1, 1]} : vector<7x16xf32> to vector<7x8xf32>
    %95 = vector.shape_cast %93 : vector<7x8xf32> to vector<1x7x8xf32>
    %96 = vector.shape_cast %94 : vector<7x8xf32> to vector<1x7x8xf32>
    %97 = tpu.concatenate %95, %96 in 0 : vector<1x7x8xf32>, vector<1x7x8xf32> -> vector<2x7x8xf32>
    %98 = vector.extract_strided_slice %87 {offsets = [0, 0], sizes = [64, 8], strides = [1, 1]} : vector<64x16xf32> to vector<64x8xf32>
    %99 = vector.extract_strided_slice %87 {offsets = [0, 8], sizes = [64, 8], strides = [1, 1]} : vector<64x16xf32> to vector<64x8xf32>
    %100 = vector.shape_cast %98 : vector<64x8xf32> to vector<1x64x8xf32>
    %101 = vector.shape_cast %99 : vector<64x8xf32> to vector<1x64x8xf32>
    %102 = tpu.concatenate %100, %101 in 0 : vector<1x64x8xf32>, vector<1x64x8xf32> -> vector<2x64x8xf32>
    %103 = vector.extract_strided_slice %92 {offsets = [0, 0], sizes = [64, 8], strides = [1, 1]} : vector<64x16xf32> to vector<64x8xf32>
    %104 = vector.extract_strided_slice %92 {offsets = [0, 8], sizes = [64, 8], strides = [1, 1]} : vector<64x16xf32> to vector<64x8xf32>
    %105 = vector.shape_cast %103 : vector<64x8xf32> to vector<1x64x8xf32>
    %106 = vector.shape_cast %104 : vector<64x8xf32> to vector<1x64x8xf32>
    %107 = tpu.concatenate %105, %106 in 0 : vector<1x64x8xf32>, vector<1x64x8xf32> -> vector<2x64x8xf32>
    "tpu.trace_start"() <{level = 10 : i32, message = "hqd,hkd->hqk"}> : () -> ()
    %cst_35 = arith.constant dense<0.000000e+00> : vector<2x7x64xf32>
    %108 = tpu.matmul %97, %102, %cst_35 {dimension_numbers = #tpu.dot_dimension_numbers<[2], [2], [1], [1], [0, 0, 0, 1, 1, 1], [0], [0]>} : vector<2x7x8xf32>, vector<2x64x8xf32>, vector<2x7x64xf32> -> vector<2x7x64xf32>
    "tpu.trace_stop"() : () -> ()
    %cst_36 = arith.constant 0.353553385 : f32
    %109 = vector.broadcast %cst_36 : f32 to vector<2x7x64xf32>
    %110 = arith.mulf %108, %109 : vector<2x7x64xf32>
    %cst_37 = arith.constant dense<0xFF800000> : vector<2x7xf32>
    %111 = vector.multi_reduction <maximumf>, %110, %cst_37 [2] : vector<2x7x64xf32> to vector<2x7xf32>
    %112 = vector.shape_cast %111 : vector<2x7xf32> to vector<2x7x1xf32>
    %113 = vector.broadcast %112 : vector<2x7x1xf32> to vector<2x7x64xf32>
    %114 = arith.subf %110, %113 : vector<2x7x64xf32>
    %115 = math.exp %114 : vector<2x7x64xf32>
    %cst_38 = arith.constant dense<0.000000e+00> : vector<2x7xf32>
    %116 = vector.multi_reduction <add>, %115, %cst_38 [2] : vector<2x7x64xf32> to vector<2x7xf32>
    %117 = vector.shape_cast %116 : vector<2x7xf32> to vector<2x7x1xf32>
    %118 = tpu.reciprocal %117 {approx = true} : vector<2x7x1xf32> -> vector<2x7x1xf32>
    %119 = vector.broadcast %118 : vector<2x7x1xf32> to vector<2x7x64xf32>
    %120 = arith.mulf %115, %119 : vector<2x7x64xf32>
    "tpu.trace_start"() <{level = 10 : i32, message = "hqk,hkd->hqd"}> : () -> ()
    %cst_39 = arith.constant dense<0.000000e+00> : vector<2x7x8xf32>
    %121 = tpu.matmul %120, %107, %cst_39 {dimension_numbers = #tpu.dot_dimension_numbers<[2], [1], [1], [2], [0, 0, 0, 1, 1, 2], [0], [0]>} : vector<2x7x64xf32>, vector<2x64x8xf32>, vector<2x7x8xf32> -> vector<2x7x8xf32>
    "tpu.trace_stop"() : () -> ()
    %122 = vector.extract_strided_slice %121 {offsets = [0, 0, 0], sizes = [1, 7, 8], strides = [1, 1, 1]} : vector<2x7x8xf32> to vector<1x7x8xf32>
    %123 = vector.shape_cast %122 : vector<1x7x8xf32> to vector<7x8xf32>
    %124 = vector.extract_strided_slice %121 {offsets = [1, 0, 0], sizes = [1, 7, 8], strides = [1, 1, 1]} : vector<2x7x8xf32> to vector<1x7x8xf32>
    %125 = vector.shape_cast %124 : vector<1x7x8xf32> to vector<7x8xf32>
    %126 = tpu.concatenate %123, %125 in 1 : vector<7x8xf32>, vector<7x8xf32> -> vector<7x16xf32>
    %c128 = arith.constant 128 : index
    %c0_40 = arith.constant 0 : index
    %127 = vector.load %arg4[%c128, %c0_40] : memref<1088x128xf32, #tpu.memory_space<vmem>>, vector<16x32xf32>
    %cst_41 = arith.constant dense<0.000000e+00> : vector<7x32xf32>
    %128 = tpu.matmul %126, %127, %cst_41 {dimension_numbers = #tpu.dot_dimension_numbers<[1], [0], [0], [1], [0, 0, 1, 1], [], []>} : vector<7x16xf32>, vector<16x32xf32>, vector<7x32xf32> -> vector<7x32xf32>
    %c144 = arith.constant 144 : index
    %c0_42 = arith.constant 0 : index
    %129 = vector.load %arg4[%c144, %c0_42] : memref<1088x128xf32, #tpu.memory_space<vmem>>, vector<1x32xf32>
    %130 = vector.broadcast %129 : vector<1x32xf32> to vector<7x32xf32>
    %131 = arith.addf %128, %130 : vector<7x32xf32>
    %132 = arith.addf %75, %131 : vector<7x32xf32>
    %c152 = arith.constant 152 : index
    %c0_43 = arith.constant 0 : index
    %133 = vector.load %arg4[%c152, %c0_43] : memref<1088x128xf32, #tpu.memory_space<vmem>>, vector<2x32xf32>
    %cst_44 = arith.constant dense<0.000000e+00> : vector<7xf32>
    %134 = vector.multi_reduction <add>, %132, %cst_44 [1] : vector<7x32xf32> to vector<7xf32>
    %135 = vector.shape_cast %134 : vector<7xf32> to vector<7x1xf32>
    %cst_45 = arith.constant 3.200000e+01 : f32
    %136 = vector.broadcast %cst_45 : f32 to vector<7x1xf32>
    %137 = arith.divf %135, %136 : vector<7x1xf32>
    %138 = vector.broadcast %137 : vector<7x1xf32> to vector<7x32xf32>
    %139 = arith.subf %132, %138 : vector<7x32xf32>
    %140 = arith.mulf %139, %139 : vector<7x32xf32>
    %cst_46 = arith.constant dense<0.000000e+00> : vector<7xf32>
    %141 = vector.multi_reduction <add>, %140, %cst_46 [1] : vector<7x32xf32> to vector<7xf32>
    %142 = vector.shape_cast %141 : vector<7xf32> to vector<7x1xf32>
    %cst_47 = arith.constant 3.200000e+01 : f32
    %143 = vector.broadcast %cst_47 : f32 to vector<7x1xf32>
    %144 = arith.divf %142, %143 : vector<7x1xf32>
    %145 = vector.broadcast %137 : vector<7x1xf32> to vector<7x32xf32>
    %146 = arith.subf %132, %145 : vector<7x32xf32>
    %cst_48 = arith.constant 9.99999974E-6 : f32
    %147 = vector.broadcast %cst_48 : f32 to vector<7x1xf32>
    %148 = arith.addf %144, %147 : vector<7x1xf32>
    %149 = math.rsqrt %148 : vector<7x1xf32>
    %150 = vector.broadcast %149 : vector<7x1xf32> to vector<7x32xf32>
    %151 = arith.mulf %146, %150 : vector<7x32xf32>
    %152 = vector.extract_strided_slice %133 {offsets = [0, 0], sizes = [1, 32], strides = [1, 1]} : vector<2x32xf32> to vector<1x32xf32>
    %153 = vector.broadcast %152 : vector<1x32xf32> to vector<7x32xf32>
    %154 = arith.mulf %151, %153 : vector<7x32xf32>
    %155 = vector.extract_strided_slice %133 {offsets = [1, 0], sizes = [1, 32], strides = [1, 1]} : vector<2x32xf32> to vector<1x32xf32>
    %156 = vector.broadcast %155 : vector<1x32xf32> to vector<7x32xf32>
    %157 = arith.addf %154, %156 : vector<7x32xf32>
    %c160 = arith.constant 160 : index
    %c0_49 = arith.constant 0 : index
    %158 = vector.load %arg4[%c160, %c0_49] : memref<1088x128xf32, #tpu.memory_space<vmem>>, vector<32x64xf32>
    %cst_50 = arith.constant dense<0.000000e+00> : vector<7x64xf32>
    %159 = tpu.matmul %157, %158, %cst_50 {dimension_numbers = #tpu.dot_dimension_numbers<[1], [0], [0], [1], [0, 0, 1, 1], [], []>} : vector<7x32xf32>, vector<32x64xf32>, vector<7x64xf32> -> vector<7x64xf32>
    %c192 = arith.constant 192 : index
    %c0_51 = arith.constant 0 : index
    %160 = vector.load %arg4[%c192, %c0_51] : memref<1088x128xf32, #tpu.memory_space<vmem>>, vector<1x64xf32>
    %161 = vector.broadcast %160 : vector<1x64xf32> to vector<7x64xf32>
    %162 = arith.addf %159, %161 : vector<7x64xf32>
    %cst_52 = arith.constant 0.000000e+00 : f32
    %163 = vector.broadcast %cst_52 : f32 to vector<7x64xf32>
    %164 = arith.maximumf %162, %163 : vector<7x64xf32>
    %c200 = arith.constant 200 : index
    %c0_53 = arith.constant 0 : index
    %165 = vector.load %arg4[%c200, %c0_53] : memref<1088x128xf32, #tpu.memory_space<vmem>>, vector<64x32xf32>
    %cst_54 = arith.constant dense<0.000000e+00> : vector<7x32xf32>
    %166 = tpu.matmul %164, %165, %cst_54 {dimension_numbers = #tpu.dot_dimension_numbers<[1], [0], [0], [1], [0, 0, 1, 1], [], []>} : vector<7x64xf32>, vector<64x32xf32>, vector<7x32xf32> -> vector<7x32xf32>
    %167 = arith.addf %157, %166 : vector<7x32xf32>
    %c264 = arith.constant 264 : index
    %c0_55 = arith.constant 0 : index
    %168 = vector.load %arg4[%c264, %c0_55] : memref<1088x128xf32, #tpu.memory_space<vmem>>, vector<1x32xf32>
    %169 = vector.broadcast %168 : vector<1x32xf32> to vector<7x32xf32>
    %170 = arith.addf %167, %169 : vector<7x32xf32>
    %c272 = arith.constant 272 : index
    %c0_56 = arith.constant 0 : index
    %171 = vector.load %arg4[%c272, %c0_56] : memref<1088x128xf32, #tpu.memory_space<vmem>>, vector<2x32xf32>
    %cst_57 = arith.constant dense<0.000000e+00> : vector<7xf32>
    %172 = vector.multi_reduction <add>, %170, %cst_57 [1] : vector<7x32xf32> to vector<7xf32>
    %173 = vector.shape_cast %172 : vector<7xf32> to vector<7x1xf32>
    %cst_58 = arith.constant 3.200000e+01 : f32
    %174 = vector.broadcast %cst_58 : f32 to vector<7x1xf32>
    %175 = arith.divf %173, %174 : vector<7x1xf32>
    %176 = vector.broadcast %175 : vector<7x1xf32> to vector<7x32xf32>
    %177 = arith.subf %170, %176 : vector<7x32xf32>
    %178 = arith.mulf %177, %177 : vector<7x32xf32>
    %cst_59 = arith.constant dense<0.000000e+00> : vector<7xf32>
    %179 = vector.multi_reduction <add>, %178, %cst_59 [1] : vector<7x32xf32> to vector<7xf32>
    %180 = vector.shape_cast %179 : vector<7xf32> to vector<7x1xf32>
    %cst_60 = arith.constant 3.200000e+01 : f32
    %181 = vector.broadcast %cst_60 : f32 to vector<7x1xf32>
    %182 = arith.divf %180, %181 : vector<7x1xf32>
    %183 = vector.broadcast %175 : vector<7x1xf32> to vector<7x32xf32>
    %184 = arith.subf %170, %183 : vector<7x32xf32>
    %cst_61 = arith.constant 9.99999974E-6 : f32
    %185 = vector.broadcast %cst_61 : f32 to vector<7x1xf32>
    %186 = arith.addf %182, %185 : vector<7x1xf32>
    %187 = math.rsqrt %186 : vector<7x1xf32>
    %188 = vector.broadcast %187 : vector<7x1xf32> to vector<7x32xf32>
    %189 = arith.mulf %184, %188 : vector<7x32xf32>
    %190 = vector.extract_strided_slice %171 {offsets = [0, 0], sizes = [1, 32], strides = [1, 1]} : vector<2x32xf32> to vector<1x32xf32>
    %191 = vector.broadcast %190 : vector<1x32xf32> to vector<7x32xf32>
    %192 = arith.mulf %189, %191 : vector<7x32xf32>
    %193 = vector.extract_strided_slice %171 {offsets = [1, 0], sizes = [1, 32], strides = [1, 1]} : vector<2x32xf32> to vector<1x32xf32>
    %194 = vector.broadcast %193 : vector<1x32xf32> to vector<7x32xf32>
    %195 = arith.addf %192, %194 : vector<7x32xf32>
    %196 = arith.addf %195, %1 : vector<7x32xf32>
    %197 = arith.addf %2, %3 : vector<64x32xf32>
    %c280 = arith.constant 280 : index
    %c0_62 = arith.constant 0 : index
    %198 = vector.load %arg4[%c280, %c0_62] : memref<1088x128xf32, #tpu.memory_space<vmem>>, vector<32x16xf32>
    %cst_63 = arith.constant dense<0.000000e+00> : vector<64x16xf32>
    %199 = tpu.matmul %197, %198, %cst_63 {dimension_numbers = #tpu.dot_dimension_numbers<[1], [0], [0], [1], [0, 0, 1, 1], [], []>} : vector<64x32xf32>, vector<32x16xf32>, vector<64x16xf32> -> vector<64x16xf32>
    %c312 = arith.constant 312 : index
    %c0_64 = arith.constant 0 : index
    %200 = vector.load %arg4[%c312, %c0_64] : memref<1088x128xf32, #tpu.memory_space<vmem>>, vector<1x16xf32>
    %201 = vector.broadcast %200 : vector<1x16xf32> to vector<64x16xf32>
    %202 = arith.addf %199, %201 : vector<64x16xf32>
    %c280_65 = arith.constant 280 : index
    %c16_66 = arith.constant 16 : index
    %203 = vector.load %arg4[%c280_65, %c16_66] : memref<1088x128xf32, #tpu.memory_space<vmem>>, vector<32x16xf32>
    %cst_67 = arith.constant dense<0.000000e+00> : vector<7x16xf32>
    %204 = tpu.matmul %196, %203, %cst_67 {dimension_numbers = #tpu.dot_dimension_numbers<[1], [0], [0], [1], [0, 0, 1, 1], [], []>} : vector<7x32xf32>, vector<32x16xf32>, vector<7x16xf32> -> vector<7x16xf32>
    %c312_68 = arith.constant 312 : index
    %c16_69 = arith.constant 16 : index
    %205 = vector.load %arg4[%c312_68, %c16_69] : memref<1088x128xf32, #tpu.memory_space<vmem>>, vector<1x16xf32>
    %206 = vector.broadcast %205 : vector<1x16xf32> to vector<7x16xf32>
    %207 = arith.addf %204, %206 : vector<7x16xf32>
    %c280_70 = arith.constant 280 : index
    %c32_71 = arith.constant 32 : index
    %208 = vector.load %arg4[%c280_70, %c32_71] : memref<1088x128xf32, #tpu.memory_space<vmem>>, vector<32x16xf32>
    %cst_72 = arith.constant dense<0.000000e+00> : vector<7x16xf32>
    %209 = tpu.matmul %195, %208, %cst_72 {dimension_numbers = #tpu.dot_dimension_numbers<[1], [0], [0], [1], [0, 0, 1, 1], [], []>} : vector<7x32xf32>, vector<32x16xf32>, vector<7x16xf32> -> vector<7x16xf32>
    %c312_73 = arith.constant 312 : index
    %c32_74 = arith.constant 32 : index
    %210 = vector.load %arg4[%c312_73, %c32_74] : memref<1088x128xf32, #tpu.memory_space<vmem>>, vector<1x16xf32>
    %211 = vector.broadcast %210 : vector<1x16xf32> to vector<7x16xf32>
    %212 = arith.addf %209, %211 : vector<7x16xf32>
    %213 = vector.extract_strided_slice %202 {offsets = [0, 0], sizes = [64, 8], strides = [1, 1]} : vector<64x16xf32> to vector<64x8xf32>
    %214 = vector.extract_strided_slice %202 {offsets = [0, 8], sizes = [64, 8], strides = [1, 1]} : vector<64x16xf32> to vector<64x8xf32>
    %215 = vector.shape_cast %213 : vector<64x8xf32> to vector<1x64x8xf32>
    %216 = vector.shape_cast %214 : vector<64x8xf32> to vector<1x64x8xf32>
    %217 = tpu.concatenate %215, %216 in 0 : vector<1x64x8xf32>, vector<1x64x8xf32> -> vector<2x64x8xf32>
    %218 = vector.extract_strided_slice %207 {offsets = [0, 0], sizes = [7, 8], strides = [1, 1]} : vector<7x16xf32> to vector<7x8xf32>
    %219 = vector.extract_strided_slice %207 {offsets = [0, 8], sizes = [7, 8], strides = [1, 1]} : vector<7x16xf32> to vector<7x8xf32>
    %220 = vector.shape_cast %218 : vector<7x8xf32> to vector<1x7x8xf32>
    %221 = vector.shape_cast %219 : vector<7x8xf32> to vector<1x7x8xf32>
    %222 = tpu.concatenate %220, %221 in 0 : vector<1x7x8xf32>, vector<1x7x8xf32> -> vector<2x7x8xf32>
    %223 = vector.extract_strided_slice %212 {offsets = [0, 0], sizes = [7, 8], strides = [1, 1]} : vector<7x16xf32> to vector<7x8xf32>
    %224 = vector.extract_strided_slice %212 {offsets = [0, 8], sizes = [7, 8], strides = [1, 1]} : vector<7x16xf32> to vector<7x8xf32>
    %225 = vector.shape_cast %223 : vector<7x8xf32> to vector<1x7x8xf32>
    %226 = vector.shape_cast %224 : vector<7x8xf32> to vector<1x7x8xf32>
    %227 = tpu.concatenate %225, %226 in 0 : vector<1x7x8xf32>, vector<1x7x8xf32> -> vector<2x7x8xf32>
    "tpu.trace_start"() <{level = 10 : i32, message = "hqd,hkd->hqk"}> : () -> ()
    %cst_75 = arith.constant dense<0.000000e+00> : vector<2x64x7xf32>
    %228 = tpu.matmul %217, %222, %cst_75 {dimension_numbers = #tpu.dot_dimension_numbers<[2], [2], [1], [1], [0, 0, 0, 1, 1, 1], [0], [0]>} : vector<2x64x8xf32>, vector<2x7x8xf32>, vector<2x64x7xf32> -> vector<2x64x7xf32>
    "tpu.trace_stop"() : () -> ()
    %cst_76 = arith.constant 0.353553385 : f32
    %229 = vector.broadcast %cst_76 : f32 to vector<2x64x7xf32>
    %230 = arith.mulf %228, %229 : vector<2x64x7xf32>
    %cst_77 = arith.constant dense<0xFF800000> : vector<2x64xf32>
    %231 = vector.multi_reduction <maximumf>, %230, %cst_77 [2] : vector<2x64x7xf32> to vector<2x64xf32>
    %232 = vector.shape_cast %231 : vector<2x64xf32> to vector<2x64x1xf32>
    %233 = vector.broadcast %232 : vector<2x64x1xf32> to vector<2x64x7xf32>
    %234 = arith.subf %230, %233 : vector<2x64x7xf32>
    %235 = math.exp %234 : vector<2x64x7xf32>
    %cst_78 = arith.constant dense<0.000000e+00> : vector<2x64xf32>
    %236 = vector.multi_reduction <add>, %235, %cst_78 [2] : vector<2x64x7xf32> to vector<2x64xf32>
    %237 = vector.shape_cast %236 : vector<2x64xf32> to vector<2x64x1xf32>
    %238 = tpu.reciprocal %237 {approx = true} : vector<2x64x1xf32> -> vector<2x64x1xf32>
    %239 = vector.broadcast %238 : vector<2x64x1xf32> to vector<2x64x7xf32>
    %240 = arith.mulf %235, %239 : vector<2x64x7xf32>
    "tpu.trace_start"() <{level = 10 : i32, message = "hqk,hkd->hqd"}> : () -> ()
    %cst_79 = arith.constant dense<0.000000e+00> : vector<2x64x8xf32>
    %241 = tpu.matmul %240, %227, %cst_79 {dimension_numbers = #tpu.dot_dimension_numbers<[2], [1], [1], [2], [0, 0, 0, 1, 1, 2], [0], [0]>} : vector<2x64x7xf32>, vector<2x7x8xf32>, vector<2x64x8xf32> -> vector<2x64x8xf32>
    "tpu.trace_stop"() : () -> ()
    %242 = vector.extract_strided_slice %241 {offsets = [0, 0, 0], sizes = [1, 64, 8], strides = [1, 1, 1]} : vector<2x64x8xf32> to vector<1x64x8xf32>
    %243 = vector.shape_cast %242 : vector<1x64x8xf32> to vector<64x8xf32>
    %244 = vector.extract_strided_slice %241 {offsets = [1, 0, 0], sizes = [1, 64, 8], strides = [1, 1, 1]} : vector<2x64x8xf32> to vector<1x64x8xf32>
    %245 = vector.shape_cast %244 : vector<1x64x8xf32> to vector<64x8xf32>
    %246 = tpu.concatenate %243, %245 in 1 : vector<64x8xf32>, vector<64x8xf32> -> vector<64x16xf32>
    %c320 = arith.constant 320 : index
    %c0_80 = arith.constant 0 : index
    %247 = vector.load %arg4[%c320, %c0_80] : memref<1088x128xf32, #tpu.memory_space<vmem>>, vector<16x32xf32>
    %cst_81 = arith.constant dense<0.000000e+00> : vector<64x32xf32>
    %248 = tpu.matmul %246, %247, %cst_81 {dimension_numbers = #tpu.dot_dimension_numbers<[1], [0], [0], [1], [0, 0, 1, 1], [], []>} : vector<64x16xf32>, vector<16x32xf32>, vector<64x32xf32> -> vector<64x32xf32>
    %c336 = arith.constant 336 : index
    %c0_82 = arith.constant 0 : index
    %249 = vector.load %arg4[%c336, %c0_82] : memref<1088x128xf32, #tpu.memory_space<vmem>>, vector<1x32xf32>
    %250 = vector.broadcast %249 : vector<1x32xf32> to vector<64x32xf32>
    %251 = arith.addf %248, %250 : vector<64x32xf32>
    %252 = arith.addf %2, %251 : vector<64x32xf32>
    %c344 = arith.constant 344 : index
    %c0_83 = arith.constant 0 : index
    %253 = vector.load %arg4[%c344, %c0_83] : memref<1088x128xf32, #tpu.memory_space<vmem>>, vector<2x32xf32>
    %cst_84 = arith.constant dense<0.000000e+00> : vector<64xf32>
    %254 = vector.multi_reduction <add>, %252, %cst_84 [1] : vector<64x32xf32> to vector<64xf32>
    %255 = vector.shape_cast %254 : vector<64xf32> to vector<64x1xf32>
    %cst_85 = arith.constant 3.200000e+01 : f32
    %256 = vector.broadcast %cst_85 : f32 to vector<64x1xf32>
    %257 = arith.divf %255, %256 : vector<64x1xf32>
    %258 = vector.broadcast %257 : vector<64x1xf32> to vector<64x32xf32>
    %259 = arith.subf %252, %258 : vector<64x32xf32>
    %260 = arith.mulf %259, %259 : vector<64x32xf32>
    %cst_86 = arith.constant dense<0.000000e+00> : vector<64xf32>
    %261 = vector.multi_reduction <add>, %260, %cst_86 [1] : vector<64x32xf32> to vector<64xf32>
    %262 = vector.shape_cast %261 : vector<64xf32> to vector<64x1xf32>
    %cst_87 = arith.constant 3.200000e+01 : f32
    %263 = vector.broadcast %cst_87 : f32 to vector<64x1xf32>
    %264 = arith.divf %262, %263 : vector<64x1xf32>
    %265 = vector.broadcast %257 : vector<64x1xf32> to vector<64x32xf32>
    %266 = arith.subf %252, %265 : vector<64x32xf32>
    %cst_88 = arith.constant 9.99999974E-6 : f32
    %267 = vector.broadcast %cst_88 : f32 to vector<64x1xf32>
    %268 = arith.addf %264, %267 : vector<64x1xf32>
    %269 = math.rsqrt %268 : vector<64x1xf32>
    %270 = vector.broadcast %269 : vector<64x1xf32> to vector<64x32xf32>
    %271 = arith.mulf %266, %270 : vector<64x32xf32>
    %272 = vector.extract_strided_slice %253 {offsets = [0, 0], sizes = [1, 32], strides = [1, 1]} : vector<2x32xf32> to vector<1x32xf32>
    %273 = vector.broadcast %272 : vector<1x32xf32> to vector<64x32xf32>
    %274 = arith.mulf %271, %273 : vector<64x32xf32>
    %275 = vector.extract_strided_slice %253 {offsets = [1, 0], sizes = [1, 32], strides = [1, 1]} : vector<2x32xf32> to vector<1x32xf32>
    %276 = vector.broadcast %275 : vector<1x32xf32> to vector<64x32xf32>
    %277 = arith.addf %274, %276 : vector<64x32xf32>
    %278 = arith.addf %195, %1 : vector<7x32xf32>
    %c352 = arith.constant 352 : index
    %c0_89 = arith.constant 0 : index
    %279 = vector.load %arg4[%c352, %c0_89] : memref<1088x128xf32, #tpu.memory_space<vmem>>, vector<32x64xf32>
    %cst_90 = arith.constant dense<0.000000e+00> : vector<7x64xf32>
    %280 = tpu.matmul %278, %279, %cst_90 {dimension_numbers = #tpu.dot_dimension_numbers<[1], [0], [0], [1], [0, 0, 1, 1], [], []>} : vector<7x32xf32>, vector<32x64xf32>, vector<7x64xf32> -> vector<7x64xf32>
    %c384 = arith.constant 384 : index
    %c0_91 = arith.constant 0 : index
    %281 = vector.load %arg4[%c384, %c0_91] : memref<1088x128xf32, #tpu.memory_space<vmem>>, vector<1x64xf32>
    %282 = vector.broadcast %281 : vector<1x64xf32> to vector<7x64xf32>
    %283 = arith.addf %280, %282 : vector<7x64xf32>
    %284 = vector.extract_strided_slice %283 {offsets = [0, 0], sizes = [7, 32], strides = [1, 1]} : vector<7x64xf32> to vector<7x32xf32>
    %285 = vector.extract_strided_slice %283 {offsets = [0, 32], sizes = [7, 32], strides = [1, 1]} : vector<7x64xf32> to vector<7x32xf32>
    %c352_92 = arith.constant 352 : index
    %c64 = arith.constant 64 : index
    %286 = vector.load %arg4[%c352_92, %c64] : memref<1088x128xf32, #tpu.memory_space<vmem>>, vector<32x32xf32>
    %cst_93 = arith.constant dense<0.000000e+00> : vector<7x32xf32>
    %287 = tpu.matmul %195, %286, %cst_93 {dimension_numbers = #tpu.dot_dimension_numbers<[1], [0], [0], [1], [0, 0, 1, 1], [], []>} : vector<7x32xf32>, vector<32x32xf32>, vector<7x32xf32> -> vector<7x32xf32>
    %c384_94 = arith.constant 384 : index
    %c64_95 = arith.constant 64 : index
    %288 = vector.load %arg4[%c384_94, %c64_95] : memref<1088x128xf32, #tpu.memory_space<vmem>>, vector<1x32xf32>
    %289 = vector.broadcast %288 : vector<1x32xf32> to vector<7x32xf32>
    %290 = arith.addf %287, %289 : vector<7x32xf32>
    %291 = vector.extract_strided_slice %284 {offsets = [0, 0], sizes = [7, 16], strides = [1, 1]} : vector<7x32xf32> to vector<7x16xf32>
    %292 = vector.extract_strided_slice %284 {offsets = [0, 16], sizes = [7, 16], strides = [1, 1]} : vector<7x32xf32> to vector<7x16xf32>
    %293 = vector.shape_cast %291 : vector<7x16xf32> to vector<1x7x16xf32>
    %294 = vector.shape_cast %292 : vector<7x16xf32> to vector<1x7x16xf32>
    %295 = tpu.concatenate %293, %294 in 0 : vector<1x7x16xf32>, vector<1x7x16xf32> -> vector<2x7x16xf32>
    %296 = vector.extract_strided_slice %285 {offsets = [0, 0], sizes = [7, 16], strides = [1, 1]} : vector<7x32xf32> to vector<7x16xf32>
    %297 = vector.extract_strided_slice %285 {offsets = [0, 16], sizes = [7, 16], strides = [1, 1]} : vector<7x32xf32> to vector<7x16xf32>
    %298 = vector.shape_cast %296 : vector<7x16xf32> to vector<1x7x16xf32>
    %299 = vector.shape_cast %297 : vector<7x16xf32> to vector<1x7x16xf32>
    %300 = tpu.concatenate %298, %299 in 0 : vector<1x7x16xf32>, vector<1x7x16xf32> -> vector<2x7x16xf32>
    %301 = vector.extract_strided_slice %290 {offsets = [0, 0], sizes = [7, 16], strides = [1, 1]} : vector<7x32xf32> to vector<7x16xf32>
    %302 = vector.extract_strided_slice %290 {offsets = [0, 16], sizes = [7, 16], strides = [1, 1]} : vector<7x32xf32> to vector<7x16xf32>
    %303 = vector.shape_cast %301 : vector<7x16xf32> to vector<1x7x16xf32>
    %304 = vector.shape_cast %302 : vector<7x16xf32> to vector<1x7x16xf32>
    %305 = tpu.concatenate %303, %304 in 0 : vector<1x7x16xf32>, vector<1x7x16xf32> -> vector<2x7x16xf32>
    "tpu.trace_start"() <{level = 10 : i32, message = "hqd,hkd->hqk"}> : () -> ()
    %cst_96 = arith.constant dense<0.000000e+00> : vector<2x7x7xf32>
    %306 = tpu.matmul %295, %300, %cst_96 {dimension_numbers = #tpu.dot_dimension_numbers<[2], [2], [1], [1], [0, 0, 0, 1, 1, 1], [0], [0]>} : vector<2x7x16xf32>, vector<2x7x16xf32>, vector<2x7x7xf32> -> vector<2x7x7xf32>
    "tpu.trace_stop"() : () -> ()
    %cst_97 = arith.constant 2.500000e-01 : f32
    %307 = vector.broadcast %cst_97 : f32 to vector<2x7x7xf32>
    %308 = arith.mulf %306, %307 : vector<2x7x7xf32>
    %cst_98 = arith.constant dense<0xFF800000> : vector<2x7xf32>
    %309 = vector.multi_reduction <maximumf>, %308, %cst_98 [2] : vector<2x7x7xf32> to vector<2x7xf32>
    %310 = vector.shape_cast %309 : vector<2x7xf32> to vector<2x7x1xf32>
    %311 = vector.broadcast %310 : vector<2x7x1xf32> to vector<2x7x7xf32>
    %312 = arith.subf %308, %311 : vector<2x7x7xf32>
    %313 = math.exp %312 : vector<2x7x7xf32>
    %cst_99 = arith.constant dense<0.000000e+00> : vector<2x7xf32>
    %314 = vector.multi_reduction <add>, %313, %cst_99 [2] : vector<2x7x7xf32> to vector<2x7xf32>
    %315 = vector.shape_cast %314 : vector<2x7xf32> to vector<2x7x1xf32>
    %316 = tpu.reciprocal %315 {approx = true} : vector<2x7x1xf32> -> vector<2x7x1xf32>
    %317 = vector.broadcast %316 : vector<2x7x1xf32> to vector<2x7x7xf32>
    %318 = arith.mulf %313, %317 : vector<2x7x7xf32>
    "tpu.trace_start"() <{level = 10 : i32, message = "hqk,hkd->hqd"}> : () -> ()
    %cst_100 = arith.constant dense<0.000000e+00> : vector<2x7x16xf32>
    %319 = tpu.matmul %318, %305, %cst_100 {dimension_numbers = #tpu.dot_dimension_numbers<[2], [1], [1], [2], [0, 0, 0, 1, 1, 2], [0], [0]>} : vector<2x7x7xf32>, vector<2x7x16xf32>, vector<2x7x16xf32> -> vector<2x7x16xf32>
    "tpu.trace_stop"() : () -> ()
    %320 = vector.extract_strided_slice %319 {offsets = [0, 0, 0], sizes = [1, 7, 16], strides = [1, 1, 1]} : vector<2x7x16xf32> to vector<1x7x16xf32>
    %321 = vector.shape_cast %320 : vector<1x7x16xf32> to vector<7x16xf32>
    %322 = vector.extract_strided_slice %319 {offsets = [1, 0, 0], sizes = [1, 7, 16], strides = [1, 1, 1]} : vector<2x7x16xf32> to vector<1x7x16xf32>
    %323 = vector.shape_cast %322 : vector<1x7x16xf32> to vector<7x16xf32>
    %324 = tpu.concatenate %321, %323 in 1 : vector<7x16xf32>, vector<7x16xf32> -> vector<7x32xf32>
    %c392 = arith.constant 392 : index
    %c0_101 = arith.constant 0 : index
    %325 = vector.load %arg4[%c392, %c0_101] : memref<1088x128xf32, #tpu.memory_space<vmem>>, vector<32x32xf32>
    %cst_102 = arith.constant dense<0.000000e+00> : vector<7x32xf32>
    %326 = tpu.matmul %324, %325, %cst_102 {dimension_numbers = #tpu.dot_dimension_numbers<[1], [0], [0], [1], [0, 0, 1, 1], [], []>} : vector<7x32xf32>, vector<32x32xf32>, vector<7x32xf32> -> vector<7x32xf32>
    %c424 = arith.constant 424 : index
    %c0_103 = arith.constant 0 : index
    %327 = vector.load %arg4[%c424, %c0_103] : memref<1088x128xf32, #tpu.memory_space<vmem>>, vector<1x32xf32>
    %328 = vector.broadcast %327 : vector<1x32xf32> to vector<7x32xf32>
    %329 = arith.addf %326, %328 : vector<7x32xf32>
    %330 = arith.addf %195, %329 : vector<7x32xf32>
    %c432 = arith.constant 432 : index
    %c0_104 = arith.constant 0 : index
    %331 = vector.load %arg4[%c432, %c0_104] : memref<1088x128xf32, #tpu.memory_space<vmem>>, vector<2x32xf32>
    %cst_105 = arith.constant dense<0.000000e+00> : vector<7xf32>
    %332 = vector.multi_reduction <add>, %330, %cst_105 [1] : vector<7x32xf32> to vector<7xf32>
    %333 = vector.shape_cast %332 : vector<7xf32> to vector<7x1xf32>
    %cst_106 = arith.constant 3.200000e+01 : f32
    %334 = vector.broadcast %cst_106 : f32 to vector<7x1xf32>
    %335 = arith.divf %333, %334 : vector<7x1xf32>
    %336 = vector.broadcast %335 : vector<7x1xf32> to vector<7x32xf32>
    %337 = arith.subf %330, %336 : vector<7x32xf32>
    %338 = arith.mulf %337, %337 : vector<7x32xf32>
    %cst_107 = arith.constant dense<0.000000e+00> : vector<7xf32>
    %339 = vector.multi_reduction <add>, %338, %cst_107 [1] : vector<7x32xf32> to vector<7xf32>
    %340 = vector.shape_cast %339 : vector<7xf32> to vector<7x1xf32>
    %cst_108 = arith.constant 3.200000e+01 : f32
    %341 = vector.broadcast %cst_108 : f32 to vector<7x1xf32>
    %342 = arith.divf %340, %341 : vector<7x1xf32>
    %343 = vector.broadcast %335 : vector<7x1xf32> to vector<7x32xf32>
    %344 = arith.subf %330, %343 : vector<7x32xf32>
    %cst_109 = arith.constant 9.99999974E-6 : f32
    %345 = vector.broadcast %cst_109 : f32 to vector<7x1xf32>
    %346 = arith.addf %342, %345 : vector<7x1xf32>
    %347 = math.rsqrt %346 : vector<7x1xf32>
    %348 = vector.broadcast %347 : vector<7x1xf32> to vector<7x32xf32>
    %349 = arith.mulf %344, %348 : vector<7x32xf32>
    %350 = vector.extract_strided_slice %331 {offsets = [0, 0], sizes = [1, 32], strides = [1, 1]} : vector<2x32xf32> to vector<1x32xf32>
    %351 = vector.broadcast %350 : vector<1x32xf32> to vector<7x32xf32>
    %352 = arith.mulf %349, %351 : vector<7x32xf32>
    %353 = vector.extract_strided_slice %331 {offsets = [1, 0], sizes = [1, 32], strides = [1, 1]} : vector<2x32xf32> to vector<1x32xf32>
    %354 = vector.broadcast %353 : vector<1x32xf32> to vector<7x32xf32>
    %355 = arith.addf %352, %354 : vector<7x32xf32>
    %356 = arith.addf %355, %1 : vector<7x32xf32>
    %357 = arith.addf %277, %3 : vector<64x32xf32>
    %c440 = arith.constant 440 : index
    %c0_110 = arith.constant 0 : index
    %358 = vector.load %arg4[%c440, %c0_110] : memref<1088x128xf32, #tpu.memory_space<vmem>>, vector<32x16xf32>
    %cst_111 = arith.constant dense<0.000000e+00> : vector<7x16xf32>
    %359 = tpu.matmul %356, %358, %cst_111 {dimension_numbers = #tpu.dot_dimension_numbers<[1], [0], [0], [1], [0, 0, 1, 1], [], []>} : vector<7x32xf32>, vector<32x16xf32>, vector<7x16xf32> -> vector<7x16xf32>
    %c472 = arith.constant 472 : index
    %c0_112 = arith.constant 0 : index
    %360 = vector.load %arg4[%c472, %c0_112] : memref<1088x128xf32, #tpu.memory_space<vmem>>, vector<1x16xf32>
    %361 = vector.broadcast %360 : vector<1x16xf32> to vector<7x16xf32>
    %362 = arith.addf %359, %361 : vector<7x16xf32>
    %c440_113 = arith.constant 440 : index
    %c16_114 = arith.constant 16 : index
    %363 = vector.load %arg4[%c440_113, %c16_114] : memref<1088x128xf32, #tpu.memory_space<vmem>>, vector<32x16xf32>
    %cst_115 = arith.constant dense<0.000000e+00> : vector<64x16xf32>
    %364 = tpu.matmul %357, %363, %cst_115 {dimension_numbers = #tpu.dot_dimension_numbers<[1], [0], [0], [1], [0, 0, 1, 1], [], []>} : vector<64x32xf32>, vector<32x16xf32>, vector<64x16xf32> -> vector<64x16xf32>
    %c472_116 = arith.constant 472 : index
    %c16_117 = arith.constant 16 : index
    %365 = vector.load %arg4[%c472_116, %c16_117] : memref<1088x128xf32, #tpu.memory_space<vmem>>, vector<1x16xf32>
    %366 = vector.broadcast %365 : vector<1x16xf32> to vector<64x16xf32>
    %367 = arith.addf %364, %366 : vector<64x16xf32>
    %c440_118 = arith.constant 440 : index
    %c32_119 = arith.constant 32 : index
    %368 = vector.load %arg4[%c440_118, %c32_119] : memref<1088x128xf32, #tpu.memory_space<vmem>>, vector<32x16xf32>
    %cst_120 = arith.constant dense<0.000000e+00> : vector<64x16xf32>
    %369 = tpu.matmul %277, %368, %cst_120 {dimension_numbers = #tpu.dot_dimension_numbers<[1], [0], [0], [1], [0, 0, 1, 1], [], []>} : vector<64x32xf32>, vector<32x16xf32>, vector<64x16xf32> -> vector<64x16xf32>
    %c472_121 = arith.constant 472 : index
    %c32_122 = arith.constant 32 : index
    %370 = vector.load %arg4[%c472_121, %c32_122] : memref<1088x128xf32, #tpu.memory_space<vmem>>, vector<1x16xf32>
    %371 = vector.broadcast %370 : vector<1x16xf32> to vector<64x16xf32>
    %372 = arith.addf %369, %371 : vector<64x16xf32>
    %373 = vector.extract_strided_slice %362 {offsets = [0, 0], sizes = [7, 8], strides = [1, 1]} : vector<7x16xf32> to vector<7x8xf32>
    %374 = vector.extract_strided_slice %362 {offsets = [0, 8], sizes = [7, 8], strides = [1, 1]} : vector<7x16xf32> to vector<7x8xf32>
    %375 = vector.shape_cast %373 : vector<7x8xf32> to vector<1x7x8xf32>
    %376 = vector.shape_cast %374 : vector<7x8xf32> to vector<1x7x8xf32>
    %377 = tpu.concatenate %375, %376 in 0 : vector<1x7x8xf32>, vector<1x7x8xf32> -> vector<2x7x8xf32>
    %378 = vector.extract_strided_slice %367 {offsets = [0, 0], sizes = [64, 8], strides = [1, 1]} : vector<64x16xf32> to vector<64x8xf32>
    %379 = vector.extract_strided_slice %367 {offsets = [0, 8], sizes = [64, 8], strides = [1, 1]} : vector<64x16xf32> to vector<64x8xf32>
    %380 = vector.shape_cast %378 : vector<64x8xf32> to vector<1x64x8xf32>
    %381 = vector.shape_cast %379 : vector<64x8xf32> to vector<1x64x8xf32>
    %382 = tpu.concatenate %380, %381 in 0 : vector<1x64x8xf32>, vector<1x64x8xf32> -> vector<2x64x8xf32>
    %383 = vector.extract_strided_slice %372 {offsets = [0, 0], sizes = [64, 8], strides = [1, 1]} : vector<64x16xf32> to vector<64x8xf32>
    %384 = vector.extract_strided_slice %372 {offsets = [0, 8], sizes = [64, 8], strides = [1, 1]} : vector<64x16xf32> to vector<64x8xf32>
    %385 = vector.shape_cast %383 : vector<64x8xf32> to vector<1x64x8xf32>
    %386 = vector.shape_cast %384 : vector<64x8xf32> to vector<1x64x8xf32>
    %387 = tpu.concatenate %385, %386 in 0 : vector<1x64x8xf32>, vector<1x64x8xf32> -> vector<2x64x8xf32>
    "tpu.trace_start"() <{level = 10 : i32, message = "hqd,hkd->hqk"}> : () -> ()
    %cst_123 = arith.constant dense<0.000000e+00> : vector<2x7x64xf32>
    %388 = tpu.matmul %377, %382, %cst_123 {dimension_numbers = #tpu.dot_dimension_numbers<[2], [2], [1], [1], [0, 0, 0, 1, 1, 1], [0], [0]>} : vector<2x7x8xf32>, vector<2x64x8xf32>, vector<2x7x64xf32> -> vector<2x7x64xf32>
    "tpu.trace_stop"() : () -> ()
    %cst_124 = arith.constant 0.353553385 : f32
    %389 = vector.broadcast %cst_124 : f32 to vector<2x7x64xf32>
    %390 = arith.mulf %388, %389 : vector<2x7x64xf32>
    %cst_125 = arith.constant dense<0xFF800000> : vector<2x7xf32>
    %391 = vector.multi_reduction <maximumf>, %390, %cst_125 [2] : vector<2x7x64xf32> to vector<2x7xf32>
    %392 = vector.shape_cast %391 : vector<2x7xf32> to vector<2x7x1xf32>
    %393 = vector.broadcast %392 : vector<2x7x1xf32> to vector<2x7x64xf32>
    %394 = arith.subf %390, %393 : vector<2x7x64xf32>
    %395 = math.exp %394 : vector<2x7x64xf32>
    %cst_126 = arith.constant dense<0.000000e+00> : vector<2x7xf32>
    %396 = vector.multi_reduction <add>, %395, %cst_126 [2] : vector<2x7x64xf32> to vector<2x7xf32>
    %397 = vector.shape_cast %396 : vector<2x7xf32> to vector<2x7x1xf32>
    %398 = tpu.reciprocal %397 {approx = true} : vector<2x7x1xf32> -> vector<2x7x1xf32>
    %399 = vector.broadcast %398 : vector<2x7x1xf32> to vector<2x7x64xf32>
    %400 = arith.mulf %395, %399 : vector<2x7x64xf32>
    "tpu.trace_start"() <{level = 10 : i32, message = "hqk,hkd->hqd"}> : () -> ()
    %cst_127 = arith.constant dense<0.000000e+00> : vector<2x7x8xf32>
    %401 = tpu.matmul %400, %387, %cst_127 {dimension_numbers = #tpu.dot_dimension_numbers<[2], [1], [1], [2], [0, 0, 0, 1, 1, 2], [0], [0]>} : vector<2x7x64xf32>, vector<2x64x8xf32>, vector<2x7x8xf32> -> vector<2x7x8xf32>
    "tpu.trace_stop"() : () -> ()
    %402 = vector.extract_strided_slice %401 {offsets = [0, 0, 0], sizes = [1, 7, 8], strides = [1, 1, 1]} : vector<2x7x8xf32> to vector<1x7x8xf32>
    %403 = vector.shape_cast %402 : vector<1x7x8xf32> to vector<7x8xf32>
    %404 = vector.extract_strided_slice %401 {offsets = [1, 0, 0], sizes = [1, 7, 8], strides = [1, 1, 1]} : vector<2x7x8xf32> to vector<1x7x8xf32>
    %405 = vector.shape_cast %404 : vector<1x7x8xf32> to vector<7x8xf32>
    %406 = tpu.concatenate %403, %405 in 1 : vector<7x8xf32>, vector<7x8xf32> -> vector<7x16xf32>
    %c480 = arith.constant 480 : index
    %c0_128 = arith.constant 0 : index
    %407 = vector.load %arg4[%c480, %c0_128] : memref<1088x128xf32, #tpu.memory_space<vmem>>, vector<16x32xf32>
    %cst_129 = arith.constant dense<0.000000e+00> : vector<7x32xf32>
    %408 = tpu.matmul %406, %407, %cst_129 {dimension_numbers = #tpu.dot_dimension_numbers<[1], [0], [0], [1], [0, 0, 1, 1], [], []>} : vector<7x16xf32>, vector<16x32xf32>, vector<7x32xf32> -> vector<7x32xf32>
    %c496 = arith.constant 496 : index
    %c0_130 = arith.constant 0 : index
    %409 = vector.load %arg4[%c496, %c0_130] : memref<1088x128xf32, #tpu.memory_space<vmem>>, vector<1x32xf32>
    %410 = vector.broadcast %409 : vector<1x32xf32> to vector<7x32xf32>
    %411 = arith.addf %408, %410 : vector<7x32xf32>
    %412 = arith.addf %355, %411 : vector<7x32xf32>
    %c504 = arith.constant 504 : index
    %c0_131 = arith.constant 0 : index
    %413 = vector.load %arg4[%c504, %c0_131] : memref<1088x128xf32, #tpu.memory_space<vmem>>, vector<2x32xf32>
    %cst_132 = arith.constant dense<0.000000e+00> : vector<7xf32>
    %414 = vector.multi_reduction <add>, %412, %cst_132 [1] : vector<7x32xf32> to vector<7xf32>
    %415 = vector.shape_cast %414 : vector<7xf32> to vector<7x1xf32>
    %cst_133 = arith.constant 3.200000e+01 : f32
    %416 = vector.broadcast %cst_133 : f32 to vector<7x1xf32>
    %417 = arith.divf %415, %416 : vector<7x1xf32>
    %418 = vector.broadcast %417 : vector<7x1xf32> to vector<7x32xf32>
    %419 = arith.subf %412, %418 : vector<7x32xf32>
    %420 = arith.mulf %419, %419 : vector<7x32xf32>
    %cst_134 = arith.constant dense<0.000000e+00> : vector<7xf32>
    %421 = vector.multi_reduction <add>, %420, %cst_134 [1] : vector<7x32xf32> to vector<7xf32>
    %422 = vector.shape_cast %421 : vector<7xf32> to vector<7x1xf32>
    %cst_135 = arith.constant 3.200000e+01 : f32
    %423 = vector.broadcast %cst_135 : f32 to vector<7x1xf32>
    %424 = arith.divf %422, %423 : vector<7x1xf32>
    %425 = vector.broadcast %417 : vector<7x1xf32> to vector<7x32xf32>
    %426 = arith.subf %412, %425 : vector<7x32xf32>
    %cst_136 = arith.constant 9.99999974E-6 : f32
    %427 = vector.broadcast %cst_136 : f32 to vector<7x1xf32>
    %428 = arith.addf %424, %427 : vector<7x1xf32>
    %429 = math.rsqrt %428 : vector<7x1xf32>
    %430 = vector.broadcast %429 : vector<7x1xf32> to vector<7x32xf32>
    %431 = arith.mulf %426, %430 : vector<7x32xf32>
    %432 = vector.extract_strided_slice %413 {offsets = [0, 0], sizes = [1, 32], strides = [1, 1]} : vector<2x32xf32> to vector<1x32xf32>
    %433 = vector.broadcast %432 : vector<1x32xf32> to vector<7x32xf32>
    %434 = arith.mulf %431, %433 : vector<7x32xf32>
    %435 = vector.extract_strided_slice %413 {offsets = [1, 0], sizes = [1, 32], strides = [1, 1]} : vector<2x32xf32> to vector<1x32xf32>
    %436 = vector.broadcast %435 : vector<1x32xf32> to vector<7x32xf32>
    %437 = arith.addf %434, %436 : vector<7x32xf32>
    %c512 = arith.constant 512 : index
    %c0_137 = arith.constant 0 : index
    %438 = vector.load %arg4[%c512, %c0_137] : memref<1088x128xf32, #tpu.memory_space<vmem>>, vector<32x64xf32>
    %cst_138 = arith.constant dense<0.000000e+00> : vector<7x64xf32>
    %439 = tpu.matmul %437, %438, %cst_138 {dimension_numbers = #tpu.dot_dimension_numbers<[1], [0], [0], [1], [0, 0, 1, 1], [], []>} : vector<7x32xf32>, vector<32x64xf32>, vector<7x64xf32> -> vector<7x64xf32>
    %c544 = arith.constant 544 : index
    %c0_139 = arith.constant 0 : index
    %440 = vector.load %arg4[%c544, %c0_139] : memref<1088x128xf32, #tpu.memory_space<vmem>>, vector<1x64xf32>
    %441 = vector.broadcast %440 : vector<1x64xf32> to vector<7x64xf32>
    %442 = arith.addf %439, %441 : vector<7x64xf32>
    %cst_140 = arith.constant 0.000000e+00 : f32
    %443 = vector.broadcast %cst_140 : f32 to vector<7x64xf32>
    %444 = arith.maximumf %442, %443 : vector<7x64xf32>
    %c552 = arith.constant 552 : index
    %c0_141 = arith.constant 0 : index
    %445 = vector.load %arg4[%c552, %c0_141] : memref<1088x128xf32, #tpu.memory_space<vmem>>, vector<64x32xf32>
    %cst_142 = arith.constant dense<0.000000e+00> : vector<7x32xf32>
    %446 = tpu.matmul %444, %445, %cst_142 {dimension_numbers = #tpu.dot_dimension_numbers<[1], [0], [0], [1], [0, 0, 1, 1], [], []>} : vector<7x64xf32>, vector<64x32xf32>, vector<7x32xf32> -> vector<7x32xf32>
    %447 = arith.addf %437, %446 : vector<7x32xf32>
    %c616 = arith.constant 616 : index
    %c0_143 = arith.constant 0 : index
    %448 = vector.load %arg4[%c616, %c0_143] : memref<1088x128xf32, #tpu.memory_space<vmem>>, vector<1x32xf32>
    %449 = vector.broadcast %448 : vector<1x32xf32> to vector<7x32xf32>
    %450 = arith.addf %447, %449 : vector<7x32xf32>
    %c624 = arith.constant 624 : index
    %c0_144 = arith.constant 0 : index
    %451 = vector.load %arg4[%c624, %c0_144] : memref<1088x128xf32, #tpu.memory_space<vmem>>, vector<2x32xf32>
    %cst_145 = arith.constant dense<0.000000e+00> : vector<7xf32>
    %452 = vector.multi_reduction <add>, %450, %cst_145 [1] : vector<7x32xf32> to vector<7xf32>
    %453 = vector.shape_cast %452 : vector<7xf32> to vector<7x1xf32>
    %cst_146 = arith.constant 3.200000e+01 : f32
    %454 = vector.broadcast %cst_146 : f32 to vector<7x1xf32>
    %455 = arith.divf %453, %454 : vector<7x1xf32>
    %456 = vector.broadcast %455 : vector<7x1xf32> to vector<7x32xf32>
    %457 = arith.subf %450, %456 : vector<7x32xf32>
    %458 = arith.mulf %457, %457 : vector<7x32xf32>
    %cst_147 = arith.constant dense<0.000000e+00> : vector<7xf32>
    %459 = vector.multi_reduction <add>, %458, %cst_147 [1] : vector<7x32xf32> to vector<7xf32>
    %460 = vector.shape_cast %459 : vector<7xf32> to vector<7x1xf32>
    %cst_148 = arith.constant 3.200000e+01 : f32
    %461 = vector.broadcast %cst_148 : f32 to vector<7x1xf32>
    %462 = arith.divf %460, %461 : vector<7x1xf32>
    %463 = vector.broadcast %455 : vector<7x1xf32> to vector<7x32xf32>
    %464 = arith.subf %450, %463 : vector<7x32xf32>
    %cst_149 = arith.constant 9.99999974E-6 : f32
    %465 = vector.broadcast %cst_149 : f32 to vector<7x1xf32>
    %466 = arith.addf %462, %465 : vector<7x1xf32>
    %467 = math.rsqrt %466 : vector<7x1xf32>
    %468 = vector.broadcast %467 : vector<7x1xf32> to vector<7x32xf32>
    %469 = arith.mulf %464, %468 : vector<7x32xf32>
    %470 = vector.extract_strided_slice %451 {offsets = [0, 0], sizes = [1, 32], strides = [1, 1]} : vector<2x32xf32> to vector<1x32xf32>
    %471 = vector.broadcast %470 : vector<1x32xf32> to vector<7x32xf32>
    %472 = arith.mulf %469, %471 : vector<7x32xf32>
    %473 = vector.extract_strided_slice %451 {offsets = [1, 0], sizes = [1, 32], strides = [1, 1]} : vector<2x32xf32> to vector<1x32xf32>
    %474 = vector.broadcast %473 : vector<1x32xf32> to vector<7x32xf32>
    %475 = arith.addf %472, %474 : vector<7x32xf32>
    %476 = arith.addf %475, %1 : vector<7x32xf32>
    %477 = arith.addf %277, %3 : vector<64x32xf32>
    %c632 = arith.constant 632 : index
    %c0_150 = arith.constant 0 : index
    %478 = vector.load %arg4[%c632, %c0_150] : memref<1088x128xf32, #tpu.memory_space<vmem>>, vector<32x16xf32>
    %cst_151 = arith.constant dense<0.000000e+00> : vector<64x16xf32>
    %479 = tpu.matmul %477, %478, %cst_151 {dimension_numbers = #tpu.dot_dimension_numbers<[1], [0], [0], [1], [0, 0, 1, 1], [], []>} : vector<64x32xf32>, vector<32x16xf32>, vector<64x16xf32> -> vector<64x16xf32>
    %c664 = arith.constant 664 : index
    %c0_152 = arith.constant 0 : index
    %480 = vector.load %arg4[%c664, %c0_152] : memref<1088x128xf32, #tpu.memory_space<vmem>>, vector<1x16xf32>
    %481 = vector.broadcast %480 : vector<1x16xf32> to vector<64x16xf32>
    %482 = arith.addf %479, %481 : vector<64x16xf32>
    %c632_153 = arith.constant 632 : index
    %c16_154 = arith.constant 16 : index
    %483 = vector.load %arg4[%c632_153, %c16_154] : memref<1088x128xf32, #tpu.memory_space<vmem>>, vector<32x16xf32>
    %cst_155 = arith.constant dense<0.000000e+00> : vector<7x16xf32>
    %484 = tpu.matmul %476, %483, %cst_155 {dimension_numbers = #tpu.dot_dimension_numbers<[1], [0], [0], [1], [0, 0, 1, 1], [], []>} : vector<7x32xf32>, vector<32x16xf32>, vector<7x16xf32> -> vector<7x16xf32>
    %c664_156 = arith.constant 664 : index
    %c16_157 = arith.constant 16 : index
    %485 = vector.load %arg4[%c664_156, %c16_157] : memref<1088x128xf32, #tpu.memory_space<vmem>>, vector<1x16xf32>
    %486 = vector.broadcast %485 : vector<1x16xf32> to vector<7x16xf32>
    %487 = arith.addf %484, %486 : vector<7x16xf32>
    %c632_158 = arith.constant 632 : index
    %c32_159 = arith.constant 32 : index
    %488 = vector.load %arg4[%c632_158, %c32_159] : memref<1088x128xf32, #tpu.memory_space<vmem>>, vector<32x16xf32>
    %cst_160 = arith.constant dense<0.000000e+00> : vector<7x16xf32>
    %489 = tpu.matmul %475, %488, %cst_160 {dimension_numbers = #tpu.dot_dimension_numbers<[1], [0], [0], [1], [0, 0, 1, 1], [], []>} : vector<7x32xf32>, vector<32x16xf32>, vector<7x16xf32> -> vector<7x16xf32>
    %c664_161 = arith.constant 664 : index
    %c32_162 = arith.constant 32 : index
    %490 = vector.load %arg4[%c664_161, %c32_162] : memref<1088x128xf32, #tpu.memory_space<vmem>>, vector<1x16xf32>
    %491 = vector.broadcast %490 : vector<1x16xf32> to vector<7x16xf32>
    %492 = arith.addf %489, %491 : vector<7x16xf32>
    %493 = vector.extract_strided_slice %482 {offsets = [0, 0], sizes = [64, 8], strides = [1, 1]} : vector<64x16xf32> to vector<64x8xf32>
    %494 = vector.extract_strided_slice %482 {offsets = [0, 8], sizes = [64, 8], strides = [1, 1]} : vector<64x16xf32> to vector<64x8xf32>
    %495 = vector.shape_cast %493 : vector<64x8xf32> to vector<1x64x8xf32>
    %496 = vector.shape_cast %494 : vector<64x8xf32> to vector<1x64x8xf32>
    %497 = tpu.concatenate %495, %496 in 0 : vector<1x64x8xf32>, vector<1x64x8xf32> -> vector<2x64x8xf32>
    %498 = vector.extract_strided_slice %487 {offsets = [0, 0], sizes = [7, 8], strides = [1, 1]} : vector<7x16xf32> to vector<7x8xf32>
    %499 = vector.extract_strided_slice %487 {offsets = [0, 8], sizes = [7, 8], strides = [1, 1]} : vector<7x16xf32> to vector<7x8xf32>
    %500 = vector.shape_cast %498 : vector<7x8xf32> to vector<1x7x8xf32>
    %501 = vector.shape_cast %499 : vector<7x8xf32> to vector<1x7x8xf32>
    %502 = tpu.concatenate %500, %501 in 0 : vector<1x7x8xf32>, vector<1x7x8xf32> -> vector<2x7x8xf32>
    %503 = vector.extract_strided_slice %492 {offsets = [0, 0], sizes = [7, 8], strides = [1, 1]} : vector<7x16xf32> to vector<7x8xf32>
    %504 = vector.extract_strided_slice %492 {offsets = [0, 8], sizes = [7, 8], strides = [1, 1]} : vector<7x16xf32> to vector<7x8xf32>
    %505 = vector.shape_cast %503 : vector<7x8xf32> to vector<1x7x8xf32>
    %506 = vector.shape_cast %504 : vector<7x8xf32> to vector<1x7x8xf32>
    %507 = tpu.concatenate %505, %506 in 0 : vector<1x7x8xf32>, vector<1x7x8xf32> -> vector<2x7x8xf32>
    "tpu.trace_start"() <{level = 10 : i32, message = "hqd,hkd->hqk"}> : () -> ()
    %cst_163 = arith.constant dense<0.000000e+00> : vector<2x64x7xf32>
    %508 = tpu.matmul %497, %502, %cst_163 {dimension_numbers = #tpu.dot_dimension_numbers<[2], [2], [1], [1], [0, 0, 0, 1, 1, 1], [0], [0]>} : vector<2x64x8xf32>, vector<2x7x8xf32>, vector<2x64x7xf32> -> vector<2x64x7xf32>
    "tpu.trace_stop"() : () -> ()
    %cst_164 = arith.constant 0.353553385 : f32
    %509 = vector.broadcast %cst_164 : f32 to vector<2x64x7xf32>
    %510 = arith.mulf %508, %509 : vector<2x64x7xf32>
    %cst_165 = arith.constant dense<0xFF800000> : vector<2x64xf32>
    %511 = vector.multi_reduction <maximumf>, %510, %cst_165 [2] : vector<2x64x7xf32> to vector<2x64xf32>
    %512 = vector.shape_cast %511 : vector<2x64xf32> to vector<2x64x1xf32>
    %513 = vector.broadcast %512 : vector<2x64x1xf32> to vector<2x64x7xf32>
    %514 = arith.subf %510, %513 : vector<2x64x7xf32>
    %515 = math.exp %514 : vector<2x64x7xf32>
    %cst_166 = arith.constant dense<0.000000e+00> : vector<2x64xf32>
    %516 = vector.multi_reduction <add>, %515, %cst_166 [2] : vector<2x64x7xf32> to vector<2x64xf32>
    %517 = vector.shape_cast %516 : vector<2x64xf32> to vector<2x64x1xf32>
    %518 = tpu.reciprocal %517 {approx = true} : vector<2x64x1xf32> -> vector<2x64x1xf32>
    %519 = vector.broadcast %518 : vector<2x64x1xf32> to vector<2x64x7xf32>
    %520 = arith.mulf %515, %519 : vector<2x64x7xf32>
    "tpu.trace_start"() <{level = 10 : i32, message = "hqk,hkd->hqd"}> : () -> ()
    %cst_167 = arith.constant dense<0.000000e+00> : vector<2x64x8xf32>
    %521 = tpu.matmul %520, %507, %cst_167 {dimension_numbers = #tpu.dot_dimension_numbers<[2], [1], [1], [2], [0, 0, 0, 1, 1, 2], [0], [0]>} : vector<2x64x7xf32>, vector<2x7x8xf32>, vector<2x64x8xf32> -> vector<2x64x8xf32>
    "tpu.trace_stop"() : () -> ()
    %522 = vector.extract_strided_slice %521 {offsets = [0, 0, 0], sizes = [1, 64, 8], strides = [1, 1, 1]} : vector<2x64x8xf32> to vector<1x64x8xf32>
    %523 = vector.shape_cast %522 : vector<1x64x8xf32> to vector<64x8xf32>
    %524 = vector.extract_strided_slice %521 {offsets = [1, 0, 0], sizes = [1, 64, 8], strides = [1, 1, 1]} : vector<2x64x8xf32> to vector<1x64x8xf32>
    %525 = vector.shape_cast %524 : vector<1x64x8xf32> to vector<64x8xf32>
    %526 = tpu.concatenate %523, %525 in 1 : vector<64x8xf32>, vector<64x8xf32> -> vector<64x16xf32>
    %c672 = arith.constant 672 : index
    %c0_168 = arith.constant 0 : index
    %527 = vector.load %arg4[%c672, %c0_168] : memref<1088x128xf32, #tpu.memory_space<vmem>>, vector<16x32xf32>
    %cst_169 = arith.constant dense<0.000000e+00> : vector<64x32xf32>
    %528 = tpu.matmul %526, %527, %cst_169 {dimension_numbers = #tpu.dot_dimension_numbers<[1], [0], [0], [1], [0, 0, 1, 1], [], []>} : vector<64x16xf32>, vector<16x32xf32>, vector<64x32xf32> -> vector<64x32xf32>
    %c688 = arith.constant 688 : index
    %c0_170 = arith.constant 0 : index
    %529 = vector.load %arg4[%c688, %c0_170] : memref<1088x128xf32, #tpu.memory_space<vmem>>, vector<1x32xf32>
    %530 = vector.broadcast %529 : vector<1x32xf32> to vector<64x32xf32>
    %531 = arith.addf %528, %530 : vector<64x32xf32>
    %532 = arith.addf %277, %531 : vector<64x32xf32>
    %c696 = arith.constant 696 : index
    %c0_171 = arith.constant 0 : index
    %533 = vector.load %arg4[%c696, %c0_171] : memref<1088x128xf32, #tpu.memory_space<vmem>>, vector<2x32xf32>
    %cst_172 = arith.constant dense<0.000000e+00> : vector<64xf32>
    %534 = vector.multi_reduction <add>, %532, %cst_172 [1] : vector<64x32xf32> to vector<64xf32>
    %535 = vector.shape_cast %534 : vector<64xf32> to vector<64x1xf32>
    %cst_173 = arith.constant 3.200000e+01 : f32
    %536 = vector.broadcast %cst_173 : f32 to vector<64x1xf32>
    %537 = arith.divf %535, %536 : vector<64x1xf32>
    %538 = vector.broadcast %537 : vector<64x1xf32> to vector<64x32xf32>
    %539 = arith.subf %532, %538 : vector<64x32xf32>
    %540 = arith.mulf %539, %539 : vector<64x32xf32>
    %cst_174 = arith.constant dense<0.000000e+00> : vector<64xf32>
    %541 = vector.multi_reduction <add>, %540, %cst_174 [1] : vector<64x32xf32> to vector<64xf32>
    %542 = vector.shape_cast %541 : vector<64xf32> to vector<64x1xf32>
    %cst_175 = arith.constant 3.200000e+01 : f32
    %543 = vector.broadcast %cst_175 : f32 to vector<64x1xf32>
    %544 = arith.divf %542, %543 : vector<64x1xf32>
    %545 = vector.broadcast %537 : vector<64x1xf32> to vector<64x32xf32>
    %546 = arith.subf %532, %545 : vector<64x32xf32>
    %cst_176 = arith.constant 9.99999974E-6 : f32
    %547 = vector.broadcast %cst_176 : f32 to vector<64x1xf32>
    %548 = arith.addf %544, %547 : vector<64x1xf32>
    %549 = math.rsqrt %548 : vector<64x1xf32>
    %550 = vector.broadcast %549 : vector<64x1xf32> to vector<64x32xf32>
    %551 = arith.mulf %546, %550 : vector<64x32xf32>
    %552 = vector.extract_strided_slice %533 {offsets = [0, 0], sizes = [1, 32], strides = [1, 1]} : vector<2x32xf32> to vector<1x32xf32>
    %553 = vector.broadcast %552 : vector<1x32xf32> to vector<64x32xf32>
    %554 = arith.mulf %551, %553 : vector<64x32xf32>
    %555 = vector.extract_strided_slice %533 {offsets = [1, 0], sizes = [1, 32], strides = [1, 1]} : vector<2x32xf32> to vector<1x32xf32>
    %556 = vector.broadcast %555 : vector<1x32xf32> to vector<64x32xf32>
    %557 = arith.addf %554, %556 : vector<64x32xf32>
    %558 = arith.addf %475, %1 : vector<7x32xf32>
    %559 = arith.addf %557, %3 : vector<64x32xf32>
    %c704 = arith.constant 704 : index
    %c0_177 = arith.constant 0 : index
    %560 = vector.load %arg4[%c704, %c0_177] : memref<1088x128xf32, #tpu.memory_space<vmem>>, vector<32x16xf32>
    %cst_178 = arith.constant dense<0.000000e+00> : vector<7x16xf32>
    %561 = tpu.matmul %558, %560, %cst_178 {dimension_numbers = #tpu.dot_dimension_numbers<[1], [0], [0], [1], [0, 0, 1, 1], [], []>} : vector<7x32xf32>, vector<32x16xf32>, vector<7x16xf32> -> vector<7x16xf32>
    %c736 = arith.constant 736 : index
    %c0_179 = arith.constant 0 : index
    %562 = vector.load %arg4[%c736, %c0_179] : memref<1088x128xf32, #tpu.memory_space<vmem>>, vector<1x16xf32>
    %563 = vector.broadcast %562 : vector<1x16xf32> to vector<7x16xf32>
    %564 = arith.addf %561, %563 : vector<7x16xf32>
    %c704_180 = arith.constant 704 : index
    %c16_181 = arith.constant 16 : index
    %565 = vector.load %arg4[%c704_180, %c16_181] : memref<1088x128xf32, #tpu.memory_space<vmem>>, vector<32x16xf32>
    %cst_182 = arith.constant dense<0.000000e+00> : vector<64x16xf32>
    %566 = tpu.matmul %559, %565, %cst_182 {dimension_numbers = #tpu.dot_dimension_numbers<[1], [0], [0], [1], [0, 0, 1, 1], [], []>} : vector<64x32xf32>, vector<32x16xf32>, vector<64x16xf32> -> vector<64x16xf32>
    %c736_183 = arith.constant 736 : index
    %c16_184 = arith.constant 16 : index
    %567 = vector.load %arg4[%c736_183, %c16_184] : memref<1088x128xf32, #tpu.memory_space<vmem>>, vector<1x16xf32>
    %568 = vector.broadcast %567 : vector<1x16xf32> to vector<64x16xf32>
    %569 = arith.addf %566, %568 : vector<64x16xf32>
    %c704_185 = arith.constant 704 : index
    %c32_186 = arith.constant 32 : index
    %570 = vector.load %arg4[%c704_185, %c32_186] : memref<1088x128xf32, #tpu.memory_space<vmem>>, vector<32x16xf32>
    %cst_187 = arith.constant dense<0.000000e+00> : vector<64x16xf32>
    %571 = tpu.matmul %557, %570, %cst_187 {dimension_numbers = #tpu.dot_dimension_numbers<[1], [0], [0], [1], [0, 0, 1, 1], [], []>} : vector<64x32xf32>, vector<32x16xf32>, vector<64x16xf32> -> vector<64x16xf32>
    %c736_188 = arith.constant 736 : index
    %c32_189 = arith.constant 32 : index
    %572 = vector.load %arg4[%c736_188, %c32_189] : memref<1088x128xf32, #tpu.memory_space<vmem>>, vector<1x16xf32>
    %573 = vector.broadcast %572 : vector<1x16xf32> to vector<64x16xf32>
    %574 = arith.addf %571, %573 : vector<64x16xf32>
    %575 = vector.extract_strided_slice %564 {offsets = [0, 0], sizes = [7, 8], strides = [1, 1]} : vector<7x16xf32> to vector<7x8xf32>
    %576 = vector.extract_strided_slice %564 {offsets = [0, 8], sizes = [7, 8], strides = [1, 1]} : vector<7x16xf32> to vector<7x8xf32>
    %577 = vector.shape_cast %575 : vector<7x8xf32> to vector<1x7x8xf32>
    %578 = vector.shape_cast %576 : vector<7x8xf32> to vector<1x7x8xf32>
    %579 = tpu.concatenate %577, %578 in 0 : vector<1x7x8xf32>, vector<1x7x8xf32> -> vector<2x7x8xf32>
    %580 = vector.extract_strided_slice %569 {offsets = [0, 0], sizes = [64, 8], strides = [1, 1]} : vector<64x16xf32> to vector<64x8xf32>
    %581 = vector.extract_strided_slice %569 {offsets = [0, 8], sizes = [64, 8], strides = [1, 1]} : vector<64x16xf32> to vector<64x8xf32>
    %582 = vector.shape_cast %580 : vector<64x8xf32> to vector<1x64x8xf32>
    %583 = vector.shape_cast %581 : vector<64x8xf32> to vector<1x64x8xf32>
    %584 = tpu.concatenate %582, %583 in 0 : vector<1x64x8xf32>, vector<1x64x8xf32> -> vector<2x64x8xf32>
    %585 = vector.extract_strided_slice %574 {offsets = [0, 0], sizes = [64, 8], strides = [1, 1]} : vector<64x16xf32> to vector<64x8xf32>
    %586 = vector.extract_strided_slice %574 {offsets = [0, 8], sizes = [64, 8], strides = [1, 1]} : vector<64x16xf32> to vector<64x8xf32>
    %587 = vector.shape_cast %585 : vector<64x8xf32> to vector<1x64x8xf32>
    %588 = vector.shape_cast %586 : vector<64x8xf32> to vector<1x64x8xf32>
    %589 = tpu.concatenate %587, %588 in 0 : vector<1x64x8xf32>, vector<1x64x8xf32> -> vector<2x64x8xf32>
    "tpu.trace_start"() <{level = 10 : i32, message = "hqd,hkd->hqk"}> : () -> ()
    %cst_190 = arith.constant dense<0.000000e+00> : vector<2x7x64xf32>
    %590 = tpu.matmul %579, %584, %cst_190 {dimension_numbers = #tpu.dot_dimension_numbers<[2], [2], [1], [1], [0, 0, 0, 1, 1, 1], [0], [0]>} : vector<2x7x8xf32>, vector<2x64x8xf32>, vector<2x7x64xf32> -> vector<2x7x64xf32>
    "tpu.trace_stop"() : () -> ()
    %cst_191 = arith.constant 0.353553385 : f32
    %591 = vector.broadcast %cst_191 : f32 to vector<2x7x64xf32>
    %592 = arith.mulf %590, %591 : vector<2x7x64xf32>
    %cst_192 = arith.constant dense<0xFF800000> : vector<2x7xf32>
    %593 = vector.multi_reduction <maximumf>, %592, %cst_192 [2] : vector<2x7x64xf32> to vector<2x7xf32>
    %594 = vector.shape_cast %593 : vector<2x7xf32> to vector<2x7x1xf32>
    %595 = vector.broadcast %594 : vector<2x7x1xf32> to vector<2x7x64xf32>
    %596 = arith.subf %592, %595 : vector<2x7x64xf32>
    %597 = math.exp %596 : vector<2x7x64xf32>
    %cst_193 = arith.constant dense<0.000000e+00> : vector<2x7xf32>
    %598 = vector.multi_reduction <add>, %597, %cst_193 [2] : vector<2x7x64xf32> to vector<2x7xf32>
    %599 = vector.shape_cast %598 : vector<2x7xf32> to vector<2x7x1xf32>
    %600 = tpu.reciprocal %599 {approx = true} : vector<2x7x1xf32> -> vector<2x7x1xf32>
    %601 = vector.broadcast %600 : vector<2x7x1xf32> to vector<2x7x64xf32>
    %602 = arith.mulf %597, %601 : vector<2x7x64xf32>
    "tpu.trace_start"() <{level = 10 : i32, message = "hqk,hkd->hqd"}> : () -> ()
    %cst_194 = arith.constant dense<0.000000e+00> : vector<2x7x8xf32>
    %603 = tpu.matmul %602, %589, %cst_194 {dimension_numbers = #tpu.dot_dimension_numbers<[2], [1], [1], [2], [0, 0, 0, 1, 1, 2], [0], [0]>} : vector<2x7x64xf32>, vector<2x64x8xf32>, vector<2x7x8xf32> -> vector<2x7x8xf32>
    "tpu.trace_stop"() : () -> ()
    %604 = vector.extract_strided_slice %603 {offsets = [0, 0, 0], sizes = [1, 7, 8], strides = [1, 1, 1]} : vector<2x7x8xf32> to vector<1x7x8xf32>
    %605 = vector.shape_cast %604 : vector<1x7x8xf32> to vector<7x8xf32>
    %606 = vector.extract_strided_slice %603 {offsets = [1, 0, 0], sizes = [1, 7, 8], strides = [1, 1, 1]} : vector<2x7x8xf32> to vector<1x7x8xf32>
    %607 = vector.shape_cast %606 : vector<1x7x8xf32> to vector<7x8xf32>
    %608 = tpu.concatenate %605, %607 in 1 : vector<7x8xf32>, vector<7x8xf32> -> vector<7x16xf32>
    %c744 = arith.constant 744 : index
    %c0_195 = arith.constant 0 : index
    %609 = vector.load %arg4[%c744, %c0_195] : memref<1088x128xf32, #tpu.memory_space<vmem>>, vector<16x32xf32>
    %cst_196 = arith.constant dense<0.000000e+00> : vector<7x32xf32>
    %610 = tpu.matmul %608, %609, %cst_196 {dimension_numbers = #tpu.dot_dimension_numbers<[1], [0], [0], [1], [0, 0, 1, 1], [], []>} : vector<7x16xf32>, vector<16x32xf32>, vector<7x32xf32> -> vector<7x32xf32>
    %c760 = arith.constant 760 : index
    %c0_197 = arith.constant 0 : index
    %611 = vector.load %arg4[%c760, %c0_197] : memref<1088x128xf32, #tpu.memory_space<vmem>>, vector<1x32xf32>
    %612 = vector.broadcast %611 : vector<1x32xf32> to vector<7x32xf32>
    %613 = arith.addf %610, %612 : vector<7x32xf32>
    %614 = arith.addf %475, %613 : vector<7x32xf32>
    %c768 = arith.constant 768 : index
    %c0_198 = arith.constant 0 : index
    %615 = vector.load %arg4[%c768, %c0_198] : memref<1088x128xf32, #tpu.memory_space<vmem>>, vector<2x32xf32>
    %cst_199 = arith.constant dense<0.000000e+00> : vector<7xf32>
    %616 = vector.multi_reduction <add>, %614, %cst_199 [1] : vector<7x32xf32> to vector<7xf32>
    %617 = vector.shape_cast %616 : vector<7xf32> to vector<7x1xf32>
    %cst_200 = arith.constant 3.200000e+01 : f32
    %618 = vector.broadcast %cst_200 : f32 to vector<7x1xf32>
    %619 = arith.divf %617, %618 : vector<7x1xf32>
    %620 = vector.broadcast %619 : vector<7x1xf32> to vector<7x32xf32>
    %621 = arith.subf %614, %620 : vector<7x32xf32>
    %622 = arith.mulf %621, %621 : vector<7x32xf32>
    %cst_201 = arith.constant dense<0.000000e+00> : vector<7xf32>
    %623 = vector.multi_reduction <add>, %622, %cst_201 [1] : vector<7x32xf32> to vector<7xf32>
    %624 = vector.shape_cast %623 : vector<7xf32> to vector<7x1xf32>
    %cst_202 = arith.constant 3.200000e+01 : f32
    %625 = vector.broadcast %cst_202 : f32 to vector<7x1xf32>
    %626 = arith.divf %624, %625 : vector<7x1xf32>
    %627 = vector.broadcast %619 : vector<7x1xf32> to vector<7x32xf32>
    %628 = arith.subf %614, %627 : vector<7x32xf32>
    %cst_203 = arith.constant 9.99999974E-6 : f32
    %629 = vector.broadcast %cst_203 : f32 to vector<7x1xf32>
    %630 = arith.addf %626, %629 : vector<7x1xf32>
    %631 = math.rsqrt %630 : vector<7x1xf32>
    %632 = vector.broadcast %631 : vector<7x1xf32> to vector<7x32xf32>
    %633 = arith.mulf %628, %632 : vector<7x32xf32>
    %634 = vector.extract_strided_slice %615 {offsets = [0, 0], sizes = [1, 32], strides = [1, 1]} : vector<2x32xf32> to vector<1x32xf32>
    %635 = vector.broadcast %634 : vector<1x32xf32> to vector<7x32xf32>
    %636 = arith.mulf %633, %635 : vector<7x32xf32>
    %637 = vector.extract_strided_slice %615 {offsets = [1, 0], sizes = [1, 32], strides = [1, 1]} : vector<2x32xf32> to vector<1x32xf32>
    %638 = vector.broadcast %637 : vector<1x32xf32> to vector<7x32xf32>
    %639 = arith.addf %636, %638 : vector<7x32xf32>
    %640 = vector.extract_strided_slice %639 {offsets = [1, 0], sizes = [1, 32], strides = [1, 1]} : vector<7x32xf32> to vector<1x32xf32>
    %c776 = arith.constant 776 : index
    %c0_204 = arith.constant 0 : index
    %641 = vector.load %arg4[%c776, %c0_204] : memref<1088x128xf32, #tpu.memory_space<vmem>>, vector<32x32xf32>
    %cst_205 = arith.constant dense<0.000000e+00> : vector<1x32xf32>
    %642 = tpu.matmul %640, %641, %cst_205 {dimension_numbers = #tpu.dot_dimension_numbers<[1], [0], [0], [1], [0, 0, 1, 1], [], []>} : vector<1x32xf32>, vector<32x32xf32>, vector<1x32xf32> -> vector<1x32xf32>
    %c808 = arith.constant 808 : index
    %c0_206 = arith.constant 0 : index
    %643 = vector.load %arg4[%c808, %c0_206] : memref<1088x128xf32, #tpu.memory_space<vmem>>, vector<1x32xf32>
    %644 = arith.addf %642, %643 : vector<1x32xf32>
    %cst_207 = arith.constant 0.000000e+00 : f32
    %645 = vector.broadcast %cst_207 : f32 to vector<1x32xf32>
    %646 = arith.maximumf %644, %645 : vector<1x32xf32>
    %c816 = arith.constant 816 : index
    %c0_208 = arith.constant 0 : index
    %647 = vector.load %arg4[%c816, %c0_208] : memref<1088x128xf32, #tpu.memory_space<vmem>>, vector<32x32xf32>
    %cst_209 = arith.constant dense<0.000000e+00> : vector<1x32xf32>
    %648 = tpu.matmul %646, %647, %cst_209 {dimension_numbers = #tpu.dot_dimension_numbers<[1], [0], [0], [1], [0, 0, 1, 1], [], []>} : vector<1x32xf32>, vector<32x32xf32>, vector<1x32xf32> -> vector<1x32xf32>
    %c848 = arith.constant 848 : index
    %c0_210 = arith.constant 0 : index
    %649 = vector.load %arg4[%c848, %c0_210] : memref<1088x128xf32, #tpu.memory_space<vmem>>, vector<1x32xf32>
    %650 = arith.addf %648, %649 : vector<1x32xf32>
    %cst_211 = arith.constant 0.000000e+00 : f32
    %651 = vector.broadcast %cst_211 : f32 to vector<1x32xf32>
    %652 = arith.maximumf %650, %651 : vector<1x32xf32>
    %c856 = arith.constant 856 : index
    %c0_212 = arith.constant 0 : index
    %653 = vector.load %arg4[%c856, %c0_212] : memref<1088x128xf32, #tpu.memory_space<vmem>>, vector<32x64xf32>
    %cst_213 = arith.constant dense<0.000000e+00> : vector<1x64xf32>
    %654 = tpu.matmul %652, %653, %cst_213 {dimension_numbers = #tpu.dot_dimension_numbers<[1], [0], [0], [1], [0, 0, 1, 1], [], []>} : vector<1x32xf32>, vector<32x64xf32>, vector<1x64xf32> -> vector<1x64xf32>
    %c888 = arith.constant 888 : index
    %c0_214 = arith.constant 0 : index
    %655 = vector.load %arg4[%c888, %c0_214] : memref<1088x128xf32, #tpu.memory_space<vmem>>, vector<1x64xf32>
    %656 = arith.addf %654, %655 : vector<1x64xf32>
    %c896 = arith.constant 896 : index
    %c0_215 = arith.constant 0 : index
    %657 = vector.load %arg4[%c896, %c0_215] : memref<1088x128xf32, #tpu.memory_space<vmem>>, vector<32x32xf32>
    %cst_216 = arith.constant dense<0.000000e+00> : vector<64x32xf32>
    %658 = tpu.matmul %557, %657, %cst_216 {dimension_numbers = #tpu.dot_dimension_numbers<[1], [0], [0], [1], [0, 0, 1, 1], [], []>} : vector<64x32xf32>, vector<32x32xf32>, vector<64x32xf32> -> vector<64x32xf32>
    %c928 = arith.constant 928 : index
    %c0_217 = arith.constant 0 : index
    %659 = vector.load %arg4[%c928, %c0_217] : memref<1088x128xf32, #tpu.memory_space<vmem>>, vector<1x32xf32>
    %660 = vector.broadcast %659 : vector<1x32xf32> to vector<64x32xf32>
    %661 = arith.addf %658, %660 : vector<64x32xf32>
    %c992 = arith.constant 992 : index
    %c0_218 = arith.constant 0 : index
    %662 = vector.load %arg4[%c992, %c0_218] : memref<1088x128xf32, #tpu.memory_space<vmem>>, vector<32x32xf32>
    %cst_219 = arith.constant dense<0.000000e+00> : vector<64x32xf32>
    %663 = tpu.matmul %661, %662, %cst_219 {dimension_numbers = #tpu.dot_dimension_numbers<[1], [0], [0], [1], [0, 0, 1, 1], [], []>} : vector<64x32xf32>, vector<32x32xf32>, vector<64x32xf32> -> vector<64x32xf32>
    %664 = arith.subf %661, %663 : vector<64x32xf32>
    %665 = arith.mulf %664, %664 : vector<64x32xf32>
    %cst_220 = arith.constant dense<0.000000e+00> : vector<64x32xf32>
    %666 = tpu.matmul %665, %662, %cst_220 {dimension_numbers = #tpu.dot_dimension_numbers<[1], [0], [0], [1], [0, 0, 1, 1], [], []>} : vector<64x32xf32>, vector<32x32xf32>, vector<64x32xf32> -> vector<64x32xf32>
    %667 = arith.subf %661, %663 : vector<64x32xf32>
    %cst_221 = arith.constant 9.99999997E-7 : f32
    %668 = vector.broadcast %cst_221 : f32 to vector<64x32xf32>
    %669 = arith.addf %666, %668 : vector<64x32xf32>
    %670 = math.rsqrt %669 : vector<64x32xf32>
    %671 = arith.mulf %667, %670 : vector<64x32xf32>
    %c936 = arith.constant 936 : index
    %c0_222 = arith.constant 0 : index
    %672 = vector.load %arg4[%c936, %c0_222] : memref<1088x128xf32, #tpu.memory_space<vmem>>, vector<1x32xf32>
    %673 = vector.broadcast %672 : vector<1x32xf32> to vector<64x32xf32>
    %674 = arith.mulf %671, %673 : vector<64x32xf32>
    %c944 = arith.constant 944 : index
    %c0_223 = arith.constant 0 : index
    %675 = vector.load %arg4[%c944, %c0_223] : memref<1088x128xf32, #tpu.memory_space<vmem>>, vector<1x32xf32>
    %676 = vector.broadcast %675 : vector<1x32xf32> to vector<64x32xf32>
    %677 = arith.addf %674, %676 : vector<64x32xf32>
    %678 = arith.mulf %677, %677 : vector<64x32xf32>
    %679 = arith.mulf %677, %678 : vector<64x32xf32>
    %cst_224 = arith.constant 4.471500e-02 : f32
    %680 = vector.broadcast %cst_224 : f32 to vector<64x32xf32>
    %681 = arith.mulf %680, %679 : vector<64x32xf32>
    %682 = arith.addf %677, %681 : vector<64x32xf32>
    %cst_225 = arith.constant 0.797884583 : f32
    %683 = vector.broadcast %cst_225 : f32 to vector<64x32xf32>
    %684 = arith.mulf %683, %682 : vector<64x32xf32>
    %685 = math.tanh %684 : vector<64x32xf32>
    %cst_226 = arith.constant 1.000000e+00 : f32
    %686 = vector.broadcast %cst_226 : f32 to vector<64x32xf32>
    %687 = arith.addf %686, %685 : vector<64x32xf32>
    %cst_227 = arith.constant 5.000000e-01 : f32
    %688 = vector.broadcast %cst_227 : f32 to vector<64x32xf32>
    %689 = arith.mulf %688, %687 : vector<64x32xf32>
    %690 = arith.mulf %677, %689 : vector<64x32xf32>
    %c952 = arith.constant 952 : index
    %c0_228 = arith.constant 0 : index
    %691 = vector.load %arg4[%c952, %c0_228] : memref<1088x128xf32, #tpu.memory_space<vmem>>, vector<32x64xf32>
    %cst_229 = arith.constant dense<0.000000e+00> : vector<64x64xf32>
    %692 = tpu.matmul %690, %691, %cst_229 {dimension_numbers = #tpu.dot_dimension_numbers<[1], [0], [0], [1], [0, 0, 1, 1], [], []>} : vector<64x32xf32>, vector<32x64xf32>, vector<64x64xf32> -> vector<64x64xf32>
    %c984 = arith.constant 984 : index
    %c0_230 = arith.constant 0 : index
    %693 = vector.load %arg4[%c984, %c0_230] : memref<1088x128xf32, #tpu.memory_space<vmem>>, vector<1x64xf32>
    %694 = vector.broadcast %693 : vector<1x64xf32> to vector<64x64xf32>
    %695 = arith.addf %692, %694 : vector<64x64xf32>
    %696 = arith.mulf %695, %695 : vector<64x64xf32>
    %697 = arith.mulf %695, %696 : vector<64x64xf32>
    %cst_231 = arith.constant 4.471500e-02 : f32
    %698 = vector.broadcast %cst_231 : f32 to vector<64x64xf32>
    %699 = arith.mulf %698, %697 : vector<64x64xf32>
    %700 = arith.addf %695, %699 : vector<64x64xf32>
    %cst_232 = arith.constant 0.797884583 : f32
    %701 = vector.broadcast %cst_232 : f32 to vector<64x64xf32>
    %702 = arith.mulf %701, %700 : vector<64x64xf32>
    %703 = math.tanh %702 : vector<64x64xf32>
    %cst_233 = arith.constant 1.000000e+00 : f32
    %704 = vector.broadcast %cst_233 : f32 to vector<64x64xf32>
    %705 = arith.addf %704, %703 : vector<64x64xf32>
    %cst_234 = arith.constant 5.000000e-01 : f32
    %706 = vector.broadcast %cst_234 : f32 to vector<64x64xf32>
    %707 = arith.mulf %706, %705 : vector<64x64xf32>
    %708 = arith.mulf %695, %707 : vector<64x64xf32>
    %709 = vector.broadcast %656 : vector<1x64xf32> to vector<64x64xf32>
    %710 = arith.mulf %708, %709 : vector<64x64xf32>
    %c1024 = arith.constant 1024 : index
    %c0_235 = arith.constant 0 : index
    %711 = vector.load %arg4[%c1024, %c0_235] : memref<1088x128xf32, #tpu.memory_space<vmem>>, vector<64x16xf32>
    %cst_236 = arith.constant dense<0.000000e+00> : vector<64x16xf32>
    %712 = tpu.matmul %710, %711, %cst_236 {dimension_numbers = #tpu.dot_dimension_numbers<[1], [0], [0], [1], [0, 0, 1, 1], [], []>} : vector<64x64xf32>, vector<64x16xf32>, vector<64x16xf32> -> vector<64x16xf32>
    %c0_237 = arith.constant 0 : index
    %c0_238 = arith.constant 0 : index
    %c0_239 = arith.constant 0 : index
    %713 = vector.load %arg5[%c0_237, %c0_238, %c0_239] : memref<1x64x16xf32, #tpu.memory_space<vmem>>, vector<1x64x16xf32>
    %714 = vector.shape_cast %713 : vector<1x64x16xf32> to vector<64x16xf32>
    %715 = vector.shape_cast %712 : vector<64x16xf32> to vector<1x64x16xf32>
    tpu.vector_store %arg5[%c0_237, %c0_238, %c0_239], %715 {strides = array<i32>} : memref<1x64x16xf32, #tpu.memory_space<vmem>>, vector<1x64x16xf32>,
    return
  }
  func.func @transform_0(%arg0: i32) -> (i32, i32, i32) {
    %c0_i32 = arith.constant 0 : i32
    %c0_i32_0 = arith.constant 0 : i32
    %c0_i32_1 = arith.constant 0 : i32
    return %arg0, %c0_i32, %c0_i32_0 : i32, i32, i32
  }
  func.func @transform_1(%arg0: i32) -> (i32, i32) {
    %c0_i32 = arith.constant 0 : i32
    %c0_i32_0 = arith.constant 0 : i32
    %c0_i32_1 = arith.constant 0 : i32
    return %c0_i32, %c0_i32_0 : i32, i32
  }
  func.func @transform_2(%arg0: i32) -> (i32, i32) {
    %c0_i32 = arith.constant 0 : i32
    %c0_i32_0 = arith.constant 0 : i32
    %c0_i32_1 = arith.constant 0 : i32
    return %c0_i32, %c0_i32_0 : i32, i32
  }
  func.func @transform_3(%arg0: i32) -> (i32, i32) {
    %c0_i32 = arith.constant 0 : i32
    %c0_i32_0 = arith.constant 0 : i32
    %c0_i32_1 = arith.constant 0 : i32
    return %c0_i32, %c0_i32_0 : i32, i32
  }
  func.func @transform_4(%arg0: i32) -> (i32, i32, i32) {
    %c0_i32 = arith.constant 0 : i32
    %c0_i32_0 = arith.constant 0 : i32
    %c0_i32_1 = arith.constant 0 : i32
    return %arg0, %c0_i32, %c0_i32_0 : i32, i32, i32
  }
}

</mosaic_0001>

<bundles_post_ra>
// kernel: forward.1
= control target key start
LH: loop header
LB: loop body
LE: loop exit
PB: predicated region body
PF: predicated region fallthrough
CT: control target
= control target key end

     0   :  { %9 = vsyncpa [#allocation3], 0  ;;  %s11101_s15 = smov 0   ;;  %s12969_s0 = inlined_call_operand.vmem [shape: f32[2,7,32], index: 0, kind: input, shape index: {}]   ;;  %s12970_s1 = inlined_call_operand.vmem [shape: f32[64,32], index: 1, kind: input, shape index: {}]   ;;  %s12971_s2 = inlined_call_operand.vmem [shape: f32[64,32], index: 2, kind: input, shape index: {}]   ;;  %s12972_s3 = inlined_call_operand.hbm [shape: f32[1088,128], index: 3, kind: input, shape index: {}]   ;;  %s12973_s4 = inlined_call_operand.vmem [shape: f32[2,64,16], index: 4, kind: output, shape index: {}]  }
   0x1 LB: > { %s11107_s16 = sadd.s32 4294967295, %s11062_s15   ;;  %p8316_p0 = scmp.ge.s32.totalorder %s11062_s15, 1  ;;  %s11062_s15 = sphi %s11101_s15, %s15_s15  }
   0x2   : > { %p135_p1 = scmp.lt.s32.totalorder %s11062_s15, 3  ;;  %s11064_s17 = smov [#allocation2]  }
   0x3   : > { %s153_s18 = sshll.u32 %s11064_s17, 4  ;;  %p12974_p3 = scmp.eq.s32.totalorder %s11107_s16, 0  ;;  %s154_s18 = int_to_ptr.vmem [resolvable:$true] %s153_s18 }
   0x4   : > { %p11111_p2 = pnand %p8316_p0, %p135_p1  ;;  %s11024_s23 = scalar_lea.hbm %s12972_s3, 17408 }
   0x5   : > { %p11025_p6 = scmp.ne.s32.totalorder %s12972_s3, %s11024_s23  ;;  %p11031_p10 = scmp.lt.u32.totalorder %s11024_s23, %s12972_s3 }
   0x6   : > { %s12976_s19 = scalar_select %p11111_p2, 1, 0 }
   0x7   : > { %p10480_p4 = pneg %p11111_p2 }
   0x9   : > { %p11120_p5 = pnand %p12974_p3, %p10480_p4 }
   0xb   : > { %p11026_p7 = pneg %p11120_p5 }
   0xd   : > { %p11027_p8 = pnand %p11026_p7, %p11025_p6 }
   0xf   : > { %p11028_p9 = pneg %p11027_p8 }
  0x11   : > { %p11033_p11 = pnand %p11031_p10, %p11028_p9 }
  0x13   : > { %11036 = shalt.err (!%p11033_p11)
}
  0x14   : > { %s11037_s28 = scalar_lea.vmem %s154_s18, 17408  ;;  %p11045_p1 = scmp.lt.s32.totalorder %s154_s18, %s154_s18 }
  0x15   : > { %p11038_p12 = scmp.ne.s32.totalorder %s154_s18, %s11037_s28  ;;  %p11046_p4 = scmp.lt.s32.totalorder %s11037_s28, %s11037_s28 }
  0x17   : > { %p11040_p13 = pnand %p11038_p12, %p11026_p7  ;;  %p11047_p3 = por %p11046_p4, %p11045_p1 }
  0x19   : > { %p11041_p0 = pneg %p11040_p13 }
  0x1b   : > { %p11048_p2 = pnand %p11047_p3, %p11041_p0 }
  0x1d   : > { %11051 = shalt.err (!%p11048_p2)
}
  0x1e   : > { %s11065_s29 = smov 128   ;;  %s11066_s30 = smov 8  }
  0x1f   : > { %10483 = dma.hbm_to_vmem [thread:$0]  (!%p11120_p5), %s12972_s3, 17408, %s154_s18, [#allocation3], %s11065_s29, %s11065_s29, %s11066_s30  }
  0x20   : > { %p12978_p6 = scmp.ne.s32.totalorder %s12976_s19, 0 }
  0x21   : > { %p12979_p8 = scmp.eq.s32.totalorder (!%p12978_p6), %s11107_s16, 0 }
  0x22   : > { %176 = sbr.rel (%p12978_p6) target bundleno = 14430 (0x385e), region = 36 }
  0x29   : > { %11057 = dma.done.wait (%p12979_p8), [#allocation3], 17408   ;;  %p12980_p7 = pmov %p12979_p8 }
  0x2a   : > { %p201_p2 = scmp.lt.s32.totalorder %s11107_s16, 1  ;;  %v11067_v0 = vmov 0.0|0.0   ;;  %vm11068_vm0 = vmmov 0   ;;  %v11069_v1 = vmov 0.0   ;;  %v227_v2 = vld [vmem:[#allocation2] sm:$0xff]  ;;  %v228_v3 = vld [vmem:[#allocation2 + $0x8] sm:$0xff] }
  0x2b   : > { %11059 = vsyncadd (%p12980_p7), [#allocation3], 4294949888  ;;  %10053 = vmatprep.subr.bf16.mxu0 %v11067_v0  ;;  %9135 = vmatprep.mubr.msk.f32.mxu0 %vm11068_vm0, %v11069_v1  ;;  %v229_v4 = vld [vmem:[#allocation2 + $0x10] sm:$0xff]  ;;  %v10054_v5 = vpack.c.bf16 %v228_v3, %v227_v2  ;;  %v230_v6 = vld [vmem:[#allocation2 + $0x18] sm:$0xff]  ;;  %vm236_vm1 = vcmask 261120   ;;  %s11070_s11 = smov 96  }
  0x2c   : > { %9143 = vmatprep.subr.mxu1 %v11069_v1  ;;  %9145 = vmatprep.mubr.msk.f32.mxu1 %vm11068_vm0, %v11069_v1  ;;  %s12984_s16 = smov (!%p201_p2, %s11107_s16), 1  ;;  %v10057_v7 = vpack.c.bf16 %v230_v6, %v229_v4  ;;  %v8324_v9 = vld [vmem:[#allocation2 + $0x20] ss:$0 sm:$0xff]  ;;  %s11071_s12 = smov 112   ;;  %vm315_vm2 = vcmask 130048   ;;  %vm468_vm3 = vcmask 55296  }
  0x2d   : > { %s8321_s7 = sshll.u32 %s12984_s16, 3  ;;  %10055 = vmatpush3.bf16.msra.mxu0 %v10054_v5  ;;  %s11072_s13 = smov 64   ;;  %vm497_vm4 = vcmask 1046528   ;;  %vm493_vm5 = vcmask 56320   ;;  %v652_v42 = vld [vmem:[#allocation2 + $0x28] sm:$0xff]  ;;  %v653_v43 = vld [vmem:[#allocation2 + $0x30] sm:$0xff] }
  0x2e   : > { %10056 = vmatprep.subr.bf16.mxu0 %v11067_v0  ;;  %s11161_s10 = scalar_lea.vmem %s12969_s0, %s8321_s7  ;;  %v654_v44 = vld [vmem:[#allocation2 + $0x38] sm:$0xff]  ;;  %v10060_v45 = vpack.c.bf16 %v653_v43, %v652_v42  ;;  %v655_v46 = vld [vmem:[#allocation2 + $0x40] sm:$0xff]  ;;  %s11073_s14 = smov 16   ;;  %v11208_v56 = vld [vmem:[#allocation2 + $0x68] sm:$0xff]  ;;  %vm735_vm6 = vcmask 260096   ;;  %vm1203_vm7 = vcmask 64512  }
  0x2f   : > { %v11164_v8 = vld [vmem:[%s11161_s10] sm:$0x7f]  ;;  %v10063_v47 = vpack.c.bf16 %v655_v46, %v654_v44  ;;  %v11204_v54 = vld [vmem:[#allocation2 + $0x58] sm:$0xff]  ;;  %v11214_v58 = vld [vmem:[#allocation2 + $0x70] sm:$0xff]  ;;  %s11074_s30 = smov 120   ;;  %vm1382_vm9 = vcmask 522240  }
  0x30   : > { %v11206_v55 = vld [vmem:[#allocation2 + $0x60] sm:$0xff]  ;;  %v11220_v59 = vpack.i.bf16 %v11214_v58, %v11208_v56  ;;  %v8334_v60 = vld [vmem:[#allocation2 + $0x48] ss:$0 sm:$0xff]  ;;  %v10069_v42 = vpack.c.bf16 %v11214_v58, %v11208_v56  ;;  %v11338_v43 = vld [vmem:[#allocation2 + $0x78] ss:$0 sm:$0xff]  ;;  %vm1405_vm10 = vcmask 523264  }
  0x31   : > { %10058 = vmatpush3.bf16.msra.mxu0 %v10057_v7  ;;  %v11212_v57 = vpack.i.bf16 %v11206_v55, %v11204_v54  ;;  %v11228_v4 = vld [vmem:[%s12970_s1] sm:$0xff]  ;;  %vm11353_vm8 = vmpackc.low %vm1203_vm7, %vm1203_vm7  ;;  %s11075_s5 = smov 8  }
  0x32   : > { %9138 = vmatprep.subr.mxu0 %v11069_v1  ;;  %v219_v5 = vld [vmem:[%s12971_s2] sm:$0xff] }
  0x34   : > { %9136 = vmatmul.mubr.msk.f32.vlgmr.msra.gmra.mrb[0].mxu0 %vm236_vm1, %v11164_v8 }
  0x35   : > { %9140 = vmatprep.mubr.msk.f32.mxu0 %vm11068_vm0, %v11069_v1 }
 0x107   : > { %v306_v10 = vpop.f32.mrb[0].mxu0 }
 0x108   : > { %v307_v11 = vadd.f32 %v8324_v9, %v306_v10  ;;  %v9137_v12 = vpop.f32.mrb[1].mxu0  ;;  %v11234_v9 = vadd.f32 %v219_v5, %v11228_v4 }
 0x10a   : > { %313 = vrot.lane.b32.xlu1 %v307_v11, %s11070_s11  ;;  %311 = vrot.lane.b32.xlu0 %v307_v11, %s11071_s12 }
 0x17c   : > { %v314_v13 = vpop.permute.xlu1 %313  ;;  %v312_v14 = vpop.permute.xlu0 %311 }
 0x17d   : > { %9139 = vmatpush3.xpose.msk.msra.mxu0 %vm315_vm2, %v314_v13  ;;  %390 = vrot.lane.b32.xlu0 %v312_v14, %s11070_s11 }
 0x17e   : > { %9148 = vmatprep.subr.mxu0 %v11069_v1 }
 0x180   : > { %9141 = vmatmul.mubr.msk.f32.vlgmr.msra.gmra.mrb[2].mxu0 %vm315_vm2, %v307_v11 }
 0x181   : > { %9150 = vmatprep.mubr.msk.f32.mxu0 %vm11068_vm0, %v11069_v1 }
 0x1ef   : > { %v391_v15 = vpop.permute.xlu0 %390 }
 0x1f0   : > { %9144 = vmatpush3.xpose.msk.msra.mxu1 %vm315_vm2, %v391_v15  ;;  %v220_v15 = vld [vmem:[%s12971_s2 + $0x8] sm:$0xff] }
 0x1f1   : > { %9153 = vmatprep.subr.mxu1 %v11069_v1 }
 0x1f3   : > { %9146 = vmatmul.mubr.msk.f32.vlgmr.msra.gmra.mrb[0].mxu1 %vm315_vm2, %v312_v14 }
 0x1f4   : > { %9155 = vmatprep.mubr.msk.f32.mxu1 %vm11068_vm0, %v11069_v1 }
 0x253   : > { %v386_v16 = vpop.f32.mrb[2].mxu0 }
 0x254   : > { %v466_v17 = vmul.f32 0.25, %v386_v16  ;;  %v9142_v18 = vpop.f32.mrb[3].mxu0 }
 0x255   : > { %v221_v18 = vld [vmem:[%s12971_s2 + $0x10] sm:$0xff] }
 0x256   : > { %v469_v19 = vsel %vm468_vm3, %v466_v17, -inf }
 0x257   : > { %470 = vmax.xlane.f32.xlu0 %v469_v19 }
 0x2c6   : > { %v462_v20 = vpop.f32.mrb[0].mxu1 }
 0x2c7   : > { %v467_v21 = vmul.f32 0.25, %v462_v20  ;;  %v9147_v22 = vpop.f32.mrb[1].mxu1 }
 0x2c8   : > { %v222_v22 = vld [vmem:[%s12971_s2 + $0x18] sm:$0xff] }
 0x2c9   : > { %v472_v23 = vsel %vm468_vm3, %v467_v21, -inf }
 0x2ca   : > { %473 = vmax.xlane.f32.xlu1 %v472_v23  ;;  %v11271_v23 = vld [vmem:[%s12970_s1 + $0x20] sm:$0xff] }
 0x2db   : > { %570 = vrot.lane.b32.xlu1 %v312_v14, %s11072_s13  ;;  %v11241_v14 = vld [vmem:[%s12970_s1 + $0x8] sm:$0xff] }
 0x2dc   : > { %v11255_v19 = vadd.f32 %v220_v15, %v11241_v14 }
 0x2e4   : > { %v471_v24 = vpop.xlane.xlu0 %470 }
 0x2e5   : > { %v475_v25 = vsub.f32 %v466_v17, %v471_v24  ;;  %v11249_v17 = vld [vmem:[%s12970_s1 + $0x10] sm:$0xff]  ;;  %v223_v24 = vld [vmem:[%s12971_s2 + $0x20] sm:$0xff] }
 0x2e6   : > { %v11258_v20 = vadd.f32 %v221_v18, %v11249_v17 }
 0x2e7   : > { %v477_v28 = vmul.f32 1.442695, %v475_v25 }
 0x357   : > { %v474_v26 = vpop.xlane.xlu1 %473 }
 0x358   : > { %v476_v27 = vsub.f32 %v467_v21, %v474_v26  ;;  %v11263_v21 = vld [vmem:[%s12970_s1 + $0x18] sm:$0xff]  ;;  %v11285_v26 = vadd.f32 %v223_v24, %v11271_v23 }
 0x359   : > { %v11280_v25 = vadd.f32 %v222_v22, %v11263_v21 }
 0x35a   : > { %v479_v29 = vmul.f32 1.442695, %v476_v27  ;;  %v11290_v27 = vld [vmem:[%s12970_s1 + $0x28] sm:$0xff] }
 0x35b   : > { %v571_v30 = vpop.permute.xlu1 %570 }
 0x35c   : > { %10736 = vpow2.f32 %v479_v29  ;;  %9154 = vmatpush3.msk.msra.mxu1 %vm497_vm4, %v571_v30  ;;  %v11298_v29 = vld [vmem:[%s12970_s1 + $0x30] sm:$0xff] }
 0x35d   : > { %10065 = vmatprep.subr.bf16.mxu1 %v11067_v0  ;;  %10738 = vpow2.f32 %v477_v28  ;;  %v224_v28 = vld [vmem:[%s12971_s2 + $0x28] sm:$0xff]  ;;  %v225_v30 = vld [vmem:[%s12971_s2 + $0x30] sm:$0xff] }
 0x366   : > { %v10737_v31 = vpop.eup %10736 }
 0x367   : > { %v484_v32 = vsel %vm468_vm3, %v10737_v31, 0.0  ;;  %v10739_v33 = vpop.eup %10738 }
 0x368   : > { %485 = vadd.xlane.f32.xlu0 %v484_v32  ;;  %v481_v34 = vsel %vm468_vm3, %v10739_v33, 0.0  ;;  %v11311_v32 = vadd.f32 %v225_v30, %v11298_v29 }
 0x36c   : > { %482 = vadd.xlane.f32.xlu0 %v481_v34  ;;  %v226_v34 = vld [vmem:[%s12971_s2 + $0x38] sm:$0xff] }
 0x382   : > { %491 = vrot.lane.b32.xlu0 %v307_v11, %s11072_s13 }
 0x386   : > { %10507 = vrot.lane.b32.xlu0 %v11212_v57, %s11071_s12 }
 0x38a   : > { %10512 = vrot.lane.b32.xlu0 %v11220_v59, %s11071_s12 }
 0x3f5   : > { %v486_v35 = vpop.xlane.xlu0 %485 }
 0x3f6   : > { %10740 = vrcp.f32 %v486_v35 }
 0x3f9   : > { %v483_v36 = vpop.xlane.xlu0 %482 }
 0x3fa   : > { %10742 = vrcp.f32 %v483_v36 }
 0x3fd   : > { %v492_v37 = vpop.permute.xlu0 %491 }
 0x3fe   : > { %9149 = vmatpush3.msk.msra.mxu0 %vm497_vm4, %v492_v37 }
 0x3ff   : > { %10059 = vmatprep.subr.bf16.mxu0 %v11067_v0 }
 0x400   : > { %v10741_v38 = vpop.eup %10740 }
 0x401   : > { %v490_v39 = vmul.f32 %v10741_v38, %v10737_v31  ;;  %v10508_v3 = vpop.permute.xlu0 %10507  ;;  %v11306_v31 = vadd.f32 %v224_v28, %v11290_v27 }
 0x402   : > { %v10510_v6 = vunpack.i.h.bf16 %v10508_v3  ;;  %v10509_v7 = vunpack.i.l.bf16 %v10508_v3 }
 0x403   : > { %9156 = vmatmul.mubr.msk.f32.vlgmr.msra.gmra.mrb[2].mxu1 %vm493_vm5, %v490_v39 }
 0x404   : > { %v10743_v40 = vpop.eup %10742  ;;  %9177 = vmatprep.mubr.msk.f32.mxu1 %vm11068_vm0, %v11069_v1  ;;  %v10071_v10 = vpack.c.bf16 %v10510_v6, %v10509_v7 }
 0x405   : > { %v489_v41 = vmul.f32 %v10743_v40, %v10739_v33  ;;  %v10513_v11 = vpop.permute.xlu0 %10512  ;;  %v11316_v33 = vld [vmem:[%s12970_s1 + $0x38] sm:$0xff] }
 0x406   : > { %v10515_v12 = vunpack.i.h.bf16 %v10513_v11  ;;  %v10514_v13 = vunpack.i.l.bf16 %v10513_v11  ;;  %v11324_v35 = vadd.f32 %v226_v34, %v11316_v33 }
 0x407   : > { %9151 = vmatmul.mubr.msk.f32.vlgmr.msra.gmra.mrb[4].mxu0 %vm493_vm5, %v489_v41  ;;  %v10066_v41 = vpack.c.bf16 %v11206_v55, %v11204_v54 }
 0x408   : > { %9166 = vmatprep.mubr.msk.f32.mxu0 %vm11068_vm0, %v11069_v1  ;;  %10061 = vmatpush3.bf16.msra.mxu0 %v10060_v45  ;;  %v10075_v16 = vpack.c.bf16 %v10515_v12, %v10514_v13 }
 0x409   : > { %10062 = vmatprep.subr.bf16.mxu0 %v11067_v0  ;;  %10067 = vmatpush3.bf16.msra.mxu1 %v10066_v41 }
 0x40a   : > { %10068 = vmatprep.subr.bf16.mxu1 %v11067_v0 }
 0x40c   : > { %10064 = vmatpush3.bf16.msra.mxu0 %v10063_v47 }
 0x40d   : > { %10072 = vmatprep.subr.bf16.mxu0 %v10071_v10  ;;  %10070 = vmatpush3.bf16.msra.mxu1 %v10069_v42 }
 0x4d6   : > { %v643_v48 = vpop.f32.mrb[2].mxu1 }
 0x4d7   : > { %648 = vrot.lane.b32.xlu1 %v643_v48, %s11073_s14  ;;  %v9157_v49 = vpop.f32.mrb[3].mxu1 }
 0x4da   : > { %v566_v50 = vpop.f32.mrb[4].mxu0 }
 0x4db   : > { %v9152_v51 = vpop.f32.mrb[5].mxu0 }
 0x549   : > { %v649_v52 = vpop.permute.xlu1 %648 }
 0x54a   : > { %v651_v53 = vsel %vm315_vm2, %v566_v50, %v649_v52  ;;  %v750_v52 = vlaneseq }
 0x54b   : > { %9167 = vmatmul.mubr.msk.f32.vlgmr.msra.gmra.mrb[6].mxu0 %vm236_vm1, %v651_v53 }
 0x54c   : > { %9188 = vmatprep.mubr.msk.f32.mxu0 %vm236_vm1, %v11234_v9  ;;  %10074 = vmatpush3.bf16.msra.mxu0 %v10071_v10  ;;  %v751_v55 = vshrl.u32 %v750_v52, 7 }
 0x54d   : > { %10076 = vmatprep.subr.bf16.mxu0 %v10075_v16 }
 0x54e   : > { %v11346_v58 = vsub.s32 0, %v751_v55 }
 0x550   : > { %10078 = vmatpush3.bf16.msra.mxu0 %v10075_v16 }
 0x551   : > { %10087 = vmatprep.subr.bf16.mxu0 %v11067_v0 }
 0x553   : > { %9189 = vmatmul.mubr.msk.f32.vlgmr.msra.gmra.mrb[8].mxu0 %vm236_vm1, %v11255_v19 }
 0x554   : > { %9191 = vmatprep.mubr.msk.f32.mxu0 %vm236_vm1, %v11258_v20 }
 0x557   : > { %9192 = vmatmul.mubr.msk.f32.gmra.mrb[10].mxu0 %vm236_vm1, %v11280_v25 }
 0x558   : > { %9194 = vmatprep.mubr.msk.f32.mxu0 %vm236_vm1, %v11285_v26 }
 0x55b   : > { %9195 = vmatmul.mubr.msk.f32.gmra.mrb[12].mxu0 %vm236_vm1, %v11306_v31 }
 0x55c   : > { %9197 = vmatprep.mubr.msk.f32.mxu0 %vm236_vm1, %v11311_v32 }
 0x55f   : > { %9198 = vmatmul.mubr.msk.f32.gmra.mrb[14].mxu0 %vm236_vm1, %v11324_v35 }
 0x560   : > { %9236 = vmatprep.mubr.msk.f32.mxu0 %vm11068_vm0, %v11069_v1 }
 0x61e   : > { %v730_v61 = vpop.f32.mrb[6].mxu0 }
 0x61f   : > { %v731_v62 = vadd.f32 %v8334_v60, %v730_v61  ;;  %v9168_v63 = vpop.f32.mrb[7].mxu0  ;;  %v11349_v60 = vsub.s32 1, %v751_v55 }
 0x621   : > { %v736_v2 = vsel %vm735_vm6, %v731_v62, 0.0 }
 0x622   : > { %737 = vadd.xlane.f32.xlu1 %v736_v2 }
 0x626   : > { %v9190_v44 = vpop.f32.mrb[8].mxu0 }
 0x627   : > { %v961_v45 = vpop.f32.mrb[9].mxu0 }
 0x62a   : > { %v9193_v46 = vpop.f32.mrb[10].mxu0 }
 0x62b   : > { %v971_v47 = vpop.f32.mrb[11].mxu0 }
 0x62e   : > { %v9196_v48 = vpop.f32.mrb[12].mxu0 }
 0x62f   : > { %v981_v49 = vpop.f32.mrb[13].mxu0 }
 0x632   : > { %v9199_v50 = vpop.f32.mrb[14].mxu0 }
 0x633   : > { %868 = vrot.lane.b32.xlu1 %v11338_v43, %s11071_s12  ;;  %v991_v51 = vpop.f32.mrb[15].mxu0 }
 0x637   : > { %10522 = vrot.lane.b32.xlu1 %v11220_v59, %s11070_s11 }
 0x6af   : > { %v738_v36 = vpop.xlane.xlu1 %737 }
 0x6b0   : > { %v740_v37 = vmul.f32 0.03125, %v738_v36 }
 0x6b2   : > { %v741_v38 = vsub.f32 %v731_v62, %v740_v37 }
 0x6b3   : > { %v869_v61 = vpop.permute.xlu1 %868 }
 0x6b4   : > { %v742_v39 = vmul.f32 %v741_v38, %v741_v38  ;;  %v962_v62 = vadd.f32 %v961_v45, %v869_v61  ;;  %v967_v63 = vadd.f32 %v9190_v44, %v869_v61  ;;  %v977_v2 = vadd.f32 %v9193_v46, %v869_v61 }
 0x6b5   : > { %v972_v3 = vadd.f32 %v971_v47, %v869_v61  ;;  %v987_v6 = vadd.f32 %v9196_v48, %v869_v61  ;;  %v982_v7 = vadd.f32 %v981_v49, %v869_v61  ;;  %v997_v10 = vadd.f32 %v9199_v50, %v869_v61 }
 0x6b6   : > { %v743_v40 = vsel %vm735_vm6, %v742_v39, 0.0  ;;  %v992_v11 = vadd.f32 %v991_v51, %v869_v61  ;;  %v10526_v12 = vpack.i.bf16 %v967_v63, %v962_v62  ;;  %v10088_v13 = vpack.c.bf16 %v967_v63, %v962_v62 }
 0x6b7   : > { %744 = vadd.xlane.f32.xlu0 %v743_v40  ;;  %v10531_v15 = vpack.i.bf16 %v977_v2, %v972_v3  ;;  %v10092_v16 = vpack.c.bf16 %v977_v2, %v972_v3  ;;  %v10536_v22 = vpack.i.bf16 %v987_v6, %v982_v7  ;;  %v10096_v24 = vpack.c.bf16 %v987_v6, %v982_v7  ;;  %v10523_v40 = vpop.permute.xlu1 %10522 }
 0x6b8   : > { %v10541_v28 = vpack.i.bf16 %v997_v10, %v992_v11  ;;  %v10100_v30 = vpack.c.bf16 %v997_v10, %v992_v11  ;;  %10527 = vrot.lane.b32.xlu1 %v10526_v12, %s11074_s30  ;;  %10090 = vmatpush3.bf16.xpose.msk.msra.mxu0 %vm11353_vm8, %v10088_v13  ;;  %v10525_v44 = vunpack.i.h.bf16 %v10523_v40  ;;  %v10524_v45 = vunpack.i.l.bf16 %v10523_v40 }
 0x6b9   : > { %10091 = vmatprep.subr.bf16.mxu0 %v11067_v0 }
 0x6ba   : > { %v10083_v47 = vpack.c.bf16 %v10525_v44, %v10524_v45 }
 0x6bc   : > { %10532 = vrot.lane.b32.xlu1 %v10531_v15, %s11074_s30 }
 0x6c0   : > { %10094 = vmatpush3.bf16.xpose.msk.msra.mxu0 %vm11353_vm8, %v10092_v16  ;;  %10537 = vrot.lane.b32.xlu1 %v10536_v22, %s11074_s30 }
 0x6c1   : > { %10095 = vmatprep.subr.bf16.mxu0 %v11067_v0 }
 0x6c8   : > { %10098 = vmatpush3.bf16.xpose.msk.msra.mxu0 %vm11353_vm8, %v10096_v24 }
 0x6c9   : > { %10099 = vmatprep.subr.bf16.mxu0 %v11067_v0 }
 0x6cd   : > { %10517 = vrot.lane.b32.xlu0 %v11212_v57, %s11070_s11  ;;  %v734_v57 = vld [vmem:[#allocation2 + $0x50] sm:$0x3] }
 0x6ce   : > { %v753_v59 = vrot.slane %v734_v57, %v11346_v58  ;;  %v758_v36 = vrot.slane %v734_v57, %v11349_v60 }
 0x6d0   : > { %10102 = vmatpush3.bf16.xpose.msk.msra.mxu0 %vm11353_vm8, %v10100_v30 }
 0x6d1   : > { %10542 = vrot.lane.b32.xlu0 %v10541_v28, %s11074_s30  ;;  %10119 = vmatprep.subr.bf16.mxu0 %v11067_v0 }
 0x744   : > { %v745_v53 = vpop.xlane.xlu0 %744 }
 0x745   : > { %v746_v54 = vmul.f32 0.03125, %v745_v53 }
 0x747   : > { %v747_v56 = vadd.f32 1e-05, %v746_v54 }
 0x749   : > { %10744 = vrsqrt.f32 %v747_v56 }
 0x753   : > { %v10745_v18 = vpop.eup %10744 }
 0x754   : > { %v749_v34 = vmul.f32 %v10745_v18, %v741_v38 }
 0x756   : > { %v754_v37 = vmul.f32 %v753_v59, %v749_v34 }
 0x758   : > { %v11363_v39 = vadd.f32 %v758_v36, %v754_v37 }
 0x75a   : > { %v760_v38 = vadd.f32 %v11363_v39, %v11164_v8  ;;  %v10518_v8 = vpop.permute.xlu0 %10517 }
 0x75b   : > { %v10520_v41 = vunpack.i.h.bf16 %v10518_v8  ;;  %v10519_v42 = vunpack.i.l.bf16 %v10518_v8 }
 0x75c   : > { %9178 = vmatmul.mubr.msk.f32.vlgmr.msra.gmra.mrb[4].mxu1 %vm236_vm1, %v760_v38 }
 0x75d   : > { %9208 = vmatprep.mubr.msk.f32.mxu1 %vm236_vm1, %v11228_v4  ;;  %v10079_v46 = vpack.c.bf16 %v10520_v41, %v10519_v42  ;;  %v10528_v4 = vpop.permute.xlu1 %10527 }
 0x75e   : > { %v10530_v48 = vunpack.i.h.bf16 %v10528_v4  ;;  %v10529_v49 = vunpack.i.l.bf16 %v10528_v4  ;;  %v10543_v53 = vpop.permute.xlu0 %10542 }
 0x75f   : > { %10080 = vmatprep.subr.bf16.mxu1 %v10079_v46  ;;  %v10545_v54 = vunpack.i.h.bf16 %v10543_v53  ;;  %v10544_v55 = vunpack.i.l.bf16 %v10543_v53 }
 0x760   : > { %10082 = vmatpush3.bf16.msra.mxu1 %v10079_v46  ;;  %v10104_v50 = vpack.c.bf16 %v10530_v48, %v10529_v49 }
 0x761   : > { %10084 = vmatprep.subr.bf16.mxu1 %v10083_v47 }
 0x764   : > { %10086 = vmatpush3.bf16.msra.mxu1 %v10083_v47 }
 0x765   : > { %10103 = vmatprep.subr.bf16.mxu1 %v11067_v0 }
 0x767   : > { %9209 = vmatmul.mubr.msk.f32.vlgmr.msra.gmra.mrb[6].mxu1 %vm236_vm1, %v11241_v14  ;;  %v10533_v14 = vpop.permute.xlu1 %10532 }
 0x768   : > { %9211 = vmatprep.mubr.msk.f32.mxu1 %vm236_vm1, %v11249_v17  ;;  %v10535_v17 = vunpack.i.h.bf16 %v10533_v14  ;;  %v10534_v51 = vunpack.i.l.bf16 %v10533_v14 }
 0x76b   : > { %9212 = vmatmul.mubr.msk.f32.gmra.mrb[8].mxu1 %vm236_vm1, %v11263_v21  ;;  %v10108_v21 = vpack.c.bf16 %v10535_v17, %v10534_v51 }
 0x76c   : > { %9214 = vmatprep.mubr.msk.f32.mxu1 %vm236_vm1, %v11271_v23  ;;  %v10538_v23 = vpop.permute.xlu1 %10537 }
 0x76d   : > { %10106 = vmatpush3.bf16.xpose.msk.msra.mxu1 %vm11353_vm8, %v10104_v50 }
 0x76e   : > { %10107 = vmatprep.subr.bf16.mxu1 %v11067_v0 }
 0x76f   : > { %9215 = vmatmul.mubr.msk.f32.gmra.mrb[10].mxu1 %vm236_vm1, %v11290_v27  ;;  %v10540_v27 = vunpack.i.h.bf16 %v10538_v23 }
 0x770   : > { %9217 = vmatprep.mubr.msk.f32.mxu1 %vm236_vm1, %v11298_v29  ;;  %v10539_v29 = vunpack.i.l.bf16 %v10538_v23 }
 0x772   : > { %v10112_v52 = vpack.c.bf16 %v10540_v27, %v10539_v29 }
 0x773   : > { %9218 = vmatmul.mubr.msk.f32.gmra.mrb[12].mxu1 %vm236_vm1, %v11316_v33  ;;  %v10116_v33 = vpack.c.bf16 %v10545_v54, %v10544_v55 }
 0x774   : > { %9255 = vmatprep.mubr.msk.f32.mxu1 %vm11068_vm0, %v11069_v1 }
 0x775   : > { %10110 = vmatpush3.bf16.xpose.msk.msra.mxu1 %vm11353_vm8, %v10108_v21 }
 0x776   : > { %10111 = vmatprep.subr.bf16.mxu1 %v11067_v0 }
 0x77d   : > { %10114 = vmatpush3.bf16.xpose.msk.msra.mxu1 %vm11353_vm8, %v10112_v52 }
 0x77e   : > { %10115 = vmatprep.subr.bf16.mxu1 %v11067_v0 }
 0x785   : > { %10118 = vmatpush3.bf16.xpose.msk.msra.mxu1 %vm11353_vm8, %v10116_v33 }
 0x786   : > { %10131 = vmatprep.subr.bf16.mxu1 %v11067_v0 }
 0x82f   : > { %v847_v56 = vpop.f32.mrb[4].mxu1 }
 0x830   : > { %v848_v57 = vadd.f32 %v11338_v43, %v847_v56  ;;  %v9179_v59 = vpop.f32.mrb[5].mxu1 }
 0x832   : > { %1145 = vrot.lane.b32.xlu1 %v848_v57, %s11074_s30  ;;  %9237 = vmatmul.mubr.msk.f32.vlgmr.msra.gmra.mrb[16].mxu0 %vm1203_vm7, %v848_v57 }
 0x833   : > { %9274 = vmatprep.mubr.msk.f32.mxu0 %vm11068_vm0, %v11069_v1 }
 0x836   : > { %1012 = vrot.lane.b32.xlu1 %v11338_v43, %s11070_s11 }
 0x83a   : > { %v9210_v61 = vpop.f32.mrb[6].mxu1 }
 0x83b   : > { %v1105_v62 = vpop.f32.mrb[7].mxu1 }
 0x83e   : > { %v9213_v63 = vpop.f32.mrb[8].mxu1 }
 0x83f   : > { %v1115_v2 = vpop.f32.mrb[9].mxu1 }
 0x842   : > { %v9216_v3 = vpop.f32.mrb[10].mxu1 }
 0x843   : > { %v1125_v6 = vpop.f32.mrb[11].mxu1 }
 0x846   : > { %v9219_v7 = vpop.f32.mrb[12].mxu1 }
 0x847   : > { %v1135_v10 = vpop.f32.mrb[13].mxu1 }
 0x8a4   : > { %v1146_v11 = vpop.permute.xlu1 %1145 }
 0x8a5   : > { %9256 = vmatmul.mubr.msk.f32.vlgmr.msra.gmra.mrb[14].mxu1 %vm1203_vm7, %v1146_v11 }
 0x8a6   : > { %9293 = vmatprep.mubr.msk.f32.mxu1 %vm11068_vm0, %v11069_v1 }
 0x8a8   : > { %v1013_v12 = vpop.permute.xlu1 %1012 }
 0x8a9   : > { %v1106_v13 = vadd.f32 %v1105_v62, %v1013_v12  ;;  %v1111_v15 = vadd.f32 %v9210_v61, %v1013_v12  ;;  %v1121_v16 = vadd.f32 %v9213_v63, %v1013_v12  ;;  %v1116_v18 = vadd.f32 %v1115_v2, %v1013_v12 }
 0x8aa   : > { %v1131_v43 = vadd.f32 %v9216_v3, %v1013_v12  ;;  %v1126_v22 = vadd.f32 %v1125_v6, %v1013_v12  ;;  %v1141_v24 = vadd.f32 %v9219_v7, %v1013_v12  ;;  %v1136_v28 = vadd.f32 %v1135_v10, %v1013_v12 }
 0x8ab   : > { %v10120_v30 = vpack.c.bf16 %v1111_v15, %v1106_v13  ;;  %v10551_v34 = vpack.i.bf16 %v1121_v16, %v1116_v18  ;;  %v10123_v36 = vpack.c.bf16 %v1121_v16, %v1116_v18  ;;  %v10546_v41 = vpack.i.bf16 %v1111_v15, %v1106_v13 }
 0x8ac   : > { %v10556_v37 = vpack.i.bf16 %v1131_v43, %v1126_v22  ;;  %v10126_v38 = vpack.c.bf16 %v1131_v43, %v1126_v22  ;;  %v10561_v8 = vpack.i.bf16 %v1141_v24, %v1136_v28  ;;  %v10129_v40 = vpack.c.bf16 %v1141_v24, %v1136_v28  ;;  %v1557_v24 = vld [vmem:[#allocation2 + $0x80] sm:$0xff]  ;;  %v1558_v28 = vld [vmem:[#allocation2 + $0x88] sm:$0xff] }
 0x8ad   : > { %10121 = vmatpush3.bf16.msra.mxu0 %v10120_v30  ;;  %v10144_v30 = vpack.c.bf16 %v1558_v28, %v1557_v24 }
 0x8ae   : > { %10122 = vmatprep.subr.bf16.mxu0 %v11067_v0 }
 0x8b1   : > { %10124 = vmatpush3.bf16.msra.mxu0 %v10123_v36 }
 0x8b2   : > { %10125 = vmatprep.subr.bf16.mxu0 %v11067_v0 }
 0x8b5   : > { %10127 = vmatpush3.bf16.msra.mxu0 %v10126_v38 }
 0x8b6   : > { %10128 = vmatprep.subr.bf16.mxu0 %v11067_v0 }
 0x8b9   : > { %10130 = vmatpush3.bf16.msra.mxu0 %v10129_v40 }
 0x8ba   : > { %10143 = vmatprep.subr.bf16.mxu0 %v11067_v0 }
 0x905   : > { %v1288_v42 = vpop.f32.mrb[16].mxu0 }
 0x906   : > { %v1380_v44 = vmul.f32 0.35355338, %v1288_v42  ;;  %v9238_v45 = vpop.f32.mrb[17].mxu0 }
 0x908   : > { %v1383_v46 = vsel %vm1382_vm9, %v1380_v44, -inf }
 0x909   : > { %1384 = vmax.xlane.f32.xlu1 %v1383_v46 }
 0x91a   : > { %10552 = vrot.lane.b32.xlu1 %v10551_v34, %s11074_s30 }
 0x91e   : > { %10562 = vrot.lane.b32.xlu1 %v10561_v8, %s11074_s30 }
 0x978   : > { %v1376_v47 = vpop.f32.mrb[14].mxu1 }
 0x979   : > { %v1381_v4 = vmul.f32 0.35355338, %v1376_v47  ;;  %v9257_v48 = vpop.f32.mrb[15].mxu1 }
 0x97b   : > { %v1386_v49 = vsel %vm1382_vm9, %v1381_v4, -inf }
 0x97c   : > { %1387 = vmax.xlane.f32.xlu0 %v1386_v49 }
 0x992   : > { %10547 = vrot.lane.b32.xlu0 %v10546_v41, %s11074_s30  ;;  %v8374_v41 = vld [vmem:[#allocation2 + $0x90] ss:$0 sm:$0xff] }
 0x996   : > { %v1385_v50 = vpop.xlane.xlu1 %1384 }
 0x997   : > { %v1389_v57 = vsub.f32 %v1380_v44, %v1385_v50 }
 0x999   : > { %v1391_v59 = vmul.f32 1.442695, %v1389_v57  ;;  %v1750_v57 = vld [vmem:[#allocation2 + $0xf0] sm:$0xff] }
 0x99a   : > { %v10553_v21 = vpop.permute.xlu1 %10552 }
 0x99b   : > { %v10555_v52 = vunpack.i.h.bf16 %v10553_v21  ;;  %v10554_v53 = vunpack.i.l.bf16 %v10553_v21 }
 0x99d   : > { %v10135_v55 = vpack.c.bf16 %v10555_v52, %v10554_v53  ;;  %v1746_v52 = vld [vmem:[#allocation2 + $0xd0] sm:$0xff]  ;;  %v1747_v53 = vld [vmem:[#allocation2 + $0xd8] sm:$0xff] }
 0x99e   : > { %v10563_v2 = vpop.permute.xlu1 %10562 }
 0x99f   : > { %v10565_v10 = vunpack.i.h.bf16 %v10563_v2  ;;  %v10564_v11 = vunpack.i.l.bf16 %v10563_v2  ;;  %v1638_v2 = vld [vmem:[#allocation2 + $0x98] sm:$0x3] }
 0x9a1   : > { %v10141_v15 = vpack.c.bf16 %v10565_v10, %v10564_v11  ;;  %v1660_v10 = vrot.slane %v1638_v2, %v11349_v60 }
 0xa09   : > { %v1388_v14 = vpop.xlane.xlu0 %1387 }
 0xa0a   : > { %v1390_v17 = vsub.f32 %v1381_v4, %v1388_v14 }
 0xa0c   : > { %v1393_v51 = vmul.f32 1.442695, %v1390_v17  ;;  %v1662_v17 = vld [vmem:[#allocation2 + $0xa0] sm:$0xff] }
 0xa0d   : > { %v10548_v23 = vpop.permute.xlu0 %10547 }
 0xa0e   : > { %10746 = vpow2.f32 %v1393_v51  ;;  %v10550_v27 = vunpack.i.h.bf16 %v10548_v23  ;;  %v10549_v29 = vunpack.i.l.bf16 %v10548_v23  ;;  %v1663_v51 = vld [vmem:[#allocation2 + $0xa8] sm:$0xff]  ;;  %v1664_v23 = vld [vmem:[#allocation2 + $0xb0] sm:$0xff] }
 0xa0f   : > { %10748 = vpow2.f32 %v1391_v59  ;;  %v10147_v21 = vpack.c.bf16 %v1663_v51, %v1662_v17 }
 0xa10   : > { %v10132_v54 = vpack.c.bf16 %v10550_v27, %v10549_v29  ;;  %v1665_v27 = vld [vmem:[#allocation2 + $0xb8] sm:$0xff] }
 0xa11   : > { %v10150_v29 = vpack.c.bf16 %v1665_v27, %v1664_v23 }
 0xa12   : > { %10133 = vmatpush3.bf16.msra.mxu1 %v10132_v54 }
 0xa13   : > { %10134 = vmatprep.subr.bf16.mxu1 %v11067_v0 }
 0xa16   : > { %10136 = vmatpush3.bf16.msra.mxu1 %v10135_v55  ;;  %v1748_v55 = vld [vmem:[#allocation2 + $0xe0] sm:$0xff] }
 0xa17   : > { %10137 = vmatprep.subr.bf16.mxu1 %v11067_v0 }
 0xa18   : > { %v10747_v33 = vpop.eup %10746 }
 0xa19   : > { %v1398_v56 = vsel %vm1382_vm9, %v10747_v33, 0.0  ;;  %v10749_v61 = vpop.eup %10748 }
 0xa1a   : > { %1399 = vadd.xlane.f32.xlu0 %v1398_v56  ;;  %v1395_v62 = vsel %vm1382_vm9, %v10749_v61, 0.0  ;;  %v1749_v56 = vld [vmem:[#allocation2 + $0xe8] sm:$0xff] }
 0xa1b   : > { %v10159_v59 = vpack.c.bf16 %v1750_v57, %v1749_v56 }
 0xa30   : > { %10557 = vrot.lane.b32.xlu0 %v10556_v37, %s11074_s30 }
 0xa4f   : > { %1396 = vadd.xlane.f32.xlu0 %v1395_v62 }
 0xaa7   : > { %v1400_v63 = vpop.xlane.xlu0 %1399 }
 0xaa8   : > { %10750 = vrcp.f32 %v1400_v63 }
 0xaab   : > { %v10558_v3 = vpop.permute.xlu0 %10557 }
 0xaac   : > { %v10560_v6 = vunpack.i.h.bf16 %v10558_v3  ;;  %v10559_v7 = vunpack.i.l.bf16 %v10558_v3  ;;  %v1655_v3 = vrot.slane %v1638_v2, %v11346_v58 }
 0xaae   : > { %v10138_v12 = vpack.c.bf16 %v10560_v6, %v10559_v7 }
 0xab0   : > { %10139 = vmatpush3.bf16.msra.mxu1 %v10138_v12 }
 0xab1   : > { %10140 = vmatprep.subr.bf16.mxu1 %v11067_v0 }
 0xab2   : > { %v10751_v13 = vpop.eup %10750 }
 0xab3   : > { %v1404_v16 = vmul.f32 %v10751_v13, %v10747_v33  ;;  %v10156_v33 = vpack.c.bf16 %v1748_v55, %v1747_v53  ;;  %v1751_v13 = vld [vmem:[#allocation2 + $0xf8] sm:$0xff] }
 0xab4   : > { %10142 = vmatpush3.bf16.msra.mxu1 %v10141_v15  ;;  %v1752_v15 = vld [vmem:[#allocation2 + $0x100] sm:$0xff] }
 0xab5   : > { %10146 = vmatprep.subr.bf16.mxu1 %v11067_v0 }
 0xab7   : > { %9294 = vmatmul.mubr.msk.f32.vlgmr.msra.gmra.mrb[16].mxu1 %vm1405_vm10, %v1404_v16  ;;  %v10162_v16 = vpack.c.bf16 %v1752_v15, %v1751_v13 }
 0xab8   : > { %9311 = vmatprep.mubr.msk.f32.mxu1 %vm11068_vm0, %v11069_v1  ;;  %10148 = vmatpush3.bf16.msra.mxu1 %v10147_v21 }
 0xab9   : > { %10149 = vmatprep.subr.bf16.mxu1 %v11067_v0 }
 0xabc   : > { %10151 = vmatpush3.bf16.msra.mxu1 %v10150_v29 }
 0xadc   : > { %v1397_v18 = vpop.xlane.xlu0 %1396 }
 0xadd   : > { %10752 = vrcp.f32 %v1397_v18  ;;  %v8376_v18 = vld [vmem:[#allocation2 + $0xc0] ss:$0 sm:$0xff] }
 0xae7   : > { %v10753_v43 = vpop.eup %10752 }
 0xae8   : > { %v1403_v22 = vmul.f32 %v10753_v43, %v10749_v61 }
 0xaea   : > { %9275 = vmatmul.mubr.msk.f32.vlgmr.msra.gmra.mrb[18].mxu0 %vm1405_vm10, %v1403_v22 }
 0xaeb   : > { %9300 = vmatprep.mubr.msk.f32.mxu0 %vm11068_vm0, %v11069_v1  ;;  %10145 = vmatpush3.bf16.msra.mxu0 %v10144_v30 }
 0xaec   : > { %10152 = vmatprep.subr.bf16.mxu0 %v11067_v0 }
 0xb8a   : > { %v1548_v34 = vpop.f32.mrb[16].mxu1 }
 0xb8b   : > { %1553 = vrot.lane.b32.xlu1 %v1548_v34, %s11075_s5  ;;  %v9295_v36 = vpop.f32.mrb[17].mxu1  ;;  %v8379_v34 = vld [vmem:[#allocation2 + $0x108] ss:$0 sm:$0xff] }
 0xbbd   : > { %v1475_v37 = vpop.f32.mrb[18].mxu0 }
 0xbbe   : > { %v9276_v38 = vpop.f32.mrb[19].mxu0 }
 0xbfd   : > { %v1554_v8 = vpop.permute.xlu1 %1553 }
 0xbfe   : > { %v1556_v40 = vsel %vm1203_vm7, %v1475_v37, %v1554_v8  ;;  %v1858_v8 = vld [vmem:[#allocation2 + $0x118] sm:$0xff] }
 0xbff   : > { %9301 = vmatmul.mubr.msk.f32.vlgmr.msra.gmra.mrb[20].mxu0 %vm315_vm2, %v1556_v40  ;;  %v1859_v40 = vld [vmem:[#allocation2 + $0x120] sm:$0xff] }
 0xc00   : > { %9330 = vmatprep.mubr.msk.f32.mxu0 %vm11068_vm0, %v11069_v1 }
 0xcd2   : > { %v1633_v42 = vpop.f32.mrb[20].mxu0 }
 0xcd3   : > { %v1634_v44 = vadd.f32 %v8374_v41, %v1633_v42  ;;  %v9302_v45 = vpop.f32.mrb[21].mxu0  ;;  %v10566_v41 = vpack.i.bf16 %v1859_v40, %v1858_v8  ;;  %v11466_v42 = vld [vmem:[#allocation2 + $0x138] ss:$0 sm:$0xff] }
 0xcd5   : > { %v1637_v46 = vadd.f32 %v1634_v44, %v11363_v39  ;;  %v1745_v39 = vld [vmem:[#allocation2 + $0xc8] sm:$0xff]  ;;  %v10164_v44 = vpack.c.bf16 %v1859_v40, %v1858_v8 }
 0xcd6   : > { %v10153_v54 = vpack.c.bf16 %v1746_v52, %v1745_v39 }
 0xcd7   : > { %v1639_v47 = vsel %vm735_vm6, %v1637_v46, 0.0  ;;  %10165 = vmatprep.subr.bf16.mxu1 %v10164_v44 }
 0xcd8   : > { %1640 = vadd.xlane.f32.xlu1 %v1639_v47  ;;  %10154 = vmatpush3.bf16.msra.mxu0 %v10153_v54 }
 0xcd9   : > { %10155 = vmatprep.subr.bf16.mxu0 %v11067_v0 }
 0xcdc   : > { %10157 = vmatpush3.bf16.msra.mxu0 %v10156_v33 }
 0xcdd   : > { %10158 = vmatprep.subr.bf16.mxu0 %v11067_v0 }
 0xce0   : > { %10160 = vmatpush3.bf16.msra.mxu0 %v10159_v59  ;;  %v1833_v59 = vld [vmem:[#allocation2 + $0x110] sm:$0x3] }
 0xce1   : > { %10161 = vmatprep.subr.bf16.mxu0 %v11067_v0  ;;  %v1855_v2 = vrot.slane %v1833_v59, %v11349_v60 }
 0xce4   : > { %10163 = vmatpush3.bf16.msra.mxu0 %v10162_v16 }
 0xce5   : > { %10172 = vmatprep.subr.bf16.mxu0 %v11067_v0 }
 0xce9   : > { %10567 = vrot.lane.b32.xlu1 %v10566_v41, %s11071_s12 }
 0xced   : > { %1989 = vrot.lane.b32.xlu1 %v11466_v42, %s11071_s12 }
 0xcf1   : > { %10577 = vrot.lane.b32.xlu1 %v10566_v41, %s11070_s11 }
 0xd65   : > { %v1641_v4 = vpop.xlane.xlu1 %1640 }
 0xd66   : > { %v1642_v48 = vmul.f32 0.03125, %v1641_v4 }
 0xd68   : > { %v1643_v49 = vsub.f32 %v1637_v46, %v1642_v48 }
 0xd69   : > { %v10568_v17 = vpop.permute.xlu1 %10567 }
 0xd6a   : > { %v1644_v50 = vmul.f32 %v1643_v49, %v1643_v49  ;;  %v10570_v39 = vunpack.i.h.bf16 %v10568_v17 }
 0xd6c   : > { %v1645_v14 = vsel %vm735_vm6, %v1644_v50, 0.0  ;;  %v1861_v50 = vld [vmem:[#allocation2 + $0x130] sm:$0xff] }
 0xd6d   : > { %1646 = vadd.xlane.f32.xlu0 %v1645_v14  ;;  %v11475_v21 = vpop.permute.xlu1 %1989 }
 0xd71   : > { %v10578_v23 = vpop.permute.xlu1 %10577 }
 0xd72   : > { %v10580_v27 = vunpack.i.h.bf16 %v10578_v23  ;;  %v10579_v29 = vunpack.i.l.bf16 %v10578_v23 }
 0xd74   : > { %v10179_v52 = vpack.c.bf16 %v10580_v27, %v10579_v29 }
 0xdfa   : > { %v1647_v61 = vpop.xlane.xlu0 %1646 }
 0xdfb   : > { %v1648_v62 = vmul.f32 0.03125, %v1647_v61  ;;  %v1850_v61 = vrot.slane %v1833_v59, %v11346_v58 }
 0xdfd   : > { %v1649_v63 = vadd.f32 1e-05, %v1648_v62 }
 0xdff   : > { %10754 = vrsqrt.f32 %v1649_v63 }
 0xe09   : > { %v10755_v6 = vpop.eup %10754 }
 0xe0a   : > { %v1651_v7 = vmul.f32 %v10755_v6, %v1643_v49  ;;  %v1860_v49 = vld [vmem:[#allocation2 + $0x128] sm:$0xff] }
 0xe0b   : > { %v10168_v14 = vpack.c.bf16 %v1861_v50, %v1860_v49  ;;  %v10571_v51 = vpack.i.bf16 %v1861_v50, %v1860_v49 }
 0xe0c   : > { %v1656_v11 = vmul.f32 %v1655_v3, %v1651_v7  ;;  %v10998_v7 = vld [vmem:[%s11161_s10] sm:$0x7f] }
 0xe0e   : > { %v1661_v12 = vadd.f32 %v1660_v10, %v1656_v11 }
 0xe10   : > { %9312 = vmatmul.mubr.msk.f32.vlgmr.msra.gmra.mrb[18].mxu1 %vm236_vm1, %v1661_v12 }
 0xe11   : > { %9341 = vmatprep.mubr.msk.f32.mxu1 %vm236_vm1, %v11234_v9  ;;  %10167 = vmatpush3.bf16.msra.mxu1 %v10164_v44 }
 0xe12   : > { %10169 = vmatprep.subr.bf16.mxu1 %v10168_v14 }
 0xe15   : > { %10171 = vmatpush3.bf16.msra.mxu1 %v10168_v14 }
 0xe16   : > { %10178 = vmatprep.subr.bf16.mxu1 %v11067_v0 }
 0xe18   : > { %9342 = vmatmul.mubr.msk.f32.vlgmr.msra.gmra.mrb[20].mxu1 %vm236_vm1, %v11255_v19  ;;  %v10569_v19 = vunpack.i.l.bf16 %v10568_v17 }
 0xe19   : > { %9344 = vmatprep.mubr.msk.f32.mxu1 %vm236_vm1, %v11258_v20  ;;  %10180 = vmatpush3.bf16.msra.mxu1 %v10179_v52 }
 0xe1a   : > { %v10173_v20 = vpack.c.bf16 %v10570_v39, %v10569_v19  ;;  %10181 = vmatprep.subr.bf16.mxu1 %v11067_v0 }
 0xe1c   : > { %9345 = vmatmul.mubr.msk.f32.gmra.mrb[22].mxu1 %vm236_vm1, %v11280_v25 }
 0xe1d   : > { %9347 = vmatprep.mubr.msk.f32.mxu1 %vm236_vm1, %v11285_v26 }
 0xe20   : > { %9348 = vmatmul.mubr.msk.f32.gmra.mrb[24].mxu1 %vm236_vm1, %v11306_v31 }
 0xe21   : > { %9350 = vmatprep.mubr.msk.f32.mxu1 %vm236_vm1, %v11311_v32 }
 0xe24   : > { %9351 = vmatmul.mubr.msk.f32.gmra.mrb[26].mxu1 %vm236_vm1, %v11324_v35 }
 0xe25   : > { %9372 = vmatprep.mubr.msk.f32.mxu1 %vm11068_vm0, %v11069_v1 }
 0xee3   : > { %v1740_v43 = vpop.f32.mrb[18].mxu1 }
 0xee4   : > { %v1741_v22 = vadd.f32 %v8376_v18, %v1740_v43  ;;  %v9313_v24 = vpop.f32.mrb[19].mxu1 }
 0xee6   : > { %v1744_v28 = vmax.f32 %v1741_v22, 0.0 }
 0xee8   : > { %9331 = vmatmul.mubr.msk.f32.vlgmr.msra.gmra.mrb[22].mxu0 %vm1405_vm10, %v1744_v28 }
 0xee9   : > { %9361 = vmatprep.mubr.msk.f32.mxu0 %vm11068_vm0, %v11069_v1  ;;  %10174 = vmatpush3.bf16.msra.mxu0 %v10173_v20 }
 0xeea   : > { %10175 = vmatprep.subr.bf16.mxu0 %v11067_v0 }
 0xeeb   : > { %v9343_v11 = vpop.f32.mrb[20].mxu1 }
 0xeec   : > { %v1939_v41 = vadd.f32 %v9343_v11, %v11466_v42 }
 0xfbb   : > { %v1822_v30 = vpop.f32.mrb[22].mxu0 }
 0xfbc   : > { %v1826_v36 = vadd.f32 %v1822_v30, %v1661_v12  ;;  %v9332_v9 = vpop.f32.mrb[23].mxu0  ;;  %v1933_v12 = vpop.f32.mrb[21].mxu1 }
 0xfbd   : > { %v1934_v13 = vadd.f32 %v11466_v42, %v1933_v12  ;;  %v9346_v15 = vpop.f32.mrb[22].mxu1 }
 0xfbe   : > { %v1832_v37 = vadd.f32 %v8379_v34, %v1826_v36  ;;  %v1943_v16 = vpop.f32.mrb[23].mxu1  ;;  %v1949_v44 = vadd.f32 %v9346_v15, %v11466_v42 }
 0xfbf   : > { %v1944_v18 = vadd.f32 %v11466_v42, %v1943_v16  ;;  %v9349_v43 = vpop.f32.mrb[24].mxu1 }
 0xfc0   : > { %v1834_v38 = vsel %vm735_vm6, %v1832_v37, 0.0  ;;  %v1953_v22 = vpop.f32.mrb[25].mxu1 }
 0xfc1   : > { %1835 = vadd.xlane.f32.xlu0 %v1834_v38  ;;  %v1954_v24 = vadd.f32 %v11466_v42, %v1953_v22  ;;  %v9352_v28 = vpop.f32.mrb[26].mxu1 }
 0xfc2   : > { %v1963_v30 = vpop.f32.mrb[27].mxu1 }
 0xfc3   : > { %v1964_v34 = vadd.f32 %v11466_v42, %v1963_v30 }
0x104e   : > { %v1836_v45 = vpop.xlane.xlu0 %1835 }
0x104f   : > { %v1837_v46 = vmul.f32 0.03125, %v1836_v45  ;;  %v1959_v45 = vadd.f32 %v9349_v43, %v11466_v42 }
0x1051   : > { %v1838_v47 = vsub.f32 %v1832_v37, %v1837_v46  ;;  %v1969_v46 = vadd.f32 %v9352_v28, %v11466_v42 }
0x1053   : > { %v1839_v4 = vmul.f32 %v1838_v47, %v1838_v47 }
0x1055   : > { %v1840_v48 = vsel %vm735_vm6, %v1839_v4, 0.0 }
0x1056   : > { %1841 = vadd.xlane.f32.xlu0 %v1840_v48 }
0x106c   : > { %10572 = vrot.lane.b32.xlu0 %v10571_v51, %s11071_s12 }
0x1070   : > { %10582 = vrot.lane.b32.xlu0 %v10571_v51, %s11070_s11 }
0x1074   : > { %2161 = vrot.lane.b32.xlu0 %v1934_v13, %s11074_s30 }
0x1078   : > { %2165 = vrot.lane.b32.xlu0 %v1944_v18, %s11074_s30 }
0x107c   : > { %2169 = vrot.lane.b32.xlu0 %v1954_v24, %s11074_s30 }
0x1080   : > { %2173 = vrot.lane.b32.xlu0 %v1964_v34, %s11074_s30 }
0x10e3   : > { %v1842_v25 = vpop.xlane.xlu0 %1841 }
0x10e4   : > { %v1843_v26 = vmul.f32 0.03125, %v1842_v25 }
0x10e6   : > { %v1844_v53 = vadd.f32 1e-05, %v1843_v26 }
0x10e7   : > { %v10573_v31 = vpop.permute.xlu0 %10572 }
0x10e8   : > { %10756 = vrsqrt.f32 %v1844_v53  ;;  %v10575_v54 = vunpack.i.h.bf16 %v10573_v31  ;;  %v10574_v55 = vunpack.i.l.bf16 %v10573_v31 }
0x10ea   : > { %v10176_v32 = vpack.c.bf16 %v10575_v54, %v10574_v55 }
0x10eb   : > { %v10583_v33 = vpop.permute.xlu0 %10582 }
0x10ec   : > { %v10585_v56 = vunpack.i.h.bf16 %v10583_v33  ;;  %v10584_v57 = vunpack.i.l.bf16 %v10583_v33  ;;  %10177 = vmatpush3.bf16.msra.mxu0 %v10176_v32 }
0x10ee   : > { %v10182_v35 = vpack.c.bf16 %v10585_v56, %v10584_v57 }
0x10ef   : > { %v2162_v36 = vpop.permute.xlu0 %2161 }
0x10f0   : > { %10183 = vmatpush3.bf16.msra.mxu1 %v10182_v35 }
0x10f2   : > { %v10757_v62 = vpop.eup %10756 }
0x10f3   : > { %v1846_v63 = vmul.f32 %v10757_v62, %v1838_v47  ;;  %v2166_v47 = vpop.permute.xlu0 %2165 }
0x10f5   : > { %v1851_v3 = vmul.f32 %v1850_v61, %v1846_v63 }
0x10f7   : > { %v11497_v6 = vadd.f32 %v1855_v2, %v1851_v3  ;;  %v2170_v49 = vpop.permute.xlu0 %2169 }
0x10f9   : > { %9373 = vmatmul.mubr.msk.f32.vlgmr.msra.gmra.mrb[28].mxu1 %vm236_vm1, %v11497_v6  ;;  %v11503_v10 = vadd.f32 %v10998_v7, %v11497_v6 }
0x10fa   : > { %9391 = vmatprep.mubr.msk.f32.mxu1 %vm1203_vm7, %v2162_v36 }
0x10fb   : > { %9362 = vmatmul.mubr.msk.f32.vlgmr.msra.gmra.mrb[24].mxu0 %vm236_vm1, %v11503_v10  ;;  %v2174_v14 = vpop.permute.xlu0 %2173 }
0x10fc   : > { %9377 = vmatprep.mubr.msk.f32.mxu0 %vm1203_vm7, %v1934_v13 }
0x11cc   : > { %v11517_v9 = vpop.f32.mrb[28].mxu1 }
0x11cd   : > { %v9374_v37 = vpop.f32.mrb[29].mxu1 }
0x11ce   : > { %v2061_v38 = vpop.f32.mrb[24].mxu0 }
0x11cf   : > { %v2062_v8 = vadd.f32 %v2061_v38, %v11475_v21  ;;  %v9363_v40 = vpop.f32.mrb[25].mxu0 }
0x11d1   : > { %2178 = vrot.lane.b32.xlu1 %v2062_v8, %s11074_s30  ;;  %9375 = vmatprep.subr.msk.mxu0 %vm1203_vm7, %v2062_v8 }
0x11d2   : > { %9376 = vmatpush3.xpose.msk.msra.mxu0 %vm1203_vm7, %v2062_v8 }
0x11d5   : > { %2163 = vrot.lane.b32.xlu1 %v1939_v41, %s11074_s30  ;;  %9378 = vmatmul.mubr.msk.f32.vlgmr.msra.gmra.mrb[26].mxu0 %vm1203_vm7, %v1939_v41 }
0x11d6   : > { %9380 = vmatprep.mubr.msk.f32.mxu0 %vm1203_vm7, %v1944_v18 }
0x11d9   : > { %2167 = vrot.lane.b32.xlu1 %v1949_v44, %s11074_s30  ;;  %9381 = vmatmul.mubr.msk.f32.gmra.mrb[28].mxu0 %vm1203_vm7, %v1949_v44 }
0x11da   : > { %9383 = vmatprep.mubr.msk.f32.mxu0 %vm1203_vm7, %v1954_v24 }
0x11dd   : > { %2171 = vrot.lane.b32.xlu1 %v1959_v45, %s11074_s30  ;;  %9384 = vmatmul.mubr.msk.f32.gmra.mrb[30].mxu0 %vm1203_vm7, %v1959_v45 }
0x11de   : > { %9386 = vmatprep.mubr.msk.f32.mxu0 %vm1203_vm7, %v1964_v34 }
0x11e1   : > { %2175 = vrot.lane.b32.xlu1 %v1969_v46, %s11074_s30  ;;  %9387 = vmatmul.mubr.msk.f32.gmra.mrb[32].mxu0 %vm1203_vm7, %v1969_v46 }
0x1243   : > { %v2179_v4 = vpop.permute.xlu1 %2178 }
0x1244   : > { %9389 = vmatprep.subr.msk.mxu1 %vm1203_vm7, %v2179_v4 }
0x1245   : > { %9390 = vmatpush3.xpose.msk.msra.mxu1 %vm1203_vm7, %v2179_v4 }
0x1247   : > { %v2164_v48 = vpop.permute.xlu1 %2163 }
0x1248   : > { %9392 = vmatmul.mubr.msk.f32.vlgmr.msra.gmra.mrb[30].mxu1 %vm1203_vm7, %v2164_v48 }
0x1249   : > { %9394 = vmatprep.mubr.msk.f32.mxu1 %vm1203_vm7, %v2166_v47 }
0x124b   : > { %v2168_v50 = vpop.permute.xlu1 %2167 }
0x124c   : > { %9395 = vmatmul.mubr.msk.f32.gmra.mrb[32].mxu1 %vm1203_vm7, %v2168_v50 }
0x124d   : > { %9397 = vmatprep.mubr.msk.f32.mxu1 %vm1203_vm7, %v2170_v49 }
0x124f   : > { %v2172_v17 = vpop.permute.xlu1 %2171 }
0x1250   : > { %9398 = vmatmul.mubr.msk.f32.gmra.mrb[34].mxu1 %vm1203_vm7, %v2172_v17 }
0x1251   : > { %9400 = vmatprep.mubr.msk.f32.mxu1 %vm1203_vm7, %v2174_v14 }
0x1253   : > { %v2176_v51 = vpop.permute.xlu1 %2175 }
0x1254   : > { %9401 = vmatmul.mubr.msk.f32.gmra.mrb[36].mxu1 %vm1203_vm7, %v2176_v51 }
0x12a8   : > { %v11547_v21 = vpop.f32.mrb[26].mxu0 }
0x12a9   : > { %v11549_v23 = vpop.f32.mrb[27].mxu0 }
0x12ac   : > { %v11551_v27 = vpop.f32.mrb[28].mxu0 }
0x12ad   : > { %v11553_v29 = vpop.f32.mrb[29].mxu0 }
0x12b0   : > { %v11555_v39 = vpop.f32.mrb[30].mxu0 }
0x12b1   : > { %v11557_v19 = vpop.f32.mrb[31].mxu0 }
0x12b4   : > { %v11559_v52 = vpop.f32.mrb[32].mxu0 }
0x12b5   : > { %v11561_v20 = vpop.f32.mrb[33].mxu0 }
0x131b   : > { %v9393_v25 = vpop.f32.mrb[30].mxu1 }
0x131c   : > { %v2438_v26 = vmul.f32 0.35355338, %v9393_v25  ;;  %v2390_v53 = vpop.f32.mrb[31].mxu1 }
0x131d   : > { %v2437_v31 = vmul.f32 0.35355338, %v2390_v53 }
0x131e   : > { %v2472_v54 = vsel %vm493_vm5, %v2438_v26, -inf }
0x131f   : > { %2473 = vmax.xlane.f32.xlu1 %v2472_v54  ;;  %v9396_v55 = vpop.f32.mrb[32].mxu1  ;;  %v2469_v32 = vsel %vm493_vm5, %v2437_v31, -inf }
0x1320   : > { %2470 = vmax.xlane.f32.xlu0 %v2469_v32  ;;  %v2400_v33 = vpop.f32.mrb[33].mxu1  ;;  %v2440_v57 = vmul.f32 0.35355338, %v9396_v55 }
0x1321   : > { %v2439_v56 = vmul.f32 0.35355338, %v2400_v33 }
0x1322   : > { %v2478_v3 = vsel %vm493_vm5, %v2440_v57, -inf }
0x1323   : > { %v9399_v59 = vpop.f32.mrb[34].mxu1  ;;  %v2475_v35 = vsel %vm493_vm5, %v2439_v56, -inf }
0x1324   : > { %2476 = vmax.xlane.f32.xlu0 %v2475_v35  ;;  %v2410_v61 = vpop.f32.mrb[35].mxu1  ;;  %v2442_v62 = vmul.f32 0.35355338, %v9399_v59 }
0x1325   : > { %v2441_v63 = vmul.f32 0.35355338, %v2410_v61 }
0x1326   : > { %v2484_v15 = vsel %vm493_vm5, %v2442_v62, -inf }
0x1327   : > { %v9402_v2 = vpop.f32.mrb[36].mxu1  ;;  %v2481_v7 = vsel %vm493_vm5, %v2441_v63, -inf }
0x1328   : > { %2479 = vmax.xlane.f32.xlu0 %v2478_v3  ;;  %2482 = vmax.xlane.f32.xlu1 %v2481_v7  ;;  %v2420_v11 = vpop.f32.mrb[37].mxu1  ;;  %v2444_v12 = vmul.f32 0.35355338, %v9402_v2  ;;  %v2432_v3 = vmul.f32 0.35355338, %v11551_v27 }
0x1329   : > { %v2443_v13 = vmul.f32 0.35355338, %v2420_v11 }
0x132a   : > { %v2490_v18 = vsel %vm493_vm5, %v2444_v12, -inf }
0x132b   : > { %v2487_v16 = vsel %vm493_vm5, %v2443_v13, -inf }
0x132c   : > { %2485 = vmax.xlane.f32.xlu0 %v2484_v15  ;;  %2488 = vmax.xlane.f32.xlu1 %v2487_v16  ;;  %v11621_v15 = vmul.f32 0.35355338, %v11555_v39 }
0x1330   : > { %2491 = vmax.xlane.f32.xlu0 %v2490_v18  ;;  %v11626_v18 = vmul.f32 0.35355338, %v11561_v20  ;;  %v11639_v20 = vmul.f32 0.35355338, %v11549_v23 }
0x133d   : > { %2077 = vrot.lane.b32.xlu1 %v11466_v42, %s11070_s11 }
0x13ac   : > { %v2474_v43 = vpop.xlane.xlu1 %2473 }
0x13ad   : > { %v2502_v22 = vsub.f32 %v2438_v26, %v2474_v43  ;;  %v2471_v24 = vpop.xlane.xlu0 %2470  ;;  %v11631_v43 = vmul.f32 0.35355338, %v11559_v52 }
0x13ae   : > { %v2501_v28 = vsub.f32 %v2437_v31, %v2471_v24  ;;  %v2445_v24 = vsel %vm493_vm5, %v11639_v20, -inf }
0x13af   : > { %v2527_v30 = vmul.f32 1.442695, %v2502_v22  ;;  %v2463_v22 = vsel %vm493_vm5, %v11626_v18, -inf  ;;  %v2466_v39 = vsel %vm493_vm5, %v11631_v43, -inf }
0x13b0   : > { %v2525_v34 = vmul.f32 1.442695, %v2501_v28 }
0x13b1   : > { %10758 = vpow2.f32 %v2527_v30  ;;  %v2477_v36 = vpop.xlane.xlu0 %2476 }
0x13b2   : > { %10760 = vpow2.f32 %v2525_v34  ;;  %v2503_v37 = vsub.f32 %v2439_v56, %v2477_v36 }
0x13b4   : > { %v2529_v44 = vmul.f32 1.442695, %v2503_v37 }
0x13b5   : > { %v2480_v38 = vpop.xlane.xlu0 %2479  ;;  %v2483_v8 = vpop.xlane.xlu1 %2482 }
0x13b6   : > { %v2504_v40 = vsub.f32 %v2440_v57, %v2480_v38  ;;  %v2505_v41 = vsub.f32 %v2441_v63, %v2483_v8  ;;  %v2430_v57 = vmul.f32 0.35355338, %v11547_v21 }
0x13b8   : > { %v2531_v45 = vmul.f32 1.442695, %v2504_v40  ;;  %v2533_v46 = vmul.f32 1.442695, %v2505_v41  ;;  %v2448_v63 = vsel %vm493_vm5, %v2430_v57, -inf }
0x13b9   : > { %v2486_v47 = vpop.xlane.xlu0 %2485  ;;  %v2489_v4 = vpop.xlane.xlu1 %2488 }
0x13ba   : > { %10762 = vpow2.f32 %v2531_v45  ;;  %v2506_v42 = vsub.f32 %v2442_v62, %v2486_v47  ;;  %v2507_v53 = vsub.f32 %v2443_v13, %v2489_v4  ;;  %v11600_v62 = vmul.f32 0.35355338, %v11553_v29 }
0x13bb   : > { %v11573_v48 = vpop.eup %10758  ;;  %10764 = vpow2.f32 %v2533_v46  ;;  %v2454_v13 = vsel %vm493_vm5, %v2432_v3, -inf }
0x13bc   : > { %10766 = vpow2.f32 %v2529_v44  ;;  %v2535_v49 = vmul.f32 1.442695, %v2506_v42  ;;  %v2568_v50 = vsel %vm493_vm5, %v11573_v48, 0.0  ;;  %v11577_v14 = vpop.eup %10760  ;;  %v2537_v32 = vmul.f32 1.442695, %v2507_v53 }
0x13bd   : > { %v2492_v17 = vpop.xlane.xlu0 %2491  ;;  %2569 = vadd.xlane.f32.xlu0 %v2568_v50  ;;  %v2078_v51 = vpop.permute.xlu1 %2077  ;;  %v2565_v54 = vsel %vm493_vm5, %v11577_v14, 0.0  ;;  %v2451_v7 = vsel %vm493_vm5, %v11600_v62, -inf  ;;  %v11649_v50 = vld [vmem:[#allocation2 + $0x160] sm:$0xff] }
0x13be   : > { %v2508_v25 = vsub.f32 %v2444_v12, %v2492_v17  ;;  %v2150_v26 = vadd.f32 %v11517_v9, %v2078_v51  ;;  %10768 = vpow2.f32 %v2535_v49  ;;  %v11615_v12 = vmul.f32 0.35355338, %v11557_v19 }
0x13bf   : > { %v2460_v19 = vsel %vm493_vm5, %v11621_v15, -inf }
0x13c0   : > { %v2539_v31 = vmul.f32 1.442695, %v2508_v25  ;;  %9403 = vmatprep.subr.msk.mxu0 %vm497_vm4, %v2150_v26  ;;  %v2457_v16 = vsel %vm493_vm5, %v11615_v12, -inf }
0x13c1   : > { %2566 = vadd.xlane.f32.xlu0 %v2565_v54  ;;  %9404 = vmatpush3.msk.msra.mxu0 %vm497_vm4, %v2150_v26 }
0x13c2   : > { %10770 = vpow2.f32 %v2539_v31 }
0x13c3   : > { %10772 = vpow2.f32 %v2537_v32 }
0x13c4   : > { %v11584_v55 = vpop.eup %10762 }
0x13c5   : > { %v11586_v33 = vpop.eup %10764  ;;  %v2574_v9 = vsel %vm493_vm5, %v11584_v55, 0.0 }
0x13c6   : > { %v11590_v56 = vpop.eup %10766  ;;  %2575 = vadd.xlane.f32.xlu0 %v2574_v9  ;;  %v2577_v59 = vsel %vm493_vm5, %v11586_v33, 0.0  ;;  %v11661_v9 = vld [vmem:[#allocation2 + $0x170] sm:$0xff] }
0x13c7   : > { %2578 = vadd.xlane.f32.xlu1 %v2577_v59  ;;  %v2571_v35 = vsel %vm493_vm5, %v11590_v56, 0.0 }
0x13c8   : > { %v11597_v61 = vpop.eup %10768 }
0x13c9   : > { %v2580_v21 = vsel %vm493_vm5, %v11597_v61, 0.0 }
0x13ca   : > { %2572 = vadd.xlane.f32.xlu0 %v2571_v35 }
0x13cb   : > { %2449 = vmax.xlane.f32.xlu1 %v2448_v63 }
0x13cc   : > { %v11605_v2 = vpop.eup %10770 }
0x13cd   : > { %v2586_v29 = vsel %vm493_vm5, %v11605_v2, 0.0  ;;  %v11612_v11 = vpop.eup %10772 }
0x13ce   : > { %2581 = vadd.xlane.f32.xlu0 %v2580_v21  ;;  %v2583_v27 = vsel %vm493_vm5, %v11612_v11, 0.0 }
0x13cf   : > { %2452 = vmax.xlane.f32.xlu1 %v2451_v7 }
0x13d2   : > { %2587 = vadd.xlane.f32.xlu0 %v2586_v29 }
0x13d3   : > { %2455 = vmax.xlane.f32.xlu1 %v2454_v13 }
0x13d6   : > { %2584 = vadd.xlane.f32.xlu0 %v2583_v27 }
0x13d7   : > { %2458 = vmax.xlane.f32.xlu1 %v2457_v16 }
0x13db   : > { %2461 = vmax.xlane.f32.xlu1 %v2460_v19 }
0x13df   : > { %2464 = vmax.xlane.f32.xlu1 %v2463_v22 }
0x13e3   : > { %2467 = vmax.xlane.f32.xlu1 %v2466_v39 }
0x13ec   : > { %2181 = vrot.lane.b32.xlu0 %v2150_v26, %s11074_s30 }
0x140b   : > { %2446 = vmax.xlane.f32.xlu0 %v2445_v24 }
0x144a   : > { %v2570_v28 = vpop.xlane.xlu0 %2569 }
0x144e   : > { %v2567_v52 = vpop.xlane.xlu0 %2566 }
0x144f   : > { %10774 = vrcp.f32 %v2567_v52 }
0x1450   : > { %10776 = vrcp.f32 %v2570_v28 }
0x1453   : > { %v2576_v30 = vpop.xlane.xlu0 %2575 }
0x1454   : > { %v2579_v34 = vpop.xlane.xlu1 %2578 }
0x1457   : > { %v2573_v36 = vpop.xlane.xlu0 %2572 }
0x1458   : > { %v2450_v37 = vpop.xlane.xlu1 %2449  ;;  %10778 = vrcp.f32 %v2573_v36 }
0x1459   : > { %v10775_v38 = vpop.eup %10774  ;;  %v2494_v8 = vsub.f32 %v2430_v57, %v2450_v37  ;;  %v11663_v57 = vld [vmem:[#allocation2 + $0x178] sm:$0xff] }
0x145a   : > { %v2613_v40 = vmul.f32 %v10775_v38, %v11577_v14  ;;  %v11651_v14 = vld [vmem:[#allocation2 + $0x168] sm:$0xff]  ;;  %v10777_v17 = vpop.eup %10776 }
0x145b   : > { %v2511_v41 = vmul.f32 1.442695, %v2494_v8  ;;  %v2582_v44 = vpop.xlane.xlu0 %2581  ;;  %v10189_v53 = vpack.c.bf16 %v11651_v14, %v11649_v50  ;;  %v2614_v31 = vmul.f32 %v10777_v17, %v11573_v48 }
0x145c   : > { %v11644_v23 = vpop.xlane.xlu1 %2452  ;;  %9419 = vmatprep.mubr.msk.f32.mxu1 %vm493_vm5, %v2613_v40 }
0x145d   : > { %10780 = vpow2.f32 %v2511_v41 }
0x145e   : > { %10782 = vrcp.f32 %v2576_v30 }
0x145f   : > { %v2588_v45 = vpop.xlane.xlu0 %2587  ;;  %10784 = vrcp.f32 %v2579_v34 }
0x1460   : > { %v2456_v46 = vpop.xlane.xlu1 %2455  ;;  %10786 = vrcp.f32 %v2582_v44 }
0x1461   : > { %v2496_v47 = vsub.f32 %v2432_v3, %v2456_v46  ;;  %v10192_v3 = vpack.c.bf16 %v11663_v57, %v11661_v9  ;;  %v10586_v46 = vpack.i.bf16 %v11651_v14, %v11649_v50 }
0x1462   : > { %v10779_v51 = vpop.eup %10778 }
0x1463   : > { %v2515_v4 = vmul.f32 1.442695, %v2496_v47  ;;  %v2585_v42 = vpop.xlane.xlu0 %2584  ;;  %v2615_v63 = vmul.f32 %v10779_v51, %v11590_v56 }
0x1464   : > { %10788 = vrcp.f32 %v2585_v42  ;;  %v11647_v49 = vpop.xlane.xlu1 %2458 }
0x1465   : > { %10790 = vpow2.f32 %v2515_v4  ;;  %v2497_v37 = vsub.f32 %v11615_v12, %v11647_v49 }
0x1466   : > { %10792 = vrcp.f32 %v2588_v45 }
0x1467   : > { %v11653_v25 = vpop.eup %10780  ;;  %v2182_v26 = vpop.permute.xlu0 %2181  ;;  %v2517_v38 = vmul.f32 1.442695, %v2497_v37  ;;  %v2923_v37 = vld [vmem:[#allocation2 + $0x140] sm:$0xff] }
0x1468   : > { %v2462_v54 = vpop.xlane.xlu1 %2461  ;;  %9417 = vmatprep.subr.msk.mxu1 %vm497_vm4, %v2182_v26  ;;  %v2544_v32 = vsel %vm493_vm5, %v11653_v25, 0.0  ;;  %v10783_v59 = vpop.eup %10782 }
0x1469   : > { %v2498_v35 = vsub.f32 %v11621_v15, %v2462_v54  ;;  %2545 = vadd.xlane.f32.xlu0 %v2544_v32  ;;  %9418 = vmatpush3.msk.msra.mxu1 %vm497_vm4, %v2182_v26  ;;  %v10785_v21 = vpop.eup %10784  ;;  %v2616_v29 = vmul.f32 %v10783_v59, %v11584_v55 }
0x146a   : > { %9420 = vmatmul.mubr.msk.f32.vlgmr.msra.gmra.mrb[38].mxu1 %vm493_vm5, %v2614_v31  ;;  %10188 = vmatprep.subr.bf16.mxu1 %v11067_v0  ;;  %v10787_v13 = vpop.eup %10786  ;;  %v2617_v56 = vmul.f32 %v10785_v21, %v11586_v33 }
0x146b   : > { %v2519_v48 = vmul.f32 1.442695, %v2498_v35  ;;  %9422 = vmatprep.mubr.msk.f32.mxu1 %vm493_vm5, %v2615_v63  ;;  %10190 = vmatpush3.bf16.msra.mxu1 %v10189_v53  ;;  %v2618_v55 = vmul.f32 %v10787_v13, %v11597_v61 }
0x146c   : > { %v2465_v7 = vpop.xlane.xlu1 %2464  ;;  %10191 = vmatprep.subr.bf16.mxu1 %v11067_v0 }
0x146d   : > { %10794 = vpow2.f32 %v2519_v48  ;;  %v2499_v8 = vsub.f32 %v11626_v18, %v2465_v7 }
0x146e   : > { %v10789_v27 = vpop.eup %10788  ;;  %9423 = vmatmul.mubr.msk.f32.gmra.mrb[40].mxu1 %vm493_vm5, %v2616_v29 }
0x146f   : > { %v11677_v15 = vpop.eup %10790  ;;  %9425 = vmatprep.mubr.msk.f32.mxu1 %vm493_vm5, %v2617_v56  ;;  %10193 = vmatpush3.bf16.msra.mxu1 %v10192_v3  ;;  %v2619_v33 = vmul.f32 %v10789_v27, %v11612_v11  ;;  %v2521_v40 = vmul.f32 1.442695, %v2499_v8 }
0x1470   : > { %v2468_v16 = vpop.xlane.xlu1 %2467  ;;  %v2550_v19 = vsel %vm493_vm5, %v11677_v15, 0.0  ;;  %10194 = vmatprep.subr.bf16.mxu1 %v11067_v0  ;;  %v10793_v22 = vpop.eup %10792 }
0x1471   : > { %v2500_v39 = vsub.f32 %v11631_v43, %v2468_v16  ;;  %2551 = vadd.xlane.f32.xlu0 %v2550_v19  ;;  %v2620_v28 = vmul.f32 %v10793_v22, %v11605_v2  ;;  %v2495_v43 = vsub.f32 %v11600_v62, %v11644_v23 }
0x1472   : > { %9426 = vmatmul.mubr.msk.f32.gmra.mrb[42].mxu1 %vm493_vm5, %v2618_v55 }
0x1473   : > { %v2523_v24 = vmul.f32 1.442695, %v2500_v39  ;;  %9428 = vmatprep.mubr.msk.f32.mxu1 %vm493_vm5, %v2619_v33  ;;  %v2513_v36 = vmul.f32 1.442695, %v2495_v43 }
0x1475   : > { %10796 = vpow2.f32 %v2523_v24 }
0x1476   : > { %9429 = vmatmul.mubr.msk.f32.gmra.mrb[44].mxu1 %vm493_vm5, %v2620_v28  ;;  %v8436_v28 = vld [vmem:[#allocation2 + $0x180] ss:$0 sm:$0xff] }
0x1477   : > { %v11690_v52 = vpop.eup %10794  ;;  %9455 = vmatprep.mubr.msk.f32.mxu1 %vm11068_vm0, %v11069_v1 }
0x1478   : > { %v2556_v61 = vsel %vm493_vm5, %v11690_v52, 0.0 }
0x1479   : > { %2557 = vadd.xlane.f32.xlu0 %v2556_v61 }
0x147a   : > { %9456 = vmatmul.mubr.msk.f32.vlgmr.msra.gmra.mrb[46].mxu1 %vm236_vm1, %v11503_v10 }
0x147b   : > { %9466 = vmatprep.mubr.msk.f32.mxu1 %vm11068_vm0, %v11069_v1 }
0x147f   : > { %v11700_v11 = vpop.eup %10796 }
0x1480   : > { %v2562_v2 = vsel %vm493_vm5, %v11700_v11, 0.0 }
0x1481   : > { %2563 = vadd.xlane.f32.xlu0 %v2562_v2 }
0x1497   : > { %10587 = vrot.lane.b32.xlu0 %v10586_v46, %s11072_s13 }
0x1498   : > { %v2447_v30 = vpop.xlane.xlu0 %2446 }
0x1499   : > { %v2493_v34 = vsub.f32 %v11639_v20, %v2447_v30 }
0x149b   : > { %v2509_v10 = vmul.f32 1.442695, %v2493_v34 }
0x149d   : > { %10798 = vpow2.f32 %v2509_v10  ;;  %v2924_v10 = vld [vmem:[#allocation2 + $0x148] sm:$0xff] }
0x149e   : > { %10800 = vpow2.f32 %v2513_v36  ;;  %v10591_v36 = vpack.i.bf16 %v11663_v57, %v11661_v9 }
0x149f   : > { %10802 = vpow2.f32 %v2517_v38  ;;  %v10184_v38 = vpack.c.bf16 %v2924_v10, %v2923_v37  ;;  %v10999_v10 = vld [vmem:[%s12970_s1] sm:$0xff] }
0x14a0   : > { %10804 = vpow2.f32 %v2521_v40 }
0x14a1   : > { %10185 = vmatprep.subr.bf16.mxu0 %v10184_v38 }
0x14a7   : > { %v10799_v41 = vpop.eup %10798 }
0x14a8   : > { %v2541_v44 = vsel %vm493_vm5, %v10799_v41, 0.0  ;;  %v10801_v62 = vpop.eup %10800 }
0x14a9   : > { %2542 = vadd.xlane.f32.xlu1 %v2541_v44  ;;  %v2547_v20 = vsel %vm493_vm5, %v10801_v62, 0.0  ;;  %v10803_v23 = vpop.eup %10802 }
0x14aa   : > { %v2553_v12 = vsel %vm493_vm5, %v10803_v23, 0.0  ;;  %v11713_v45 = vpop.eup %10804 }
0x14ab   : > { %v2559_v18 = vsel %vm493_vm5, %v11713_v45, 0.0 }
0x14ad   : > { %2548 = vadd.xlane.f32.xlu1 %v2547_v20 }
0x14b1   : > { %2554 = vadd.xlane.f32.xlu1 %v2553_v12 }
0x14b5   : > { %2560 = vadd.xlane.f32.xlu1 %v2559_v18 }
0x14f6   : > { %v2546_v47 = vpop.xlane.xlu0 %2545 }
0x14f7   : > { %10806 = vrcp.f32 %v2546_v47 }
0x14fe   : > { %v2552_v4 = vpop.xlane.xlu0 %2551 }
0x1501   : > { %v10807_v59 = vpop.eup %10806 }
0x1502   : > { %v2606_v7 = vmul.f32 %v10807_v59, %v11653_v25 }
0x1506   : > { %v2558_v42 = vpop.xlane.xlu0 %2557 }
0x150e   : > { %v2564_v49 = vpop.xlane.xlu0 %2563 }
0x1512   : > { %v10588_v17 = vpop.permute.xlu0 %10587 }
0x1513   : > { %v10590_v51 = vunpack.i.h.bf16 %v10588_v17  ;;  %v10589_v26 = vunpack.i.l.bf16 %v10588_v17 }
0x1515   : > { %v10195_v53 = vpack.c.bf16 %v10590_v51, %v10589_v26 }
0x1517   : > { %10196 = vmatpush3.bf16.msra.mxu1 %v10195_v53 }
0x1518   : > { %10197 = vmatprep.subr.bf16.mxu1 %v11067_v0 }
0x1536   : > { %v2543_v31 = vpop.xlane.xlu1 %2542 }
0x1537   : > { %10808 = vrcp.f32 %v2543_v31 }
0x1538   : > { %10810 = vrcp.f32 %v2552_v4 }
0x153a   : > { %v2549_v54 = vpop.xlane.xlu1 %2548 }
0x153b   : > { %10812 = vrcp.f32 %v2549_v54 }
0x153c   : > { %10814 = vrcp.f32 %v2558_v42 }
0x153d   : > { %v9421_v50 = vpop.f32.mrb[38].mxu1 }
0x153e   : > { %v2844_v14 = vpop.f32.mrb[39].mxu1  ;;  %v2555_v32 = vpop.xlane.xlu1 %2554 }
0x153f   : > { %10816 = vrcp.f32 %v2555_v32  ;;  %2891 = vrot.lane.b32.xlu0 %v2844_v14, %s11075_s5 }
0x1540   : > { %10818 = vrcp.f32 %v2564_v49 }
0x1541   : > { %v10809_v35 = vpop.eup %10808  ;;  %v9424_v63 = vpop.f32.mrb[40].mxu1 }
0x1542   : > { %v2854_v21 = vpop.f32.mrb[41].mxu1  ;;  %v2561_v48 = vpop.xlane.xlu1 %2560  ;;  %v2605_v3 = vmul.f32 %v10809_v35, %v10799_v41 }
0x1543   : > { %10820 = vrcp.f32 %v2561_v48  ;;  %2895 = vrot.lane.b32.xlu0 %v2854_v21, %s11075_s5  ;;  %v10811_v29 = vpop.eup %10810 }
0x1544   : > { %9405 = vmatprep.mubr.msk.f32.mxu0 %vm493_vm5, %v2605_v3  ;;  %v2608_v19 = vmul.f32 %v10811_v29, %v11677_v15 }
0x1545   : > { %v10813_v13 = vpop.eup %10812  ;;  %9406 = vmatmul.mubr.msk.f32.vlgmr.msra.gmra.mrb[34].mxu0 %vm493_vm5, %v2606_v7  ;;  %v9427_v56 = vpop.f32.mrb[42].mxu1 }
0x1546   : > { %v2864_v27 = vpop.f32.mrb[43].mxu1  ;;  %v2607_v16 = vmul.f32 %v10813_v13, %v10801_v62  ;;  %v10815_v55 = vpop.eup %10814  ;;  %10187 = vmatpush3.bf16.msra.mxu0 %v10184_v38 }
0x1547   : > { %2899 = vrot.lane.b32.xlu0 %v2864_v27, %s11075_s5  ;;  %v2610_v24 = vmul.f32 %v10815_v55, %v11690_v52  ;;  %9469 = vmatprep.subr.mxu0 %v11069_v1 }
0x1548   : > { %9408 = vmatprep.mubr.msk.f32.mxu0 %vm493_vm5, %v2607_v16 }
0x1549   : > { %v10817_v25 = vpop.eup %10816  ;;  %9409 = vmatmul.mubr.msk.f32.gmra.mrb[36].mxu0 %vm493_vm5, %v2608_v19  ;;  %v9430_v22 = vpop.f32.mrb[44].mxu1 }
0x154a   : > { %v2874_v39 = vpop.f32.mrb[45].mxu1  ;;  %v2609_v33 = vmul.f32 %v10817_v25, %v10803_v23  ;;  %v10819_v61 = vpop.eup %10818 }
0x154b   : > { %2903 = vrot.lane.b32.xlu0 %v2874_v39, %s11075_s5  ;;  %v2612_v52 = vmul.f32 %v10819_v61, %v11700_v11 }
0x154c   : > { %9411 = vmatprep.mubr.msk.f32.mxu0 %vm493_vm5, %v2609_v33 }
0x154d   : > { %v10821_v2 = vpop.eup %10820  ;;  %9412 = vmatmul.mubr.msk.f32.gmra.mrb[38].mxu0 %vm493_vm5, %v2610_v24  ;;  %v3271_v15 = vpop.f32.mrb[46].mxu1 }
0x154e   : > { %v11734_v43 = vadd.f32 %v8436_v28, %v3271_v15  ;;  %v9457_v30 = vpop.f32.mrb[47].mxu1  ;;  %v2611_v34 = vmul.f32 %v10821_v2, %v11713_v45 }
0x1550   : > { %3366 = vrot.lane.b32.xlu1 %v11734_v43, %s11071_s12  ;;  %3371 = vrot.lane.b32.xlu0 %v11734_v43, %s11070_s11 }
0x1551   : > { %9414 = vmatprep.mubr.msk.f32.mxu0 %vm493_vm5, %v2611_v34 }
0x1552   : > { %9415 = vmatmul.mubr.msk.f32.gmra.mrb[40].mxu0 %vm493_vm5, %v2612_v52 }
0x1554   : > { %10592 = vrot.lane.b32.xlu1 %v10591_v36, %s11072_s13  ;;  %3292 = vrot.lane.b32.xlu0 %v8436_v28, %s11072_s13 }
0x15b1   : > { %v2892_v44 = vpop.permute.xlu0 %2891 }
0x15b5   : > { %v2896_v4 = vpop.permute.xlu0 %2895 }
0x15b9   : > { %v2900_v42 = vpop.permute.xlu0 %2899 }
0x15bd   : > { %v2904_v49 = vpop.permute.xlu0 %2903 }
0x15c2   : > { %v3367_v8 = vpop.permute.xlu1 %3366  ;;  %v3372_v53 = vpop.permute.xlu0 %3371 }
0x15c3   : > { %3447 = vrot.lane.b32.xlu1 %v3367_v8, %s11070_s11 }
0x15c6   : > { %v10593_v11 = vpop.permute.xlu1 %10592  ;;  %v3293_v48 = vpop.permute.xlu0 %3292 }
0x15c7   : > { %v10595_v9 = vunpack.i.h.bf16 %v10593_v11  ;;  %v10594_v57 = vunpack.i.l.bf16 %v10593_v11  ;;  %2893 = vrot.lane.b32.xlu1 %v9421_v50, %s11075_s5 }
0x15c9   : > { %v10198_v40 = vpack.c.bf16 %v10595_v9, %v10594_v57  ;;  %v11000_v9 = vld [vmem:[%s12970_s1 + $0x10] sm:$0xff] }
0x15cb   : > { %2897 = vrot.lane.b32.xlu1 %v9424_v63, %s11075_s5  ;;  %10199 = vmatpush3.bf16.msra.mxu1 %v10198_v40 }
0x15cc   : > { %9474 = vmatprep.subr.mxu1 %v11069_v1 }
0x15ce   : > { %9467 = vmatmul.mubr.msk.f32.vlgmr.msra.gmra.mrb[48].mxu1 %vm236_vm1, %v11497_v6 }
0x15cf   : > { %2901 = vrot.lane.b32.xlu1 %v9427_v56, %s11075_s5  ;;  %9476 = vmatprep.mubr.msk.f32.mxu1 %vm11068_vm0, %v11069_v1  ;;  %v8427_v56 = vld [vmem:[#allocation2 + $0x150] ss:$0 sm:$0xff] }
0x15d3   : > { %2905 = vrot.lane.b32.xlu1 %v9430_v22, %s11075_s5 }
0x1618   : > { %v9407_v41 = vpop.f32.mrb[34].mxu0 }
0x1619   : > { %v2713_v62 = vpop.f32.mrb[35].mxu0 }
0x161a   : > { %v2915_v20 = vsel %vm1203_vm7, %v2713_v62, %v2892_v44 }
0x161b   : > { %9435 = vmatprep.mubr.msk.f32.mxu0 %vm315_vm2, %v2915_v20 }
0x161c   : > { %v9410_v23 = vpop.f32.mrb[36].mxu0 }
0x161d   : > { %v2723_v12 = vpop.f32.mrb[37].mxu0 }
0x161e   : > { %v2917_v31 = vsel %vm1203_vm7, %v2723_v12, %v2896_v4 }
0x1620   : > { %v9413_v45 = vpop.f32.mrb[38].mxu0 }
0x1621   : > { %v2733_v18 = vpop.f32.mrb[39].mxu0 }
0x1622   : > { %v2919_v14 = vsel %vm1203_vm7, %v2733_v18, %v2900_v42 }
0x1625   : > { %v9416_v46 = vpop.f32.mrb[40].mxu0 }
0x1626   : > { %v2743_v47 = vpop.f32.mrb[41].mxu0 }
0x1627   : > { %v2921_v35 = vsel %vm1203_vm7, %v2743_v47, %v2904_v49 }
0x1635   : > { %v3448_v17 = vpop.permute.xlu1 %3447 }
0x1636   : > { %9475 = vmatpush3.xpose.msk.msra.mxu1 %vm315_vm2, %v3448_v17 }
0x1637   : > { %9484 = vmatprep.subr.mxu1 %v11069_v1 }
0x1639   : > { %v2894_v51 = vpop.permute.xlu1 %2893  ;;  %9477 = vmatmul.mubr.msk.f32.vlgmr.msra.gmra.mrb[50].mxu1 %vm315_vm2, %v3367_v8 }
0x163a   : > { %v2916_v26 = vsel %vm1203_vm7, %v9407_v41, %v2894_v51  ;;  %9486 = vmatprep.mubr.msk.f32.mxu1 %vm11068_vm0, %v11069_v1  ;;  %v11001_v41 = vld [vmem:[%s12970_s1 + $0x18] sm:$0xff] }
0x163b   : > { %9436 = vmatmul.mubr.msk.f32.vlgmr.msra.gmra.mrb[42].mxu0 %vm315_vm2, %v2916_v26 }
0x163c   : > { %9470 = vmatpush3.xpose.msk.msra.mxu0 %vm315_vm2, %v3372_v53  ;;  %9438 = vmatprep.mubr.msk.f32.mxu0 %vm315_vm2, %v2917_v31 }
0x163d   : > { %v2898_v54 = vpop.permute.xlu1 %2897  ;;  %9479 = vmatprep.subr.mxu0 %v11069_v1 }
0x163e   : > { %v2918_v50 = vsel %vm1203_vm7, %v9410_v23, %v2898_v54  ;;  %v11002_v23 = vld [vmem:[%s12970_s1 + $0x28] sm:$0xff] }
0x163f   : > { %9439 = vmatmul.mubr.msk.f32.gmra.mrb[44].mxu0 %vm315_vm2, %v2918_v50 }
0x1640   : > { %9441 = vmatprep.mubr.msk.f32.mxu0 %vm315_vm2, %v2919_v14 }
0x1641   : > { %v2902_v32 = vpop.permute.xlu1 %2901 }
0x1642   : > { %v2920_v59 = vsel %vm1203_vm7, %v9413_v45, %v2902_v32 }
0x1643   : > { %9442 = vmatmul.mubr.msk.f32.gmra.mrb[46].mxu0 %vm315_vm2, %v2920_v59 }
0x1644   : > { %9444 = vmatprep.mubr.msk.f32.mxu0 %vm315_vm2, %v2921_v35 }
0x1645   : > { %v2906_v63 = vpop.permute.xlu1 %2905 }
0x1646   : > { %v2922_v21 = vsel %vm1203_vm7, %v9416_v46, %v2906_v63  ;;  %v11003_v46 = vld [vmem:[%s12970_s1 + $0x38] sm:$0xff] }
0x1647   : > { %9445 = vmatmul.mubr.msk.f32.gmra.mrb[48].mxu0 %vm315_vm2, %v2922_v21 }
0x1648   : > { %9471 = vmatprep.mubr.msk.f32.mxu0 %vm11068_vm0, %v11069_v1 }
0x164b   : > { %9472 = vmatmul.mubr.msk.f32.vlgmr.msra.gmra.mrb[50].mxu0 %vm315_vm2, %v11734_v43 }
0x164c   : > { %9481 = vmatprep.mubr.msk.f32.mxu0 %vm11068_vm0, %v11069_v1 }
0x16a1   : > { %v3361_v3 = vpop.f32.mrb[48].mxu1 }
0x16a2   : > { %v3362_v7 = vadd.f32 %v3361_v3, %v3293_v48  ;;  %v9468_v29 = vpop.f32.mrb[49].mxu1 }
0x16a4   : > { %9480 = vmatpush3.msk.msra.mxu0 %vm497_vm4, %v3362_v7 }
0x16a5   : > { %10200 = vmatprep.subr.bf16.mxu0 %v11067_v0 }
0x170c   : > { %v3519_v13 = vpop.f32.mrb[50].mxu1 }
0x170d   : > { %v3524_v27 = vmul.f32 0.25, %v3519_v13  ;;  %v9478_v16 = vpop.f32.mrb[51].mxu1 }
0x170e   : > { %v9437_v19 = vpop.f32.mrb[42].mxu0 }
0x170f   : > { %v11790_v55 = vadd.f32 %v9437_v19, %v8427_v56  ;;  %v3020_v25 = vpop.f32.mrb[43].mxu0  ;;  %v3528_v22 = vsel %vm468_vm3, %v3524_v27, -inf }
0x1710   : > { %3529 = vmax.xlane.f32.xlu1 %v3528_v22  ;;  %v3021_v37 = vadd.f32 %v8427_v56, %v3020_v25 }
0x1712   : > { %v9440_v39 = vpop.f32.mrb[44].mxu0  ;;  %v3059_v38 = vadd.f32 %v10999_v10, %v3021_v37 }
0x1713   : > { %v3030_v33 = vpop.f32.mrb[45].mxu0  ;;  %v3036_v11 = vadd.f32 %v9440_v39, %v8427_v56 }
0x1714   : > { %v3031_v8 = vadd.f32 %v8427_v56, %v3030_v33  ;;  %v3068_v40 = vsel %vm236_vm1, %v3059_v38, 0.0 }
0x1715   : > { %v11809_v44 = vadd.f32 %v11001_v41, %v3036_v11  ;;  %v11005_v11 = vld [vmem:[%s12970_s1 + $0x20] sm:$0xff] }
0x1716   : > { %v9443_v24 = vpop.f32.mrb[46].mxu0  ;;  %v3061_v57 = vadd.f32 %v11000_v9, %v3031_v8 }
0x1717   : > { %v3040_v28 = vpop.f32.mrb[47].mxu0  ;;  %v3046_v62 = vadd.f32 %v9443_v24, %v8427_v56  ;;  %v3077_v18 = vsel %vm236_vm1, %v11809_v44, 0.0  ;;  %v3702_v24 = vld [vmem:[#allocation2 + $0x188] sm:$0xff] }
0x1718   : > { %v11793_v61 = vadd.f32 %v8427_v56, %v3040_v28  ;;  %v3074_v20 = vsel %vm236_vm1, %v3061_v57, 0.0  ;;  %v3703_v28 = vld [vmem:[#allocation2 + $0x190] sm:$0xff] }
0x1719   : > { %v11815_v12 = vadd.f32 %v11002_v23, %v3046_v62 }
0x171a   : > { %v9446_v2 = vpop.f32.mrb[48].mxu0  ;;  %v3063_v9 = vadd.f32 %v11005_v11, %v11793_v61 }
0x171b   : > { %v3050_v15 = vpop.f32.mrb[49].mxu0  ;;  %v3056_v45 = vadd.f32 %v9446_v2, %v8427_v56  ;;  %v3083_v4 = vsel %vm236_vm1, %v11815_v12, 0.0  ;;  %v3704_v2 = vld [vmem:[#allocation2 + $0x198] sm:$0xff] }
0x171c   : > { %v11795_v43 = vadd.f32 %v8427_v56, %v3050_v15  ;;  %v10201_v15 = vpack.c.bf16 %v3703_v28, %v3702_v24  ;;  %v3080_v62 = vsel %vm236_vm1, %v3063_v9, 0.0 }
0x171d   : > { %v11822_v47 = vadd.f32 %v11003_v46, %v3056_v45 }
0x171e   : > { %v3443_v30 = vpop.f32.mrb[50].mxu0 }
0x171f   : > { %v3523_v34 = vmul.f32 0.25, %v3443_v30  ;;  %v9473_v52 = vpop.f32.mrb[51].mxu0  ;;  %v3089_v42 = vsel %vm236_vm1, %v11822_v47, 0.0  ;;  %v3705_v30 = vld [vmem:[#allocation2 + $0x1a0] sm:$0xff] }
0x1721   : > { %v3525_v36 = vsel %vm468_vm3, %v3523_v34, -inf }
0x1722   : > { %3526 = vmax.xlane.f32.xlu0 %v3525_v36 }
0x1738   : > { %3369 = vrot.lane.b32.xlu0 %v3362_v7, %s11071_s12 }
0x1757   : > { %3069 = vadd.xlane.f32.xlu0 %v3068_v40  ;;  %v11006_v40 = vld [vmem:[%s12970_s1 + $0x30] sm:$0xff] }
0x1758   : > { %v3065_v41 = vadd.f32 %v11006_v40, %v11795_v43 }
0x175b   : > { %3075 = vadd.xlane.f32.xlu0 %v3074_v20 }
0x175f   : > { %3078 = vadd.xlane.f32.xlu0 %v3077_v18 }
0x1763   : > { %3084 = vadd.xlane.f32.xlu0 %v3083_v4 }
0x1767   : > { %3090 = vadd.xlane.f32.xlu0 %v3089_v42  ;;  %v3067_v42 = vld [vmem:[#allocation2 + $0x158] sm:$0x3] }
0x179d   : > { %v3530_v49 = vpop.xlane.xlu1 %3529 }
0x179e   : > { %v3532_v17 = vsub.f32 %v3524_v27, %v3530_v49 }
0x17a0   : > { %v3535_v51 = vmul.f32 1.442695, %v3532_v17  ;;  %v11862_v17 = vrot.slane %v3067_v42, %v11346_v58 }
0x17a2   : > { %10822 = vpow2.f32 %v3535_v51  ;;  %v11866_v51 = vrot.slane %v3067_v42, %v11349_v60 }
0x17ac   : > { %v10823_v26 = vpop.eup %10822 }
0x17ad   : > { %v3540_v53 = vsel %vm468_vm3, %v10823_v26, 0.0 }
0x17ae   : > { %3541 = vadd.xlane.f32.xlu1 %v3540_v53 }
0x17af   : > { %v3527_v31 = vpop.xlane.xlu0 %3526 }
0x17b0   : > { %v3531_v54 = vsub.f32 %v3523_v34, %v3527_v31  ;;  %v10204_v34 = vpack.c.bf16 %v3705_v30, %v3704_v2 }
0x17b2   : > { %v3533_v50 = vmul.f32 1.442695, %v3531_v54  ;;  %v11007_v54 = vld [vmem:[%s12971_s2] sm:$0xff] }
0x17b3   : > { %v3370_v14 = vpop.permute.xlu0 %3369 }
0x17b4   : > { %10824 = vpow2.f32 %v3533_v50  ;;  %9485 = vmatpush3.msk.msra.mxu1 %vm497_vm4, %v3370_v14 }
0x17b5   : > { %10206 = vmatprep.subr.bf16.mxu1 %v11067_v0 }
0x17be   : > { %v10825_v32 = vpop.eup %10824 }
0x17bf   : > { %v3537_v59 = vsel %vm468_vm3, %v10825_v32, 0.0 }
0x17c0   : > { %3538 = vadd.xlane.f32.xlu1 %v3537_v59 }
0x17e4   : > { %v3070_v35 = vpop.xlane.xlu0 %3069 }
0x17e5   : > { %v3092_v63 = vmul.f32 0.03125, %v3070_v35 }
0x17e7   : > { %v3100_v21 = vsub.f32 %v3059_v38, %v3092_v63  ;;  %v11004_v38 = vld [vmem:[%s12970_s1 + $0x8] sm:$0xff] }
0x17e8   : > { %v3076_v48 = vpop.xlane.xlu0 %3075  ;;  %v3060_v8 = vadd.f32 %v11004_v38, %v11790_v55  ;;  %v3086_v55 = vsel %vm236_vm1, %v3065_v41, 0.0 }
0x17e9   : > { %v3094_v3 = vmul.f32 0.03125, %v3076_v48  ;;  %v3108_v7 = vmul.f32 %v3100_v21, %v3100_v21 }
0x17eb   : > { %v11832_v29 = vsub.f32 %v3061_v57, %v3094_v3  ;;  %v3116_v13 = vsel %vm236_vm1, %v3108_v7, 0.0  ;;  %v3071_v57 = vsel %vm236_vm1, %v3060_v8, 0.0 }
0x17ec   : > { %3117 = vadd.xlane.f32.xlu0 %v3116_v13  ;;  %v3079_v20 = vpop.xlane.xlu0 %3078 }
0x17ed   : > { %v3110_v56 = vmul.f32 %v11832_v29, %v11832_v29 }
0x17ef   : > { %v3122_v27 = vsel %vm236_vm1, %v3110_v56, 0.0 }
0x17f0   : > { %3123 = vadd.xlane.f32.xlu0 %v3122_v27  ;;  %v3085_v23 = vpop.xlane.xlu0 %3084  ;;  %v11891_v27 = vld [vmem:[#allocation2 + $0x1b8] sm:$0xff] }
0x17f4   : > { %v3091_v45 = vpop.xlane.xlu0 %3090 }
0x183b   : > { %v3542_v16 = vpop.xlane.xlu1 %3541 }
0x183c   : > { %10826 = vrcp.f32 %v3542_v16  ;;  %v11893_v16 = vld [vmem:[#allocation2 + $0x1c0] sm:$0xff] }
0x1846   : > { %v10827_v19 = vpop.eup %10826 }
0x1847   : > { %v3546_v25 = vmul.f32 %v10827_v19, %v10823_v26  ;;  %v10596_v19 = vpack.i.bf16 %v11893_v16, %v11891_v27 }
0x1849   : > { %9487 = vmatmul.mubr.msk.f32.vlgmr.msra.gmra.mrb[52].mxu1 %vm493_vm5, %v3546_v25 }
0x184a   : > { %9508 = vmatprep.mubr.msk.f32.mxu1 %vm11068_vm0, %v11069_v1 }
0x184d   : > { %v3539_v22 = vpop.xlane.xlu1 %3538 }
0x184e   : > { %10828 = vrcp.f32 %v3539_v22  ;;  %v8447_v22 = vld [vmem:[#allocation2 + $0x1a8] ss:$0 sm:$0xff] }
0x1858   : > { %v10829_v39 = vpop.eup %10828 }
0x1859   : > { %v3545_v33 = vmul.f32 %v10829_v39, %v10825_v32 }
0x185b   : > { %9482 = vmatmul.mubr.msk.f32.vlgmr.msra.gmra.mrb[52].mxu0 %vm493_vm5, %v3545_v33  ;;  %v3095_v33 = vmul.f32 0.03125, %v3079_v20 }
0x185c   : > { %9497 = vmatprep.mubr.msk.f32.mxu0 %vm11068_vm0, %v11069_v1  ;;  %10202 = vmatpush3.bf16.msra.mxu0 %v10201_v15 }
0x185d   : > { %10203 = vmatprep.subr.bf16.mxu0 %v11067_v0  ;;  %v11902_v30 = vsub.f32 %v11809_v44, %v3095_v33 }
0x1860   : > { %10205 = vmatpush3.bf16.msra.mxu0 %v10204_v34  ;;  %v3097_v34 = vmul.f32 0.03125, %v3085_v23 }
0x1879   : > { %v3118_v18 = vpop.xlane.xlu0 %3117 }
0x187a   : > { %v3140_v61 = vmul.f32 0.03125, %v3118_v18 }
0x187c   : > { %v3148_v46 = vadd.f32 1e-05, %v3140_v61 }
0x187d   : > { %v3124_v40 = vpop.xlane.xlu0 %3123 }
0x187e   : > { %10830 = vrsqrt.f32 %v3148_v46  ;;  %v11930_v46 = vld [vmem:[#allocation2 + $0x1d8] ss:$0 sm:$0xff] }
0x1888   : > { %v10831_v4 = vpop.eup %10830 }
0x1889   : > { %v3164_v49 = vmul.f32 %v10831_v4, %v3100_v21  ;;  %v3142_v4 = vmul.f32 0.03125, %v3124_v40 }
0x188b   : > { %v3176_v43 = vmul.f32 %v11862_v17, %v3164_v49  ;;  %v3150_v42 = vadd.f32 1e-05, %v3142_v4 }
0x188d   : > { %v11869_v26 = vadd.f32 %v11866_v51, %v3176_v43  ;;  %10832 = vrsqrt.f32 %v3150_v42 }
0x188f   : > { %v11876_v50 = vadd.f32 %v11007_v54, %v11869_v26 }
0x191c   : > { %v3693_v52 = vpop.f32.mrb[52].mxu1 }
0x191d   : > { %3698 = vrot.lane.b32.xlu1 %v3693_v52, %s11073_s14  ;;  %v9488_v36 = vpop.f32.mrb[53].mxu1 }
0x192e   : > { %v3618_v37 = vpop.f32.mrb[52].mxu0 }
0x192f   : > { %v9483_v10 = vpop.f32.mrb[53].mxu0 }
0x1930   : > { %v3099_v10 = vmul.f32 0.03125, %v3091_v45 }
0x1941   : > { %3072 = vadd.xlane.f32.xlu1 %v3071_v57 }
0x1945   : > { %3081 = vadd.xlane.f32.xlu1 %v3080_v62 }
0x1949   : > { %3087 = vadd.xlane.f32.xlu1 %v3086_v55  ;;  %v11925_v55 = vld [vmem:[#allocation2 + $0x1d0] sm:$0xff] }
0x198f   : > { %v3699_v53 = vpop.permute.xlu1 %3698 }
0x1990   : > { %v3701_v31 = vsel %vm315_vm2, %v3618_v37, %v3699_v53  ;;  %v11908_v37 = vsub.f32 %v11815_v12, %v3097_v34 }
0x1991   : > { %9498 = vmatmul.mubr.msk.f32.vlgmr.msra.gmra.mrb[54].mxu0 %vm236_vm1, %v3701_v31 }
0x1992   : > { %9519 = vmatprep.mubr.msk.f32.mxu0 %vm236_vm1, %v11876_v50  ;;  %v3113_v11 = vmul.f32 %v11908_v37, %v11908_v37 }
0x19ce   : > { %v3073_v14 = vpop.xlane.xlu1 %3072 }
0x19cf   : > { %v3093_v25 = vmul.f32 0.03125, %v3073_v14 }
0x19d1   : > { %v11898_v24 = vsub.f32 %v3060_v8, %v3093_v25  ;;  %v3111_v8 = vmul.f32 %v11902_v30, %v11902_v30  ;;  %v10833_v25 = vpop.eup %10832 }
0x19d2   : > { %v3082_v32 = vpop.xlane.xlu1 %3081  ;;  %v3166_v33 = vmul.f32 %v10833_v25, %v11832_v29 }
0x19d3   : > { %v3096_v59 = vmul.f32 0.03125, %v3082_v32  ;;  %v3109_v36 = vmul.f32 %v11898_v24, %v11898_v24  ;;  %v3125_v44 = vsel %vm236_vm1, %v3111_v8, 0.0 }
0x19d5   : > { %v11881_v35 = vsub.f32 %v3063_v9, %v3096_v59  ;;  %v3119_v38 = vsel %vm236_vm1, %v3109_v36, 0.0  ;;  %v3131_v9 = vsel %vm236_vm1, %v3113_v11, 0.0 }
0x19d6   : > { %v3088_v63 = vpop.xlane.xlu1 %3087 }
0x19d7   : > { %v3098_v21 = vmul.f32 0.03125, %v3088_v63  ;;  %v3112_v48 = vmul.f32 %v11881_v35, %v11881_v35 }
0x19d9   : > { %v11885_v3 = vsub.f32 %v3065_v41, %v3098_v21  ;;  %v3128_v7 = vsel %vm236_vm1, %v3112_v48, 0.0 }
0x19da   : > { %3129 = vadd.xlane.f32.xlu0 %v3128_v7 }
0x19db   : > { %v3114_v13 = vmul.f32 %v11885_v3, %v11885_v3 }
0x19dd   : > { %v3134_v56 = vsel %vm236_vm1, %v3114_v13, 0.0 }
0x19de   : > { %3135 = vadd.xlane.f32.xlu0 %v3134_v56 }
0x19f4   : > { %10597 = vrot.lane.b32.xlu0 %v10596_v19, %s11071_s12 }
0x19f8   : > { %3917 = vrot.lane.b32.xlu0 %v11930_v46, %s11071_s12 }
0x19fc   : > { %10607 = vrot.lane.b32.xlu0 %v10596_v19, %s11070_s11 }
0x1a64   : > { %v3780_v39 = vpop.f32.mrb[54].mxu0 }
0x1a65   : > { %v3781_v28 = vadd.f32 %v8447_v22, %v3780_v39  ;;  %v9499_v2 = vpop.f32.mrb[55].mxu0 }
0x1a67   : > { %v3784_v15 = vadd.f32 %v3781_v28, %v11497_v6  ;;  %v11914_v6 = vsub.f32 %v11822_v47, %v3099_v10  ;;  %v3130_v41 = vpop.xlane.xlu0 %3129  ;;  %v11923_v47 = vld [vmem:[#allocation2 + $0x1c8] sm:$0xff]  ;;  %v3178_v10 = vmul.f32 %v11862_v17, %v3166_v33 }
0x1a68   : > { %v10601_v20 = vpack.i.bf16 %v11925_v55, %v11923_v47  ;;  %v3144_v49 = vmul.f32 0.03125, %v3130_v41 }
0x1a69   : > { %v3786_v52 = vsel %vm735_vm6, %v3784_v15, 0.0  ;;  %v3115_v12 = vmul.f32 %v11914_v6, %v11914_v6  ;;  %v11947_v41 = vadd.f32 %v11866_v51, %v3178_v10 }
0x1a6a   : > { %3787 = vadd.xlane.f32.xlu1 %v3786_v52  ;;  %10612 = vrot.lane.b32.xlu0 %v10601_v20, %s11070_s11  ;;  %v3152_v31 = vadd.f32 1e-05, %v3144_v49 }
0x1a6b   : > { %v3137_v57 = vsel %vm236_vm1, %v3115_v12, 0.0  ;;  %v3136_v62 = vpop.xlane.xlu0 %3135 }
0x1a6c   : > { %v3146_v54 = vmul.f32 0.03125, %v3136_v62  ;;  %10834 = vrsqrt.f32 %v3152_v31 }
0x1a6e   : > { %3120 = vadd.xlane.f32.xlu1 %v3119_v38  ;;  %v3154_v21 = vadd.f32 1e-05, %v3146_v54 }
0x1a6f   : > { %v10598_v23 = vpop.permute.xlu0 %10597 }
0x1a70   : > { %v10600_v45 = vunpack.i.h.bf16 %v10598_v23  ;;  %v10599_v18 = vunpack.i.l.bf16 %v10598_v23  ;;  %v11008_v23 = vld [vmem:[%s12971_s2 + $0x8] sm:$0xff] }
0x1a72   : > { %3126 = vadd.xlane.f32.xlu1 %v3125_v44  ;;  %v10212_v61 = vpack.c.bf16 %v10600_v45, %v10599_v18  ;;  %v11009_v18 = vld [vmem:[%s12971_s2 + $0x10] sm:$0xff] }
0x1a74   : > { %10213 = vmatprep.subr.bf16.mxu0 %v10212_v61 }
0x1a75   : > { %10215 = vmatpush3.bf16.msra.mxu0 %v10212_v61  ;;  %v11968_v61 = vadd.f32 %v11009_v18, %v11947_v41 }
0x1a76   : > { %3132 = vadd.xlane.f32.xlu1 %v3131_v9 }
0x1a7a   : > { %3138 = vadd.xlane.f32.xlu1 %v3137_v57 }
0x1a8b   : > { %10602 = vrot.lane.b32.xlu1 %v10601_v20, %s11071_s12 }
0x1af7   : > { %v3788_v43 = vpop.xlane.xlu1 %3787 }
0x1af8   : > { %v3789_v53 = vmul.f32 0.03125, %v3788_v43 }
0x1afa   : > { %v11936_v14 = vsub.f32 %v3784_v15, %v3789_v53  ;;  %v10835_v15 = vpop.eup %10834  ;;  %v11010_v53 = vld [vmem:[%s12971_s2 + $0x18] sm:$0xff] }
0x1afb   : > { %v3121_v32 = vpop.xlane.xlu1 %3120  ;;  %v3168_v38 = vmul.f32 %v10835_v15, %v11881_v35 }
0x1afc   : > { %v3141_v59 = vmul.f32 0.03125, %v3121_v32  ;;  %v3791_v63 = vmul.f32 %v11936_v14, %v11936_v14 }
0x1afe   : > { %v3149_v48 = vadd.f32 1e-05, %v3141_v59  ;;  %v3792_v7 = vsel %vm735_vm6, %v3791_v63, 0.0  ;;  %v11011_v59 = vld [vmem:[%s12971_s2 + $0x20] sm:$0xff] }
0x1aff   : > { %3793 = vadd.xlane.f32.xlu1 %v3792_v7  ;;  %v3127_v13 = vpop.xlane.xlu1 %3126 }
0x1b00   : > { %10836 = vrsqrt.f32 %v3149_v48  ;;  %v3143_v56 = vmul.f32 0.03125, %v3127_v13 }
0x1b01   : > { %10838 = vrsqrt.f32 %v3154_v21 }
0x1b02   : > { %v3151_v19 = vadd.f32 1e-05, %v3143_v56  ;;  %v11013_v56 = vld [vmem:[%s12971_s2 + $0x30] sm:$0xff] }
0x1b03   : > { %v3133_v22 = vpop.xlane.xlu1 %3132 }
0x1b04   : > { %10840 = vrsqrt.f32 %v3151_v19  ;;  %v3145_v39 = vmul.f32 0.03125, %v3133_v22  ;;  %v12023_v22 = vpop.permute.xlu0 %3917 }
0x1b06   : > { %v3153_v28 = vadd.f32 1e-05, %v3145_v39  ;;  %v10207_v39 = vpack.c.bf16 %v11893_v16, %v11891_v27 }
0x1b07   : > { %v3139_v2 = vpop.xlane.xlu1 %3138 }
0x1b08   : > { %10842 = vrsqrt.f32 %v3153_v28  ;;  %v3147_v34 = vmul.f32 0.03125, %v3139_v2  ;;  %10208 = vmatpush3.bf16.msra.mxu1 %v10207_v39  ;;  %v10608_v27 = vpop.permute.xlu0 %10607 }
0x1b09   : > { %10209 = vmatprep.subr.bf16.mxu1 %v11067_v0  ;;  %v10610_v16 = vunpack.i.h.bf16 %v10608_v27  ;;  %v10609_v28 = vunpack.i.l.bf16 %v10608_v27 }
0x1b0a   : > { %v10837_v52 = vpop.eup %10836  ;;  %v3155_v36 = vadd.f32 1e-05, %v3147_v34 }
0x1b0b   : > { %v3165_v8 = vmul.f32 %v10837_v52, %v11898_v24  ;;  %v10603_v44 = vpop.permute.xlu1 %10602  ;;  %v10839_v11 = vpop.eup %10838  ;;  %v3180_v24 = vmul.f32 %v11862_v17, %v3168_v38  ;;  %v10220_v2 = vpack.c.bf16 %v10610_v16, %v10609_v28 }
0x1b0c   : > { %10844 = vrsqrt.f32 %v3155_v36  ;;  %v10605_v9 = vunpack.i.h.bf16 %v10603_v44  ;;  %v10604_v12 = vunpack.i.l.bf16 %v10603_v44  ;;  %v3170_v62 = vmul.f32 %v10839_v11, %v11885_v3  ;;  %v3785_v36 = vld [vmem:[#allocation2 + $0x1b0] sm:$0x3]  ;;  %v10613_v10 = vpop.permute.xlu0 %10612 }
0x1b0d   : > { %v3177_v29 = vmul.f32 %v11862_v17, %v3165_v8  ;;  %v11976_v49 = vadd.f32 %v11866_v51, %v3180_v24  ;;  %v3807_v8 = vrot.slane %v3785_v36, %v11349_v60  ;;  %v10615_v11 = vunpack.i.h.bf16 %v10613_v10 }
0x1b0e   : > { %v10841_v57 = vpop.eup %10840  ;;  %v10216_v40 = vpack.c.bf16 %v10605_v9, %v10604_v12  ;;  %v3182_v43 = vmul.f32 %v11862_v17, %v3170_v62  ;;  %v10614_v9 = vunpack.i.l.bf16 %v10613_v10 }
0x1b0f   : > { %v3167_v20 = vmul.f32 %v10841_v57, %v11902_v30  ;;  %v11952_v35 = vadd.f32 %v11866_v51, %v3177_v29  ;;  %v11995_v63 = vadd.f32 %v11011_v59, %v11976_v49  ;;  %v12050_v29 = vld [vmem:[%s11161_s10] sm:$0x7f] }
0x1b10   : > { %10217 = vmatprep.subr.bf16.mxu0 %v10216_v40  ;;  %4061 = vrot.lane.b32.xlu1 %v11930_v46, %s11070_s11  ;;  %v12001_v48 = vadd.f32 %v11866_v51, %v3182_v43 }
0x1b11   : > { %10219 = vmatpush3.bf16.msra.mxu0 %v10216_v40  ;;  %v11961_v45 = vadd.f32 %v11008_v23, %v11952_v35  ;;  %v3179_v3 = vmul.f32 %v11862_v17, %v3167_v20  ;;  %v10224_v40 = vpack.c.bf16 %v10615_v11, %v10614_v9 }
0x1b12   : > { %v10843_v30 = vpop.eup %10842  ;;  %10228 = vmatprep.subr.bf16.mxu0 %v11067_v0  ;;  %v12018_v19 = vadd.f32 %v11013_v56, %v12001_v48 }
0x1b13   : > { %v3169_v4 = vmul.f32 %v10843_v30, %v11908_v37  ;;  %v11973_v42 = vadd.f32 %v11866_v51, %v3179_v3 }
0x1b14   : > { %9520 = vmatmul.mubr.msk.f32.vlgmr.msra.gmra.mrb[56].mxu0 %vm236_vm1, %v11961_v45 }
0x1b15   : > { %9522 = vmatprep.mubr.msk.f32.mxu0 %vm236_vm1, %v11968_v61  ;;  %v11987_v37 = vadd.f32 %v11010_v53, %v11973_v42  ;;  %v3181_v31 = vmul.f32 %v11862_v17, %v3169_v4 }
0x1b16   : > { %v10845_v54 = vpop.eup %10844 }
0x1b17   : > { %v3171_v32 = vmul.f32 %v10845_v54, %v11914_v6  ;;  %v11998_v21 = vadd.f32 %v11866_v51, %v3181_v31  ;;  %v11012_v6 = vld [vmem:[%s12971_s2 + $0x28] sm:$0xff] }
0x1b18   : > { %9523 = vmatmul.mubr.msk.f32.gmra.mrb[58].mxu0 %vm236_vm1, %v11987_v37 }
0x1b19   : > { %9525 = vmatprep.mubr.msk.f32.mxu0 %vm236_vm1, %v11995_v63  ;;  %v12011_v7 = vadd.f32 %v11012_v6, %v11998_v21  ;;  %v3183_v13 = vmul.f32 %v11862_v17, %v3171_v32  ;;  %v11014_v17 = vld [vmem:[%s12971_s2 + $0x38] sm:$0xff] }
0x1b1b   : > { %v12021_v25 = vadd.f32 %v11866_v51, %v3183_v13  ;;  %v10210_v51 = vpack.c.bf16 %v11925_v55, %v11923_v47  ;;  %v3802_v47 = vrot.slane %v3785_v36, %v11346_v58 }
0x1b1c   : > { %9526 = vmatmul.mubr.msk.f32.gmra.mrb[60].mxu0 %vm236_vm1, %v12011_v7 }
0x1b1d   : > { %9528 = vmatprep.mubr.msk.f32.mxu0 %vm236_vm1, %v12018_v19  ;;  %v12035_v33 = vadd.f32 %v11014_v17, %v12021_v25  ;;  %10211 = vmatpush3.bf16.msra.mxu1 %v10210_v51 }
0x1b1e   : > { %10221 = vmatprep.subr.bf16.mxu1 %v10220_v2 }
0x1b20   : > { %9529 = vmatmul.mubr.msk.f32.gmra.mrb[62].mxu0 %vm236_vm1, %v12035_v33 }
0x1b21   : > { %9567 = vmatprep.mubr.msk.f32.mxu0 %vm11068_vm0, %v11069_v1 }
0x1b8c   : > { %v3794_v15 = vpop.xlane.xlu1 %3793 }
0x1b8d   : > { %v3795_v34 = vmul.f32 0.03125, %v3794_v15 }
0x1b8f   : > { %v3796_v52 = vadd.f32 1e-05, %v3795_v34 }
0x1b91   : > { %10846 = vrsqrt.f32 %v3796_v52 }
0x1b9b   : > { %v10847_v55 = vpop.eup %10846 }
0x1b9c   : > { %v3798_v38 = vmul.f32 %v10847_v55, %v11936_v14 }
0x1b9e   : > { %v3803_v44 = vmul.f32 %v3802_v47, %v3798_v38 }
0x1ba0   : > { %v12047_v12 = vadd.f32 %v3807_v8, %v3803_v44 }
0x1ba2   : > { %v3809_v57 = vadd.f32 %v12050_v29, %v12047_v12 }
0x1ba4   : > { %9509 = vmatmul.mubr.msk.f32.vlgmr.msra.gmra.mrb[54].mxu1 %vm236_vm1, %v3809_v57 }
0x1ba5   : > { %10223 = vmatpush3.bf16.msra.mxu1 %v10220_v2  ;;  %9539 = vmatprep.mubr.msk.f32.mxu1 %vm236_vm1, %v11869_v26 }
0x1ba6   : > { %10225 = vmatprep.subr.bf16.mxu1 %v10224_v40 }
0x1ba9   : > { %10227 = vmatpush3.bf16.msra.mxu1 %v10224_v40 }
0x1baa   : > { %10244 = vmatprep.subr.bf16.mxu1 %v11067_v0 }
0x1bac   : > { %9540 = vmatmul.mubr.msk.f32.vlgmr.msra.gmra.mrb[56].mxu1 %vm236_vm1, %v11952_v35 }
0x1bad   : > { %9542 = vmatprep.mubr.msk.f32.mxu1 %vm236_vm1, %v11947_v41 }
0x1bb0   : > { %9543 = vmatmul.mubr.msk.f32.gmra.mrb[58].mxu1 %vm236_vm1, %v11973_v42 }
0x1bb1   : > { %9545 = vmatprep.mubr.msk.f32.mxu1 %vm236_vm1, %v11976_v49 }
0x1bb4   : > { %9546 = vmatmul.mubr.msk.f32.gmra.mrb[60].mxu1 %vm236_vm1, %v11998_v21 }
0x1bb5   : > { %9548 = vmatprep.mubr.msk.f32.mxu1 %vm236_vm1, %v12001_v48 }
0x1bb8   : > { %9549 = vmatmul.mubr.msk.f32.gmra.mrb[62].mxu1 %vm236_vm1, %v12021_v25 }
0x1bb9   : > { %9586 = vmatprep.mubr.msk.f32.mxu1 %vm11068_vm0, %v11069_v1 }
0x1be7   : > { %v9521_v14 = vpop.f32.mrb[56].mxu0 }
0x1be8   : > { %v4016_v62 = vadd.f32 %v9521_v14, %v12023_v22  ;;  %v4010_v20 = vpop.f32.mrb[57].mxu0 }
0x1be9   : > { %v4011_v24 = vadd.f32 %v4010_v20, %v12023_v22 }
0x1beb   : > { %v10616_v23 = vpack.i.bf16 %v4016_v62, %v4011_v24  ;;  %v10229_v3 = vpack.c.bf16 %v4016_v62, %v4011_v24  ;;  %v9524_v30 = vpop.f32.mrb[58].mxu0  ;;  %v4062_v24 = vpop.permute.xlu1 %4061 }
0x1bec   : > { %v4026_v18 = vadd.f32 %v9524_v30, %v12023_v22  ;;  %v4020_v4 = vpop.f32.mrb[59].mxu0 }
0x1bed   : > { %v4021_v43 = vadd.f32 %v4020_v4, %v12023_v22  ;;  %10617 = vrot.lane.b32.xlu0 %v10616_v23, %s11074_s30  ;;  %10231 = vmatpush3.bf16.xpose.msk.msra.mxu0 %vm11353_vm8, %v10229_v3 }
0x1bee   : > { %10232 = vmatprep.subr.bf16.mxu0 %v11067_v0 }
0x1bef   : > { %v10621_v53 = vpack.i.bf16 %v4026_v18, %v4021_v43  ;;  %v10233_v31 = vpack.c.bf16 %v4026_v18, %v4021_v43  ;;  %v9527_v54 = vpop.f32.mrb[60].mxu0 }
0x1bf0   : > { %v4036_v32 = vadd.f32 %v9527_v54, %v12023_v22  ;;  %v4030_v59 = vpop.f32.mrb[61].mxu0 }
0x1bf1   : > { %v4031_v6 = vadd.f32 %v4030_v59, %v12023_v22  ;;  %10622 = vrot.lane.b32.xlu0 %v10621_v53, %s11074_s30 }
0x1bf3   : > { %v10626_v13 = vpack.i.bf16 %v4036_v32, %v4031_v6  ;;  %v10237_v56 = vpack.c.bf16 %v4036_v32, %v4031_v6  ;;  %v9530_v39 = vpop.f32.mrb[62].mxu0 }
0x1bf4   : > { %v4046_v17 = vadd.f32 %v9530_v39, %v12023_v22  ;;  %v4040_v51 = vpop.f32.mrb[63].mxu0 }
0x1bf5   : > { %v4041_v27 = vadd.f32 %v4040_v51, %v12023_v22  ;;  %10627 = vrot.lane.b32.xlu0 %v10626_v13, %s11074_s30  ;;  %10235 = vmatpush3.bf16.xpose.msk.msra.mxu0 %vm11353_vm8, %v10233_v31 }
0x1bf6   : > { %10236 = vmatprep.subr.bf16.mxu0 %v11067_v0 }
0x1bf7   : > { %v10631_v16 = vpack.i.bf16 %v4046_v17, %v4041_v27  ;;  %v10241_v28 = vpack.c.bf16 %v4046_v17, %v4041_v27 }
0x1bf9   : > { %10632 = vrot.lane.b32.xlu0 %v10631_v16, %s11074_s30 }
0x1bfd   : > { %10239 = vmatpush3.bf16.xpose.msk.msra.mxu0 %vm11353_vm8, %v10237_v56 }
0x1bfe   : > { %10240 = vmatprep.subr.bf16.mxu0 %v11067_v0 }
0x1c05   : > { %10243 = vmatpush3.bf16.xpose.msk.msra.mxu0 %vm11353_vm8, %v10241_v28 }
0x1c06   : > { %10260 = vmatprep.subr.bf16.mxu0 %v11067_v0 }
0x1c5f   : > { %v10618_v22 = vpop.permute.xlu0 %10617 }
0x1c60   : > { %v10620_v2 = vunpack.i.h.bf16 %v10618_v22  ;;  %v10619_v15 = vunpack.i.l.bf16 %v10618_v22 }
0x1c62   : > { %v10245_v34 = vpack.c.bf16 %v10620_v2, %v10619_v15 }
0x1c63   : > { %v10623_v52 = vpop.permute.xlu0 %10622 }
0x1c64   : > { %10247 = vmatpush3.bf16.xpose.msk.msra.mxu1 %vm11353_vm8, %v10245_v34  ;;  %v10625_v36 = vunpack.i.h.bf16 %v10623_v52  ;;  %v10624_v47 = vunpack.i.l.bf16 %v10623_v52 }
0x1c65   : > { %10248 = vmatprep.subr.bf16.mxu1 %v11067_v0 }
0x1c66   : > { %v10249_v55 = vpack.c.bf16 %v10625_v36, %v10624_v47 }
0x1c67   : > { %v10628_v10 = vpop.permute.xlu0 %10627 }
0x1c68   : > { %v10630_v38 = vunpack.i.h.bf16 %v10628_v10  ;;  %v10629_v8 = vunpack.i.l.bf16 %v10628_v10 }
0x1c6a   : > { %v10253_v44 = vpack.c.bf16 %v10630_v38, %v10629_v8 }
0x1c6b   : > { %v10633_v11 = vpop.permute.xlu0 %10632 }
0x1c6c   : > { %10251 = vmatpush3.bf16.xpose.msk.msra.mxu1 %vm11353_vm8, %v10249_v55  ;;  %v10635_v9 = vunpack.i.h.bf16 %v10633_v11  ;;  %v10634_v57 = vunpack.i.l.bf16 %v10633_v11 }
0x1c6d   : > { %10252 = vmatprep.subr.bf16.mxu1 %v11067_v0 }
0x1c6e   : > { %v10257_v20 = vpack.c.bf16 %v10635_v9, %v10634_v57 }
0x1c74   : > { %10255 = vmatpush3.bf16.xpose.msk.msra.mxu1 %vm11353_vm8, %v10253_v44 }
0x1c75   : > { %10256 = vmatprep.subr.bf16.mxu1 %v11067_v0 }
0x1c77   : > { %v3896_v40 = vpop.f32.mrb[54].mxu1 }
0x1c78   : > { %v3897_v14 = vadd.f32 %v11930_v46, %v3896_v40  ;;  %v9510_v62 = vpop.f32.mrb[55].mxu1 }
0x1c7a   : > { %4194 = vrot.lane.b32.xlu0 %v3897_v14, %s11074_s30  ;;  %9568 = vmatmul.mubr.msk.f32.vlgmr.msra.gmra.mrb[64].mxu0 %vm1203_vm7, %v3897_v14 }
0x1c7b   : > { %9605 = vmatprep.mubr.msk.f32.mxu0 %vm11068_vm0, %v11069_v1 }
0x1c7c   : > { %10259 = vmatpush3.bf16.xpose.msk.msra.mxu1 %vm11353_vm8, %v10257_v20 }
0x1c7d   : > { %10272 = vmatprep.subr.bf16.mxu1 %v11067_v0 }
0x1c7f   : > { %v9541_v23 = vpop.f32.mrb[56].mxu1 }
0x1c80   : > { %v4160_v3 = vadd.f32 %v9541_v23, %v4062_v24  ;;  %v4154_v30 = vpop.f32.mrb[57].mxu1 }
0x1c81   : > { %v4155_v18 = vadd.f32 %v4154_v30, %v4062_v24 }
0x1c83   : > { %v10636_v46 = vpack.i.bf16 %v4160_v3, %v4155_v18  ;;  %v10261_v4 = vpack.c.bf16 %v4160_v3, %v4155_v18  ;;  %v9544_v43 = vpop.f32.mrb[58].mxu1 }
0x1c84   : > { %v4170_v53 = vadd.f32 %v9544_v43, %v4062_v24  ;;  %v4164_v31 = vpop.f32.mrb[59].mxu1 }
0x1c85   : > { %v4165_v54 = vadd.f32 %v4164_v31, %v4062_v24  ;;  %10262 = vmatpush3.bf16.msra.mxu0 %v10261_v4 }
0x1c86   : > { %10263 = vmatprep.subr.bf16.mxu0 %v11067_v0 }
0x1c87   : > { %v10641_v32 = vpack.i.bf16 %v4170_v53, %v4165_v54  ;;  %v10264_v59 = vpack.c.bf16 %v4170_v53, %v4165_v54  ;;  %v9547_v6 = vpop.f32.mrb[60].mxu1 }
0x1c88   : > { %v4180_v13 = vadd.f32 %v9547_v6, %v4062_v24  ;;  %v4174_v56 = vpop.f32.mrb[61].mxu1 }
0x1c89   : > { %v4175_v39 = vadd.f32 %v4174_v56, %v4062_v24  ;;  %10265 = vmatpush3.bf16.msra.mxu0 %v10264_v59 }
0x1c8a   : > { %10266 = vmatprep.subr.bf16.mxu0 %v11067_v0 }
0x1c8b   : > { %v10646_v17 = vpack.i.bf16 %v4180_v13, %v4175_v39  ;;  %v10267_v51 = vpack.c.bf16 %v4180_v13, %v4175_v39  ;;  %v9550_v27 = vpop.f32.mrb[62].mxu1 }
0x1c8c   : > { %v4190_v16 = vadd.f32 %v9550_v27, %v4062_v24  ;;  %v4184_v28 = vpop.f32.mrb[63].mxu1 }
0x1c8d   : > { %v4185_v22 = vadd.f32 %v4184_v28, %v4062_v24  ;;  %10268 = vmatpush3.bf16.msra.mxu0 %v10267_v51 }
0x1c8e   : > { %10269 = vmatprep.subr.bf16.mxu0 %v11067_v0 }
0x1c8f   : > { %v10651_v2 = vpack.i.bf16 %v4190_v16, %v4185_v22  ;;  %v10270_v15 = vpack.c.bf16 %v4190_v16, %v4185_v22 }
0x1c91   : > { %10271 = vmatpush3.bf16.msra.mxu0 %v10270_v15 }
0x1c92   : > { %10284 = vmatprep.subr.bf16.mxu0 %v11067_v0 }
0x1cec   : > { %v4195_v34 = vpop.permute.xlu0 %4194 }
0x1ced   : > { %9587 = vmatmul.mubr.msk.f32.vlgmr.msra.gmra.mrb[64].mxu1 %vm1203_vm7, %v4195_v34  ;;  %v4603_v34 = vld [vmem:[#allocation2 + $0x1e0] sm:$0xff] }
0x1cee   : > { %9624 = vmatprep.mubr.msk.f32.mxu1 %vm11068_vm0, %v11069_v1 }
0x1d4d   : > { %v4336_v52 = vpop.f32.mrb[64].mxu0 }
0x1d4e   : > { %v4428_v36 = vmul.f32 0.35355338, %v4336_v52  ;;  %v9569_v47 = vpop.f32.mrb[65].mxu0  ;;  %v4604_v52 = vld [vmem:[#allocation2 + $0x1e8] sm:$0xff] }
0x1d50   : > { %v4430_v55 = vsel %vm1382_vm9, %v4428_v36, -inf }
0x1d51   : > { %4431 = vmax.xlane.f32.xlu1 %v4430_v55 }
0x1d62   : > { %10642 = vrot.lane.b32.xlu1 %v10641_v32, %s11074_s30 }
0x1dc0   : > { %v4424_v10 = vpop.f32.mrb[64].mxu1 }
0x1dc1   : > { %v4429_v38 = vmul.f32 0.35355338, %v4424_v10  ;;  %v9588_v8 = vpop.f32.mrb[65].mxu1 }
0x1dc3   : > { %v4433_v44 = vsel %vm1382_vm9, %v4429_v38, -inf }
0x1dc4   : > { %4434 = vmax.xlane.f32.xlu0 %v4433_v44 }
0x1dda   : > { %10637 = vrot.lane.b32.xlu0 %v10636_v46, %s11074_s30 }
0x1dde   : > { %10647 = vrot.lane.b32.xlu0 %v10646_v17, %s11074_s30  ;;  %v4432_v11 = vpop.xlane.xlu1 %4431 }
0x1ddf   : > { %v4436_v32 = vsub.f32 %v4428_v36, %v4432_v11  ;;  %v10285_v36 = vpack.c.bf16 %v4604_v52, %v4603_v34  ;;  %v8487_v11 = vld [vmem:[#allocation2 + $0x1f0] ss:$0 sm:$0xff] }
0x1de1   : > { %v4438_v59 = vmul.f32 1.442695, %v4436_v32 }
0x1de2   : > { %v10643_v14 = vpop.permute.xlu1 %10642 }
0x1de3   : > { %v10645_v23 = vunpack.i.h.bf16 %v10643_v14  ;;  %v10644_v3 = vunpack.i.l.bf16 %v10643_v14 }
0x1de5   : > { %v10276_v4 = vpack.c.bf16 %v10645_v23, %v10644_v3 }
0x1e51   : > { %v4435_v9 = vpop.xlane.xlu0 %4434 }
0x1e52   : > { %v4437_v57 = vsub.f32 %v4429_v38, %v4435_v9 }
0x1e54   : > { %v4440_v40 = vmul.f32 1.442695, %v4437_v57 }
0x1e55   : > { %v10638_v62 = vpop.permute.xlu0 %10637 }
0x1e56   : > { %10848 = vpow2.f32 %v4440_v40  ;;  %v10640_v20 = vunpack.i.h.bf16 %v10638_v62  ;;  %v10639_v24 = vunpack.i.l.bf16 %v10638_v62 }
0x1e57   : > { %10850 = vpow2.f32 %v4438_v59  ;;  %v4906_v59 = vld [vmem:[#allocation2 + $0x288] sm:$0xff] }
0x1e58   : > { %v10273_v30 = vpack.c.bf16 %v10640_v20, %v10639_v24 }
0x1e59   : > { %v10648_v18 = vpop.permute.xlu0 %10647 }
0x1e5a   : > { %10274 = vmatpush3.bf16.msra.mxu1 %v10273_v30  ;;  %v10650_v46 = vunpack.i.h.bf16 %v10648_v18  ;;  %v10649_v43 = vunpack.i.l.bf16 %v10648_v18  ;;  %v4708_v18 = vld [vmem:[#allocation2 + $0x200] sm:$0xff] }
0x1e5b   : > { %10275 = vmatprep.subr.bf16.mxu1 %v11067_v0 }
0x1e5c   : > { %v10279_v31 = vpack.c.bf16 %v10650_v46, %v10649_v43  ;;  %v4710_v43 = vld [vmem:[#allocation2 + $0x210] sm:$0xff] }
0x1e5e   : > { %10277 = vmatpush3.bf16.msra.mxu1 %v10276_v4  ;;  %v4709_v4 = vld [vmem:[#allocation2 + $0x208] sm:$0xff] }
0x1e5f   : > { %10278 = vmatprep.subr.bf16.mxu1 %v11067_v0  ;;  %v10288_v46 = vpack.c.bf16 %v4709_v4, %v4708_v18 }
0x1e60   : > { %v10849_v53 = vpop.eup %10848 }
0x1e61   : > { %v4445_v54 = vsel %vm1382_vm9, %v10849_v53, 0.0  ;;  %v10851_v6 = vpop.eup %10850 }
0x1e62   : > { %4446 = vadd.xlane.f32.xlu0 %v4445_v54  ;;  %10280 = vmatpush3.bf16.msra.mxu1 %v10279_v31  ;;  %v4442_v13 = vsel %vm1382_vm9, %v10851_v6, 0.0  ;;  %v12150_v31 = vld [vmem:[#allocation2 + $0x278] sm:$0xff]  ;;  %v12152_v54 = vld [vmem:[#allocation2 + $0x280] sm:$0xff] }
0x1e63   : > { %10281 = vmatprep.subr.bf16.mxu1 %v11067_v0  ;;  %v10305_v32 = vpack.c.bf16 %v12152_v54, %v12150_v31 }
0x1e78   : > { %10652 = vrot.lane.b32.xlu0 %v10651_v2, %s11074_s30 }
0x1e97   : > { %4443 = vadd.xlane.f32.xlu0 %v4442_v13  ;;  %v4791_v13 = vld [vmem:[#allocation2 + $0x228] sm:$0xff] }
0x1eef   : > { %v4447_v56 = vpop.xlane.xlu0 %4446 }
0x1ef0   : > { %10852 = vrcp.f32 %v4447_v56  ;;  %v4792_v56 = vld [vmem:[#allocation2 + $0x230] sm:$0xff] }
0x1ef3   : > { %v10653_v39 = vpop.permute.xlu0 %10652 }
0x1ef4   : > { %v10655_v17 = vunpack.i.h.bf16 %v10653_v39  ;;  %v10654_v51 = vunpack.i.l.bf16 %v10653_v39  ;;  %v4793_v39 = vld [vmem:[#allocation2 + $0x238] sm:$0xff] }
0x1ef6   : > { %v10282_v27 = vpack.c.bf16 %v10655_v17, %v10654_v51  ;;  %v10294_v51 = vpack.c.bf16 %v4792_v56, %v4791_v13 }
0x1ef8   : > { %10283 = vmatpush3.bf16.msra.mxu1 %v10282_v27  ;;  %v4794_v27 = vld [vmem:[#allocation2 + $0x240] sm:$0xff] }
0x1ef9   : > { %10287 = vmatprep.subr.bf16.mxu1 %v11067_v0 }
0x1efa   : > { %v10853_v16 = vpop.eup %10852 }
0x1efb   : > { %v4451_v28 = vmul.f32 %v10853_v16, %v10849_v53  ;;  %v4711_v53 = vld [vmem:[#allocation2 + $0x218] sm:$0xff]  ;;  %v10297_v16 = vpack.c.bf16 %v4794_v27, %v4793_v39  ;;  %v10656_v27 = vpack.i.bf16 %v12152_v54, %v12150_v31 }
0x1efd   : > { %9625 = vmatmul.mubr.msk.f32.vlgmr.msra.gmra.mrb[66].mxu1 %vm1405_vm10, %v4451_v28  ;;  %v4795_v28 = vld [vmem:[#allocation2 + $0x248] sm:$0xff] }
0x1efe   : > { %9642 = vmatprep.mubr.msk.f32.mxu1 %vm11068_vm0, %v11069_v1  ;;  %10289 = vmatpush3.bf16.msra.mxu1 %v10288_v46 }
0x1eff   : > { %10290 = vmatprep.subr.bf16.mxu1 %v11067_v0 }
0x1f24   : > { %v4444_v22 = vpop.xlane.xlu0 %4443 }
0x1f25   : > { %10854 = vrcp.f32 %v4444_v22  ;;  %v4796_v22 = vld [vmem:[#allocation2 + $0x250] sm:$0xff] }
0x1f2f   : > { %v10855_v2 = vpop.eup %10854 }
0x1f30   : > { %v4450_v15 = vmul.f32 %v10855_v2, %v10851_v6  ;;  %v4907_v6 = vld [vmem:[#allocation2 + $0x290] sm:$0xff]  ;;  %v10300_v2 = vpack.c.bf16 %v4796_v22, %v4795_v28 }
0x1f31   : > { %v10661_v17 = vpack.i.bf16 %v4907_v6, %v4906_v59 }
0x1f32   : > { %9606 = vmatmul.mubr.msk.f32.vlgmr.msra.gmra.mrb[66].mxu0 %vm1405_vm10, %v4450_v15 }
0x1f33   : > { %9631 = vmatprep.mubr.msk.f32.mxu0 %vm11068_vm0, %v11069_v1  ;;  %10286 = vmatpush3.bf16.msra.mxu0 %v10285_v36  ;;  %v4684_v36 = vld [vmem:[#allocation2 + $0x1f8] sm:$0x3] }
0x1f34   : > { %10293 = vmatprep.subr.bf16.mxu0 %v11067_v0 }
0x1fd0   : > { %v4594_v47 = vpop.f32.mrb[66].mxu1 }
0x1fd1   : > { %4599 = vrot.lane.b32.xlu1 %v4594_v47, %s11075_s5  ;;  %v9626_v55 = vpop.f32.mrb[67].mxu1  ;;  %v4701_v47 = vrot.slane %v4684_v36, %v11346_v58 }
0x2005   : > { %v4521_v10 = vpop.f32.mrb[66].mxu0 }
0x2006   : > { %v9607_v38 = vpop.f32.mrb[67].mxu0 }
0x2007   : > { %v4706_v38 = vrot.slane %v4684_v36, %v11349_v60 }
0x2043   : > { %v4600_v8 = vpop.permute.xlu1 %4599 }
0x2044   : > { %v4602_v44 = vsel %vm1203_vm7, %v4521_v10, %v4600_v8 }
0x2045   : > { %9632 = vmatmul.mubr.msk.f32.vlgmr.msra.gmra.mrb[68].mxu0 %vm315_vm2, %v4602_v44 }
0x2046   : > { %9661 = vmatprep.mubr.msk.f32.mxu0 %vm11068_vm0, %v11069_v1  ;;  %10295 = vmatpush3.bf16.msra.mxu0 %v10294_v51 }
0x2047   : > { %10296 = vmatprep.subr.bf16.mxu0 %v11067_v0 }
0x204a   : > { %10298 = vmatpush3.bf16.msra.mxu0 %v10297_v16 }
0x204b   : > { %10299 = vmatprep.subr.bf16.mxu0 %v11067_v0 }
0x204e   : > { %10301 = vmatpush3.bf16.msra.mxu0 %v10300_v2 }
0x204f   : > { %10302 = vmatprep.subr.bf16.mxu0 %v11067_v0 }
0x2118   : > { %v4679_v9 = vpop.f32.mrb[68].mxu0 }
0x2119   : > { %v4680_v57 = vadd.f32 %v8487_v11, %v4679_v9  ;;  %v9633_v40 = vpop.f32.mrb[69].mxu0  ;;  %v10309_v11 = vpack.c.bf16 %v4907_v6, %v4906_v59 }
0x211b   : > { %v4683_v14 = vadd.f32 %v4680_v57, %v12047_v12  ;;  %v10291_v12 = vpack.c.bf16 %v4711_v53, %v4710_v43  ;;  %v8492_v53 = vld [vmem:[#allocation2 + $0x268] ss:$0 sm:$0xff] }
0x211d   : > { %v4685_v62 = vsel %vm735_vm6, %v4683_v14, 0.0  ;;  %10292 = vmatpush3.bf16.msra.mxu1 %v10291_v12 }
0x211e   : > { %4686 = vadd.xlane.f32.xlu1 %v4685_v62  ;;  %10306 = vmatprep.subr.bf16.mxu1 %v10305_v32 }
0x212f   : > { %10662 = vrot.lane.b32.xlu1 %v10661_v17, %s11071_s12 }
0x21ab   : > { %v4687_v20 = vpop.xlane.xlu1 %4686 }
0x21ac   : > { %v4688_v24 = vmul.f32 0.03125, %v4687_v20 }
0x21ae   : > { %v4689_v23 = vsub.f32 %v4683_v14, %v4688_v24 }
0x21af   : > { %v10663_v16 = vpop.permute.xlu1 %10662 }
0x21b0   : > { %v4690_v3 = vmul.f32 %v4689_v23, %v4689_v23 }
0x21b2   : > { %v4691_v30 = vsel %vm735_vm6, %v4690_v3, 0.0 }
0x21b3   : > { %4692 = vadd.xlane.f32.xlu0 %v4691_v30 }
0x2240   : > { %v4693_v15 = vpop.xlane.xlu0 %4692 }
0x2241   : > { %v4694_v34 = vmul.f32 0.03125, %v4693_v15 }
0x2243   : > { %v4695_v52 = vadd.f32 1e-05, %v4694_v34  ;;  %v10665_v34 = vunpack.i.h.bf16 %v10663_v16 }
0x2245   : > { %10856 = vrsqrt.f32 %v4695_v52  ;;  %v10664_v52 = vunpack.i.l.bf16 %v10663_v16 }
0x224f   : > { %v10857_v55 = vpop.eup %10856 }
0x2250   : > { %v4697_v10 = vmul.f32 %v10857_v55, %v4689_v23 }
0x2252   : > { %v4702_v8 = vmul.f32 %v4701_v47, %v4697_v10 }
0x2254   : > { %v4707_v44 = vadd.f32 %v4706_v38, %v4702_v8  ;;  %v10317_v38 = vpack.c.bf16 %v10665_v34, %v10664_v52 }
0x2256   : > { %9643 = vmatmul.mubr.msk.f32.vlgmr.msra.gmra.mrb[68].mxu1 %vm236_vm1, %v4707_v44 }
0x2257   : > { %10308 = vmatpush3.bf16.msra.mxu1 %v10305_v32  ;;  %9672 = vmatprep.mubr.msk.f32.mxu1 %vm236_vm1, %v11876_v50  ;;  %v4797_v50 = vld [vmem:[#allocation2 + $0x258] sm:$0xff] }
0x2258   : > { %10310 = vmatprep.subr.bf16.mxu1 %v10309_v11 }
0x225b   : > { %10312 = vmatpush3.bf16.msra.mxu1 %v10309_v11 }
0x225c   : > { %10319 = vmatprep.subr.bf16.mxu1 %v11067_v0 }
0x225e   : > { %9673 = vmatmul.mubr.msk.f32.vlgmr.msra.gmra.mrb[70].mxu1 %vm236_vm1, %v11961_v45  ;;  %v4798_v45 = vld [vmem:[#allocation2 + $0x260] sm:$0xff] }
0x225f   : > { %9675 = vmatprep.mubr.msk.f32.mxu1 %vm236_vm1, %v11968_v61  ;;  %v10303_v61 = vpack.c.bf16 %v4798_v45, %v4797_v50  ;;  %v4879_v45 = vld [vmem:[#allocation2 + $0x270] sm:$0x3] }
0x2261   : > { %10304 = vmatpush3.bf16.msra.mxu0 %v10303_v61 }
0x2262   : > { %9676 = vmatmul.mubr.msk.f32.gmra.mrb[72].mxu1 %vm236_vm1, %v11987_v37  ;;  %v12182_v37 = vld [vmem:[#allocation2 + $0x298] ss:$0 sm:$0xff]  ;;  %10313 = vmatprep.subr.bf16.mxu0 %v11067_v0 }
0x2263   : > { %9678 = vmatprep.mubr.msk.f32.mxu1 %vm236_vm1, %v11995_v63  ;;  %5035 = vrot.lane.b32.xlu1 %v12182_v37, %s11071_s12  ;;  %v8489_v63 = vld [vmem:[#allocation2 + $0x220] ss:$0 sm:$0xff] }
0x2266   : > { %9679 = vmatmul.mubr.msk.f32.gmra.mrb[74].mxu1 %vm236_vm1, %v12011_v7 }
0x2267   : > { %9681 = vmatprep.mubr.msk.f32.mxu1 %vm236_vm1, %v12018_v19  ;;  %10672 = vrot.lane.b32.xlu1 %v10661_v17, %s11070_s11 }
0x226a   : > { %9682 = vmatmul.mubr.msk.f32.gmra.mrb[76].mxu1 %vm236_vm1, %v12035_v33 }
0x226b   : > { %9703 = vmatprep.mubr.msk.f32.mxu1 %vm11068_vm0, %v11069_v1 }
0x22d5   : > { %v5036_v2 = vpop.permute.xlu1 %5035 }
0x22d9   : > { %v10673_v8 = vpop.permute.xlu1 %10672 }
0x22da   : > { %v10675_v31 = vunpack.i.h.bf16 %v10673_v8  ;;  %v10674_v54 = vunpack.i.l.bf16 %v10673_v8 }
0x2329   : > { %v4786_v7 = vpop.f32.mrb[68].mxu1 }
0x232a   : > { %v4787_v19 = vadd.f32 %v8489_v63, %v4786_v7  ;;  %v9644_v33 = vpop.f32.mrb[69].mxu1  ;;  %v10323_v63 = vpack.c.bf16 %v10675_v31, %v10674_v54  ;;  %v4896_v7 = vrot.slane %v4879_v45, %v11346_v58 }
0x232b   : > { %v4901_v33 = vrot.slane %v4879_v45, %v11349_v60 }
0x232c   : > { %v4790_v9 = vmax.f32 %v4787_v19, 0.0 }
0x232e   : > { %9662 = vmatmul.mubr.msk.f32.vlgmr.msra.gmra.mrb[70].mxu0 %vm1405_vm10, %v4790_v9 }
0x232f   : > { %9692 = vmatprep.mubr.msk.f32.mxu0 %vm11068_vm0, %v11069_v1 }
0x2331   : > { %v12191_v57 = vpop.f32.mrb[70].mxu1 }
0x2332   : > { %v4979_v40 = vpop.f32.mrb[71].mxu1 }
0x2333   : > { %v12194_v14 = vadd.f32 %v12182_v37, %v4979_v40 }
0x2335   : > { %v12196_v62 = vpop.f32.mrb[72].mxu1  ;;  %5207 = vrot.lane.b32.xlu1 %v12194_v14, %s11074_s30 }
0x2336   : > { %v4989_v20 = vpop.f32.mrb[73].mxu1 }
0x2337   : > { %v12201_v24 = vadd.f32 %v12182_v37, %v4989_v20 }
0x2339   : > { %v12203_v23 = vpop.f32.mrb[74].mxu1  ;;  %5211 = vrot.lane.b32.xlu1 %v12201_v24, %s11074_s30 }
0x233a   : > { %v4999_v3 = vpop.f32.mrb[75].mxu1 }
0x233b   : > { %v12208_v30 = vadd.f32 %v12182_v37, %v4999_v3 }
0x233d   : > { %v12210_v18 = vpop.f32.mrb[76].mxu1  ;;  %5215 = vrot.lane.b32.xlu1 %v12208_v30, %s11074_s30 }
0x233e   : > { %v5009_v4 = vpop.f32.mrb[77].mxu1 }
0x233f   : > { %v12215_v46 = vadd.f32 %v12182_v37, %v5009_v4 }
0x2341   : > { %5219 = vrot.lane.b32.xlu1 %v12215_v46, %s11074_s30 }
0x23a7   : > { %v5208_v3 = vpop.permute.xlu1 %5207 }
0x2401   : > { %v4868_v43 = vpop.f32.mrb[70].mxu0 }
0x2402   : > { %v4872_v12 = vadd.f32 %v4868_v43, %v4707_v44  ;;  %v9663_v32 = vpop.f32.mrb[71].mxu0 }
0x2404   : > { %v4878_v59 = vadd.f32 %v8492_v53, %v4872_v12 }
0x2406   : > { %v4880_v6 = vsel %vm735_vm6, %v4878_v59, 0.0 }
0x2407   : > { %4881 = vadd.xlane.f32.xlu0 %v4880_v6  ;;  %v5212_v6 = vpop.permute.xlu1 %5211 }
0x2494   : > { %v4882_v13 = vpop.xlane.xlu0 %4881 }
0x2495   : > { %v4883_v56 = vmul.f32 0.03125, %v4882_v13 }
0x2497   : > { %v4884_v39 = vsub.f32 %v4878_v59, %v4883_v56 }
0x2499   : > { %v4885_v17 = vmul.f32 %v4884_v39, %v4884_v39 }
0x249b   : > { %v4886_v51 = vsel %vm735_vm6, %v4885_v17, 0.0 }
0x249c   : > { %4887 = vadd.xlane.f32.xlu0 %v4886_v51 }
0x24b2   : > { %10657 = vrot.lane.b32.xlu0 %v10656_v27, %s11071_s12 }
0x24b6   : > { %10667 = vrot.lane.b32.xlu0 %v10656_v27, %s11070_s11 }
0x2529   : > { %v4888_v28 = vpop.xlane.xlu0 %4887 }
0x252a   : > { %v4889_v22 = vmul.f32 0.03125, %v4888_v28 }
0x252c   : > { %v4890_v15 = vadd.f32 1e-05, %v4889_v22 }
0x252d   : > { %v10658_v36 = vpop.permute.xlu0 %10657 }
0x252e   : > { %10858 = vrsqrt.f32 %v4890_v15  ;;  %v10660_v47 = vunpack.i.h.bf16 %v10658_v36  ;;  %v10659_v55 = vunpack.i.l.bf16 %v10658_v36 }
0x2530   : > { %v10314_v10 = vpack.c.bf16 %v10660_v47, %v10659_v55 }
0x2531   : > { %v10668_v44 = vpop.permute.xlu0 %10667 }
0x2532   : > { %v10670_v11 = vunpack.i.h.bf16 %v10668_v44  ;;  %v10669_v50 = vunpack.i.l.bf16 %v10668_v44  ;;  %10315 = vmatpush3.bf16.msra.mxu0 %v10314_v10 }
0x2533   : > { %10316 = vmatprep.subr.bf16.mxu0 %v11067_v0 }
0x2534   : > { %v10320_v61 = vpack.c.bf16 %v10670_v11, %v10669_v50 }
0x2536   : > { %10321 = vmatpush3.bf16.msra.mxu1 %v10320_v61  ;;  %10318 = vmatpush3.bf16.msra.mxu0 %v10317_v38 }
0x2537   : > { %10322 = vmatprep.subr.bf16.mxu1 %v11067_v0 }
0x2538   : > { %v10859_v19 = vpop.eup %10858 }
0x2539   : > { %v4892_v9 = vmul.f32 %v10859_v19, %v4884_v39 }
0x253a   : > { %10324 = vmatpush3.bf16.msra.mxu1 %v10323_v63 }
0x253b   : > { %v4897_v40 = vmul.f32 %v4896_v7, %v4892_v9 }
0x253d   : > { %v12229_v20 = vadd.f32 %v4901_v33, %v4897_v40 }
0x253f   : > { %9704 = vmatmul.mubr.msk.f32.vlgmr.msra.gmra.mrb[78].mxu1 %vm236_vm1, %v12229_v20  ;;  %v12235_v4 = vadd.f32 %v12050_v29, %v12229_v20  ;;  %v4985_v29 = vadd.f32 %v12191_v57, %v12182_v37  ;;  %v5005_v57 = vadd.f32 %v12203_v23, %v12182_v37 }
0x2540   : > { %9722 = vmatprep.mubr.msk.f32.mxu1 %vm1203_vm7, %v5208_v3 }
0x2541   : > { %9693 = vmatmul.mubr.msk.f32.vlgmr.msra.gmra.mrb[72].mxu0 %vm236_vm1, %v12235_v4 }
0x2542   : > { %9708 = vmatprep.mubr.msk.f32.mxu0 %vm1203_vm7, %v12194_v14  ;;  %v4995_v14 = vadd.f32 %v12196_v62, %v12182_v37  ;;  %v5015_v62 = vadd.f32 %v12210_v18, %v12182_v37 }
0x2612   : > { %v12242_v43 = vpop.f32.mrb[78].mxu1 }
0x2613   : > { %v9705_v53 = vpop.f32.mrb[79].mxu1 }
0x2614   : > { %v5107_v12 = vpop.f32.mrb[72].mxu0 }
0x2615   : > { %v5108_v32 = vadd.f32 %v5107_v12, %v5036_v2  ;;  %v9694_v59 = vpop.f32.mrb[73].mxu0 }
0x2617   : > { %5224 = vrot.lane.b32.xlu0 %v5108_v32, %s11074_s30  ;;  %9706 = vmatprep.subr.msk.mxu0 %vm1203_vm7, %v5108_v32 }
0x2618   : > { %9707 = vmatpush3.xpose.msk.msra.mxu0 %vm1203_vm7, %v5108_v32 }
0x261b   : > { %5209 = vrot.lane.b32.xlu0 %v4985_v29, %s11074_s30  ;;  %9709 = vmatmul.mubr.msk.f32.vlgmr.msra.gmra.mrb[74].mxu0 %vm1203_vm7, %v4985_v29 }
0x261c   : > { %9711 = vmatprep.mubr.msk.f32.mxu0 %vm1203_vm7, %v12201_v24 }
0x261f   : > { %5213 = vrot.lane.b32.xlu0 %v4995_v14, %s11074_s30  ;;  %9712 = vmatmul.mubr.msk.f32.gmra.mrb[76].mxu0 %vm1203_vm7, %v4995_v14 }
0x2620   : > { %9714 = vmatprep.mubr.msk.f32.mxu0 %vm1203_vm7, %v12208_v30  ;;  %v5216_v30 = vpop.permute.xlu1 %5215 }
0x2623   : > { %5217 = vrot.lane.b32.xlu0 %v5005_v57, %s11074_s30  ;;  %9715 = vmatmul.mubr.msk.f32.gmra.mrb[78].mxu0 %vm1203_vm7, %v5005_v57 }
0x2624   : > { %9717 = vmatprep.mubr.msk.f32.mxu0 %vm1203_vm7, %v12215_v46  ;;  %v5220_v13 = vpop.permute.xlu1 %5219 }
0x2627   : > { %5221 = vrot.lane.b32.xlu0 %v5015_v62, %s11074_s30  ;;  %9718 = vmatmul.mubr.msk.f32.gmra.mrb[80].mxu0 %vm1203_vm7, %v5015_v62 }
0x2689   : > { %v5225_v24 = vpop.permute.xlu0 %5224 }
0x268a   : > { %9720 = vmatprep.subr.msk.mxu1 %vm1203_vm7, %v5225_v24 }
0x268b   : > { %9721 = vmatpush3.xpose.msk.msra.mxu1 %vm1203_vm7, %v5225_v24 }
0x268d   : > { %v5210_v23 = vpop.permute.xlu0 %5209 }
0x268e   : > { %9723 = vmatmul.mubr.msk.f32.vlgmr.msra.gmra.mrb[80].mxu1 %vm1203_vm7, %v5210_v23 }
0x268f   : > { %9725 = vmatprep.mubr.msk.f32.mxu1 %vm1203_vm7, %v5212_v6 }
0x2691   : > { %v5214_v46 = vpop.permute.xlu0 %5213 }
0x2692   : > { %9726 = vmatmul.mubr.msk.f32.gmra.mrb[82].mxu1 %vm1203_vm7, %v5214_v46 }
0x2693   : > { %9728 = vmatprep.mubr.msk.f32.mxu1 %vm1203_vm7, %v5216_v30 }
0x2695   : > { %v5218_v18 = vpop.permute.xlu0 %5217 }
0x2696   : > { %9729 = vmatmul.mubr.msk.f32.gmra.mrb[84].mxu1 %vm1203_vm7, %v5218_v18 }
0x2697   : > { %9731 = vmatprep.mubr.msk.f32.mxu1 %vm1203_vm7, %v5220_v13 }
0x2699   : > { %v5222_v56 = vpop.permute.xlu0 %5221 }
0x269a   : > { %9732 = vmatmul.mubr.msk.f32.gmra.mrb[86].mxu1 %vm1203_vm7, %v5222_v56 }
0x26ee   : > { %v9710_v39 = vpop.f32.mrb[74].mxu0 }
0x26ef   : > { %v5313_v17 = vpop.f32.mrb[75].mxu0  ;;  %v12297_v32 = vmul.f32 0.35355338, %v9710_v39 }
0x26f0   : > { %v12294_v53 = vmul.f32 0.35355338, %v5313_v17 }
0x26f1   : > { %v5494_v14 = vsel %vm493_vm5, %v12297_v32, -inf }
0x26f2   : > { %v9713_v51 = vpop.f32.mrb[76].mxu0  ;;  %v5491_v59 = vsel %vm493_vm5, %v12294_v53, -inf }
0x26f3   : > { %v5323_v27 = vpop.f32.mrb[77].mxu0  ;;  %v12305_v57 = vmul.f32 0.35355338, %v9713_v51 }
0x26f4   : > { %v12301_v29 = vmul.f32 0.35355338, %v5323_v27 }
0x26f5   : > { %v5500_v6 = vsel %vm493_vm5, %v12305_v57, -inf }
0x26f6   : > { %v9716_v16 = vpop.f32.mrb[78].mxu0  ;;  %v5497_v62 = vsel %vm493_vm5, %v12301_v29, -inf }
0x26f7   : > { %v5333_v28 = vpop.f32.mrb[79].mxu0  ;;  %v12325_v56 = vmul.f32 0.35355338, %v9716_v16 }
0x26f8   : > { %v12309_v24 = vmul.f32 0.35355338, %v5333_v28 }
0x26f9   : > { %v5506_v39 = vsel %vm493_vm5, %v12325_v56, -inf }
0x26fa   : > { %v9719_v22 = vpop.f32.mrb[80].mxu0  ;;  %v5503_v30 = vsel %vm493_vm5, %v12309_v24, -inf }
0x26fb   : > { %v5343_v2 = vpop.f32.mrb[81].mxu0  ;;  %v12319_v46 = vmul.f32 0.35355338, %v9719_v22 }
0x26fc   : > { %v12313_v23 = vmul.f32 0.35355338, %v5343_v2 }
0x26fd   : > { %v5512_v13 = vsel %vm493_vm5, %v12319_v46, -inf }
0x26fe   : > { %v5509_v18 = vsel %vm493_vm5, %v12313_v23, -inf }
0x2761   : > { %v9724_v15 = vpop.f32.mrb[80].mxu1 }
0x2762   : > { %v5484_v34 = vmul.f32 0.35355338, %v9724_v15  ;;  %v5436_v52 = vpop.f32.mrb[81].mxu1 }
0x2763   : > { %v5483_v36 = vmul.f32 0.35355338, %v5436_v52 }
0x2764   : > { %v5518_v47 = vsel %vm493_vm5, %v5484_v34, -inf }
0x2765   : > { %5519 = vmax.xlane.f32.xlu0 %v5518_v47  ;;  %v9727_v55 = vpop.f32.mrb[82].mxu1  ;;  %v5515_v10 = vsel %vm493_vm5, %v5483_v36, -inf }
0x2766   : > { %v12280_v38 = vmul.f32 0.35355338, %v9727_v55  ;;  %5516 = vmax.xlane.f32.xlu1 %v5515_v10  ;;  %v5446_v8 = vpop.f32.mrb[83].mxu1 }
0x2767   : > { %v5485_v44 = vmul.f32 0.35355338, %v5446_v8 }
0x2768   : > { %v5524_v31 = vsel %vm493_vm5, %v12280_v38, -inf }
0x2769   : > { %v9730_v54 = vpop.f32.mrb[84].mxu1  ;;  %v5521_v11 = vsel %vm493_vm5, %v5485_v44, -inf }
0x276a   : > { %v12285_v50 = vmul.f32 0.35355338, %v9730_v54  ;;  %5525 = vmax.xlane.f32.xlu1 %v5524_v31  ;;  %5522 = vmax.xlane.f32.xlu0 %v5521_v11  ;;  %v5456_v45 = vpop.f32.mrb[85].mxu1 }
0x276b   : > { %v5487_v61 = vmul.f32 0.35355338, %v5456_v45 }
0x276c   : > { %v5530_v63 = vsel %vm493_vm5, %v12285_v50, -inf }
0x276d   : > { %v9733_v7 = vpop.f32.mrb[86].mxu1  ;;  %v5527_v19 = vsel %vm493_vm5, %v5487_v61, -inf }
0x276e   : > { %v12290_v33 = vmul.f32 0.35355338, %v9733_v7  ;;  %5531 = vmax.xlane.f32.xlu1 %v5530_v63  ;;  %5528 = vmax.xlane.f32.xlu0 %v5527_v19  ;;  %v5466_v9 = vpop.f32.mrb[87].mxu1 }
0x276f   : > { %v5489_v40 = vmul.f32 0.35355338, %v5466_v9 }
0x2770   : > { %v5536_v3 = vsel %vm493_vm5, %v12290_v33, -inf }
0x2771   : > { %v5533_v12 = vsel %vm493_vm5, %v5489_v40, -inf }
0x2772   : > { %5537 = vmax.xlane.f32.xlu1 %v5536_v3  ;;  %5534 = vmax.xlane.f32.xlu0 %v5533_v12 }
0x2776   : > { %5492 = vmax.xlane.f32.xlu1 %v5491_v59 }
0x277a   : > { %5495 = vmax.xlane.f32.xlu1 %v5494_v14 }
0x277e   : > { %5498 = vmax.xlane.f32.xlu1 %v5497_v62 }
0x2782   : > { %5501 = vmax.xlane.f32.xlu1 %v5500_v6 }
0x2786   : > { %5504 = vmax.xlane.f32.xlu1 %v5503_v30 }
0x2788   : > { %5123 = vrot.lane.b32.xlu0 %v12182_v37, %s11070_s11 }
0x278a   : > { %5510 = vmax.xlane.f32.xlu1 %v5509_v18 }
0x278e   : > { %5513 = vmax.xlane.f32.xlu1 %v5512_v13 }
0x27a7   : > { %5507 = vmax.xlane.f32.xlu0 %v5506_v39 }
0x27f2   : > { %v5520_v17 = vpop.xlane.xlu0 %5519 }
0x27f3   : > { %v5548_v51 = vsub.f32 %v5484_v34, %v5520_v17  ;;  %v5517_v27 = vpop.xlane.xlu1 %5516 }
0x27f4   : > { %v5547_v37 = vsub.f32 %v5483_v36, %v5517_v27 }
0x27f5   : > { %v5573_v28 = vmul.f32 1.442695, %v5548_v51 }
0x27f6   : > { %v5571_v22 = vmul.f32 1.442695, %v5547_v37 }
0x27f7   : > { %v5526_v2 = vpop.xlane.xlu1 %5525  ;;  %v5523_v15 = vpop.xlane.xlu0 %5522 }
0x27f8   : > { %10860 = vpow2.f32 %v5571_v22  ;;  %v5549_v52 = vsub.f32 %v5485_v44, %v5523_v15  ;;  %v5550_v47 = vsub.f32 %v12280_v38, %v5526_v2 }
0x27f9   : > { %10862 = vpow2.f32 %v5573_v28 }
0x27fa   : > { %v5575_v55 = vmul.f32 1.442695, %v5549_v52  ;;  %v5577_v8 = vmul.f32 1.442695, %v5550_v47 }
0x27fb   : > { %v5532_v16 = vpop.xlane.xlu1 %5531  ;;  %v5529_v10 = vpop.xlane.xlu0 %5528 }
0x27fc   : > { %10864 = vpow2.f32 %v5575_v55  ;;  %v5551_v31 = vsub.f32 %v5487_v61, %v5529_v10  ;;  %v5552_v36 = vsub.f32 %v12285_v50, %v5532_v16 }
0x27fd   : > { %10866 = vpow2.f32 %v5577_v8 }
0x27fe   : > { %v5579_v63 = vmul.f32 1.442695, %v5551_v31  ;;  %v5581_v61 = vmul.f32 1.442695, %v5552_v36 }
0x27ff   : > { %v5538_v54 = vpop.xlane.xlu1 %5537  ;;  %v5535_v11 = vpop.xlane.xlu0 %5534 }
0x2800   : > { %v5553_v34 = vsub.f32 %v5489_v40, %v5535_v11  ;;  %v5554_v40 = vsub.f32 %v12290_v33, %v5538_v54 }
0x2802   : > { %v12330_v45 = vpop.eup %10860  ;;  %v5583_v7 = vmul.f32 1.442695, %v5553_v34  ;;  %v5585_v14 = vmul.f32 1.442695, %v5554_v40 }
0x2803   : > { %v5124_v44 = vpop.permute.xlu0 %5123  ;;  %v5493_v19 = vpop.xlane.xlu1 %5492  ;;  %v5611_v38 = vsel %vm493_vm5, %v12330_v45, 0.0 }
0x2804   : > { %v12335_v9 = vpop.eup %10862  ;;  %v5196_v3 = vadd.f32 %v12242_v43, %v5124_v44  ;;  %5612 = vadd.xlane.f32.xlu1 %v5611_v38  ;;  %10868 = vpow2.f32 %v5583_v7  ;;  %v5539_v43 = vsub.f32 %v12294_v53, %v5493_v19 }
0x2805   : > { %10870 = vpow2.f32 %v5579_v63  ;;  %v5614_v12 = vsel %vm493_vm5, %v12335_v9, 0.0 }
0x2806   : > { %9734 = vmatprep.subr.msk.mxu0 %vm497_vm4, %v5196_v3  ;;  %v12343_v59 = vpop.eup %10864  ;;  %10872 = vpow2.f32 %v5581_v61  ;;  %v5555_v30 = vmul.f32 1.442695, %v5539_v43 }
0x2807   : > { %9735 = vmatpush3.msk.msra.mxu0 %vm497_vm4, %v5196_v3  ;;  %v5496_v50 = vpop.xlane.xlu1 %5495  ;;  %v5617_v6 = vsel %vm493_vm5, %v12343_v59, 0.0  ;;  %v12348_v33 = vpop.eup %10866  ;;  %10874 = vpow2.f32 %v5585_v14 }
0x2808   : > { %5615 = vadd.xlane.f32.xlu1 %v5614_v12  ;;  %v5540_v18 = vsub.f32 %v12297_v32, %v5496_v50  ;;  %v5620_v39 = vsel %vm493_vm5, %v12348_v33, 0.0  ;;  %10876 = vpow2.f32 %v5555_v30 }
0x280a   : > { %v5557_v27 = vmul.f32 1.442695, %v5540_v18 }
0x280b   : > { %v5499_v62 = vpop.xlane.xlu1 %5498 }
0x280c   : > { %5618 = vadd.xlane.f32.xlu1 %v5617_v6  ;;  %v5541_v37 = vsub.f32 %v12301_v29, %v5499_v62  ;;  %10878 = vpow2.f32 %v5557_v27 }
0x280e   : > { %v12351_v13 = vpop.eup %10868  ;;  %v5559_v22 = vmul.f32 1.442695, %v5541_v37 }
0x280f   : > { %v12355_v17 = vpop.eup %10870  ;;  %v5629_v53 = vsel %vm493_vm5, %v12351_v13, 0.0  ;;  %v5502_v51 = vpop.xlane.xlu1 %5501 }
0x2810   : > { %5621 = vadd.xlane.f32.xlu1 %v5620_v39  ;;  %5630 = vadd.xlane.f32.xlu0 %v5629_v53  ;;  %v5623_v32 = vsel %vm493_vm5, %v12355_v17, 0.0  ;;  %v12362_v28 = vpop.eup %10872  ;;  %v5542_v2 = vsub.f32 %v12305_v57, %v5502_v51  ;;  %10880 = vpow2.f32 %v5559_v22  ;;  %v12412_v22 = vld [vmem:[#allocation2 + $0x2c8] sm:$0xff] }
0x2811   : > { %v5626_v52 = vsel %vm493_vm5, %v12362_v28, 0.0  ;;  %v12367_v47 = vpop.eup %10874 }
0x2812   : > { %v5561_v55 = vmul.f32 1.442695, %v5542_v2  ;;  %v5632_v16 = vsel %vm493_vm5, %v12367_v47, 0.0  ;;  %v12372_v10 = vpop.eup %10876 }
0x2813   : > { %v5505_v15 = vpop.xlane.xlu1 %5504  ;;  %v5587_v57 = vsel %vm493_vm5, %v12372_v10, 0.0 }
0x2814   : > { %5624 = vadd.xlane.f32.xlu1 %v5623_v32  ;;  %v5543_v29 = vsub.f32 %v12309_v24, %v5505_v15  ;;  %10882 = vpow2.f32 %v5561_v55  ;;  %v12410_v32 = vld [vmem:[#allocation2 + $0x2c0] sm:$0xff] }
0x2816   : > { %v5563_v8 = vmul.f32 1.442695, %v5543_v29  ;;  %v12376_v31 = vpop.eup %10878  ;;  %v10330_v29 = vpack.c.bf16 %v12412_v22, %v12410_v32 }
0x2817   : > { %v5590_v54 = vsel %vm493_vm5, %v12376_v31, 0.0  ;;  %v5511_v36 = vpop.xlane.xlu1 %5510 }
0x2818   : > { %5627 = vadd.xlane.f32.xlu1 %v5626_v52  ;;  %10884 = vpow2.f32 %v5563_v8  ;;  %v5545_v19 = vsub.f32 %v12313_v23, %v5511_v36 }
0x281a   : > { %v12380_v11 = vpop.eup %10880  ;;  %v5567_v61 = vmul.f32 1.442695, %v5545_v19 }
0x281b   : > { %v5593_v24 = vsel %vm493_vm5, %v12380_v11, 0.0  ;;  %v5514_v38 = vpop.xlane.xlu1 %5513 }
0x281c   : > { %5633 = vadd.xlane.f32.xlu1 %v5632_v16  ;;  %10886 = vpow2.f32 %v5567_v61  ;;  %v12420_v16 = vld [vmem:[#allocation2 + $0x2d8] sm:$0xff] }
0x281e   : > { %v12385_v34 = vpop.eup %10882 }
0x281f   : > { %v5596_v63 = vsel %vm493_vm5, %v12385_v34, 0.0 }
0x2820   : > { %5588 = vadd.xlane.f32.xlu1 %v5587_v57 }
0x2822   : > { %v12389_v7 = vpop.eup %10884 }
0x2823   : > { %v5599_v44 = vsel %vm493_vm5, %v12389_v7, 0.0 }
0x2824   : > { %5591 = vadd.xlane.f32.xlu1 %v5590_v54 }
0x2826   : > { %5227 = vrot.lane.b32.xlu0 %v5196_v3, %s11074_s30  ;;  %v5546_v3 = vsub.f32 %v12319_v46, %v5514_v38  ;;  %v12396_v43 = vpop.eup %10886 }
0x2827   : > { %v5605_v46 = vsel %vm493_vm5, %v12396_v43, 0.0 }
0x2828   : > { %5594 = vadd.xlane.f32.xlu1 %v5593_v24  ;;  %v5569_v12 = vmul.f32 1.442695, %v5546_v3 }
0x282c   : > { %5597 = vadd.xlane.f32.xlu1 %v5596_v63 }
0x2830   : > { %5600 = vadd.xlane.f32.xlu1 %v5599_v44 }
0x2834   : > { %v5508_v40 = vpop.xlane.xlu0 %5507 }
0x2835   : > { %v5544_v50 = vsub.f32 %v12325_v56, %v5508_v40 }
0x2837   : > { %v5565_v14 = vmul.f32 1.442695, %v5544_v50 }
0x2839   : > { %10888 = vpow2.f32 %v5565_v14 }
0x283a   : > { %10890 = vpow2.f32 %v5569_v12 }
0x2843   : > { %v12398_v62 = vpop.eup %10888 }
0x2844   : > { %v5602_v23 = vsel %vm493_vm5, %v12398_v62, 0.0  ;;  %v12402_v6 = vpop.eup %10890 }
0x2845   : > { %5603 = vadd.xlane.f32.xlu1 %v5602_v23  ;;  %5606 = vadd.xlane.f32.xlu0 %v5605_v46  ;;  %v5608_v56 = vsel %vm493_vm5, %v12402_v6, 0.0 }
0x2849   : > { %5609 = vadd.xlane.f32.xlu1 %v5608_v56 }
0x2891   : > { %v5613_v30 = vpop.xlane.xlu1 %5612 }
0x2892   : > { %10892 = vrcp.f32 %v5613_v30 }
0x2895   : > { %v5616_v18 = vpop.xlane.xlu1 %5615 }
0x2896   : > { %10894 = vrcp.f32 %v5616_v18 }
0x2899   : > { %v5619_v39 = vpop.xlane.xlu1 %5618 }
0x289a   : > { %10896 = vrcp.f32 %v5619_v39 }
0x289c   : > { %v10893_v53 = vpop.eup %10892 }
0x289d   : > { %v5622_v51 = vpop.xlane.xlu1 %5621  ;;  %v5659_v27 = vmul.f32 %v10893_v53, %v12330_v45  ;;  %v5631_v37 = vpop.xlane.xlu0 %5630  ;;  %v12418_v45 = vld [vmem:[#allocation2 + $0x2d0] sm:$0xff] }
0x289e   : > { %10898 = vrcp.f32 %v5622_v51  ;;  %v10333_v54 = vpack.c.bf16 %v12420_v16, %v12418_v45 }
0x289f   : > { %9750 = vmatprep.mubr.msk.f32.mxu1 %vm493_vm5, %v5659_v27 }
0x28a0   : > { %v10895_v2 = vpop.eup %10894 }
0x28a1   : > { %v5660_v15 = vmul.f32 %v10895_v2, %v12335_v9  ;;  %v5625_v52 = vpop.xlane.xlu1 %5624  ;;  %v5228_v55 = vpop.permute.xlu0 %5227 }
0x28a2   : > { %10900 = vrcp.f32 %v5625_v52  ;;  %9748 = vmatprep.subr.msk.mxu1 %vm497_vm4, %v5228_v55  ;;  %v5970_v52 = vld [vmem:[#allocation2 + $0x2a8] sm:$0xff] }
0x28a3   : > { %9749 = vmatpush3.msk.msra.mxu1 %vm497_vm4, %v5228_v55  ;;  %10902 = vrcp.f32 %v5631_v37 }
0x28a4   : > { %v10897_v8 = vpop.eup %10896  ;;  %9751 = vmatmul.mubr.msk.f32.vlgmr.msra.gmra.mrb[88].mxu1 %vm493_vm5, %v5660_v15  ;;  %10329 = vmatprep.subr.bf16.mxu1 %v11067_v0  ;;  %v5969_v15 = vld [vmem:[#allocation2 + $0x2a0] sm:$0xff] }
0x28a5   : > { %v5628_v57 = vpop.xlane.xlu1 %5627  ;;  %v5661_v9 = vmul.f32 %v10897_v8, %v12343_v59  ;;  %10331 = vmatpush3.bf16.msra.mxu1 %v10330_v29  ;;  %v10325_v55 = vpack.c.bf16 %v5970_v52, %v5969_v15 }
0x28a6   : > { %10904 = vrcp.f32 %v5628_v57  ;;  %10332 = vmatprep.subr.bf16.mxu1 %v11067_v0 }
0x28a7   : > { %9753 = vmatprep.mubr.msk.f32.mxu1 %vm493_vm5, %v5661_v9  ;;  %10326 = vmatprep.subr.bf16.mxu0 %v10325_v55 }
0x28a8   : > { %v10899_v24 = vpop.eup %10898 }
0x28a9   : > { %v5634_v36 = vpop.xlane.xlu1 %5633  ;;  %v5662_v63 = vmul.f32 %v10899_v24, %v12348_v33  ;;  %10334 = vmatpush3.bf16.msra.mxu1 %v10333_v54 }
0x28aa   : > { %10906 = vrcp.f32 %v5634_v36 }
0x28ab   : > { %9754 = vmatmul.mubr.msk.f32.gmra.mrb[90].mxu1 %vm493_vm5, %v5662_v63 }
0x28ac   : > { %v10901_v59 = vpop.eup %10900 }
0x28ad   : > { %v5589_v44 = vpop.xlane.xlu1 %5588  ;;  %v5663_v19 = vmul.f32 %v10901_v59, %v12355_v17  ;;  %v10903_v38 = vpop.eup %10902 }
0x28ae   : > { %10908 = vrcp.f32 %v5589_v44  ;;  %v5665_v50 = vmul.f32 %v10903_v38, %v12351_v13 }
0x28af   : > { %9756 = vmatprep.mubr.msk.f32.mxu1 %vm493_vm5, %v5663_v19 }
0x28b0   : > { %v10905_v3 = vpop.eup %10904 }
0x28b1   : > { %v5592_v61 = vpop.xlane.xlu1 %5591  ;;  %v5664_v40 = vmul.f32 %v10905_v3, %v12362_v28 }
0x28b2   : > { %10910 = vrcp.f32 %v5592_v61 }
0x28b3   : > { %9757 = vmatmul.mubr.msk.f32.gmra.mrb[92].mxu1 %vm493_vm5, %v5664_v40 }
0x28b4   : > { %v10907_v33 = vpop.eup %10906  ;;  %9759 = vmatprep.mubr.msk.f32.mxu1 %vm493_vm5, %v5665_v50 }
0x28b5   : > { %v5595_v12 = vpop.xlane.xlu1 %5594  ;;  %v5666_v14 = vmul.f32 %v10907_v33, %v12367_v47 }
0x28b6   : > { %10912 = vrcp.f32 %v5595_v12 }
0x28b7   : > { %9760 = vmatmul.mubr.msk.f32.gmra.mrb[94].mxu1 %vm493_vm5, %v5666_v14 }
0x28b8   : > { %v10909_v17 = vpop.eup %10908  ;;  %9786 = vmatprep.mubr.msk.f32.mxu1 %vm11068_vm0, %v11069_v1 }
0x28b9   : > { %v5598_v23 = vpop.xlane.xlu1 %5597  ;;  %v5651_v28 = vmul.f32 %v10909_v17, %v12372_v10 }
0x28ba   : > { %10914 = vrcp.f32 %v5598_v23 }
0x28bb   : > { %9736 = vmatprep.mubr.msk.f32.mxu0 %vm493_vm5, %v5651_v28  ;;  %9787 = vmatmul.mubr.msk.f32.vlgmr.msra.gmra.mrb[96].mxu1 %vm236_vm1, %v12235_v4 }
0x28bc   : > { %v10911_v13 = vpop.eup %10910 }
0x28bd   : > { %v5652_v46 = vmul.f32 %v10911_v13, %v12376_v31  ;;  %v5601_v47 = vpop.xlane.xlu1 %5600 }
0x28be   : > { %10916 = vrcp.f32 %v5601_v47 }
0x28bf   : > { %9737 = vmatmul.mubr.msk.f32.vlgmr.msra.gmra.mrb[82].mxu0 %vm493_vm5, %v5652_v46 }
0x28c0   : > { %v10913_v56 = vpop.eup %10912  ;;  %10328 = vmatpush3.bf16.msra.mxu0 %v10325_v55 }
0x28c1   : > { %v5653_v30 = vmul.f32 %v10913_v56, %v12380_v11 }
0x28c3   : > { %9739 = vmatprep.mubr.msk.f32.mxu0 %vm493_vm5, %v5653_v30 }
0x28c4   : > { %v10915_v18 = vpop.eup %10914 }
0x28c5   : > { %v5654_v10 = vmul.f32 %v10915_v18, %v12385_v34 }
0x28c7   : > { %9740 = vmatmul.mubr.msk.f32.gmra.mrb[84].mxu0 %vm493_vm5, %v5654_v10 }
0x28c8   : > { %v10917_v39 = vpop.eup %10916 }
0x28c9   : > { %v5655_v4 = vmul.f32 %v10917_v39, %v12389_v7 }
0x28cb   : > { %9742 = vmatprep.mubr.msk.f32.mxu0 %vm493_vm5, %v5655_v4 }
0x28d2   : > { %v5604_v31 = vpop.xlane.xlu1 %5603  ;;  %v5607_v53 = vpop.xlane.xlu0 %5606 }
0x28d3   : > { %10918 = vrcp.f32 %v5604_v31  ;;  %v8540_v31 = vld [vmem:[#allocation2 + $0x2b0] ss:$0 sm:$0xff] }
0x28d4   : > { %10920 = vrcp.f32 %v5607_v53 }
0x28d6   : > { %v5610_v51 = vpop.xlane.xlu1 %5609 }
0x28d7   : > { %10922 = vrcp.f32 %v5610_v51 }
0x28dd   : > { %v10919_v27 = vpop.eup %10918 }
0x28de   : > { %v10921_v11 = vpop.eup %10920  ;;  %v5656_v37 = vmul.f32 %v10919_v27, %v12398_v62 }
0x28df   : > { %v5657_v2 = vmul.f32 %v10921_v11, %v12396_v43 }
0x28e0   : > { %9743 = vmatmul.mubr.msk.f32.gmra.mrb[86].mxu0 %vm493_vm5, %v5656_v37 }
0x28e1   : > { %v10923_v34 = vpop.eup %10922  ;;  %9745 = vmatprep.mubr.msk.f32.mxu0 %vm493_vm5, %v5657_v2 }
0x28e2   : > { %v5658_v7 = vmul.f32 %v10923_v34, %v12402_v6 }
0x28e4   : > { %9746 = vmatmul.mubr.msk.f32.gmra.mrb[88].mxu0 %vm493_vm5, %v5658_v7 }
0x2977   : > { %v9752_v29 = vpop.f32.mrb[88].mxu1 }
0x2978   : > { %v5890_v8 = vpop.f32.mrb[89].mxu1 }
0x2979   : > { %5937 = vrot.lane.b32.xlu1 %v5890_v8, %s11075_s5 }
0x297d   : > { %5939 = vrot.lane.b32.xlu1 %v9752_v29, %s11075_s5 }
0x297e   : > { %v9755_v43 = vpop.f32.mrb[90].mxu1 }
0x297f   : > { %5943 = vrot.lane.b32.xlu0 %v9755_v43, %s11075_s5  ;;  %v5900_v62 = vpop.f32.mrb[91].mxu1 }
0x2981   : > { %5941 = vrot.lane.b32.xlu1 %v5900_v62, %s11075_s5 }
0x2986   : > { %v9758_v6 = vpop.f32.mrb[92].mxu1 }
0x2987   : > { %v5910_v57 = vpop.f32.mrb[93].mxu1 }
0x2988   : > { %5945 = vrot.lane.b32.xlu1 %v5910_v57, %s11075_s5 }
0x298a   : > { %v9761_v9 = vpop.f32.mrb[94].mxu1 }
0x298b   : > { %v5920_v54 = vpop.f32.mrb[95].mxu1 }
0x298c   : > { %5947 = vrot.lane.b32.xlu1 %v9758_v6, %s11075_s5 }
0x298e   : > { %v12466_v24 = vpop.f32.mrb[96].mxu1 }
0x298f   : > { %v9788_v36 = vpop.f32.mrb[97].mxu1 }
0x2990   : > { %5949 = vrot.lane.b32.xlu1 %v5920_v54, %s11075_s5 }
0x2992   : > { %v9738_v63 = vpop.f32.mrb[82].mxu0 }
0x2993   : > { %v5759_v59 = vpop.f32.mrb[83].mxu0 }
0x2994   : > { %5951 = vrot.lane.b32.xlu1 %v9761_v9, %s11075_s5 }
0x299a   : > { %v9741_v44 = vpop.f32.mrb[84].mxu0 }
0x299b   : > { %v5769_v19 = vpop.f32.mrb[85].mxu0 }
0x29b3   : > { %v9744_v38 = vpop.f32.mrb[86].mxu0 }
0x29b4   : > { %v5779_v3 = vpop.f32.mrb[87].mxu0 }
0x29b7   : > { %v9747_v61 = vpop.f32.mrb[88].mxu0 }
0x29b8   : > { %v5789_v40 = vpop.f32.mrb[89].mxu0 }
0x29eb   : > { %v5938_v50 = vpop.permute.xlu1 %5937 }
0x29ec   : > { %v5961_v33 = vsel %vm1203_vm7, %v5759_v59, %v5938_v50 }
0x29ed   : > { %9766 = vmatprep.mubr.msk.f32.mxu0 %vm315_vm2, %v5961_v33 }
0x29ef   : > { %v5940_v12 = vpop.permute.xlu1 %5939 }
0x29f0   : > { %v5962_v14 = vsel %vm1203_vm7, %v9738_v63, %v5940_v12 }
0x29f1   : > { %9767 = vmatmul.mubr.msk.f32.vlgmr.msra.gmra.mrb[90].mxu0 %vm315_vm2, %v5962_v14  ;;  %v5944_v17 = vpop.permute.xlu0 %5943 }
0x29f2   : > { %v5964_v13 = vsel %vm1203_vm7, %v9741_v44, %v5944_v17 }
0x29f3   : > { %v5942_v23 = vpop.permute.xlu1 %5941 }
0x29f4   : > { %v5963_v28 = vsel %vm1203_vm7, %v5769_v19, %v5942_v23 }
0x29f5   : > { %9769 = vmatprep.mubr.msk.f32.mxu0 %vm315_vm2, %v5963_v28 }
0x29f6   : > { %9770 = vmatmul.mubr.msk.f32.gmra.mrb[92].mxu0 %vm315_vm2, %v5964_v13 }
0x29fa   : > { %v5946_v46 = vpop.permute.xlu1 %5945 }
0x29fb   : > { %v5965_v47 = vsel %vm1203_vm7, %v5779_v3, %v5946_v46 }
0x29fc   : > { %9772 = vmatprep.mubr.msk.f32.mxu0 %vm315_vm2, %v5965_v47 }
0x29fe   : > { %v5948_v56 = vpop.permute.xlu1 %5947 }
0x29ff   : > { %v5966_v30 = vsel %vm1203_vm7, %v9744_v38, %v5948_v56 }
0x2a00   : > { %9773 = vmatmul.mubr.msk.f32.gmra.mrb[94].mxu0 %vm315_vm2, %v5966_v30 }
0x2a02   : > { %v5950_v18 = vpop.permute.xlu1 %5949 }
0x2a03   : > { %v5967_v10 = vsel %vm1203_vm7, %v5789_v40, %v5950_v18 }
0x2a04   : > { %9775 = vmatprep.mubr.msk.f32.mxu0 %vm315_vm2, %v5967_v10 }
0x2a06   : > { %v5952_v39 = vpop.permute.xlu1 %5951 }
0x2a07   : > { %v5968_v4 = vsel %vm1203_vm7, %v9747_v61, %v5952_v39 }
0x2a08   : > { %9776 = vmatmul.mubr.msk.f32.gmra.mrb[96].mxu0 %vm315_vm2, %v5968_v4 }
0x2ac4   : > { %v9768_v53 = vpop.f32.mrb[90].mxu0 }
0x2ac5   : > { %v6072_v51 = vadd.f32 %v9768_v53, %v8540_v31  ;;  %v6066_v27 = vpop.f32.mrb[91].mxu0 }
0x2ac6   : > { %v6067_v11 = vadd.f32 %v8540_v31, %v6066_v27 }
0x2ac7   : > { %v6106_v37 = vadd.f32 %v6072_v51, %v11952_v35 }
0x2ac8   : > { %v6105_v2 = vadd.f32 %v6067_v11, %v11869_v26 }
0x2ac9   : > { %v9771_v34 = vpop.f32.mrb[92].mxu0  ;;  %v6117_v7 = vsel %vm236_vm1, %v6106_v37, 0.0 }
0x2aca   : > { %v6082_v15 = vadd.f32 %v9771_v34, %v8540_v31  ;;  %6118 = vadd.xlane.f32.xlu0 %v6117_v7  ;;  %v6076_v52 = vpop.f32.mrb[93].mxu0  ;;  %v6114_v55 = vsel %vm236_vm1, %v6105_v2, 0.0 }
0x2acb   : > { %v6077_v29 = vadd.f32 %v8540_v31, %v6076_v52  ;;  %6115 = vadd.xlane.f32.xlu1 %v6114_v55 }
0x2acc   : > { %v6108_v8 = vadd.f32 %v6082_v15, %v11973_v42 }
0x2acd   : > { %v6107_v43 = vadd.f32 %v6077_v29, %v11947_v41 }
0x2ace   : > { %v6123_v62 = vsel %vm236_vm1, %v6108_v8, 0.0 }
0x2acf   : > { %6124 = vadd.xlane.f32.xlu1 %v6123_v62  ;;  %v6120_v35 = vsel %vm236_vm1, %v6107_v43, 0.0 }
0x2ad0   : > { %6121 = vadd.xlane.f32.xlu0 %v6120_v35 }
0x2ad3   : > { %v9774_v26 = vpop.f32.mrb[94].mxu0 }
0x2ad4   : > { %v6092_v6 = vadd.f32 %v9774_v26, %v8540_v31  ;;  %v6086_v57 = vpop.f32.mrb[95].mxu0 }
0x2ad5   : > { %v6087_v9 = vadd.f32 %v8540_v31, %v6086_v57 }
0x2ad6   : > { %v6110_v54 = vadd.f32 %v6092_v6, %v11998_v21 }
0x2ad7   : > { %v6109_v36 = vadd.f32 %v6087_v9, %v11976_v49  ;;  %v10681_v9 = vpack.i.bf16 %v12420_v16, %v12418_v45 }
0x2ad8   : > { %v6129_v63 = vsel %vm236_vm1, %v6110_v54, 0.0 }
0x2ad9   : > { %6130 = vadd.xlane.f32.xlu1 %v6129_v63  ;;  %v6126_v42 = vsel %vm236_vm1, %v6109_v36, 0.0 }
0x2ada   : > { %6127 = vadd.xlane.f32.xlu0 %v6126_v42 }
0x2adb   : > { %v9777_v41 = vpop.f32.mrb[96].mxu0 }
0x2adc   : > { %v6102_v59 = vadd.f32 %v9777_v41, %v8540_v31  ;;  %v6096_v44 = vpop.f32.mrb[97].mxu0 }
0x2add   : > { %v6097_v19 = vadd.f32 %v8540_v31, %v6096_v44 }
0x2ade   : > { %v6112_v38 = vadd.f32 %v6102_v59, %v12021_v25 }
0x2adf   : > { %v6111_v3 = vadd.f32 %v6097_v19, %v12001_v48 }
0x2ae0   : > { %v6135_v61 = vsel %vm236_vm1, %v6112_v38, 0.0 }
0x2ae1   : > { %6136 = vadd.xlane.f32.xlu1 %v6135_v61  ;;  %v6132_v21 = vsel %vm236_vm1, %v6111_v3, 0.0 }
0x2ae2   : > { %6133 = vadd.xlane.f32.xlu0 %v6132_v21 }
0x2b57   : > { %v6119_v49 = vpop.xlane.xlu0 %6118 }
0x2b58   : > { %v6139_v40 = vmul.f32 0.03125, %v6119_v49  ;;  %v6116_v50 = vpop.xlane.xlu1 %6115 }
0x2b59   : > { %v6138_v33 = vmul.f32 0.03125, %v6116_v50 }
0x2b5a   : > { %v12502_v12 = vsub.f32 %v6106_v37, %v6139_v40 }
0x2b5b   : > { %v12504_v14 = vsub.f32 %v6105_v2, %v6138_v33 }
0x2b5c   : > { %v6125_v17 = vpop.xlane.xlu1 %6124  ;;  %v6155_v25 = vmul.f32 %v12502_v12, %v12502_v12 }
0x2b5d   : > { %v6141_v23 = vmul.f32 0.03125, %v6125_v17  ;;  %v6122_v48 = vpop.xlane.xlu0 %6121  ;;  %v6154_v28 = vmul.f32 %v12504_v14, %v12504_v14 }
0x2b5e   : > { %v6140_v13 = vmul.f32 0.03125, %v6122_v48  ;;  %v6165_v46 = vsel %vm236_vm1, %v6155_v25, 0.0 }
0x2b5f   : > { %v12511_v47 = vsub.f32 %v6108_v8, %v6141_v23  ;;  %6166 = vadd.xlane.f32.xlu1 %v6165_v46  ;;  %v6162_v56 = vsel %vm236_vm1, %v6154_v28, 0.0 }
0x2b60   : > { %v12514_v30 = vsub.f32 %v6107_v43, %v6140_v13  ;;  %6163 = vadd.xlane.f32.xlu0 %v6162_v56 }
0x2b61   : > { %v6157_v18 = vmul.f32 %v12511_v47, %v12511_v47 }
0x2b62   : > { %v6156_v10 = vmul.f32 %v12514_v30, %v12514_v30 }
0x2b63   : > { %v6171_v39 = vsel %vm236_vm1, %v6157_v18, 0.0 }
0x2b64   : > { %6172 = vadd.xlane.f32.xlu1 %v6171_v39  ;;  %v6168_v4 = vsel %vm236_vm1, %v6156_v10, 0.0 }
0x2b65   : > { %6169 = vadd.xlane.f32.xlu0 %v6168_v4 }
0x2b66   : > { %v6131_v31 = vpop.xlane.xlu1 %6130 }
0x2b67   : > { %v6143_v53 = vmul.f32 0.03125, %v6131_v31  ;;  %v6128_v51 = vpop.xlane.xlu0 %6127 }
0x2b68   : > { %v6142_v27 = vmul.f32 0.03125, %v6128_v51 }
0x2b69   : > { %v12522_v11 = vsub.f32 %v6110_v54, %v6143_v53  ;;  %v10676_v54 = vpack.i.bf16 %v12412_v22, %v12410_v32 }
0x2b6a   : > { %v12524_v37 = vsub.f32 %v6109_v36, %v6142_v27  ;;  %v12547_v36 = vld [vmem:[#allocation2 + $0x2e0] ss:$0 sm:$0xff] }
0x2b6b   : > { %v6159_v2 = vmul.f32 %v12522_v11, %v12522_v11 }
0x2b6c   : > { %v6158_v34 = vmul.f32 %v12524_v37, %v12524_v37 }
0x2b6d   : > { %v6177_v7 = vsel %vm236_vm1, %v6159_v2, 0.0 }
0x2b6e   : > { %6178 = vadd.xlane.f32.xlu1 %v6177_v7  ;;  %v6137_v15 = vpop.xlane.xlu1 %6136  ;;  %v6174_v52 = vsel %vm236_vm1, %v6158_v34, 0.0 }
0x2b6f   : > { %v6145_v55 = vmul.f32 0.03125, %v6137_v15  ;;  %v6134_v29 = vpop.xlane.xlu0 %6133  ;;  %6175 = vadd.xlane.f32.xlu0 %v6174_v52 }
0x2b70   : > { %v6144_v8 = vmul.f32 0.03125, %v6134_v29 }
0x2b71   : > { %v12532_v43 = vsub.f32 %v6112_v38, %v6145_v55 }
0x2b72   : > { %v12534_v62 = vsub.f32 %v6111_v3, %v6144_v8  ;;  %v6113_v3 = vld [vmem:[#allocation2 + $0x2b8] sm:$0x3] }
0x2b73   : > { %v6161_v35 = vmul.f32 %v12532_v43, %v12532_v43  ;;  %v12555_v49 = vrot.slane %v6113_v3, %v11346_v58  ;;  %v12559_v48 = vrot.slane %v6113_v3, %v11349_v60 }
0x2b74   : > { %v6160_v26 = vmul.f32 %v12534_v62, %v12534_v62 }
0x2b75   : > { %v6183_v6 = vsel %vm236_vm1, %v6161_v35, 0.0 }
0x2b76   : > { %6184 = vadd.xlane.f32.xlu1 %v6183_v6  ;;  %v6180_v57 = vsel %vm236_vm1, %v6160_v26, 0.0 }
0x2b77   : > { %6181 = vadd.xlane.f32.xlu0 %v6180_v57 }
0x2b87   : > { %10682 = vrot.lane.b32.xlu1 %v10681_v9, %s11071_s12 }
0x2b8b   : > { %6346 = vrot.lane.b32.xlu1 %v12547_v36, %s11071_s12 }
0x2b8d   : > { %10677 = vrot.lane.b32.xlu0 %v10676_v54, %s11071_s12 }
0x2b8f   : > { %10687 = vrot.lane.b32.xlu1 %v10676_v54, %s11070_s11 }
0x2b91   : > { %10692 = vrot.lane.b32.xlu0 %v10681_v9, %s11070_s11 }
0x2bec   : > { %v6167_v63 = vpop.xlane.xlu1 %6166 }
0x2bed   : > { %v6164_v42 = vpop.xlane.xlu0 %6163  ;;  %v6187_v16 = vmul.f32 0.03125, %v6167_v63 }
0x2bee   : > { %v6186_v41 = vmul.f32 0.03125, %v6164_v42 }
0x2bef   : > { %v6195_v22 = vadd.f32 1e-05, %v6187_v16 }
0x2bf0   : > { %v6194_v45 = vadd.f32 1e-05, %v6186_v41 }
0x2bf1   : > { %v6173_v59 = vpop.xlane.xlu1 %6172 }
0x2bf2   : > { %10924 = vrsqrt.f32 %v6194_v45  ;;  %v6170_v44 = vpop.xlane.xlu0 %6169  ;;  %v6189_v19 = vmul.f32 0.03125, %v6173_v59 }
0x2bf3   : > { %v6188_v32 = vmul.f32 0.03125, %v6170_v44  ;;  %10926 = vrsqrt.f32 %v6195_v22 }
0x2bf4   : > { %v6197_v61 = vadd.f32 1e-05, %v6189_v19 }
0x2bf5   : > { %v6196_v38 = vadd.f32 1e-05, %v6188_v32 }
0x2bf7   : > { %10928 = vrsqrt.f32 %v6196_v38 }
0x2bf8   : > { %10930 = vrsqrt.f32 %v6197_v61 }
0x2bfb   : > { %v6179_v21 = vpop.xlane.xlu1 %6178 }
0x2bfc   : > { %v6191_v40 = vmul.f32 0.03125, %v6179_v21  ;;  %v6176_v50 = vpop.xlane.xlu0 %6175  ;;  %v10925_v33 = vpop.eup %10924 }
0x2bfd   : > { %v6190_v17 = vmul.f32 0.03125, %v6176_v50  ;;  %v6210_v23 = vmul.f32 %v10925_v33, %v12504_v14  ;;  %v10927_v18 = vpop.eup %10926  ;;  %v11016_v14 = vld [vmem:[%s12971_s2] sm:$0xff]  ;;  %v11017_v50 = vld [vmem:[%s12971_s2 + $0x8] sm:$0xff] }
0x2bfe   : > { %v6199_v25 = vadd.f32 1e-05, %v6191_v40  ;;  %v6211_v27 = vmul.f32 %v10927_v18, %v12502_v12 }
0x2bff   : > { %v6198_v28 = vadd.f32 1e-05, %v6190_v17  ;;  %v6222_v13 = vmul.f32 %v12555_v49, %v6210_v23 }
0x2c00   : > { %v6223_v6 = vmul.f32 %v12555_v49, %v6211_v27  ;;  %v11022_v27 = vld [vmem:[%s12971_s2 + $0x30] sm:$0xff] }
0x2c01   : > { %10932 = vrsqrt.f32 %v6198_v28  ;;  %v12563_v46 = vadd.f32 %v12559_v48, %v6222_v13  ;;  %v10929_v31 = vpop.eup %10928 }
0x2c02   : > { %10934 = vrsqrt.f32 %v6199_v25  ;;  %v10931_v7 = vpop.eup %10930  ;;  %v6212_v15 = vmul.f32 %v10929_v31, %v12514_v30 }
0x2c03   : > { %v6185_v56 = vpop.xlane.xlu1 %6184  ;;  %9817 = vmatprep.mubr.msk.f32.mxu0 %vm236_vm1, %v12563_v46  ;;  %v6242_v4 = vadd.f32 %v11016_v14, %v12563_v46  ;;  %v6213_v57 = vmul.f32 %v10931_v7, %v12511_v47  ;;  %v12582_v47 = vadd.f32 %v12559_v48, %v6223_v6  ;;  %v11020_v14 = vld [vmem:[%s12971_s2 + $0x20] sm:$0xff] }
0x2c04   : > { %v6193_v10 = vmul.f32 0.03125, %v6185_v56  ;;  %v6182_v39 = vpop.xlane.xlu0 %6181  ;;  %v6224_v41 = vmul.f32 %v12555_v49, %v6212_v15 }
0x2c05   : > { %v6192_v53 = vmul.f32 0.03125, %v6182_v39  ;;  %9797 = vmatprep.mubr.msk.f32.mxu1 %vm236_vm1, %v6242_v4  ;;  %v6225_v32 = vmul.f32 %v12555_v49, %v6213_v57  ;;  %v6243_v33 = vadd.f32 %v11017_v50, %v12582_v47 }
0x2c06   : > { %v6201_v51 = vadd.f32 1e-05, %v6193_v10 }
0x2c07   : > { %v6200_v2 = vadd.f32 1e-05, %v6192_v53  ;;  %v10683_v34 = vpop.permute.xlu1 %10682  ;;  %v12595_v17 = vadd.f32 %v12559_v48, %v6225_v32 }
0x2c08   : > { %10936 = vrsqrt.f32 %v6201_v51  ;;  %v10685_v52 = vunpack.i.h.bf16 %v10683_v34  ;;  %v10684_v55 = vunpack.i.l.bf16 %v10683_v34  ;;  %v10678_v29 = vpop.permute.xlu0 %10677 }
0x2c09   : > { %10938 = vrsqrt.f32 %v6200_v2  ;;  %v10680_v8 = vunpack.i.h.bf16 %v10678_v29  ;;  %v10679_v35 = vunpack.i.l.bf16 %v10678_v29 }
0x2c0a   : > { %v10339_v9 = vpack.c.bf16 %v10685_v52, %v10684_v55 }
0x2c0b   : > { %v10933_v26 = vpop.eup %10932  ;;  %v10335_v54 = vpack.c.bf16 %v10680_v8, %v10679_v35  ;;  %v12576_v12 = vpop.permute.xlu1 %6346 }
0x2c0c   : > { %v10935_v63 = vpop.eup %10934  ;;  %v6214_v42 = vmul.f32 %v10933_v26, %v12524_v37  ;;  %v10693_v30 = vpop.permute.xlu0 %10692  ;;  %v12586_v37 = vadd.f32 %v12559_v48, %v6224_v41 }
0x2c0d   : > { %10336 = vmatprep.subr.bf16.mxu1 %v10335_v54  ;;  %v10695_v45 = vunpack.i.h.bf16 %v10693_v30  ;;  %v10694_v16 = vunpack.i.l.bf16 %v10693_v30  ;;  %v6215_v59 = vmul.f32 %v10935_v63, %v12522_v11 }
0x2c0e   : > { %10338 = vmatpush3.bf16.msra.mxu1 %v10335_v54  ;;  %v6226_v38 = vmul.f32 %v12555_v49, %v6214_v42 }
0x2c0f   : > { %v10688_v44 = vpop.permute.xlu1 %10687  ;;  %10340 = vmatprep.subr.bf16.mxu1 %v10339_v9  ;;  %v10347_v21 = vpack.c.bf16 %v10695_v45, %v10694_v16  ;;  %v6227_v25 = vmul.f32 %v12555_v49, %v6215_v59 }
0x2c10   : > { %v10690_v22 = vunpack.i.h.bf16 %v10688_v44  ;;  %v10689_v19 = vunpack.i.l.bf16 %v10688_v44  ;;  %v12605_v13 = vadd.f32 %v12559_v48, %v6226_v38 }
0x2c11   : > { %v12615_v10 = vadd.f32 %v12559_v48, %v6227_v25 }
0x2c12   : > { %v10937_v3 = vpop.eup %10936  ;;  %v10343_v61 = vpack.c.bf16 %v10690_v22, %v10689_v19  ;;  %10342 = vmatpush3.bf16.msra.mxu1 %v10339_v9  ;;  %v6246_v4 = vadd.f32 %v11020_v14, %v12605_v13 }
0x2c13   : > { %v10939_v40 = vpop.eup %10938  ;;  %v6217_v11 = vmul.f32 %v10937_v3, %v12532_v43  ;;  %10351 = vmatprep.subr.bf16.mxu1 %v11067_v0  ;;  %v11018_v43 = vld [vmem:[%s12971_s2 + $0x10] sm:$0xff] }
0x2c14   : > { %v6216_v23 = vmul.f32 %v10939_v40, %v12534_v62  ;;  %10344 = vmatprep.subr.bf16.mxu0 %v10343_v61  ;;  %v6244_v28 = vadd.f32 %v11018_v43, %v12586_v37  ;;  %v11019_v62 = vld [vmem:[%s12971_s2 + $0x18] sm:$0xff]  ;;  %v6326_v40 = vadd.f32 %v12547_v36, %v12466_v24 }
0x2c15   : > { %9798 = vmatmul.mubr.msk.f32.vlgmr.msra.gmra.mrb[98].mxu1 %vm236_vm1, %v6243_v33  ;;  %10346 = vmatpush3.bf16.msra.mxu0 %v10343_v61  ;;  %v6245_v18 = vadd.f32 %v11019_v62, %v12595_v17  ;;  %v6229_v39 = vmul.f32 %v12555_v49, %v6217_v11 }
0x2c16   : > { %9800 = vmatprep.mubr.msk.f32.mxu1 %vm236_vm1, %v6244_v28  ;;  %10348 = vmatprep.subr.bf16.mxu0 %v10347_v21  ;;  %v6228_v56 = vmul.f32 %v12555_v49, %v6216_v23  ;;  %v11021_v49 = vld [vmem:[%s12971_s2 + $0x28] sm:$0xff] }
0x2c17   : > { %v6247_v53 = vadd.f32 %v11021_v49, %v12615_v10  ;;  %v12633_v51 = vadd.f32 %v12559_v48, %v6229_v39 }
0x2c18   : > { %v12623_v31 = vadd.f32 %v12559_v48, %v6228_v56  ;;  %v11023_v48 = vld [vmem:[%s12971_s2 + $0x38] sm:$0xff] }
0x2c19   : > { %9801 = vmatmul.mubr.msk.f32.gmra.mrb[100].mxu1 %vm236_vm1, %v6245_v18  ;;  %10350 = vmatpush3.bf16.msra.mxu0 %v10347_v21  ;;  %v6249_v34 = vadd.f32 %v11023_v48, %v12633_v51 }
0x2c1a   : > { %9803 = vmatprep.mubr.msk.f32.mxu1 %vm236_vm1, %v6246_v4  ;;  %10367 = vmatprep.subr.bf16.mxu0 %v11067_v0  ;;  %v6248_v2 = vadd.f32 %v11022_v27, %v12623_v31 }
0x2c1c   : > { %9818 = vmatmul.mubr.msk.f32.vlgmr.msra.gmra.mrb[98].mxu0 %vm236_vm1, %v12582_v47 }
0x2c1d   : > { %9804 = vmatmul.mubr.msk.f32.gmra.mrb[102].mxu1 %vm236_vm1, %v6247_v53  ;;  %9820 = vmatprep.mubr.msk.f32.mxu0 %vm236_vm1, %v12586_v37 }
0x2c1e   : > { %9806 = vmatprep.mubr.msk.f32.mxu1 %vm236_vm1, %v6248_v2 }
0x2c20   : > { %9821 = vmatmul.mubr.msk.f32.gmra.mrb[100].mxu0 %vm236_vm1, %v12595_v17 }
0x2c21   : > { %9807 = vmatmul.mubr.msk.f32.gmra.mrb[104].mxu1 %vm236_vm1, %v6249_v34  ;;  %9823 = vmatprep.mubr.msk.f32.mxu0 %vm236_vm1, %v12605_v13 }
0x2c22   : > { %9845 = vmatprep.mubr.msk.f32.mxu1 %vm11068_vm0, %v11069_v1 }
0x2c24   : > { %9824 = vmatmul.mubr.msk.f32.gmra.mrb[102].mxu0 %vm236_vm1, %v12615_v10 }
0x2c25   : > { %9826 = vmatprep.mubr.msk.f32.mxu0 %vm236_vm1, %v12623_v31 }
0x2c28   : > { %9827 = vmatmul.mubr.msk.f32.gmra.mrb[104].mxu0 %vm236_vm1, %v12633_v51 }
0x2c29   : > { %9864 = vmatprep.mubr.msk.f32.mxu0 %vm11068_vm0, %v11069_v1 }
0x2ce8   : > { %v9799_v7 = vpop.f32.mrb[98].mxu1 }
0x2ce9   : > { %v6445_v15 = vadd.f32 %v9799_v7, %v12576_v12  ;;  %v6439_v52 = vpop.f32.mrb[99].mxu1 }
0x2cea   : > { %v6440_v55 = vadd.f32 %v6439_v52, %v12576_v12 }
0x2cec   : > { %v10696_v29 = vpack.i.bf16 %v6445_v15, %v6440_v55  ;;  %v10352_v8 = vpack.c.bf16 %v6445_v15, %v6440_v55  ;;  %v9802_v35 = vpop.f32.mrb[100].mxu1 }
0x2ced   : > { %v6455_v26 = vadd.f32 %v9802_v35, %v12576_v12  ;;  %v6449_v6 = vpop.f32.mrb[101].mxu1 }
0x2cee   : > { %v6450_v57 = vadd.f32 %v6449_v6, %v12576_v12  ;;  %10697 = vrot.lane.b32.xlu1 %v10696_v29, %s11074_s30  ;;  %10354 = vmatpush3.bf16.xpose.msk.msra.mxu1 %vm11353_vm8, %v10352_v8 }
0x2cef   : > { %v9819_v9 = vpop.f32.mrb[98].mxu0  ;;  %10355 = vmatprep.subr.bf16.mxu1 %v11067_v0 }
0x2cf0   : > { %v10701_v54 = vpack.i.bf16 %v6455_v26, %v6450_v57  ;;  %v10356_v63 = vpack.c.bf16 %v6455_v26, %v6450_v57  ;;  %v9805_v42 = vpop.f32.mrb[102].mxu1  ;;  %v6583_v30 = vpop.f32.mrb[99].mxu0 }
0x2cf1   : > { %v6465_v41 = vadd.f32 %v9805_v42, %v12576_v12  ;;  %v6459_v45 = vpop.f32.mrb[103].mxu1 }
0x2cf2   : > { %v6460_v16 = vadd.f32 %v6459_v45, %v12576_v12  ;;  %10702 = vrot.lane.b32.xlu0 %v10701_v54, %s11074_s30 }
0x2cf3   : > { %v9822_v59 = vpop.f32.mrb[100].mxu0 }
0x2cf4   : > { %v10706_v44 = vpack.i.bf16 %v6465_v41, %v6460_v16  ;;  %v10360_v32 = vpack.c.bf16 %v6465_v41, %v6460_v16  ;;  %v9808_v22 = vpop.f32.mrb[104].mxu1  ;;  %v6593_v19 = vpop.f32.mrb[101].mxu0 }
0x2cf5   : > { %v6475_v38 = vadd.f32 %v9808_v22, %v12576_v12  ;;  %v6469_v3 = vpop.f32.mrb[105].mxu1 }
0x2cf6   : > { %v6470_v61 = vadd.f32 %v6469_v3, %v12576_v12  ;;  %10707 = vrot.lane.b32.xlu1 %v10706_v44, %s11074_s30  ;;  %10358 = vmatpush3.bf16.xpose.msk.msra.mxu1 %vm11353_vm8, %v10356_v63 }
0x2cf7   : > { %v9825_v21 = vpop.f32.mrb[102].mxu0  ;;  %10359 = vmatprep.subr.bf16.mxu1 %v11067_v0 }
0x2cf8   : > { %v10711_v11 = vpack.i.bf16 %v6475_v38, %v6470_v61  ;;  %v10364_v50 = vpack.c.bf16 %v6475_v38, %v6470_v61  ;;  %v6603_v33 = vpop.f32.mrb[103].mxu0 }
0x2cfa   : > { %10712 = vrot.lane.b32.xlu0 %v10711_v11, %s11074_s30  ;;  %6623 = vrot.lane.b32.xlu1 %v6326_v40, %s11074_s30 }
0x2cfb   : > { %v9828_v25 = vpop.f32.mrb[104].mxu0 }
0x2cfc   : > { %v6613_v12 = vpop.f32.mrb[105].mxu0 }
0x2cfe   : > { %6490 = vrot.lane.b32.xlu1 %v12547_v36, %s11070_s11  ;;  %10362 = vmatpush3.bf16.xpose.msk.msra.mxu1 %vm11353_vm8, %v10360_v32  ;;  %s8638_s11 = sshll.u32 %s12984_s16, 6 }
0x2cff   : > { %10363 = vmatprep.subr.bf16.mxu1 %v11067_v0  ;;  %s209_s20 = scalar_lea.vmem %s12973_s4, %s8638_s11 }
0x2d06   : > { %10366 = vmatpush3.bf16.xpose.msk.msra.mxu1 %vm11353_vm8, %v10364_v50 }
0x2d07   : > { %10383 = vmatprep.subr.bf16.mxu1 %v11067_v0 }
0x2d0d   : > { %9846 = vmatmul.mubr.msk.f32.vlgmr.msra.gmra.mrb[106].mxu1 %vm1203_vm7, %v6326_v40 }
0x2d0e   : > { %9883 = vmatprep.mubr.msk.f32.mxu1 %vm11068_vm0, %v11069_v1 }
0x2d60   : > { %v10698_v24 = vpop.permute.xlu1 %10697 }
0x2d61   : > { %v10700_v23 = vunpack.i.h.bf16 %v10698_v24  ;;  %v10699_v43 = vunpack.i.l.bf16 %v10698_v24 }
0x2d63   : > { %v10368_v28 = vpack.c.bf16 %v10700_v23, %v10699_v43 }
0x2d64   : > { %v10703_v36 = vpop.permute.xlu0 %10702 }
0x2d65   : > { %10370 = vmatpush3.bf16.xpose.msk.msra.mxu0 %vm11353_vm8, %v10368_v28  ;;  %v10705_v56 = vunpack.i.h.bf16 %v10703_v36  ;;  %v10704_v62 = vunpack.i.l.bf16 %v10703_v36 }
0x2d66   : > { %10371 = vmatprep.subr.bf16.mxu0 %v11067_v0 }
0x2d67   : > { %v10372_v39 = vpack.c.bf16 %v10705_v56, %v10704_v62 }
0x2d68   : > { %v10708_v18 = vpop.permute.xlu1 %10707 }
0x2d69   : > { %v10710_v14 = vunpack.i.h.bf16 %v10708_v18  ;;  %v10709_v4 = vunpack.i.l.bf16 %v10708_v18 }
0x2d6b   : > { %v10376_v53 = vpack.c.bf16 %v10710_v14, %v10709_v4 }
0x2d6c   : > { %v6624_v49 = vpop.permute.xlu1 %6623  ;;  %v10713_v57 = vpop.permute.xlu0 %10712 }
0x2d6d   : > { %10374 = vmatpush3.bf16.xpose.msk.msra.mxu0 %vm11353_vm8, %v10372_v39 }
0x2d6e   : > { %10375 = vmatprep.subr.bf16.mxu0 %v11067_v0 }
0x2d70   : > { %v6491_v27 = vpop.permute.xlu1 %6490 }
0x2d71   : > { %v6584_v2 = vadd.f32 %v6583_v30, %v6491_v27  ;;  %v6589_v48 = vadd.f32 %v9819_v9, %v6491_v27  ;;  %v6594_v34 = vadd.f32 %v6593_v19, %v6491_v27  ;;  %v6599_v7 = vadd.f32 %v9822_v59, %v6491_v27 }
0x2d72   : > { %v12702_v15 = vadd.f32 %v6603_v33, %v6491_v27  ;;  %v6609_v52 = vadd.f32 %v9825_v21, %v6491_v27  ;;  %v6614_v55 = vadd.f32 %v6613_v12, %v6491_v27  ;;  %v6619_v29 = vadd.f32 %v9828_v25, %v6491_v27 }
0x2d73   : > { %v10384_v8 = vpack.c.bf16 %v6589_v48, %v6584_v2  ;;  %v10387_v35 = vpack.c.bf16 %v6599_v7, %v6594_v34  ;;  %v10721_v26 = vpack.i.bf16 %v6599_v7, %v6594_v34  ;;  %v10716_v6 = vpack.i.bf16 %v6589_v48, %v6584_v2 }
0x2d74   : > { %v10390_v54 = vpack.c.bf16 %v6609_v52, %v12702_v15  ;;  %v10393_v63 = vpack.c.bf16 %v6619_v29, %v6614_v55  ;;  %v10731_v42 = vpack.i.bf16 %v6619_v29, %v6614_v55  ;;  %v10726_v41 = vpack.i.bf16 %v6609_v52, %v12702_v15 }
0x2d75   : > { %10378 = vmatpush3.bf16.xpose.msk.msra.mxu0 %vm11353_vm8, %v10376_v53  ;;  %10385 = vmatpush3.bf16.msra.mxu1 %v10384_v8  ;;  %v10715_v9 = vunpack.i.h.bf16 %v10713_v57  ;;  %v10714_v30 = vunpack.i.l.bf16 %v10713_v57 }
0x2d76   : > { %10386 = vmatprep.subr.bf16.mxu1 %v11067_v0  ;;  %10379 = vmatprep.subr.bf16.mxu0 %v11067_v0 }
0x2d77   : > { %v10380_v45 = vpack.c.bf16 %v10715_v9, %v10714_v30  ;;  %v8587_v30 = vld [vmem:[#allocation2 + $0x2f8] ss:$0 sm:$0xff] }
0x2d79   : > { %10388 = vmatpush3.bf16.msra.mxu1 %v10387_v35  ;;  %v7032_v35 = vld [vmem:[#allocation2 + $0x2e8] sm:$0xff] }
0x2d7a   : > { %10389 = vmatprep.subr.bf16.mxu1 %v11067_v0 }
0x2d7d   : > { %10382 = vmatpush3.bf16.xpose.msk.msra.mxu0 %vm11353_vm8, %v10380_v45  ;;  %10391 = vmatpush3.bf16.msra.mxu1 %v10390_v54 }
0x2d7e   : > { %10392 = vmatprep.subr.bf16.mxu1 %v11067_v0  ;;  %10395 = vmatprep.subr.bf16.mxu0 %v11067_v0 }
0x2d81   : > { %10394 = vmatpush3.bf16.msra.mxu1 %v10393_v63 }
0x2d82   : > { %10407 = vmatprep.subr.bf16.mxu1 %v11067_v0 }
0x2d84   : > { %9865 = vmatmul.mubr.msk.f32.vlgmr.msra.gmra.mrb[106].mxu0 %vm1203_vm7, %v6624_v49 }
0x2d85   : > { %9902 = vmatprep.mubr.msk.f32.mxu0 %vm11068_vm0, %v11069_v1 }
0x2de0   : > { %v6765_v16 = vpop.f32.mrb[106].mxu1 }
0x2de1   : > { %v6857_v59 = vmul.f32 0.35355338, %v6765_v16  ;;  %v9847_v44 = vpop.f32.mrb[107].mxu1 }
0x2de3   : > { %v6859_v32 = vsel %vm1382_vm9, %v6857_v59, -inf }
0x2de4   : > { %6860 = vmax.xlane.f32.xlu1 %v6859_v32 }
0x2df5   : > { %10722 = vrot.lane.b32.xlu1 %v10721_v26, %s11074_s30  ;;  %v7033_v26 = vld [vmem:[#allocation2 + $0x2f0] sm:$0xff] }
0x2df9   : > { %10732 = vrot.lane.b32.xlu1 %v10731_v42, %s11074_s30 }
0x2e57   : > { %v6853_v5 = vpop.f32.mrb[106].mxu0 }
0x2e58   : > { %v6858_v22 = vmul.f32 0.35355338, %v6853_v5  ;;  %v9866_v19 = vpop.f32.mrb[107].mxu0 }
0x2e5a   : > { %v6862_v38 = vsel %vm1382_vm9, %v6858_v22, -inf }
0x2e5b   : > { %6863 = vmax.xlane.f32.xlu0 %v6862_v38 }
0x2e71   : > { %10717 = vrot.lane.b32.xlu0 %v10716_v6, %s11074_s30  ;;  %v6861_v3 = vpop.xlane.xlu1 %6860  ;;  %v10408_v6 = vpack.c.bf16 %v7033_v26, %v7032_v35 }
0x2e72   : > { %v6865_v56 = vsub.f32 %v6857_v59, %v6861_v3 }
0x2e74   : > { %v6867_v62 = vmul.f32 1.442695, %v6865_v56 }
0x2e75   : > { %v10723_v11 = vpop.permute.xlu1 %10722 }
0x2e76   : > { %v10725_v12 = vunpack.i.h.bf16 %v10723_v11  ;;  %v10724_v24 = vunpack.i.l.bf16 %v10723_v11  ;;  %v7139_v11 = vld [vmem:[#allocation2 + $0x318] sm:$0xff] }
0x2e78   : > { %v10399_v43 = vpack.c.bf16 %v10725_v12, %v10724_v24 }
0x2e79   : > { %v10733_v4 = vpop.permute.xlu1 %10732 }
0x2e7a   : > { %v10735_v2 = vunpack.i.h.bf16 %v10733_v4  ;;  %v10734_v48 = vunpack.i.l.bf16 %v10733_v4 }
0x2e7c   : > { %v10405_v15 = vpack.c.bf16 %v10735_v2, %v10734_v48  ;;  %v7374_v2 = vld [vmem:[#allocation2 + $0x380] sm:$0xff]  ;;  %v7375_v48 = vld [vmem:[#allocation2 + $0x388] sm:$0xff] }
0x2ee8   : > { %v6864_v61 = vpop.xlane.xlu0 %6863 }
0x2ee9   : > { %v6866_v21 = vsub.f32 %v6858_v22, %v6864_v61  ;;  %v7137_v61 = vld [vmem:[#allocation2 + $0x308] sm:$0xff] }
0x2eeb   : > { %v6869_v40 = vmul.f32 1.442695, %v6866_v21  ;;  %v7138_v21 = vld [vmem:[#allocation2 + $0x310] sm:$0xff] }
0x2eec   : > { %v10718_v50 = vpop.permute.xlu0 %10717 }
0x2eed   : > { %10940 = vpow2.f32 %v6869_v40  ;;  %v10720_v33 = vunpack.i.h.bf16 %v10718_v50  ;;  %v10719_v25 = vunpack.i.l.bf16 %v10718_v50  ;;  %v10411_v40 = vpack.c.bf16 %v7138_v21, %v7137_v61  ;;  %v7140_v50 = vld [vmem:[#allocation2 + $0x320] sm:$0xff] }
0x2eee   : > { %10942 = vpow2.f32 %v6867_v62 }
0x2eef   : > { %v10396_v23 = vpack.c.bf16 %v10720_v33, %v10719_v25  ;;  %v10414_v33 = vpack.c.bf16 %v7140_v50, %v7139_v11  ;;  %v7218_v25 = vld [vmem:[#allocation2 + $0x338] sm:$0xff] }
0x2ef1   : > { %10397 = vmatpush3.bf16.msra.mxu0 %v10396_v23 }
0x2ef2   : > { %10398 = vmatprep.subr.bf16.mxu0 %v11067_v0 }
0x2ef5   : > { %10400 = vmatpush3.bf16.msra.mxu0 %v10399_v43 }
0x2ef6   : > { %10401 = vmatprep.subr.bf16.mxu0 %v11067_v0 }
0x2ef7   : > { %v10941_v28 = vpop.eup %10940 }
0x2ef8   : > { %v6874_v36 = vsel %vm1382_vm9, %v10941_v28, 0.0  ;;  %v10943_v18 = vpop.eup %10942 }
0x2ef9   : > { %6875 = vadd.xlane.f32.xlu0 %v6874_v36  ;;  %v6871_v39 = vsel %vm1382_vm9, %v10943_v18, 0.0 }
0x2f0f   : > { %10727 = vrot.lane.b32.xlu0 %v10726_v41, %s11074_s30 }
0x2f2e   : > { %6872 = vadd.xlane.f32.xlu0 %v6871_v39 }
0x2f86   : > { %v6876_v14 = vpop.xlane.xlu0 %6875 }
0x2f87   : > { %10944 = vrcp.f32 %v6876_v14 }
0x2f8a   : > { %v10728_v49 = vpop.permute.xlu0 %10727 }
0x2f8b   : > { %v10730_v53 = vunpack.i.h.bf16 %v10728_v49  ;;  %v10729_v27 = vunpack.i.l.bf16 %v10728_v49  ;;  %v7219_v49 = vld [vmem:[#allocation2 + $0x340] sm:$0xff] }
0x2f8d   : > { %v10402_v34 = vpack.c.bf16 %v10730_v53, %v10729_v27  ;;  %v7220_v53 = vld [vmem:[#allocation2 + $0x348] sm:$0xff] }
0x2f8e   : > { %v10420_v27 = vpack.c.bf16 %v7220_v53, %v7219_v49 }
0x2f8f   : > { %10403 = vmatpush3.bf16.msra.mxu0 %v10402_v34  ;;  %v10428_v34 = vpack.c.bf16 %v7375_v48, %v7374_v2 }
0x2f90   : > { %10404 = vmatprep.subr.bf16.mxu0 %v11067_v0 }
0x2f91   : > { %v10945_v7 = vpop.eup %10944 }
0x2f92   : > { %v6880_v52 = vmul.f32 %v10945_v7, %v10941_v28  ;;  %v7113_v28 = vld [vmem:[#allocation2 + $0x300] sm:$0x3]  ;;  %v7296_v7 = vld [vmem:[#allocation2 + $0x358] sm:$0xff] }
0x2f93   : > { %10406 = vmatpush3.bf16.msra.mxu0 %v10405_v15  ;;  %v7130_v36 = vrot.slane %v7113_v28, %v11346_v58  ;;  %v7297_v15 = vld [vmem:[#allocation2 + $0x360] sm:$0xff] }
0x2f94   : > { %10410 = vmatprep.subr.bf16.mxu0 %v11067_v0 }
0x2f96   : > { %9903 = vmatmul.mubr.msk.f32.vlgmr.msra.gmra.mrb[108].mxu0 %vm1405_vm10, %v6880_v52  ;;  %v10423_v52 = vpack.c.bf16 %v7297_v15, %v7296_v7 }
0x2f97   : > { %9920 = vmatprep.mubr.msk.f32.mxu0 %vm11068_vm0, %v11069_v1  ;;  %10412 = vmatpush3.bf16.msra.mxu0 %v10411_v40 }
0x2f98   : > { %10413 = vmatprep.subr.bf16.mxu0 %v11067_v0 }
0x2f9b   : > { %10415 = vmatpush3.bf16.msra.mxu0 %v10414_v33 }
0x2f9c   : > { %10422 = vmatprep.subr.bf16.mxu0 %v11067_v0 }
0x2fbb   : > { %v6873_v55 = vpop.xlane.xlu0 %6872 }
0x2fbc   : > { %10946 = vrcp.f32 %v6873_v55 }
0x2fc6   : > { %v10947_v29 = vpop.eup %10946 }
0x2fc7   : > { %v6879_v8 = vmul.f32 %v10947_v29, %v10943_v18  ;;  %v7135_v18 = vrot.slane %v7113_v28, %v11349_v60  ;;  %v7141_v60 = vld [vmem:[#allocation2 + $0x328] sm:$0x1]  ;;  %v7376_v29 = vld [vmem:[#allocation2 + $0x390] sm:$0xff] }
0x2fc9   : > { %9884 = vmatmul.mubr.msk.f32.vlgmr.msra.gmra.mrb[108].mxu1 %vm1405_vm10, %v6879_v8  ;;  %v7377_v8 = vld [vmem:[#allocation2 + $0x398] sm:$0xff] }
0x2fca   : > { %9909 = vmatprep.mubr.msk.f32.mxu1 %vm11068_vm0, %v11069_v1  ;;  %10409 = vmatpush3.bf16.msra.mxu1 %v10408_v6  ;;  %v10432_v6 = vpack.c.bf16 %v7377_v8, %v7376_v29  ;;  %v7880_v29 = vld [vmem:[#allocation2 + $0x3b8] sm:$0xff]  ;;  %v7881_v8 = vld [vmem:[#allocation2 + $0x3c0] sm:$0xff] }
0x2fcb   : > { %10416 = vmatprep.subr.bf16.mxu1 %v11067_v0 }
0x3069   : > { %v7023_v57 = vpop.f32.mrb[108].mxu0 }
0x306a   : > { %7028 = vrot.lane.b32.xlu1 %v7023_v57, %s11075_s5  ;;  %v9904_v54 = vpop.f32.mrb[109].mxu0  ;;  %v7489_v57 = vld [vmem:[#allocation2 + $0x3e8] sm:$0xff] }
0x309c   : > { %v6950_v63 = vpop.f32.mrb[108].mxu1 }
0x309d   : > { %v9885_v42 = vpop.f32.mrb[109].mxu1 }
0x30dc   : > { %v7029_v41 = vpop.permute.xlu1 %7028 }
0x30dd   : > { %v7031_v9 = vsel %vm1203_vm7, %v6950_v63, %v7029_v41 }
0x30de   : > { %9910 = vmatmul.mubr.msk.f32.vlgmr.msra.gmra.mrb[110].mxu1 %vm315_vm2, %v7031_v9  ;;  %v8592_v9 = vld [vmem:[#allocation2 + $0x3a0] ss:$0 sm:$0xff] }
0x30df   : > { %9931 = vmatprep.mubr.msk.f32.mxu1 %vm11068_vm0, %v11069_v1 }
0x31b1   : > { %v7108_v45 = vpop.f32.mrb[110].mxu1 }
0x31b2   : > { %v7109_v16 = vadd.f32 %v8587_v30, %v7108_v45  ;;  %v9911_v59 = vpop.f32.mrb[111].mxu1 }
0x31b4   : > { %v7112_v44 = vadd.f32 %v7109_v16, %v12229_v20  ;;  %v7217_v20 = vld [vmem:[#allocation2 + $0x330] sm:$0xff] }
0x31b5   : > { %v10417_v12 = vpack.c.bf16 %v7218_v25, %v7217_v20 }
0x31b6   : > { %v7114_v32 = vsel %vm735_vm6, %v7112_v44, 0.0 }
0x31b7   : > { %7115 = vadd.xlane.f32.xlu1 %v7114_v32  ;;  %10418 = vmatpush3.bf16.msra.mxu1 %v10417_v12 }
0x31b8   : > { %10419 = vmatprep.subr.bf16.mxu1 %v11067_v0 }
0x31bb   : > { %10421 = vmatpush3.bf16.msra.mxu1 %v10420_v27 }
0x31bc   : > { %10429 = vmatprep.subr.bf16.mxu1 %v10428_v34 }
0x3244   : > { %v7116_v5 = vpop.xlane.xlu1 %7115 }
0x3245   : > { %v7117_v22 = vmul.f32 0.03125, %v7116_v5 }
0x3247   : > { %v7118_v19 = vsub.f32 %v7112_v44, %v7117_v22 }
0x3249   : > { %v7119_v38 = vmul.f32 %v7118_v19, %v7118_v19 }
0x324b   : > { %v7120_v3 = vsel %vm735_vm6, %v7119_v38, 0.0 }
0x324c   : > { %7121 = vadd.xlane.f32.xlu0 %v7120_v3 }
0x32d9   : > { %v7122_v24 = vpop.xlane.xlu0 %7121 }
0x32da   : > { %v7123_v23 = vmul.f32 0.03125, %v7122_v24 }
0x32dc   : > { %v7124_v43 = vadd.f32 1e-05, %v7123_v23 }
0x32de   : > { %10948 = vrsqrt.f32 %v7124_v43 }
0x32e8   : > { %v10949_v56 = vpop.eup %10948 }
0x32e9   : > { %v7126_v62 = vmul.f32 %v10949_v56, %v7118_v19 }
0x32eb   : > { %v7131_v39 = vmul.f32 %v7130_v36, %v7126_v62 }
0x32ed   : > { %v7136_v14 = vadd.f32 %v7135_v18, %v7131_v39 }
0x32ef   : > { %v7143_v4 = vrot.slane %v7136_v14, 1 }
0x32f1   : > { %9921 = vmatmul.mubr.msk.f32.vlgmr.msra.gmra.mrb[110].mxu0 %vm236_vm1, %v7143_v4 }
0x32f2   : > { %9942 = vmatprep.mubr.msk.f32.mxu0 %vm11068_vm0, %v11069_v1  ;;  %10424 = vmatpush3.bf16.msra.mxu0 %v10423_v52 }
0x32f3   : > { %10425 = vmatprep.subr.bf16.mxu0 %v11067_v0  ;;  %v7298_v0 = vld [vmem:[#allocation2 + $0x368] sm:$0xff] }
0x33c4   : > { %v7212_v55 = vpop.f32.mrb[110].mxu0 }
0x33c5   : > { %v7213_v35 = vadd.f32 %v7212_v55, %v7141_v60  ;;  %v9922_v1 = vpop.f32.mrb[111].mxu0 }
0x33c6   : > { %v10452_v1 = vpack.c.bf16 %v7881_v8, %v7880_v29 }
0x33c7   : > { %v7216_v26 = vmax.f32 %v7213_v35, 0.0  ;;  %v7882_v35 = vld [vmem:[#allocation2 + $0x3c8] sm:$0xff] }
0x33c9   : > { %9932 = vmatmul.mubr.msk.f32.vlgmr.msra.gmra.mrb[112].mxu1 %vm236_vm1, %v7216_v26  ;;  %v7883_v26 = vld [vmem:[#allocation2 + $0x3d0] sm:$0xff] }
0x33ca   : > { %10431 = vmatpush3.bf16.msra.mxu1 %v10428_v34  ;;  %9953 = vmatprep.mubr.msk.f32.mxu1 %vm236_vm1, %v12563_v46  ;;  %v7299_v46 = vld [vmem:[#allocation2 + $0x370] sm:$0xff] }
0x33cb   : > { %10433 = vmatprep.subr.bf16.mxu1 %v10432_v6 }
0x33ce   : > { %10435 = vmatpush3.bf16.msra.mxu1 %v10432_v6  ;;  %v10456_v6 = vpack.c.bf16 %v7883_v26, %v7882_v35 }
0x33d1   : > { %9954 = vmatmul.mubr.msk.f32.vlgmr.msra.gmra.mrb[114].mxu1 %vm236_vm1, %v12582_v47  ;;  %v10426_v47 = vpack.c.bf16 %v7299_v46, %v7298_v0 }
0x33d2   : > { %9956 = vmatprep.mubr.msk.f32.mxu1 %vm236_vm1, %v12586_v37  ;;  %v7488_v37 = vld [vmem:[#allocation2 + $0x3e0] sm:$0xff] }
0x33d3   : > { %10427 = vmatpush3.bf16.msra.mxu0 %v10426_v47  ;;  %v10436_v54 = vpack.c.bf16 %v7489_v57, %v7488_v37 }
0x33d5   : > { %9957 = vmatmul.mubr.msk.f32.gmra.mrb[116].mxu1 %vm236_vm1, %v12595_v17  ;;  %10437 = vmatprep.subr.bf16.mxu0 %v10436_v54  ;;  %v7490_v17 = vld [vmem:[#allocation2 + $0x3f0] sm:$0xff] }
0x33d6   : > { %9959 = vmatprep.mubr.msk.f32.mxu1 %vm236_vm1, %v12605_v13  ;;  %10445 = vmatprep.subr.bf16.mxu1 %v10436_v54  ;;  %v7491_v13 = vld [vmem:[#allocation2 + $0x3f8] sm:$0xff] }
0x33d7   : > { %10447 = vmatpush3.bf16.msra.mxu1 %v10436_v54  ;;  %v10440_v63 = vpack.c.bf16 %v7491_v13, %v7490_v17 }
0x33d9   : > { %9960 = vmatmul.mubr.msk.f32.gmra.mrb[118].mxu1 %vm236_vm1, %v12615_v10  ;;  %10449 = vmatprep.subr.bf16.mxu1 %v10440_v63  ;;  %v7221_v10 = vld [vmem:[#allocation2 + $0x350] sm:$0x1] }
0x33da   : > { %9962 = vmatprep.mubr.msk.f32.mxu1 %vm236_vm1, %v12623_v31 }
0x33db   : > { %10451 = vmatpush3.bf16.msra.mxu1 %v10440_v63 }
0x33dd   : > { %9963 = vmatmul.mubr.msk.f32.gmra.mrb[120].mxu1 %vm236_vm1, %v12633_v51 }
0x349c   : > { %v7291_v31 = vpop.f32.mrb[112].mxu1 }
0x349d   : > { %v7292_v42 = vadd.f32 %v7291_v31, %v7221_v10  ;;  %v9933_v41 = vpop.f32.mrb[113].mxu1 }
0x349f   : > { %v7295_v51 = vmax.f32 %v7292_v42, 0.0 }
0x34a1   : > { %9943 = vmatmul.mubr.msk.f32.vlgmr.msra.gmra.mrb[112].mxu0 %vm236_vm1, %v7295_v51 }
0x34a2   : > { %10439 = vmatpush3.bf16.msra.mxu0 %v10436_v54 }
0x34a3   : > { %10441 = vmatprep.subr.bf16.mxu0 %v10440_v63 }
0x34a4   : > { %v9955_v30 = vpop.f32.mrb[114].mxu1 }
0x34a5   : > { %v7449_v45 = vpop.f32.mrb[115].mxu1  ;;  %v7455_v59 = vadd.f32 %v9955_v30, %v8592_v9 }
0x34a6   : > { %v7450_v16 = vadd.f32 %v8592_v9, %v7449_v45  ;;  %10443 = vmatpush3.bf16.msra.mxu0 %v10440_v63 }
0x34a7   : > { %10453 = vmatprep.subr.bf16.mxu0 %v10452_v1 }
0x34a8   : > { %v9958_v44 = vpop.f32.mrb[116].mxu1  ;;  %9973 = vmatprep.mubr.msk.f32.mxu0 %vm236_vm1, %v7450_v16 }
0x34a9   : > { %v7459_v32 = vpop.f32.mrb[117].mxu1  ;;  %9974 = vmatmul.mubr.msk.f32.vlgmr.msra.gmra.mrb[114].mxu0 %vm236_vm1, %v7455_v59  ;;  %v7465_v22 = vadd.f32 %v9958_v44, %v8592_v9 }
0x34aa   : > { %v7460_v5 = vadd.f32 %v8592_v9, %v7459_v32  ;;  %10455 = vmatpush3.bf16.msra.mxu0 %v10452_v1  ;;  %v8618_v32 = vld [vmem:[#allocation2 + $0x3b0] ss:$0 sm:$0xff] }
0x34ab   : > { %10457 = vmatprep.subr.bf16.mxu0 %v10456_v6 }
0x34ac   : > { %v9961_v19 = vpop.f32.mrb[118].mxu1  ;;  %9976 = vmatprep.mubr.msk.f32.mxu0 %vm236_vm1, %v7460_v5 }
0x34ad   : > { %v7469_v38 = vpop.f32.mrb[119].mxu1  ;;  %9977 = vmatmul.mubr.msk.f32.gmra.mrb[116].mxu0 %vm236_vm1, %v7465_v22  ;;  %v7475_v61 = vadd.f32 %v9961_v19, %v8592_v9 }
0x34ae   : > { %v7470_v3 = vadd.f32 %v8592_v9, %v7469_v38  ;;  %10459 = vmatpush3.bf16.msra.mxu0 %v10456_v6 }
0x34b0   : > { %v9964_v21 = vpop.f32.mrb[120].mxu1  ;;  %9979 = vmatprep.mubr.msk.f32.mxu0 %vm236_vm1, %v7470_v3 }
0x34b1   : > { %v7479_v40 = vpop.f32.mrb[121].mxu1  ;;  %9980 = vmatmul.mubr.msk.f32.gmra.mrb[118].mxu0 %vm236_vm1, %v7475_v61  ;;  %v7485_v50 = vadd.f32 %v9964_v21, %v8592_v9 }
0x34b2   : > { %v7480_v11 = vadd.f32 %v8592_v9, %v7479_v40  ;;  %v8617_v9 = vld [vmem:[#allocation2 + $0x3a8] ss:$0 sm:$0xff] }
0x34b4   : > { %9982 = vmatprep.mubr.msk.f32.mxu0 %vm236_vm1, %v7480_v11 }
0x34b5   : > { %9983 = vmatmul.mubr.msk.f32.gmra.mrb[120].mxu0 %vm236_vm1, %v7485_v50 }
0x3574   : > { %v12781_v33 = vpop.f32.mrb[112].mxu0 }
0x3575   : > { %v9944_v20 = vpop.f32.mrb[113].mxu0 }
0x357c   : > { %v9975_v25 = vpop.f32.mrb[114].mxu0 }
0x357d   : > { %v12783_v12 = vsub.f32 %v7455_v59, %v9975_v25  ;;  %v7582_v24 = vpop.f32.mrb[115].mxu0 }
0x357e   : > { %v12785_v23 = vsub.f32 %v7450_v16, %v7582_v24 }
0x357f   : > { %v7630_v36 = vmul.f32 %v12783_v12, %v12783_v12 }
0x3580   : > { %v7629_v43 = vmul.f32 %v12785_v23, %v12785_v23  ;;  %v9978_v28 = vpop.f32.mrb[116].mxu0 }
0x3581   : > { %v12791_v56 = vsub.f32 %v7465_v22, %v9978_v28  ;;  %v7592_v62 = vpop.f32.mrb[117].mxu0 }
0x3582   : > { %v12793_v18 = vsub.f32 %v7460_v5, %v7592_v62  ;;  %9993 = vmatprep.mubr.msk.f32.mxu1 %vm236_vm1, %v7629_v43 }
0x3583   : > { %9994 = vmatmul.mubr.msk.f32.vlgmr.msra.gmra.mrb[122].mxu1 %vm236_vm1, %v7630_v36  ;;  %v7632_v4 = vmul.f32 %v12791_v56, %v12791_v56 }
0x3584   : > { %v7631_v39 = vmul.f32 %v12793_v18, %v12793_v18  ;;  %v9981_v14 = vpop.f32.mrb[118].mxu0 }
0x3585   : > { %v12801_v49 = vsub.f32 %v7475_v61, %v9981_v14  ;;  %v7602_v53 = vpop.f32.mrb[119].mxu0 }
0x3586   : > { %v12803_v27 = vsub.f32 %v7470_v3, %v7602_v53  ;;  %9996 = vmatprep.mubr.msk.f32.mxu1 %vm236_vm1, %v7631_v39 }
0x3587   : > { %9997 = vmatmul.mubr.msk.f32.gmra.mrb[124].mxu1 %vm236_vm1, %v7632_v4  ;;  %v7634_v34 = vmul.f32 %v12801_v49, %v12801_v49 }
0x3588   : > { %v7633_v2 = vmul.f32 %v12803_v27, %v12803_v27  ;;  %v9984_v48 = vpop.f32.mrb[120].mxu0 }
0x3589   : > { %v12811_v7 = vsub.f32 %v7485_v50, %v9984_v48  ;;  %v7612_v15 = vpop.f32.mrb[121].mxu0 }
0x358a   : > { %v12813_v52 = vsub.f32 %v7480_v11, %v7612_v15  ;;  %9999 = vmatprep.mubr.msk.f32.mxu1 %vm236_vm1, %v7633_v2 }
0x358b   : > { %10000 = vmatmul.mubr.msk.f32.gmra.mrb[126].mxu1 %vm236_vm1, %v7634_v34  ;;  %v7636_v55 = vmul.f32 %v12811_v7, %v12811_v7 }
0x358c   : > { %v7635_v60 = vmul.f32 %v12813_v52, %v12813_v52 }
0x358e   : > { %10002 = vmatprep.mubr.msk.f32.mxu1 %vm236_vm1, %v7635_v60 }
0x358f   : > { %10003 = vmatmul.mubr.msk.f32.gmra.mrb[128].mxu1 %vm236_vm1, %v7636_v55 }
0x3656   : > { %v9995_v0 = vpop.f32.mrb[122].mxu1 }
0x3657   : > { %v7733_v46 = vadd.f32 1e-06, %v9995_v0  ;;  %v7727_v47 = vpop.f32.mrb[123].mxu1 }
0x3658   : > { %v7728_v37 = vadd.f32 1e-06, %v7727_v47 }
0x3659   : > { %10950 = vrsqrt.f32 %v7733_v46 }
0x365a   : > { %10952 = vrsqrt.f32 %v7728_v37  ;;  %v9998_v57 = vpop.f32.mrb[124].mxu1 }
0x365b   : > { %v7743_v54 = vadd.f32 1e-06, %v9998_v57  ;;  %v7737_v17 = vpop.f32.mrb[125].mxu1 }
0x365c   : > { %v7738_v13 = vadd.f32 1e-06, %v7737_v17 }
0x365d   : > { %10954 = vrsqrt.f32 %v7743_v54 }
0x365e   : > { %10956 = vrsqrt.f32 %v7738_v13  ;;  %v10001_v63 = vpop.f32.mrb[126].mxu1 }
0x365f   : > { %v7753_v10 = vadd.f32 1e-06, %v10001_v63  ;;  %v7747_v31 = vpop.f32.mrb[127].mxu1 }
0x3660   : > { %v7748_v42 = vadd.f32 1e-06, %v7747_v31 }
0x3661   : > { %10958 = vrsqrt.f32 %v7753_v10 }
0x3662   : > { %10960 = vrsqrt.f32 %v7748_v42  ;;  %v10004_v41 = vpop.f32.mrb[128].mxu1 }
0x3663   : > { %v10951_v51 = vpop.eup %10950  ;;  %v7763_v30 = vadd.f32 1e-06, %v10004_v41  ;;  %v7757_v45 = vpop.f32.mrb[129].mxu1 }
0x3664   : > { %v10953_v16 = vpop.eup %10952  ;;  %v7775_v59 = vmul.f32 %v10951_v51, %v12783_v12  ;;  %v7758_v44 = vadd.f32 1e-06, %v7757_v45 }
0x3665   : > { %v7774_v5 = vmul.f32 %v10953_v16, %v12785_v23  ;;  %10962 = vrsqrt.f32 %v7763_v30 }
0x3666   : > { %v7788_v22 = vmul.f32 %v8617_v9, %v7775_v59  ;;  %10964 = vrsqrt.f32 %v7758_v44 }
0x3667   : > { %v10955_v19 = vpop.eup %10954  ;;  %v7787_v38 = vmul.f32 %v8617_v9, %v7774_v5 }
0x3668   : > { %v10957_v3 = vpop.eup %10956  ;;  %v12825_v61 = vadd.f32 %v8618_v32, %v7788_v22  ;;  %v7777_v21 = vmul.f32 %v10955_v19, %v12791_v56 }
0x3669   : > { %v7776_v40 = vmul.f32 %v10957_v3, %v12793_v18  ;;  %v12829_v11 = vadd.f32 %v8618_v32, %v7787_v38 }
0x366a   : > { %v7809_v50 = vmul.f32 %v12825_v61, %v12825_v61  ;;  %v7790_v20 = vmul.f32 %v8617_v9, %v7777_v21 }
0x366b   : > { %v10959_v25 = vpop.eup %10958  ;;  %v7789_v12 = vmul.f32 %v8617_v9, %v7776_v40  ;;  %v7808_v24 = vmul.f32 %v12829_v11, %v12829_v11 }
0x366c   : > { %v10961_v23 = vpop.eup %10960  ;;  %v7817_v43 = vmul.f32 %v7809_v50, %v12825_v61  ;;  %v7779_v28 = vmul.f32 %v10959_v25, %v12801_v49  ;;  %v12837_v36 = vadd.f32 %v8618_v32, %v7790_v20 }
0x366d   : > { %v7778_v56 = vmul.f32 %v10961_v23, %v12803_v27  ;;  %v7816_v62 = vmul.f32 %v7808_v24, %v12829_v11  ;;  %v12841_v18 = vadd.f32 %v8618_v32, %v7789_v12 }
0x366e   : > { %v7825_v39 = vmul.f32 0.044715, %v7817_v43  ;;  %v7792_v14 = vmul.f32 %v8617_v9, %v7779_v28  ;;  %v7811_v4 = vmul.f32 %v12837_v36, %v12837_v36 }
0x366f   : > { %v10963_v53 = vpop.eup %10962  ;;  %v7791_v2 = vmul.f32 %v8617_v9, %v7778_v56  ;;  %v7824_v48 = vmul.f32 0.044715, %v7816_v62  ;;  %v7810_v34 = vmul.f32 %v12841_v18, %v12841_v18 }
0x3670   : > { %v10965_v49 = vpop.eup %10964  ;;  %v7781_v15 = vmul.f32 %v10963_v53, %v12811_v7  ;;  %v7833_v27 = vadd.f32 %v7825_v39, %v12825_v61  ;;  %v7819_v60 = vmul.f32 %v7811_v4, %v12837_v36  ;;  %v12850_v55 = vadd.f32 %v8618_v32, %v7792_v14 }
0x3671   : > { %v7780_v29 = vmul.f32 %v10965_v49, %v12813_v52  ;;  %v7832_v8 = vadd.f32 %v7824_v48, %v12829_v11  ;;  %v7818_v35 = vmul.f32 %v7810_v34, %v12841_v18  ;;  %v12855_v1 = vadd.f32 %v8618_v32, %v7791_v2 }
0x3672   : > { %v7794_v26 = vmul.f32 %v8617_v9, %v7781_v15  ;;  %v7841_v6 = vmul.f32 0.7978846, %v7833_v27  ;;  %v7827_v0 = vmul.f32 0.044715, %v7819_v60  ;;  %v7813_v7 = vmul.f32 %v12850_v55, %v12850_v55 }
0x3673   : > { %v7793_v46 = vmul.f32 %v8617_v9, %v7780_v29  ;;  %v7840_v47 = vmul.f32 0.7978846, %v7832_v8  ;;  %v7826_v37 = vmul.f32 0.044715, %v7818_v35  ;;  %v7812_v57 = vmul.f32 %v12855_v1, %v12855_v1 }
0x3674   : > { %10966 = vtanh.f32 %v7841_v6  ;;  %v7835_v52 = vadd.f32 %v7827_v0, %v12837_v36  ;;  %v7821_v54 = vmul.f32 %v7813_v7, %v12850_v55  ;;  %v12863_v17 = vadd.f32 %v8618_v32, %v7794_v26 }
0x3675   : > { %10968 = vtanh.f32 %v7840_v47  ;;  %v7834_v13 = vadd.f32 %v7826_v37, %v12841_v18  ;;  %v7820_v63 = vmul.f32 %v7812_v57, %v12855_v1  ;;  %v7806_v10 = vadd.f32 %v8618_v32, %v7793_v46  ;;  %v8102_v46 = vld [vmem:[#allocation2 + $0x400] sm:$0xff]  ;;  %v8103_v47 = vld [vmem:[#allocation2 + $0x408] sm:$0xff] }
0x3676   : > { %v7843_v31 = vmul.f32 0.7978846, %v7835_v52  ;;  %v7829_v42 = vmul.f32 0.044715, %v7821_v54  ;;  %v7815_v41 = vmul.f32 %v12863_v17, %v12863_v17  ;;  %v10460_v37 = vpack.c.bf16 %v8103_v47, %v8102_v46  ;;  %v8106_v52 = vld [vmem:[#allocation2 + $0x420] sm:$0xff]  ;;  %v8107_v54 = vld [vmem:[#allocation2 + $0x428] sm:$0xff] }
0x3677   : > { %v7842_v51 = vmul.f32 0.7978846, %v7834_v13  ;;  %v7828_v9 = vmul.f32 0.044715, %v7820_v63  ;;  %v7814_v30 = vmul.f32 %v7806_v10, %v7806_v10  ;;  %v10468_v13 = vpack.c.bf16 %v8107_v54, %v8106_v52  ;;  %v8109_v63 = vld [vmem:[#allocation2 + $0x438] sm:$0xff] }
0x3678   : > { %10970 = vtanh.f32 %v7843_v31  ;;  %v7837_v45 = vadd.f32 %v7829_v42, %v12850_v55  ;;  %v7823_v16 = vmul.f32 %v7815_v41, %v12863_v17  ;;  %10461 = vmatprep.subr.bf16.mxu1 %v10460_v37  ;;  %v8619_v31 = vld [vmem:[#allocation2 + $0x3d8] ss:$0 sm:$0xff] }
0x3679   : > { %10972 = vtanh.f32 %v7842_v51  ;;  %v7836_v59 = vadd.f32 %v7828_v9, %v12855_v1  ;;  %v7822_v44 = vmul.f32 %v7814_v30, %v7806_v10  ;;  %10463 = vmatpush3.bf16.msra.mxu1 %v10460_v37 }
0x367a   : > { %v7845_v5 = vmul.f32 0.7978846, %v7837_v45  ;;  %v7831_v22 = vmul.f32 0.044715, %v7823_v16 }
0x367b   : > { %v7844_v32 = vmul.f32 0.7978846, %v7836_v59  ;;  %v7830_v19 = vmul.f32 0.044715, %v7822_v44 }
0x367c   : > { %10974 = vtanh.f32 %v7845_v5  ;;  %v7839_v38 = vadd.f32 %v7831_v22, %v12863_v17 }
0x367d   : > { %10976 = vtanh.f32 %v7844_v32  ;;  %v7838_v3 = vadd.f32 %v7830_v19, %v7806_v10 }
0x367e   : > { %v10967_v21 = vpop.eup %10966  ;;  %v7847_v40 = vmul.f32 0.7978846, %v7839_v38 }
0x367f   : > { %v10969_v50 = vpop.eup %10968  ;;  %v7857_v20 = vadd.f32 1.0, %v10967_v21  ;;  %v7846_v25 = vmul.f32 0.7978846, %v7838_v3 }
0x3680   : > { %v7856_v12 = vadd.f32 1.0, %v10969_v50  ;;  %10978 = vtanh.f32 %v7847_v40 }
0x3681   : > { %v7865_v24 = vmul.f32 0.5, %v7857_v20  ;;  %10980 = vtanh.f32 %v7846_v25 }
0x3682   : > { %v10971_v23 = vpop.eup %10970  ;;  %v7864_v43 = vmul.f32 0.5, %v7856_v12 }
0x3683   : > { %v10973_v28 = vpop.eup %10972  ;;  %v7859_v56 = vadd.f32 1.0, %v10971_v23  ;;  %v7873_v14 = vmul.f32 %v7865_v24, %v12825_v61 }
0x3684   : > { %v7872_v62 = vmul.f32 %v7864_v43, %v12829_v11  ;;  %v7858_v39 = vadd.f32 1.0, %v10973_v28 }
0x3685   : > { %v7867_v4 = vmul.f32 0.5, %v7859_v56 }
0x3686   : > { %v10975_v53 = vpop.eup %10974  ;;  %10013 = vmatprep.mubr.msk.f32.mxu0 %vm236_vm1, %v7872_v62  ;;  %v7866_v2 = vmul.f32 0.5, %v7858_v39 }
0x3687   : > { %v10977_v48 = vpop.eup %10976  ;;  %10014 = vmatmul.mubr.msk.f32.vlgmr.msra.gmra.mrb[122].mxu0 %vm236_vm1, %v7873_v14  ;;  %v7861_v34 = vadd.f32 1.0, %v10975_v53  ;;  %v7875_v27 = vmul.f32 %v7867_v4, %v12837_v36 }
0x3688   : > { %v7874_v49 = vmul.f32 %v7866_v2, %v12841_v18  ;;  %v7860_v15 = vadd.f32 1.0, %v10977_v48 }
0x3689   : > { %v7869_v60 = vmul.f32 0.5, %v7861_v34 }
0x368a   : > { %v10979_v29 = vpop.eup %10978  ;;  %10016 = vmatprep.mubr.msk.f32.mxu0 %vm236_vm1, %v7874_v49  ;;  %v7868_v11 = vmul.f32 0.5, %v7860_v15 }
0x368b   : > { %v10981_v61 = vpop.eup %10980  ;;  %10017 = vmatmul.mubr.msk.f32.gmra.mrb[124].mxu0 %vm236_vm1, %v7875_v27  ;;  %v7863_v8 = vadd.f32 1.0, %v10979_v29  ;;  %v7877_v6 = vmul.f32 %v7869_v60, %v12850_v55  ;;  %v8105_v55 = vld [vmem:[#allocation2 + $0x418] sm:$0xff] }
0x368c   : > { %v7876_v35 = vmul.f32 %v7868_v11, %v12855_v1  ;;  %v7862_v26 = vadd.f32 1.0, %v10981_v61  ;;  %v8104_v1 = vld [vmem:[#allocation2 + $0x410] sm:$0xff] }
0x368d   : > { %v7871_v0 = vmul.f32 0.5, %v7863_v8  ;;  %v10464_v57 = vpack.c.bf16 %v8105_v55, %v8104_v1  ;;  %v7300_v1 = vld [vmem:[#allocation2 + $0x378] sm:$0x1] }
0x368e   : > { %10019 = vmatprep.mubr.msk.f32.mxu0 %vm236_vm1, %v7876_v35  ;;  %v7870_v18 = vmul.f32 0.5, %v7862_v26 }
0x368f   : > { %10020 = vmatmul.mubr.msk.f32.gmra.mrb[126].mxu0 %vm236_vm1, %v7877_v6  ;;  %v7879_v7 = vmul.f32 %v7871_v0, %v12863_v17  ;;  %10465 = vmatprep.subr.bf16.mxu1 %v10464_v57  ;;  %v8108_v17 = vld [vmem:[#allocation2 + $0x430] sm:$0xff] }
0x3690   : > { %v7878_v36 = vmul.f32 %v7870_v18, %v7806_v10  ;;  %10467 = vmatpush3.bf16.msra.mxu1 %v10464_v57  ;;  %v10472_v10 = vpack.c.bf16 %v8109_v63, %v8108_v17  ;;  %v7371_v17 = vadd.f32 %v12781_v33, %v7300_v1 }
0x3691   : > { %10469 = vmatprep.subr.bf16.mxu1 %v10468_v13 }
0x3692   : > { %10022 = vmatprep.mubr.msk.f32.mxu0 %vm236_vm1, %v7878_v36 }
0x3693   : > { %10023 = vmatmul.mubr.msk.f32.gmra.mrb[128].mxu0 %vm236_vm1, %v7879_v7 }
0x3694   : > { %10471 = vmatpush3.bf16.msra.mxu1 %v10468_v13 }
0x3695   : > { %10473 = vmatprep.subr.bf16.mxu1 %v10472_v10 }
0x3698   : > { %10475 = vmatpush3.bf16.msra.mxu1 %v10472_v10 }
0x375a   : > { %v10015_v42 = vpop.f32.mrb[122].mxu0 }
0x375b   : > { %v12888_v41 = vadd.f32 %v10015_v42, %v8619_v31  ;;  %v7979_v51 = vpop.f32.mrb[123].mxu0 }
0x375c   : > { %v12890_v9 = vadd.f32 %v8619_v31, %v7979_v51 }
0x375d   : > { %v8019_v30 = vmul.f32 %v12888_v41, %v12888_v41 }
0x375e   : > { %v8018_v45 = vmul.f32 %v12890_v9, %v12890_v9  ;;  %v10018_v16 = vpop.f32.mrb[124].mxu0 }
0x375f   : > { %v8027_v59 = vmul.f32 %v8019_v30, %v12888_v41  ;;  %v12897_v44 = vadd.f32 %v10018_v16, %v8619_v31  ;;  %v7989_v5 = vpop.f32.mrb[125].mxu0  ;;  %v8093_v16 = vrot.slane %v7371_v17, %v11346_v58 }
0x3760   : > { %v8026_v22 = vmul.f32 %v8018_v45, %v12890_v9  ;;  %v12900_v32 = vadd.f32 %v8619_v31, %v7989_v5 }
0x3761   : > { %v8035_v19 = vmul.f32 0.044715, %v8027_v59  ;;  %v8021_v38 = vmul.f32 %v12897_v44, %v12897_v44 }
0x3762   : > { %v8034_v3 = vmul.f32 0.044715, %v8026_v22  ;;  %v8020_v21 = vmul.f32 %v12900_v32, %v12900_v32  ;;  %v10021_v40 = vpop.f32.mrb[126].mxu0 }
0x3763   : > { %v8043_v50 = vadd.f32 %v8035_v19, %v12888_v41  ;;  %v8029_v20 = vmul.f32 %v8021_v38, %v12897_v44  ;;  %v12908_v25 = vadd.f32 %v10021_v40, %v8619_v31  ;;  %v7999_v12 = vpop.f32.mrb[127].mxu0 }
0x3764   : > { %v8042_v24 = vadd.f32 %v8034_v3, %v12890_v9  ;;  %v8028_v23 = vmul.f32 %v8020_v21, %v12900_v32  ;;  %v12912_v43 = vadd.f32 %v8619_v31, %v7999_v12 }
0x3765   : > { %v8051_v28 = vmul.f32 0.7978846, %v8043_v50  ;;  %v8037_v56 = vmul.f32 0.044715, %v8029_v20  ;;  %v8023_v62 = vmul.f32 %v12908_v25, %v12908_v25 }
0x3766   : > { %v8050_v39 = vmul.f32 0.7978846, %v8042_v24  ;;  %v8036_v14 = vmul.f32 0.044715, %v8028_v23  ;;  %v8022_v4 = vmul.f32 %v12912_v43, %v12912_v43  ;;  %v10024_v53 = vpop.f32.mrb[128].mxu0 }
0x3767   : > { %10982 = vtanh.f32 %v8051_v28  ;;  %v8045_v2 = vadd.f32 %v8037_v56, %v12897_v44  ;;  %v8031_v48 = vmul.f32 %v8023_v62, %v12908_v25  ;;  %v12920_v34 = vadd.f32 %v10024_v53, %v8619_v31  ;;  %v8009_v49 = vpop.f32.mrb[129].mxu0 }
0x3768   : > { %10984 = vtanh.f32 %v8050_v39  ;;  %v8044_v15 = vadd.f32 %v8036_v14, %v12900_v32  ;;  %v8030_v27 = vmul.f32 %v8022_v4, %v12912_v43  ;;  %v12924_v60 = vadd.f32 %v8619_v31, %v8009_v49 }
0x3769   : > { %v8053_v29 = vmul.f32 0.7978846, %v8045_v2  ;;  %v8039_v11 = vmul.f32 0.044715, %v8031_v48  ;;  %v8025_v61 = vmul.f32 %v12920_v34, %v12920_v34 }
0x376a   : > { %v8052_v8 = vmul.f32 0.7978846, %v8044_v15  ;;  %v8038_v35 = vmul.f32 0.044715, %v8030_v27  ;;  %v8024_v26 = vmul.f32 %v12924_v60, %v12924_v60 }
0x376b   : > { %10986 = vtanh.f32 %v8053_v29  ;;  %v8047_v6 = vadd.f32 %v8039_v11, %v12908_v25  ;;  %v8033_v0 = vmul.f32 %v8025_v61, %v12920_v34 }
0x376c   : > { %10988 = vtanh.f32 %v8052_v8  ;;  %v8046_v18 = vadd.f32 %v8038_v35, %v12912_v43  ;;  %v8032_v36 = vmul.f32 %v8024_v26, %v12924_v60 }
0x376d   : > { %v8055_v7 = vmul.f32 0.7978846, %v8047_v6  ;;  %v8041_v46 = vmul.f32 0.044715, %v8033_v0 }
0x376e   : > { %v8054_v47 = vmul.f32 0.7978846, %v8046_v18  ;;  %v8040_v37 = vmul.f32 0.044715, %v8032_v36 }
0x376f   : > { %10990 = vtanh.f32 %v8055_v7  ;;  %v8049_v55 = vadd.f32 %v8041_v46, %v12920_v34 }
0x3770   : > { %10992 = vtanh.f32 %v8054_v47  ;;  %v8048_v57 = vadd.f32 %v8040_v37, %v12924_v60 }
0x3771   : > { %v10983_v52 = vpop.eup %10982  ;;  %v8057_v54 = vmul.f32 0.7978846, %v8049_v55 }
0x3772   : > { %v10985_v13 = vpop.eup %10984  ;;  %v8067_v63 = vadd.f32 1.0, %v10983_v52  ;;  %v8056_v10 = vmul.f32 0.7978846, %v8048_v57 }
0x3773   : > { %v8066_v31 = vadd.f32 1.0, %v10985_v13  ;;  %10994 = vtanh.f32 %v8057_v54 }
0x3774   : > { %v8075_v42 = vmul.f32 0.5, %v8067_v63  ;;  %10996 = vtanh.f32 %v8056_v10 }
0x3775   : > { %v10987_v51 = vpop.eup %10986  ;;  %v8074_v30 = vmul.f32 0.5, %v8066_v31 }
0x3776   : > { %v10989_v45 = vpop.eup %10988  ;;  %v8083_v59 = vmul.f32 %v8075_v42, %v12888_v41  ;;  %v8069_v5 = vadd.f32 1.0, %v10987_v51 }
0x3777   : > { %v8082_v22 = vmul.f32 %v8074_v30, %v12890_v9  ;;  %v8068_v19 = vadd.f32 1.0, %v10989_v45 }
0x3778   : > { %v8095_v38 = vmul.f32 %v8093_v16, %v8083_v59  ;;  %v8077_v3 = vmul.f32 0.5, %v8069_v5 }
0x3779   : > { %v10991_v33 = vpop.eup %10990  ;;  %v8076_v21 = vmul.f32 0.5, %v8068_v19  ;;  %v8094_v40 = vmul.f32 %v8093_v16, %v8082_v22 }
0x377a   : > { %v10993_v50 = vpop.eup %10992  ;;  %v8085_v20 = vmul.f32 %v8077_v3, %v12897_v44  ;;  %v8071_v12 = vadd.f32 1.0, %v10991_v33 }
0x377b   : > { %v8084_v24 = vmul.f32 %v8076_v21, %v12900_v32  ;;  %v8070_v23 = vadd.f32 1.0, %v10993_v50  ;;  %10041 = vmatprep.mubr.msk.f32.mxu1 %vm1405_vm10, %v8094_v40 }
0x377c   : > { %v8079_v58 = vmul.f32 0.5, %v8071_v12  ;;  %10042 = vmatmul.mubr.msk.f32.vlgmr.msra.gmra.mrb[130].mxu1 %vm1405_vm10, %v8095_v38  ;;  %v8097_v41 = vmul.f32 %v8093_v16, %v8085_v20 }
0x377d   : > { %v10995_v9 = vpop.eup %10994  ;;  %v8078_v28 = vmul.f32 0.5, %v8070_v23  ;;  %v8096_v56 = vmul.f32 %v8093_v16, %v8084_v24 }
0x377e   : > { %v10997_v62 = vpop.eup %10996  ;;  %v8087_v39 = vmul.f32 %v8079_v58, %v12908_v25  ;;  %v8073_v14 = vadd.f32 1.0, %v10995_v9 }
0x377f   : > { %v8086_v4 = vmul.f32 %v8078_v28, %v12912_v43  ;;  %v8072_v44 = vadd.f32 1.0, %v10997_v62  ;;  %10044 = vmatprep.mubr.msk.f32.mxu1 %vm1405_vm10, %v8096_v56 }
0x3780   : > { %v8081_v32 = vmul.f32 0.5, %v8073_v14  ;;  %10045 = vmatmul.mubr.msk.f32.gmra.mrb[132].mxu1 %vm1405_vm10, %v8097_v41  ;;  %v8099_v53 = vmul.f32 %v8093_v16, %v8087_v39 }
0x3781   : > { %v8080_v2 = vmul.f32 0.5, %v8072_v44  ;;  %v8098_v48 = vmul.f32 %v8093_v16, %v8086_v4 }
0x3782   : > { %v8089_v49 = vmul.f32 %v8081_v32, %v12920_v34 }
0x3783   : > { %v8088_v15 = vmul.f32 %v8080_v2, %v12924_v60  ;;  %10047 = vmatprep.mubr.msk.f32.mxu1 %vm1405_vm10, %v8098_v48 }
0x3784   : > { %10048 = vmatmul.mubr.msk.f32.gmra.mrb[134].mxu1 %vm1405_vm10, %v8099_v53  ;;  %v8101_v25 = vmul.f32 %v8093_v16, %v8089_v49 }
0x3785   : > { %v8100_v43 = vmul.f32 %v8093_v16, %v8088_v15 }
0x3787   : > { %10050 = vmatprep.mubr.msk.f32.mxu1 %vm1405_vm10, %v8100_v43 }
0x3788   : > { %10051 = vmatmul.mubr.msk.f32.gmra.mrb[136].mxu1 %vm1405_vm10, %v8101_v25 }
0x384f   : > { %v10043_v27 = vpop.f32.mrb[130].mxu1 }
0x3850   : > { %8240 = vst.msk [vmem:[%s209_s20 + $0x8] sm:$0xff] %vm315_vm2, %v10043_v27  ;;  %v8200_v34 = vpop.f32.mrb[131].mxu1 }
0x3851   : > { %8239 = vst.msk [vmem:[%s209_s20] sm:$0xff] %vm315_vm2, %v8200_v34 }
0x3853   : > { %v10046_v60 = vpop.f32.mrb[132].mxu1 }
0x3854   : > { %8242 = vst.msk [vmem:[%s209_s20 + $0x18] sm:$0xff] %vm315_vm2, %v10046_v60  ;;  %v8210_v29 = vpop.f32.mrb[133].mxu1 }
0x3855   : > { %8241 = vst.msk [vmem:[%s209_s20 + $0x10] sm:$0xff] %vm315_vm2, %v8210_v29 }
0x3857   : > { %v10049_v11 = vpop.f32.mrb[134].mxu1 }
0x3858   : > { %8244 = vst.msk [vmem:[%s209_s20 + $0x28] sm:$0xff] %vm315_vm2, %v10049_v11  ;;  %v8220_v61 = vpop.f32.mrb[135].mxu1 }
0x3859   : > { %8243 = vst.msk [vmem:[%s209_s20 + $0x20] sm:$0xff] %vm315_vm2, %v8220_v61 }
0x385b   : > { %v10052_v8 = vpop.f32.mrb[136].mxu1 }
0x385c   : > { %8246 = vst.msk [vmem:[%s209_s20 + $0x38] sm:$0xff] %vm315_vm2, %v10052_v8  ;;  %v8230_v35 = vpop.f32.mrb[137].mxu1 }
0x385d   : > { %8245 = vst.msk [vmem:[%s209_s20 + $0x30] sm:$0xff] %vm315_vm2, %v8230_v35 }
0x385e PF: > { %s15_s15 = sadd.s32 1, %s11062_s15  }
0x385f   : > { %p12_p3 = scmp.ge.s32.totalorder %s15_s15, 4  }
0x3861   :  { %14 = sbr.rel (!%p12_p3) target bundleno = 1 (0x1), region = 71 }
0x3868   :  { %8268 = vsyncpa [#allocation3], 1 }
0x3869   :  { %8270 = vsyncpa [#allocation3 + $0x1], 1 }

</bundles_post_ra>
